<compile_context>
chip_gen: v6e
topology: v6e:2x2x1
jax: 0.10.0
libtpu: 0.0.40
codegen_flags: <defaults>
</compile_context>

<pallas_src>
import numpy as np
import jax
import jax.numpy as jnp
from jax import lax
from jax.experimental import pallas as pl
from jax.experimental.pallas import tpu as pltpu


_PH = 8              # zero halo rows above/below (sublane-tile aligned, >= max dilation 4)
_LRELU_SLOPE = 0.2   # PyTorch source uses negative_slope=0.2


def _lrelu(v):
    return jnp.where(v >= 0, v, _LRELU_SLOPE * v)


# ---------------------------------------------------------------------------
# Fused kernel: whole RABlock, activations stay (H, W*C) lane-dense in VMEM.
# ---------------------------------------------------------------------------
def _make_rablock_kernel(H, W, C, B):
    WC = W * C

    def kernel(x_ref, w_ref, b_ref, caw1_ref, cab1_ref, caw2_ref, cab2_ref,
               pool_ref, expand_ref, o_ref, pad_ref):
        # Zero the halo scratch once per grid step.  Convs only rewrite the
        # centre rows, so the halo stays zero for every dilation <= _PH.
        pad_ref[...] = jnp.zeros_like(pad_ref)

        def conv3(act, unit, d, brow):
            """Dilated 3x3 'same' conv (+optional bias) as 3 MXU matmuls."""
            assert d <= _PH
            pad_ref[_PH:_PH + H, :] = act            # aligned full-lane store
            acc = None
            for kh in range(3):
                r0 = _PH + (kh - 1) * d              # sublane-shifted slab read
                t = jnp.dot(pad_ref[r0:r0 + H, :], w_ref[3 * unit + kh],
                            preferred_element_type=jnp.float32)
                acc = t if acc is None else acc + t
            if brow is not None:
                acc = acc + b_ref[brow:brow + 1, :]
            return acc

        for bi in range(B):
            x = x_ref[bi].astype(jnp.float32)        # (H, W*C)

            # ---- r1: Merge_Run_dual ---------------------------------------
            h = _lrelu(conv3(x, 0, 1, 0))
            out1 = _lrelu(conv3(h, 1, 2, 1))
            h = _lrelu(conv3(x, 2, 3, 2))
            out2 = _lrelu(conv3(h, 3, 4, 3))
            # 2C-in concat conv = sum of two C-in halves (concat is implicit)
            cat = conv3(out1, 4, 1, 4) + conv3(out2, 5, 1, None)
            r1 = _lrelu(cat) + x

            # ---- r2: ResidualBlock ----------------------------------------
            h = _lrelu(conv3(r1, 6, 1, 5))
            r2 = jnp.maximum(conv3(h, 7, 1, 6) + r1, 0.0)

            # ---- r3: EResidualBlock ---------------------------------------
            h = _lrelu(conv3(r2, 8, 1, 7))
            h = _lrelu(conv3(h, 9, 1, 8))
            y = jnp.dot(h, w_ref[30], preferred_element_type=jnp.float32)
            r3 = jnp.maximum(y + b_ref[9:10, :] + r2, 0.0)

            # ---- ca: CALayer (fused while r3 is VMEM resident) ------------
            colsum = jnp.sum(r3, axis=0, keepdims=True)              # (1, W*C)
            pooled = jnp.dot(colsum, pool_ref[...],
                             preferred_element_type=jnp.float32) * (1.0 / (H * W))
            y1 = _lrelu(jnp.dot(pooled, caw1_ref[...],
                                preferred_element_type=jnp.float32) + cab1_ref[...])
            y2 = jax.nn.sigmoid(jnp.dot(y1, caw2_ref[...],
                                        preferred_element_type=jnp.float32)
                                + cab2_ref[...])
            # per-channel scale tiled to (1, W*C) via a constant expander matmul
            scale = jnp.dot(y2, expand_ref[...],
                            preferred_element_type=jnp.float32)
            o_ref[bi] = (r3 * scale).astype(o_ref.dtype)             # lane-dense store

    return kernel


# ---------------------------------------------------------------------------
# Parameter packing: block-banded weight matrices + pre-tiled biases.
# ---------------------------------------------------------------------------
def _shift_matrix(W, dw):
    s = np.zeros((W, W), np.float32)
    for wo in range(W):
        wi = wo + dw
        if 0 <= wi < W:
            s[wi, wo] = 1.0
    return s


def _band_from_hwio(w_hwio, dilation, W):
    """(kh, kw, Cin, Cout) HWIO conv weight -> (kh, W*Cin, W*Cout) banded mats.

    Folds the kw taps and the W-direction 'same' zero padding into a
    block-banded matrix so a conv becomes matmuls on (H, W*C) slabs.
    """
    kh_, kw_, cin, cout = w_hwio.shape
    mats = []
    for kh in range(kh_):
        m = jnp.zeros((W * cin, W * cout), jnp.float32)
        for kw in range(kw_):
            dw = (kw - kw_ // 2) * dilation
            S = jnp.asarray(_shift_matrix(W, dw))
            m = m + jnp.kron(S, w_hwio[kh, kw].astype(jnp.float32))
        mats.append(m)
    return jnp.stack(mats, axis=0)


def pack_rablock_params(params, H, W, C):
    del H  # H padding handled in-kernel by the halo
    wc_concat = params['r1_b3_0'][0]                       # (3, 3, 2C, C)
    units = [
        (params['r1_b1_0'][0], 1), (params['r1_b1_1'][0], 2),
        (params['r1_b2_0'][0], 3), (params['r1_b2_1'][0], 4),
        (wc_concat[:, :, :C, :], 1), (wc_concat[:, :, C:, :], 1),
        (params['r2_0'][0], 1), (params['r2_1'][0], 1),
        (params['r3_0'][0], 1), (params['r3_1'][0], 1),
    ]
    for _, d in units:
        assert d <= _PH
    slabs = [_band_from_hwio(w, d, W) for (w, d) in units]  # each (3, WC, WC)
    m1x1 = _band_from_hwio(params['r3_2'][0], 1, W)         # (1, WC, WC)
    w_slab = jnp.concatenate(slabs + [m1x1], axis=0)        # (31, WC, WC)

    bias_names = ['r1_b1_0', 'r1_b1_1', 'r1_b2_0', 'r1_b2_1', 'r1_b3_0',
                  'r2_0', 'r2_1', 'r3_0', 'r3_1', 'r3_2']
    b_slab = jnp.stack([jnp.tile(params[n][1].astype(jnp.float32), W)
                        for n in bias_names], axis=0)       # (10, WC)

    caw1 = params['ca_1'][0].reshape(C, -1).astype(jnp.float32)
    cab1 = params['ca_1'][1].reshape(1, -1).astype(jnp.float32)
    caw2 = params['ca_2'][0].reshape(-1, C).astype(jnp.float32)
    cab2 = params['ca_2'][1].reshape(1, -1).astype(jnp.float32)

    eye = np.eye(C, dtype=np.float32)
    pool_mat = jnp.asarray(np.kron(np.ones((W, 1), np.float32), eye))   # (WC, C)
    expand_mat = jnp.asarray(np.kron(np.ones((1, W), np.float32), eye)) # (C, WC)

    return dict(w_slab=w_slab, b_slab=b_slab, caw1=caw1, cab1=cab1,
                caw2=caw2, cab2=cab2, pool_mat=pool_mat, expand_mat=expand_mat)


# ---------------------------------------------------------------------------
# Wrapper: one fused pallas_call, grid over the batch.
# ---------------------------------------------------------------------------
def rablock_forward(x_nhwc, packed, samples_per_step=1):
    N, H, W, C = x_nhwc.shape
    B = samples_per_step
    assert N % B == 0
    WC = W * C
    x2 = x_nhwc.reshape(N, H, WC)                     # free: C is already fastest

    w_slab, b_slab = packed['w_slab'], packed['b_slab']
    caw1, cab1 = packed['caw1'], packed['cab1']
    caw2, cab2 = packed['caw2'], packed['cab2']
    pool_m, expand_m = packed['pool_mat'], packed['expand_mat']

    def const(shape):
        return pl.BlockSpec(shape, lambda n: (0,) * len(shape))

    grid_spec = pltpu.PrefetchScalarGridSpec(
        num_scalar_prefetch=0,
        grid=(N // B,),
        in_specs=[
            pl.BlockSpec((B, H, WC), lambda n: (n, 0, 0)),
            const(w_slab.shape), const(b_slab.shape),
            const(caw1.shape), const(cab1.shape),
            const(caw2.shape), const(cab2.shape),
            const(pool_m.shape), const(expand_m.shape),
        ],
        out_specs=pl.BlockSpec((B, H, WC), lambda n: (n, 0, 0)),
        scratch_shapes=[pltpu.VMEM((H + 2 * _PH, WC), jnp.float32)],
    )
    out = pl.pallas_call(
        _make_rablock_kernel(H, W, C, B),
        out_shape=jax.ShapeDtypeStruct((N, H, WC), x_nhwc.dtype),
        grid_spec=grid_spec,
        compiler_params=pltpu.CompilerParams(
            dimension_semantics=("parallel",),
            vmem_limit_bytes=32 * 1024 * 1024),
    )(x2, w_slab, b_slab, caw1, cab1, caw2, cab2, pool_m, expand_m)
    return out.reshape(N, H, W, C)


# ---------------------------------------------------------------------------
# Pure-JAX reference (lax.conv at HIGHEST precision) for correctness checking.
# ---------------------------------------------------------------------------
def _conv_ref(x, wb, dilation=1):
    w, b = wb
    pad = dilation * (w.shape[0] // 2)
    y = lax.conv_general_dilated(
        x, w, window_strides=(1, 1), padding=[(pad, pad), (pad, pad)],
        rhs_dilation=(dilation, dilation),
        dimension_numbers=('NHWC', 'HWIO', 'NHWC'),
        precision=lax.Precision.HIGHEST)
    return y + b.reshape(1, 1, 1, -1)


def rablock_reference(x, p):
    h = _lrelu(_conv_ref(x, p['r1_b1_0'], 1))
    out1 = _lrelu(_conv_ref(h, p['r1_b1_1'], 2))
    h = _lrelu(_conv_ref(x, p['r1_b2_0'], 3))
    out2 = _lrelu(_conv_ref(h, p['r1_b2_1'], 4))
    c = jnp.concatenate([out1, out2], axis=-1)
    r1 = _lrelu(_conv_ref(c, p['r1_b3_0'], 1)) + x
    h = _lrelu(_conv_ref(r1, p['r2_0'], 1))
    r2 = jnp.maximum(_conv_ref(h, p['r2_1'], 1) + r1, 0.0)
    h = _lrelu(_conv_ref(r2, p['r3_0'], 1))
    h = _lrelu(_conv_ref(h, p['r3_1'], 1))
    r3 = jnp.maximum(_conv_ref(h, p['r3_2'], 1) + r2, 0.0)
    pooled = jnp.mean(r3, axis=(1, 2))
    (w1, b1), (w2, b2) = p['ca_1'], p['ca_2']
    C, Cr = w1.shape[2], w1.shape[3]
    y1 = _lrelu(jnp.dot(pooled, w1.reshape(C, Cr),
                        precision=lax.Precision.HIGHEST) + b1)
    y2 = jax.nn.sigmoid(jnp.dot(y1, w2.reshape(Cr, C),
                                precision=lax.Precision.HIGHEST) + b2)
    return r3 * y2[:, None, None, :]


# ---------------------------------------------------------------------------
# Deterministic parameter initialization (HWIO conv weights).
# ---------------------------------------------------------------------------
def _init_conv(key, kh, kw, cin, cout):
    k1, k2 = jax.random.split(key)
    std = 1.0 / (kh * kw * cin) ** 0.5
    w = jax.random.normal(k1, (kh, kw, cin, cout), jnp.float32) * std
    b = jax.random.normal(k2, (cout,), jnp.float32) * 0.01
    return w, b


def init_params(key, C, reduction=16):
    Cr = C // reduction
    names_shapes = [
        ('r1_b1_0', 3, C, C), ('r1_b1_1', 3, C, C),
        ('r1_b2_0', 3, C, C), ('r1_b2_1', 3, C, C),
        ('r1_b3_0', 3, 2 * C, C),
        ('r2_0', 3, C, C), ('r2_1', 3, C, C),
        ('r3_0', 3, C, C), ('r3_1', 3, C, C), ('r3_2', 1, C, C),
        ('ca_1', 1, C, Cr), ('ca_2', 1, Cr, C),
    ]
    keys = jax.random.split(key, len(names_shapes))
    return {name: _init_conv(k, ks, ks, cin, cout)
            for k, (name, ks, cin, cout) in zip(keys, names_shapes)}


# ---------------------------------------------------------------------------
if __name__ == "__main__":
    N, C, H, W = 2, 16, 16, 16            # C divisible by CALayer reduction=16
    key = jax.random.PRNGKey(0)
    kx, kp = jax.random.split(key)

    x_nchw = jax.random.normal(kx, (N, C, H, W), jnp.float32)
    params = init_params(kp, C)
    x_nhwc = jnp.transpose(x_nchw, (0, 2, 3, 1))

    packed = pack_rablock_params(params, H, W, C)   # pack once, reuse per call
    fwd = jax.jit(rablock_forward)

    out_nhwc = jax.block_until_ready(fwd(x_nhwc, packed))
    ref_nhwc = jax.block_until_ready(rablock_reference(x_nhwc, params))

    assert out_nhwc.shape == (N, H, W, C)
    max_err = float(jnp.max(jnp.abs(out_nhwc - ref_nhwc)))
    assert jnp.allclose(out_nhwc, ref_nhwc, atol=1e-3, rtol=1e-3), max_err

    print("KERNEL_OK")
</pallas_src>

<mosaic_0001>
module attributes {stable_mosaic.version = 11 : i64} {
  func.func @kernel(%arg0: i32, %arg1: memref<1x16x256xf32, #tpu.memory_space<vmem>>, %arg2: memref<31x256x256xf32, #tpu.memory_space<vmem>>, %arg3: memref<10x256xf32, #tpu.memory_space<vmem>>, %arg4: memref<16x1xf32, #tpu.memory_space<vmem>>, %arg5: memref<1x1xf32, #tpu.memory_space<vmem>>, %arg6: memref<1x16xf32, #tpu.memory_space<vmem>>, %arg7: memref<1x16xf32, #tpu.memory_space<vmem>>, %arg8: memref<256x16xf32, #tpu.memory_space<vmem>>, %arg9: memref<16x256xf32, #tpu.memory_space<vmem>>, %arg10: memref<1x16x256xf32, #tpu.memory_space<vmem>>, %arg11: memref<32x256xf32, #tpu.memory_space<vmem>>) attributes {dimension_semantics = [#tpu.dimension_semantics<parallel>], iteration_bounds = array<i64: 2>, scalar_prefetch = 0 : i64, scratch_operands = 1 : i64, tpu.core_type = #tpu.core_type<tc>, window_params = [{transform_indices = @transform_0, window_bounds = array<i64: 1, 16, 256>}, {pipeline_mode = #tpu.pipeline_mode<synchronous>, transform_indices = @transform_1, window_bounds = array<i64: 31, 256, 256>}, {pipeline_mode = #tpu.pipeline_mode<synchronous>, transform_indices = @transform_2, window_bounds = array<i64: 10, 256>}, {pipeline_mode = #tpu.pipeline_mode<synchronous>, transform_indices = @transform_3, window_bounds = array<i64: 16, 1>}, {pipeline_mode = #tpu.pipeline_mode<synchronous>, transform_indices = @transform_4, window_bounds = array<i64: 1, 1>}, {pipeline_mode = #tpu.pipeline_mode<synchronous>, transform_indices = @transform_5, window_bounds = array<i64: 1, 16>}, {pipeline_mode = #tpu.pipeline_mode<synchronous>, transform_indices = @transform_6, window_bounds = array<i64: 1, 16>}, {pipeline_mode = #tpu.pipeline_mode<synchronous>, transform_indices = @transform_7, window_bounds = array<i64: 256, 16>}, {pipeline_mode = #tpu.pipeline_mode<synchronous>, transform_indices = @transform_8, window_bounds = array<i64: 16, 256>}, {transform_indices = @transform_9, window_bounds = array<i64: 1, 16, 256>}]} {
    %cst = arith.constant 0.000000e+00 : f32
    %0 = vector.broadcast %cst : f32 to vector<32x256xf32>
    %c0 = arith.constant 0 : index
    %c0_0 = arith.constant 0 : index
    %1 = vector.load %arg11[%c0, %c0_0] : memref<32x256xf32, #tpu.memory_space<vmem>>, vector<32x256xf32>
    tpu.vector_store %arg11[%c0, %c0_0], %0 {strides = array<i32>} : memref<32x256xf32, #tpu.memory_space<vmem>>, vector<32x256xf32>,
    %c0_1 = arith.constant 0 : index
    %c0_2 = arith.constant 0 : index
    %c0_3 = arith.constant 0 : index
    %2 = vector.load %arg1[%c0_1, %c0_2, %c0_3] : memref<1x16x256xf32, #tpu.memory_space<vmem>>, vector<1x16x256xf32>
    %3 = vector.shape_cast %2 : vector<1x16x256xf32> to vector<16x256xf32>
    %c8 = arith.constant 8 : index
    %c0_4 = arith.constant 0 : index
    %4 = vector.load %arg11[%c8, %c0_4] : memref<32x256xf32, #tpu.memory_space<vmem>>, vector<16x256xf32>
    tpu.vector_store %arg11[%c8, %c0_4], %3 {strides = array<i32>} : memref<32x256xf32, #tpu.memory_space<vmem>>, vector<16x256xf32>,
    %c7 = arith.constant 7 : index
    %c0_5 = arith.constant 0 : index
    %5 = vector.load %arg11[%c7, %c0_5] : memref<32x256xf32, #tpu.memory_space<vmem>>, vector<16x256xf32>
    %c0_6 = arith.constant 0 : index
    %c0_7 = arith.constant 0 : index
    %c0_8 = arith.constant 0 : index
    %6 = vector.load %arg2[%c0_6, %c0_7, %c0_8] : memref<31x256x256xf32, #tpu.memory_space<vmem>>, vector<1x256x256xf32>
    %7 = vector.shape_cast %6 : vector<1x256x256xf32> to vector<256x256xf32>
    %cst_9 = arith.constant dense<0.000000e+00> : vector<16x256xf32>
    %8 = tpu.matmul %5, %7, %cst_9 {dimension_numbers = #tpu.dot_dimension_numbers<[1], [0], [0], [1], [0, 0, 1, 1], [], []>} : vector<16x256xf32>, vector<256x256xf32>, vector<16x256xf32> -> vector<16x256xf32>
    %c8_10 = arith.constant 8 : index
    %c0_11 = arith.constant 0 : index
    %9 = vector.load %arg11[%c8_10, %c0_11] : memref<32x256xf32, #tpu.memory_space<vmem>>, vector<16x256xf32>
    %c1 = arith.constant 1 : index
    %c0_12 = arith.constant 0 : index
    %c0_13 = arith.constant 0 : index
    %10 = vector.load %arg2[%c1, %c0_12, %c0_13] : memref<31x256x256xf32, #tpu.memory_space<vmem>>, vector<1x256x256xf32>
    %11 = vector.shape_cast %10 : vector<1x256x256xf32> to vector<256x256xf32>
    %cst_14 = arith.constant dense<0.000000e+00> : vector<16x256xf32>
    %12 = tpu.matmul %9, %11, %cst_14 {dimension_numbers = #tpu.dot_dimension_numbers<[1], [0], [0], [1], [0, 0, 1, 1], [], []>} : vector<16x256xf32>, vector<256x256xf32>, vector<16x256xf32> -> vector<16x256xf32>
    %13 = arith.addf %8, %12 : vector<16x256xf32>
    %c9 = arith.constant 9 : index
    %c0_15 = arith.constant 0 : index
    %14 = vector.load %arg11[%c9, %c0_15] : memref<32x256xf32, #tpu.memory_space<vmem>>, vector<16x256xf32>
    %c2 = arith.constant 2 : index
    %c0_16 = arith.constant 0 : index
    %c0_17 = arith.constant 0 : index
    %15 = vector.load %arg2[%c2, %c0_16, %c0_17] : memref<31x256x256xf32, #tpu.memory_space<vmem>>, vector<1x256x256xf32>
    %16 = vector.shape_cast %15 : vector<1x256x256xf32> to vector<256x256xf32>
    %cst_18 = arith.constant dense<0.000000e+00> : vector<16x256xf32>
    %17 = tpu.matmul %14, %16, %cst_18 {dimension_numbers = #tpu.dot_dimension_numbers<[1], [0], [0], [1], [0, 0, 1, 1], [], []>} : vector<16x256xf32>, vector<256x256xf32>, vector<16x256xf32> -> vector<16x256xf32>
    %18 = arith.addf %13, %17 : vector<16x256xf32>
    %c0_19 = arith.constant 0 : index
    %c0_20 = arith.constant 0 : index
    %19 = vector.load %arg3[%c0_19, %c0_20] : memref<10x256xf32, #tpu.memory_space<vmem>>, vector<1x256xf32>
    %20 = vector.broadcast %19 : vector<1x256xf32> to vector<16x256xf32>
    %21 = arith.addf %18, %20 : vector<16x256xf32>
    %cst_21 = arith.constant 0.000000e+00 : f32
    %22 = vector.broadcast %cst_21 : f32 to vector<16x256xf32>
    %23 = arith.cmpf oge, %21, %22 : vector<16x256xf32>
    %cst_22 = arith.constant 2.000000e-01 : f32
    %24 = vector.broadcast %cst_22 : f32 to vector<16x256xf32>
    %25 = arith.mulf %24, %21 : vector<16x256xf32>
    %26 = arith.select %23, %21, %25 : vector<16x256xi1>, vector<16x256xf32>
    %c8_23 = arith.constant 8 : index
    %c0_24 = arith.constant 0 : index
    %27 = vector.load %arg11[%c8_23, %c0_24] : memref<32x256xf32, #tpu.memory_space<vmem>>, vector<16x256xf32>
    tpu.vector_store %arg11[%c8_23, %c0_24], %26 {strides = array<i32>} : memref<32x256xf32, #tpu.memory_space<vmem>>, vector<16x256xf32>,
    %c6 = arith.constant 6 : index
    %c0_25 = arith.constant 0 : index
    %28 = vector.load %arg11[%c6, %c0_25] : memref<32x256xf32, #tpu.memory_space<vmem>>, vector<16x256xf32>
    %c3 = arith.constant 3 : index
    %c0_26 = arith.constant 0 : index
    %c0_27 = arith.constant 0 : index
    %29 = vector.load %arg2[%c3, %c0_26, %c0_27] : memref<31x256x256xf32, #tpu.memory_space<vmem>>, vector<1x256x256xf32>
    %30 = vector.shape_cast %29 : vector<1x256x256xf32> to vector<256x256xf32>
    %cst_28 = arith.constant dense<0.000000e+00> : vector<16x256xf32>
    %31 = tpu.matmul %28, %30, %cst_28 {dimension_numbers = #tpu.dot_dimension_numbers<[1], [0], [0], [1], [0, 0, 1, 1], [], []>} : vector<16x256xf32>, vector<256x256xf32>, vector<16x256xf32> -> vector<16x256xf32>
    %c8_29 = arith.constant 8 : index
    %c0_30 = arith.constant 0 : index
    %32 = vector.load %arg11[%c8_29, %c0_30] : memref<32x256xf32, #tpu.memory_space<vmem>>, vector<16x256xf32>
    %c4 = arith.constant 4 : index
    %c0_31 = arith.constant 0 : index
    %c0_32 = arith.constant 0 : index
    %33 = vector.load %arg2[%c4, %c0_31, %c0_32] : memref<31x256x256xf32, #tpu.memory_space<vmem>>, vector<1x256x256xf32>
    %34 = vector.shape_cast %33 : vector<1x256x256xf32> to vector<256x256xf32>
    %cst_33 = arith.constant dense<0.000000e+00> : vector<16x256xf32>
    %35 = tpu.matmul %32, %34, %cst_33 {dimension_numbers = #tpu.dot_dimension_numbers<[1], [0], [0], [1], [0, 0, 1, 1], [], []>} : vector<16x256xf32>, vector<256x256xf32>, vector<16x256xf32> -> vector<16x256xf32>
    %36 = arith.addf %31, %35 : vector<16x256xf32>
    %c10 = arith.constant 10 : index
    %c0_34 = arith.constant 0 : index
    %37 = vector.load %arg11[%c10, %c0_34] : memref<32x256xf32, #tpu.memory_space<vmem>>, vector<16x256xf32>
    %c5 = arith.constant 5 : index
    %c0_35 = arith.constant 0 : index
    %c0_36 = arith.constant 0 : index
    %38 = vector.load %arg2[%c5, %c0_35, %c0_36] : memref<31x256x256xf32, #tpu.memory_space<vmem>>, vector<1x256x256xf32>
    %39 = vector.shape_cast %38 : vector<1x256x256xf32> to vector<256x256xf32>
    %cst_37 = arith.constant dense<0.000000e+00> : vector<16x256xf32>
    %40 = tpu.matmul %37, %39, %cst_37 {dimension_numbers = #tpu.dot_dimension_numbers<[1], [0], [0], [1], [0, 0, 1, 1], [], []>} : vector<16x256xf32>, vector<256x256xf32>, vector<16x256xf32> -> vector<16x256xf32>
    %41 = arith.addf %36, %40 : vector<16x256xf32>
    %c1_38 = arith.constant 1 : index
    %c0_39 = arith.constant 0 : index
    %42 = vector.load %arg3[%c1_38, %c0_39] : memref<10x256xf32, #tpu.memory_space<vmem>>, vector<1x256xf32>
    %43 = vector.broadcast %42 : vector<1x256xf32> to vector<16x256xf32>
    %44 = arith.addf %41, %43 : vector<16x256xf32>
    %cst_40 = arith.constant 0.000000e+00 : f32
    %45 = vector.broadcast %cst_40 : f32 to vector<16x256xf32>
    %46 = arith.cmpf oge, %44, %45 : vector<16x256xf32>
    %cst_41 = arith.constant 2.000000e-01 : f32
    %47 = vector.broadcast %cst_41 : f32 to vector<16x256xf32>
    %48 = arith.mulf %47, %44 : vector<16x256xf32>
    %49 = arith.select %46, %44, %48 : vector<16x256xi1>, vector<16x256xf32>
    %c8_42 = arith.constant 8 : index
    %c0_43 = arith.constant 0 : index
    %50 = vector.load %arg11[%c8_42, %c0_43] : memref<32x256xf32, #tpu.memory_space<vmem>>, vector<16x256xf32>
    tpu.vector_store %arg11[%c8_42, %c0_43], %3 {strides = array<i32>} : memref<32x256xf32, #tpu.memory_space<vmem>>, vector<16x256xf32>,
    %c5_44 = arith.constant 5 : index
    %c0_45 = arith.constant 0 : index
    %51 = vector.load %arg11[%c5_44, %c0_45] : memref<32x256xf32, #tpu.memory_space<vmem>>, vector<16x256xf32>
    %c6_46 = arith.constant 6 : index
    %c0_47 = arith.constant 0 : index
    %c0_48 = arith.constant 0 : index
    %52 = vector.load %arg2[%c6_46, %c0_47, %c0_48] : memref<31x256x256xf32, #tpu.memory_space<vmem>>, vector<1x256x256xf32>
    %53 = vector.shape_cast %52 : vector<1x256x256xf32> to vector<256x256xf32>
    %cst_49 = arith.constant dense<0.000000e+00> : vector<16x256xf32>
    %54 = tpu.matmul %51, %53, %cst_49 {dimension_numbers = #tpu.dot_dimension_numbers<[1], [0], [0], [1], [0, 0, 1, 1], [], []>} : vector<16x256xf32>, vector<256x256xf32>, vector<16x256xf32> -> vector<16x256xf32>
    %c8_50 = arith.constant 8 : index
    %c0_51 = arith.constant 0 : index
    %55 = vector.load %arg11[%c8_50, %c0_51] : memref<32x256xf32, #tpu.memory_space<vmem>>, vector<16x256xf32>
    %c7_52 = arith.constant 7 : index
    %c0_53 = arith.constant 0 : index
    %c0_54 = arith.constant 0 : index
    %56 = vector.load %arg2[%c7_52, %c0_53, %c0_54] : memref<31x256x256xf32, #tpu.memory_space<vmem>>, vector<1x256x256xf32>
    %57 = vector.shape_cast %56 : vector<1x256x256xf32> to vector<256x256xf32>
    %cst_55 = arith.constant dense<0.000000e+00> : vector<16x256xf32>
    %58 = tpu.matmul %55, %57, %cst_55 {dimension_numbers = #tpu.dot_dimension_numbers<[1], [0], [0], [1], [0, 0, 1, 1], [], []>} : vector<16x256xf32>, vector<256x256xf32>, vector<16x256xf32> -> vector<16x256xf32>
    %59 = arith.addf %54, %58 : vector<16x256xf32>
    %c11 = arith.constant 11 : index
    %c0_56 = arith.constant 0 : index
    %60 = vector.load %arg11[%c11, %c0_56] : memref<32x256xf32, #tpu.memory_space<vmem>>, vector<16x256xf32>
    %c8_57 = arith.constant 8 : index
    %c0_58 = arith.constant 0 : index
    %c0_59 = arith.constant 0 : index
    %61 = vector.load %arg2[%c8_57, %c0_58, %c0_59] : memref<31x256x256xf32, #tpu.memory_space<vmem>>, vector<1x256x256xf32>
    %62 = vector.shape_cast %61 : vector<1x256x256xf32> to vector<256x256xf32>
    %cst_60 = arith.constant dense<0.000000e+00> : vector<16x256xf32>
    %63 = tpu.matmul %60, %62, %cst_60 {dimension_numbers = #tpu.dot_dimension_numbers<[1], [0], [0], [1], [0, 0, 1, 1], [], []>} : vector<16x256xf32>, vector<256x256xf32>, vector<16x256xf32> -> vector<16x256xf32>
    %64 = arith.addf %59, %63 : vector<16x256xf32>
    %c2_61 = arith.constant 2 : index
    %c0_62 = arith.constant 0 : index
    %65 = vector.load %arg3[%c2_61, %c0_62] : memref<10x256xf32, #tpu.memory_space<vmem>>, vector<1x256xf32>
    %66 = vector.broadcast %65 : vector<1x256xf32> to vector<16x256xf32>
    %67 = arith.addf %64, %66 : vector<16x256xf32>
    %cst_63 = arith.constant 0.000000e+00 : f32
    %68 = vector.broadcast %cst_63 : f32 to vector<16x256xf32>
    %69 = arith.cmpf oge, %67, %68 : vector<16x256xf32>
    %cst_64 = arith.constant 2.000000e-01 : f32
    %70 = vector.broadcast %cst_64 : f32 to vector<16x256xf32>
    %71 = arith.mulf %70, %67 : vector<16x256xf32>
    %72 = arith.select %69, %67, %71 : vector<16x256xi1>, vector<16x256xf32>
    %c8_65 = arith.constant 8 : index
    %c0_66 = arith.constant 0 : index
    %73 = vector.load %arg11[%c8_65, %c0_66] : memref<32x256xf32, #tpu.memory_space<vmem>>, vector<16x256xf32>
    tpu.vector_store %arg11[%c8_65, %c0_66], %72 {strides = array<i32>} : memref<32x256xf32, #tpu.memory_space<vmem>>, vector<16x256xf32>,
    %c4_67 = arith.constant 4 : index
    %c0_68 = arith.constant 0 : index
    %74 = vector.load %arg11[%c4_67, %c0_68] : memref<32x256xf32, #tpu.memory_space<vmem>>, vector<16x256xf32>
    %c9_69 = arith.constant 9 : index
    %c0_70 = arith.constant 0 : index
    %c0_71 = arith.constant 0 : index
    %75 = vector.load %arg2[%c9_69, %c0_70, %c0_71] : memref<31x256x256xf32, #tpu.memory_space<vmem>>, vector<1x256x256xf32>
    %76 = vector.shape_cast %75 : vector<1x256x256xf32> to vector<256x256xf32>
    %cst_72 = arith.constant dense<0.000000e+00> : vector<16x256xf32>
    %77 = tpu.matmul %74, %76, %cst_72 {dimension_numbers = #tpu.dot_dimension_numbers<[1], [0], [0], [1], [0, 0, 1, 1], [], []>} : vector<16x256xf32>, vector<256x256xf32>, vector<16x256xf32> -> vector<16x256xf32>
    %c8_73 = arith.constant 8 : index
    %c0_74 = arith.constant 0 : index
    %78 = vector.load %arg11[%c8_73, %c0_74] : memref<32x256xf32, #tpu.memory_space<vmem>>, vector<16x256xf32>
    %c10_75 = arith.constant 10 : index
    %c0_76 = arith.constant 0 : index
    %c0_77 = arith.constant 0 : index
    %79 = vector.load %arg2[%c10_75, %c0_76, %c0_77] : memref<31x256x256xf32, #tpu.memory_space<vmem>>, vector<1x256x256xf32>
    %80 = vector.shape_cast %79 : vector<1x256x256xf32> to vector<256x256xf32>
    %cst_78 = arith.constant dense<0.000000e+00> : vector<16x256xf32>
    %81 = tpu.matmul %78, %80, %cst_78 {dimension_numbers = #tpu.dot_dimension_numbers<[1], [0], [0], [1], [0, 0, 1, 1], [], []>} : vector<16x256xf32>, vector<256x256xf32>, vector<16x256xf32> -> vector<16x256xf32>
    %82 = arith.addf %77, %81 : vector<16x256xf32>
    %c12 = arith.constant 12 : index
    %c0_79 = arith.constant 0 : index
    %83 = vector.load %arg11[%c12, %c0_79] : memref<32x256xf32, #tpu.memory_space<vmem>>, vector<16x256xf32>
    %c11_80 = arith.constant 11 : index
    %c0_81 = arith.constant 0 : index
    %c0_82 = arith.constant 0 : index
    %84 = vector.load %arg2[%c11_80, %c0_81, %c0_82] : memref<31x256x256xf32, #tpu.memory_space<vmem>>, vector<1x256x256xf32>
    %85 = vector.shape_cast %84 : vector<1x256x256xf32> to vector<256x256xf32>
    %cst_83 = arith.constant dense<0.000000e+00> : vector<16x256xf32>
    %86 = tpu.matmul %83, %85, %cst_83 {dimension_numbers = #tpu.dot_dimension_numbers<[1], [0], [0], [1], [0, 0, 1, 1], [], []>} : vector<16x256xf32>, vector<256x256xf32>, vector<16x256xf32> -> vector<16x256xf32>
    %87 = arith.addf %82, %86 : vector<16x256xf32>
    %c3_84 = arith.constant 3 : index
    %c0_85 = arith.constant 0 : index
    %88 = vector.load %arg3[%c3_84, %c0_85] : memref<10x256xf32, #tpu.memory_space<vmem>>, vector<1x256xf32>
    %89 = vector.broadcast %88 : vector<1x256xf32> to vector<16x256xf32>
    %90 = arith.addf %87, %89 : vector<16x256xf32>
    %cst_86 = arith.constant 0.000000e+00 : f32
    %91 = vector.broadcast %cst_86 : f32 to vector<16x256xf32>
    %92 = arith.cmpf oge, %90, %91 : vector<16x256xf32>
    %cst_87 = arith.constant 2.000000e-01 : f32
    %93 = vector.broadcast %cst_87 : f32 to vector<16x256xf32>
    %94 = arith.mulf %93, %90 : vector<16x256xf32>
    %95 = arith.select %92, %90, %94 : vector<16x256xi1>, vector<16x256xf32>
    %c8_88 = arith.constant 8 : index
    %c0_89 = arith.constant 0 : index
    %96 = vector.load %arg11[%c8_88, %c0_89] : memref<32x256xf32, #tpu.memory_space<vmem>>, vector<16x256xf32>
    tpu.vector_store %arg11[%c8_88, %c0_89], %49 {strides = array<i32>} : memref<32x256xf32, #tpu.memory_space<vmem>>, vector<16x256xf32>,
    %c7_90 = arith.constant 7 : index
    %c0_91 = arith.constant 0 : index
    %97 = vector.load %arg11[%c7_90, %c0_91] : memref<32x256xf32, #tpu.memory_space<vmem>>, vector<16x256xf32>
    %c12_92 = arith.constant 12 : index
    %c0_93 = arith.constant 0 : index
    %c0_94 = arith.constant 0 : index
    %98 = vector.load %arg2[%c12_92, %c0_93, %c0_94] : memref<31x256x256xf32, #tpu.memory_space<vmem>>, vector<1x256x256xf32>
    %99 = vector.shape_cast %98 : vector<1x256x256xf32> to vector<256x256xf32>
    %cst_95 = arith.constant dense<0.000000e+00> : vector<16x256xf32>
    %100 = tpu.matmul %97, %99, %cst_95 {dimension_numbers = #tpu.dot_dimension_numbers<[1], [0], [0], [1], [0, 0, 1, 1], [], []>} : vector<16x256xf32>, vector<256x256xf32>, vector<16x256xf32> -> vector<16x256xf32>
    %c8_96 = arith.constant 8 : index
    %c0_97 = arith.constant 0 : index
    %101 = vector.load %arg11[%c8_96, %c0_97] : memref<32x256xf32, #tpu.memory_space<vmem>>, vector<16x256xf32>
    %c13 = arith.constant 13 : index
    %c0_98 = arith.constant 0 : index
    %c0_99 = arith.constant 0 : index
    %102 = vector.load %arg2[%c13, %c0_98, %c0_99] : memref<31x256x256xf32, #tpu.memory_space<vmem>>, vector<1x256x256xf32>
    %103 = vector.shape_cast %102 : vector<1x256x256xf32> to vector<256x256xf32>
    %cst_100 = arith.constant dense<0.000000e+00> : vector<16x256xf32>
    %104 = tpu.matmul %101, %103, %cst_100 {dimension_numbers = #tpu.dot_dimension_numbers<[1], [0], [0], [1], [0, 0, 1, 1], [], []>} : vector<16x256xf32>, vector<256x256xf32>, vector<16x256xf32> -> vector<16x256xf32>
    %105 = arith.addf %100, %104 : vector<16x256xf32>
    %c9_101 = arith.constant 9 : index
    %c0_102 = arith.constant 0 : index
    %106 = vector.load %arg11[%c9_101, %c0_102] : memref<32x256xf32, #tpu.memory_space<vmem>>, vector<16x256xf32>
    %c14 = arith.constant 14 : index
    %c0_103 = arith.constant 0 : index
    %c0_104 = arith.constant 0 : index
    %107 = vector.load %arg2[%c14, %c0_103, %c0_104] : memref<31x256x256xf32, #tpu.memory_space<vmem>>, vector<1x256x256xf32>
    %108 = vector.shape_cast %107 : vector<1x256x256xf32> to vector<256x256xf32>
    %cst_105 = arith.constant dense<0.000000e+00> : vector<16x256xf32>
    %109 = tpu.matmul %106, %108, %cst_105 {dimension_numbers = #tpu.dot_dimension_numbers<[1], [0], [0], [1], [0, 0, 1, 1], [], []>} : vector<16x256xf32>, vector<256x256xf32>, vector<16x256xf32> -> vector<16x256xf32>
    %110 = arith.addf %105, %109 : vector<16x256xf32>
    %c4_106 = arith.constant 4 : index
    %c0_107 = arith.constant 0 : index
    %111 = vector.load %arg3[%c4_106, %c0_107] : memref<10x256xf32, #tpu.memory_space<vmem>>, vector<1x256xf32>
    %112 = vector.broadcast %111 : vector<1x256xf32> to vector<16x256xf32>
    %113 = arith.addf %110, %112 : vector<16x256xf32>
    %c8_108 = arith.constant 8 : index
    %c0_109 = arith.constant 0 : index
    %114 = vector.load %arg11[%c8_108, %c0_109] : memref<32x256xf32, #tpu.memory_space<vmem>>, vector<16x256xf32>
    tpu.vector_store %arg11[%c8_108, %c0_109], %95 {strides = array<i32>} : memref<32x256xf32, #tpu.memory_space<vmem>>, vector<16x256xf32>,
    %c7_110 = arith.constant 7 : index
    %c0_111 = arith.constant 0 : index
    %115 = vector.load %arg11[%c7_110, %c0_111] : memref<32x256xf32, #tpu.memory_space<vmem>>, vector<16x256xf32>
    %c15 = arith.constant 15 : index
    %c0_112 = arith.constant 0 : index
    %c0_113 = arith.constant 0 : index
    %116 = vector.load %arg2[%c15, %c0_112, %c0_113] : memref<31x256x256xf32, #tpu.memory_space<vmem>>, vector<1x256x256xf32>
    %117 = vector.shape_cast %116 : vector<1x256x256xf32> to vector<256x256xf32>
    %cst_114 = arith.constant dense<0.000000e+00> : vector<16x256xf32>
    %118 = tpu.matmul %115, %117, %cst_114 {dimension_numbers = #tpu.dot_dimension_numbers<[1], [0], [0], [1], [0, 0, 1, 1], [], []>} : vector<16x256xf32>, vector<256x256xf32>, vector<16x256xf32> -> vector<16x256xf32>
    %c8_115 = arith.constant 8 : index
    %c0_116 = arith.constant 0 : index
    %119 = vector.load %arg11[%c8_115, %c0_116] : memref<32x256xf32, #tpu.memory_space<vmem>>, vector<16x256xf32>
    %c16 = arith.constant 16 : index
    %c0_117 = arith.constant 0 : index
    %c0_118 = arith.constant 0 : index
    %120 = vector.load %arg2[%c16, %c0_117, %c0_118] : memref<31x256x256xf32, #tpu.memory_space<vmem>>, vector<1x256x256xf32>
    %121 = vector.shape_cast %120 : vector<1x256x256xf32> to vector<256x256xf32>
    %cst_119 = arith.constant dense<0.000000e+00> : vector<16x256xf32>
    %122 = tpu.matmul %119, %121, %cst_119 {dimension_numbers = #tpu.dot_dimension_numbers<[1], [0], [0], [1], [0, 0, 1, 1], [], []>} : vector<16x256xf32>, vector<256x256xf32>, vector<16x256xf32> -> vector<16x256xf32>
    %123 = arith.addf %118, %122 : vector<16x256xf32>
    %c9_120 = arith.constant 9 : index
    %c0_121 = arith.constant 0 : index
    %124 = vector.load %arg11[%c9_120, %c0_121] : memref<32x256xf32, #tpu.memory_space<vmem>>, vector<16x256xf32>
    %c17 = arith.constant 17 : index
    %c0_122 = arith.constant 0 : index
    %c0_123 = arith.constant 0 : index
    %125 = vector.load %arg2[%c17, %c0_122, %c0_123] : memref<31x256x256xf32, #tpu.memory_space<vmem>>, vector<1x256x256xf32>
    %126 = vector.shape_cast %125 : vector<1x256x256xf32> to vector<256x256xf32>
    %cst_124 = arith.constant dense<0.000000e+00> : vector<16x256xf32>
    %127 = tpu.matmul %124, %126, %cst_124 {dimension_numbers = #tpu.dot_dimension_numbers<[1], [0], [0], [1], [0, 0, 1, 1], [], []>} : vector<16x256xf32>, vector<256x256xf32>, vector<16x256xf32> -> vector<16x256xf32>
    %128 = arith.addf %123, %127 : vector<16x256xf32>
    %129 = arith.addf %113, %128 : vector<16x256xf32>
    %cst_125 = arith.constant 0.000000e+00 : f32
    %130 = vector.broadcast %cst_125 : f32 to vector<16x256xf32>
    %131 = arith.cmpf oge, %129, %130 : vector<16x256xf32>
    %cst_126 = arith.constant 2.000000e-01 : f32
    %132 = vector.broadcast %cst_126 : f32 to vector<16x256xf32>
    %133 = arith.mulf %132, %129 : vector<16x256xf32>
    %134 = arith.select %131, %129, %133 : vector<16x256xi1>, vector<16x256xf32>
    %135 = arith.addf %134, %3 : vector<16x256xf32>
    %c8_127 = arith.constant 8 : index
    %c0_128 = arith.constant 0 : index
    %136 = vector.load %arg11[%c8_127, %c0_128] : memref<32x256xf32, #tpu.memory_space<vmem>>, vector<16x256xf32>
    tpu.vector_store %arg11[%c8_127, %c0_128], %135 {strides = array<i32>} : memref<32x256xf32, #tpu.memory_space<vmem>>, vector<16x256xf32>,
    %c7_129 = arith.constant 7 : index
    %c0_130 = arith.constant 0 : index
    %137 = vector.load %arg11[%c7_129, %c0_130] : memref<32x256xf32, #tpu.memory_space<vmem>>, vector<16x256xf32>
    %c18 = arith.constant 18 : index
    %c0_131 = arith.constant 0 : index
    %c0_132 = arith.constant 0 : index
    %138 = vector.load %arg2[%c18, %c0_131, %c0_132] : memref<31x256x256xf32, #tpu.memory_space<vmem>>, vector<1x256x256xf32>
    %139 = vector.shape_cast %138 : vector<1x256x256xf32> to vector<256x256xf32>
    %cst_133 = arith.constant dense<0.000000e+00> : vector<16x256xf32>
    %140 = tpu.matmul %137, %139, %cst_133 {dimension_numbers = #tpu.dot_dimension_numbers<[1], [0], [0], [1], [0, 0, 1, 1], [], []>} : vector<16x256xf32>, vector<256x256xf32>, vector<16x256xf32> -> vector<16x256xf32>
    %c8_134 = arith.constant 8 : index
    %c0_135 = arith.constant 0 : index
    %141 = vector.load %arg11[%c8_134, %c0_135] : memref<32x256xf32, #tpu.memory_space<vmem>>, vector<16x256xf32>
    %c19 = arith.constant 19 : index
    %c0_136 = arith.constant 0 : index
    %c0_137 = arith.constant 0 : index
    %142 = vector.load %arg2[%c19, %c0_136, %c0_137] : memref<31x256x256xf32, #tpu.memory_space<vmem>>, vector<1x256x256xf32>
    %143 = vector.shape_cast %142 : vector<1x256x256xf32> to vector<256x256xf32>
    %cst_138 = arith.constant dense<0.000000e+00> : vector<16x256xf32>
    %144 = tpu.matmul %141, %143, %cst_138 {dimension_numbers = #tpu.dot_dimension_numbers<[1], [0], [0], [1], [0, 0, 1, 1], [], []>} : vector<16x256xf32>, vector<256x256xf32>, vector<16x256xf32> -> vector<16x256xf32>
    %145 = arith.addf %140, %144 : vector<16x256xf32>
    %c9_139 = arith.constant 9 : index
    %c0_140 = arith.constant 0 : index
    %146 = vector.load %arg11[%c9_139, %c0_140] : memref<32x256xf32, #tpu.memory_space<vmem>>, vector<16x256xf32>
    %c20 = arith.constant 20 : index
    %c0_141 = arith.constant 0 : index
    %c0_142 = arith.constant 0 : index
    %147 = vector.load %arg2[%c20, %c0_141, %c0_142] : memref<31x256x256xf32, #tpu.memory_space<vmem>>, vector<1x256x256xf32>
    %148 = vector.shape_cast %147 : vector<1x256x256xf32> to vector<256x256xf32>
    %cst_143 = arith.constant dense<0.000000e+00> : vector<16x256xf32>
    %149 = tpu.matmul %146, %148, %cst_143 {dimension_numbers = #tpu.dot_dimension_numbers<[1], [0], [0], [1], [0, 0, 1, 1], [], []>} : vector<16x256xf32>, vector<256x256xf32>, vector<16x256xf32> -> vector<16x256xf32>
    %150 = arith.addf %145, %149 : vector<16x256xf32>
    %c5_144 = arith.constant 5 : index
    %c0_145 = arith.constant 0 : index
    %151 = vector.load %arg3[%c5_144, %c0_145] : memref<10x256xf32, #tpu.memory_space<vmem>>, vector<1x256xf32>
    %152 = vector.broadcast %151 : vector<1x256xf32> to vector<16x256xf32>
    %153 = arith.addf %150, %152 : vector<16x256xf32>
    %cst_146 = arith.constant 0.000000e+00 : f32
    %154 = vector.broadcast %cst_146 : f32 to vector<16x256xf32>
    %155 = arith.cmpf oge, %153, %154 : vector<16x256xf32>
    %cst_147 = arith.constant 2.000000e-01 : f32
    %156 = vector.broadcast %cst_147 : f32 to vector<16x256xf32>
    %157 = arith.mulf %156, %153 : vector<16x256xf32>
    %158 = arith.select %155, %153, %157 : vector<16x256xi1>, vector<16x256xf32>
    %c8_148 = arith.constant 8 : index
    %c0_149 = arith.constant 0 : index
    %159 = vector.load %arg11[%c8_148, %c0_149] : memref<32x256xf32, #tpu.memory_space<vmem>>, vector<16x256xf32>
    tpu.vector_store %arg11[%c8_148, %c0_149], %158 {strides = array<i32>} : memref<32x256xf32, #tpu.memory_space<vmem>>, vector<16x256xf32>,
    %c7_150 = arith.constant 7 : index
    %c0_151 = arith.constant 0 : index
    %160 = vector.load %arg11[%c7_150, %c0_151] : memref<32x256xf32, #tpu.memory_space<vmem>>, vector<16x256xf32>
    %c21 = arith.constant 21 : index
    %c0_152 = arith.constant 0 : index
    %c0_153 = arith.constant 0 : index
    %161 = vector.load %arg2[%c21, %c0_152, %c0_153] : memref<31x256x256xf32, #tpu.memory_space<vmem>>, vector<1x256x256xf32>
    %162 = vector.shape_cast %161 : vector<1x256x256xf32> to vector<256x256xf32>
    %cst_154 = arith.constant dense<0.000000e+00> : vector<16x256xf32>
    %163 = tpu.matmul %160, %162, %cst_154 {dimension_numbers = #tpu.dot_dimension_numbers<[1], [0], [0], [1], [0, 0, 1, 1], [], []>} : vector<16x256xf32>, vector<256x256xf32>, vector<16x256xf32> -> vector<16x256xf32>
    %c8_155 = arith.constant 8 : index
    %c0_156 = arith.constant 0 : index
    %164 = vector.load %arg11[%c8_155, %c0_156] : memref<32x256xf32, #tpu.memory_space<vmem>>, vector<16x256xf32>
    %c22 = arith.constant 22 : index
    %c0_157 = arith.constant 0 : index
    %c0_158 = arith.constant 0 : index
    %165 = vector.load %arg2[%c22, %c0_157, %c0_158] : memref<31x256x256xf32, #tpu.memory_space<vmem>>, vector<1x256x256xf32>
    %166 = vector.shape_cast %165 : vector<1x256x256xf32> to vector<256x256xf32>
    %cst_159 = arith.constant dense<0.000000e+00> : vector<16x256xf32>
    %167 = tpu.matmul %164, %166, %cst_159 {dimension_numbers = #tpu.dot_dimension_numbers<[1], [0], [0], [1], [0, 0, 1, 1], [], []>} : vector<16x256xf32>, vector<256x256xf32>, vector<16x256xf32> -> vector<16x256xf32>
    %168 = arith.addf %163, %167 : vector<16x256xf32>
    %c9_160 = arith.constant 9 : index
    %c0_161 = arith.constant 0 : index
    %169 = vector.load %arg11[%c9_160, %c0_161] : memref<32x256xf32, #tpu.memory_space<vmem>>, vector<16x256xf32>
    %c23 = arith.constant 23 : index
    %c0_162 = arith.constant 0 : index
    %c0_163 = arith.constant 0 : index
    %170 = vector.load %arg2[%c23, %c0_162, %c0_163] : memref<31x256x256xf32, #tpu.memory_space<vmem>>, vector<1x256x256xf32>
    %171 = vector.shape_cast %170 : vector<1x256x256xf32> to vector<256x256xf32>
    %cst_164 = arith.constant dense<0.000000e+00> : vector<16x256xf32>
    %172 = tpu.matmul %169, %171, %cst_164 {dimension_numbers = #tpu.dot_dimension_numbers<[1], [0], [0], [1], [0, 0, 1, 1], [], []>} : vector<16x256xf32>, vector<256x256xf32>, vector<16x256xf32> -> vector<16x256xf32>
    %173 = arith.addf %168, %172 : vector<16x256xf32>
    %c6_165 = arith.constant 6 : index
    %c0_166 = arith.constant 0 : index
    %174 = vector.load %arg3[%c6_165, %c0_166] : memref<10x256xf32, #tpu.memory_space<vmem>>, vector<1x256xf32>
    %175 = vector.broadcast %174 : vector<1x256xf32> to vector<16x256xf32>
    %176 = arith.addf %173, %175 : vector<16x256xf32>
    %177 = arith.addf %176, %135 : vector<16x256xf32>
    %cst_167 = arith.constant 0.000000e+00 : f32
    %178 = vector.broadcast %cst_167 : f32 to vector<16x256xf32>
    %179 = arith.maximumf %177, %178 : vector<16x256xf32>
    %c8_168 = arith.constant 8 : index
    %c0_169 = arith.constant 0 : index
    %180 = vector.load %arg11[%c8_168, %c0_169] : memref<32x256xf32, #tpu.memory_space<vmem>>, vector<16x256xf32>
    tpu.vector_store %arg11[%c8_168, %c0_169], %179 {strides = array<i32>} : memref<32x256xf32, #tpu.memory_space<vmem>>, vector<16x256xf32>,
    %c7_170 = arith.constant 7 : index
    %c0_171 = arith.constant 0 : index
    %181 = vector.load %arg11[%c7_170, %c0_171] : memref<32x256xf32, #tpu.memory_space<vmem>>, vector<16x256xf32>
    %c24 = arith.constant 24 : index
    %c0_172 = arith.constant 0 : index
    %c0_173 = arith.constant 0 : index
    %182 = vector.load %arg2[%c24, %c0_172, %c0_173] : memref<31x256x256xf32, #tpu.memory_space<vmem>>, vector<1x256x256xf32>
    %183 = vector.shape_cast %182 : vector<1x256x256xf32> to vector<256x256xf32>
    %cst_174 = arith.constant dense<0.000000e+00> : vector<16x256xf32>
    %184 = tpu.matmul %181, %183, %cst_174 {dimension_numbers = #tpu.dot_dimension_numbers<[1], [0], [0], [1], [0, 0, 1, 1], [], []>} : vector<16x256xf32>, vector<256x256xf32>, vector<16x256xf32> -> vector<16x256xf32>
    %c8_175 = arith.constant 8 : index
    %c0_176 = arith.constant 0 : index
    %185 = vector.load %arg11[%c8_175, %c0_176] : memref<32x256xf32, #tpu.memory_space<vmem>>, vector<16x256xf32>
    %c25 = arith.constant 25 : index
    %c0_177 = arith.constant 0 : index
    %c0_178 = arith.constant 0 : index
    %186 = vector.load %arg2[%c25, %c0_177, %c0_178] : memref<31x256x256xf32, #tpu.memory_space<vmem>>, vector<1x256x256xf32>
    %187 = vector.shape_cast %186 : vector<1x256x256xf32> to vector<256x256xf32>
    %cst_179 = arith.constant dense<0.000000e+00> : vector<16x256xf32>
    %188 = tpu.matmul %185, %187, %cst_179 {dimension_numbers = #tpu.dot_dimension_numbers<[1], [0], [0], [1], [0, 0, 1, 1], [], []>} : vector<16x256xf32>, vector<256x256xf32>, vector<16x256xf32> -> vector<16x256xf32>
    %189 = arith.addf %184, %188 : vector<16x256xf32>
    %c9_180 = arith.constant 9 : index
    %c0_181 = arith.constant 0 : index
    %190 = vector.load %arg11[%c9_180, %c0_181] : memref<32x256xf32, #tpu.memory_space<vmem>>, vector<16x256xf32>
    %c26 = arith.constant 26 : index
    %c0_182 = arith.constant 0 : index
    %c0_183 = arith.constant 0 : index
    %191 = vector.load %arg2[%c26, %c0_182, %c0_183] : memref<31x256x256xf32, #tpu.memory_space<vmem>>, vector<1x256x256xf32>
    %192 = vector.shape_cast %191 : vector<1x256x256xf32> to vector<256x256xf32>
    %cst_184 = arith.constant dense<0.000000e+00> : vector<16x256xf32>
    %193 = tpu.matmul %190, %192, %cst_184 {dimension_numbers = #tpu.dot_dimension_numbers<[1], [0], [0], [1], [0, 0, 1, 1], [], []>} : vector<16x256xf32>, vector<256x256xf32>, vector<16x256xf32> -> vector<16x256xf32>
    %194 = arith.addf %189, %193 : vector<16x256xf32>
    %c7_185 = arith.constant 7 : index
    %c0_186 = arith.constant 0 : index
    %195 = vector.load %arg3[%c7_185, %c0_186] : memref<10x256xf32, #tpu.memory_space<vmem>>, vector<1x256xf32>
    %196 = vector.broadcast %195 : vector<1x256xf32> to vector<16x256xf32>
    %197 = arith.addf %194, %196 : vector<16x256xf32>
    %cst_187 = arith.constant 0.000000e+00 : f32
    %198 = vector.broadcast %cst_187 : f32 to vector<16x256xf32>
    %199 = arith.cmpf oge, %197, %198 : vector<16x256xf32>
    %cst_188 = arith.constant 2.000000e-01 : f32
    %200 = vector.broadcast %cst_188 : f32 to vector<16x256xf32>
    %201 = arith.mulf %200, %197 : vector<16x256xf32>
    %202 = arith.select %199, %197, %201 : vector<16x256xi1>, vector<16x256xf32>
    %c8_189 = arith.constant 8 : index
    %c0_190 = arith.constant 0 : index
    %203 = vector.load %arg11[%c8_189, %c0_190] : memref<32x256xf32, #tpu.memory_space<vmem>>, vector<16x256xf32>
    tpu.vector_store %arg11[%c8_189, %c0_190], %202 {strides = array<i32>} : memref<32x256xf32, #tpu.memory_space<vmem>>, vector<16x256xf32>,
    %c7_191 = arith.constant 7 : index
    %c0_192 = arith.constant 0 : index
    %204 = vector.load %arg11[%c7_191, %c0_192] : memref<32x256xf32, #tpu.memory_space<vmem>>, vector<16x256xf32>
    %c27 = arith.constant 27 : index
    %c0_193 = arith.constant 0 : index
    %c0_194 = arith.constant 0 : index
    %205 = vector.load %arg2[%c27, %c0_193, %c0_194] : memref<31x256x256xf32, #tpu.memory_space<vmem>>, vector<1x256x256xf32>
    %206 = vector.shape_cast %205 : vector<1x256x256xf32> to vector<256x256xf32>
    %cst_195 = arith.constant dense<0.000000e+00> : vector<16x256xf32>
    %207 = tpu.matmul %204, %206, %cst_195 {dimension_numbers = #tpu.dot_dimension_numbers<[1], [0], [0], [1], [0, 0, 1, 1], [], []>} : vector<16x256xf32>, vector<256x256xf32>, vector<16x256xf32> -> vector<16x256xf32>
    %c8_196 = arith.constant 8 : index
    %c0_197 = arith.constant 0 : index
    %208 = vector.load %arg11[%c8_196, %c0_197] : memref<32x256xf32, #tpu.memory_space<vmem>>, vector<16x256xf32>
    %c28 = arith.constant 28 : index
    %c0_198 = arith.constant 0 : index
    %c0_199 = arith.constant 0 : index
    %209 = vector.load %arg2[%c28, %c0_198, %c0_199] : memref<31x256x256xf32, #tpu.memory_space<vmem>>, vector<1x256x256xf32>
    %210 = vector.shape_cast %209 : vector<1x256x256xf32> to vector<256x256xf32>
    %cst_200 = arith.constant dense<0.000000e+00> : vector<16x256xf32>
    %211 = tpu.matmul %208, %210, %cst_200 {dimension_numbers = #tpu.dot_dimension_numbers<[1], [0], [0], [1], [0, 0, 1, 1], [], []>} : vector<16x256xf32>, vector<256x256xf32>, vector<16x256xf32> -> vector<16x256xf32>
    %212 = arith.addf %207, %211 : vector<16x256xf32>
    %c9_201 = arith.constant 9 : index
    %c0_202 = arith.constant 0 : index
    %213 = vector.load %arg11[%c9_201, %c0_202] : memref<32x256xf32, #tpu.memory_space<vmem>>, vector<16x256xf32>
    %c29 = arith.constant 29 : index
    %c0_203 = arith.constant 0 : index
    %c0_204 = arith.constant 0 : index
    %214 = vector.load %arg2[%c29, %c0_203, %c0_204] : memref<31x256x256xf32, #tpu.memory_space<vmem>>, vector<1x256x256xf32>
    %215 = vector.shape_cast %214 : vector<1x256x256xf32> to vector<256x256xf32>
    %cst_205 = arith.constant dense<0.000000e+00> : vector<16x256xf32>
    %216 = tpu.matmul %213, %215, %cst_205 {dimension_numbers = #tpu.dot_dimension_numbers<[1], [0], [0], [1], [0, 0, 1, 1], [], []>} : vector<16x256xf32>, vector<256x256xf32>, vector<16x256xf32> -> vector<16x256xf32>
    %217 = arith.addf %212, %216 : vector<16x256xf32>
    %c8_206 = arith.constant 8 : index
    %c0_207 = arith.constant 0 : index
    %218 = vector.load %arg3[%c8_206, %c0_207] : memref<10x256xf32, #tpu.memory_space<vmem>>, vector<1x256xf32>
    %219 = vector.broadcast %218 : vector<1x256xf32> to vector<16x256xf32>
    %220 = arith.addf %217, %219 : vector<16x256xf32>
    %cst_208 = arith.constant 0.000000e+00 : f32
    %221 = vector.broadcast %cst_208 : f32 to vector<16x256xf32>
    %222 = arith.cmpf oge, %220, %221 : vector<16x256xf32>
    %cst_209 = arith.constant 2.000000e-01 : f32
    %223 = vector.broadcast %cst_209 : f32 to vector<16x256xf32>
    %224 = arith.mulf %223, %220 : vector<16x256xf32>
    %225 = arith.select %222, %220, %224 : vector<16x256xi1>, vector<16x256xf32>
    %c30 = arith.constant 30 : index
    %c0_210 = arith.constant 0 : index
    %c0_211 = arith.constant 0 : index
    %226 = vector.load %arg2[%c30, %c0_210, %c0_211] : memref<31x256x256xf32, #tpu.memory_space<vmem>>, vector<1x256x256xf32>
    %227 = vector.shape_cast %226 : vector<1x256x256xf32> to vector<256x256xf32>
    %cst_212 = arith.constant dense<0.000000e+00> : vector<16x256xf32>
    %228 = tpu.matmul %225, %227, %cst_212 {dimension_numbers = #tpu.dot_dimension_numbers<[1], [0], [0], [1], [0, 0, 1, 1], [], []>} : vector<16x256xf32>, vector<256x256xf32>, vector<16x256xf32> -> vector<16x256xf32>
    %c9_213 = arith.constant 9 : index
    %c0_214 = arith.constant 0 : index
    %229 = vector.load %arg3[%c9_213, %c0_214] : memref<10x256xf32, #tpu.memory_space<vmem>>, vector<1x256xf32>
    %230 = vector.broadcast %229 : vector<1x256xf32> to vector<16x256xf32>
    %231 = arith.addf %228, %230 : vector<16x256xf32>
    %232 = arith.addf %231, %179 : vector<16x256xf32>
    %cst_215 = arith.constant 0.000000e+00 : f32
    %233 = vector.broadcast %cst_215 : f32 to vector<16x256xf32>
    %234 = arith.maximumf %232, %233 : vector<16x256xf32>
    %cst_216 = arith.constant dense<0.000000e+00> : vector<256xf32>
    %235 = vector.multi_reduction <add>, %234, %cst_216 [0] : vector<16x256xf32> to vector<256xf32>
    %236 = vector.shape_cast %235 : vector<256xf32> to vector<1x256xf32>
    %c0_217 = arith.constant 0 : index
    %c0_218 = arith.constant 0 : index
    %237 = vector.load %arg8[%c0_217, %c0_218] : memref<256x16xf32, #tpu.memory_space<vmem>>, vector<256x16xf32>
    %cst_219 = arith.constant dense<0.000000e+00> : vector<1x16xf32>
    %238 = tpu.matmul %236, %237, %cst_219 {dimension_numbers = #tpu.dot_dimension_numbers<[1], [0], [0], [1], [0, 0, 1, 1], [], []>} : vector<1x256xf32>, vector<256x16xf32>, vector<1x16xf32> -> vector<1x16xf32>
    %cst_220 = arith.constant 3.906250e-03 : f32
    %239 = vector.broadcast %cst_220 : f32 to vector<1x16xf32>
    %240 = arith.mulf %238, %239 : vector<1x16xf32>
    %c0_221 = arith.constant 0 : index
    %c0_222 = arith.constant 0 : index
    %241 = vector.load %arg4[%c0_221, %c0_222] : memref<16x1xf32, #tpu.memory_space<vmem>>, vector<16x1xf32>
    %cst_223 = arith.constant dense<0.000000e+00> : vector<1x1xf32>
    %242 = tpu.matmul %240, %241, %cst_223 {dimension_numbers = #tpu.dot_dimension_numbers<[1], [0], [0], [1], [0, 0, 1, 1], [], []>} : vector<1x16xf32>, vector<16x1xf32>, vector<1x1xf32> -> vector<1x1xf32>
    %c0_224 = arith.constant 0 : index
    %c0_225 = arith.constant 0 : index
    %243 = vector.load %arg5[%c0_224, %c0_225] : memref<1x1xf32, #tpu.memory_space<vmem>>, vector<1x1xf32>
    %244 = arith.addf %242, %243 : vector<1x1xf32>
    %cst_226 = arith.constant 0.000000e+00 : f32
    %245 = vector.broadcast %cst_226 : f32 to vector<1x1xf32>
    %246 = arith.cmpf oge, %244, %245 : vector<1x1xf32>
    %cst_227 = arith.constant 2.000000e-01 : f32
    %247 = vector.broadcast %cst_227 : f32 to vector<1x1xf32>
    %248 = arith.mulf %247, %244 : vector<1x1xf32>
    %249 = arith.select %246, %244, %248 : vector<1x1xi1>, vector<1x1xf32>
    %c0_228 = arith.constant 0 : index
    %c0_229 = arith.constant 0 : index
    %250 = vector.load %arg6[%c0_228, %c0_229] : memref<1x16xf32, #tpu.memory_space<vmem>>, vector<1x16xf32>
    %cst_230 = arith.constant dense<0.000000e+00> : vector<1x16xf32>
    %251 = tpu.matmul %249, %250, %cst_230 {dimension_numbers = #tpu.dot_dimension_numbers<[1], [0], [0], [1], [0, 0, 1, 1], [], []>} : vector<1x1xf32>, vector<1x16xf32>, vector<1x16xf32> -> vector<1x16xf32>
    %c0_231 = arith.constant 0 : index
    %c0_232 = arith.constant 0 : index
    %252 = vector.load %arg7[%c0_231, %c0_232] : memref<1x16xf32, #tpu.memory_space<vmem>>, vector<1x16xf32>
    %253 = arith.addf %251, %252 : vector<1x16xf32>
    %254 = arith.negf %253 : vector<1x16xf32>
    %255 = math.exp %254 : vector<1x16xf32>
    %cst_233 = arith.constant 1.000000e+00 : f32
    %256 = vector.broadcast %cst_233 : f32 to vector<1x16xf32>
    %257 = arith.addf %256, %255 : vector<1x16xf32>
    %258 = arith.divf %256, %257 : vector<1x16xf32>
    %c0_234 = arith.constant 0 : index
    %c0_235 = arith.constant 0 : index
    %259 = vector.load %arg9[%c0_234, %c0_235] : memref<16x256xf32, #tpu.memory_space<vmem>>, vector<16x256xf32>
    %cst_236 = arith.constant dense<0.000000e+00> : vector<1x256xf32>
    %260 = tpu.matmul %258, %259, %cst_236 {dimension_numbers = #tpu.dot_dimension_numbers<[1], [0], [0], [1], [0, 0, 1, 1], [], []>} : vector<1x16xf32>, vector<16x256xf32>, vector<1x256xf32> -> vector<1x256xf32>
    %261 = vector.broadcast %260 : vector<1x256xf32> to vector<16x256xf32>
    %262 = arith.mulf %234, %261 : vector<16x256xf32>
    %c0_237 = arith.constant 0 : index
    %c0_238 = arith.constant 0 : index
    %c0_239 = arith.constant 0 : index
    %263 = vector.load %arg10[%c0_237, %c0_238, %c0_239] : memref<1x16x256xf32, #tpu.memory_space<vmem>>, vector<1x16x256xf32>
    %264 = vector.shape_cast %263 : vector<1x16x256xf32> to vector<16x256xf32>
    %265 = vector.shape_cast %262 : vector<16x256xf32> to vector<1x16x256xf32>
    tpu.vector_store %arg10[%c0_237, %c0_238, %c0_239], %265 {strides = array<i32>} : memref<1x16x256xf32, #tpu.memory_space<vmem>>, vector<1x16x256xf32>,
    return
  }
  func.func @transform_0(%arg0: i32) -> (i32, i32, i32) {
    %c0_i32 = arith.constant 0 : i32
    %c0_i32_0 = arith.constant 0 : i32
    %c0_i32_1 = arith.constant 0 : i32
    return %arg0, %c0_i32, %c0_i32_0 : i32, i32, i32
  }
  func.func @transform_1(%arg0: i32) -> (i32, i32, i32) {
    %c0_i32 = arith.constant 0 : i32
    %c0_i32_0 = arith.constant 0 : i32
    %c0_i32_1 = arith.constant 0 : i32
    %c0_i32_2 = arith.constant 0 : i32
    return %c0_i32, %c0_i32_0, %c0_i32_1 : i32, i32, i32
  }
  func.func @transform_2(%arg0: i32) -> (i32, i32) {
    %c0_i32 = arith.constant 0 : i32
    %c0_i32_0 = arith.constant 0 : i32
    %c0_i32_1 = arith.constant 0 : i32
    return %c0_i32, %c0_i32_0 : i32, i32
  }
  func.func @transform_3(%arg0: i32) -> (i32, i32) {
    %c0_i32 = arith.constant 0 : i32
    %c0_i32_0 = arith.constant 0 : i32
    %c0_i32_1 = arith.constant 0 : i32
    return %c0_i32, %c0_i32_0 : i32, i32
  }
  func.func @transform_4(%arg0: i32) -> (i32, i32) {
    %c0_i32 = arith.constant 0 : i32
    %c0_i32_0 = arith.constant 0 : i32
    %c0_i32_1 = arith.constant 0 : i32
    return %c0_i32, %c0_i32_0 : i32, i32
  }
  func.func @transform_5(%arg0: i32) -> (i32, i32) {
    %c0_i32 = arith.constant 0 : i32
    %c0_i32_0 = arith.constant 0 : i32
    %c0_i32_1 = arith.constant 0 : i32
    return %c0_i32, %c0_i32_0 : i32, i32
  }
  func.func @transform_6(%arg0: i32) -> (i32, i32) {
    %c0_i32 = arith.constant 0 : i32
    %c0_i32_0 = arith.constant 0 : i32
    %c0_i32_1 = arith.constant 0 : i32
    return %c0_i32, %c0_i32_0 : i32, i32
  }
  func.func @transform_7(%arg0: i32) -> (i32, i32) {
    %c0_i32 = arith.constant 0 : i32
    %c0_i32_0 = arith.constant 0 : i32
    %c0_i32_1 = arith.constant 0 : i32
    return %c0_i32, %c0_i32_0 : i32, i32
  }
  func.func @transform_8(%arg0: i32) -> (i32, i32) {
    %c0_i32 = arith.constant 0 : i32
    %c0_i32_0 = arith.constant 0 : i32
    %c0_i32_1 = arith.constant 0 : i32
    return %c0_i32, %c0_i32_0 : i32, i32
  }
  func.func @transform_9(%arg0: i32) -> (i32, i32, i32) {
    %c0_i32 = arith.constant 0 : i32
    %c0_i32_0 = arith.constant 0 : i32
    %c0_i32_1 = arith.constant 0 : i32
    return %arg0, %c0_i32, %c0_i32_0 : i32, i32, i32
  }
}

</mosaic_0001>

<bundles_post_ra>
// kernel: rablock_forward.1
= control target key start
LH: loop header
LB: loop body
LE: loop exit
PB: predicated region body
PF: predicated region fallthrough
CT: control target
= control target key end

     0   :  { %s7210_s0 = inlined_call_operand.vmem [shape: f32[2,16,256], index: 0, kind: input, shape index: {}]   ;;  %s7211_s1 = inlined_call_operand.hbm [shape: f32[31,256,256], index: 1, kind: input, shape index: {}]   ;;  %s7212_s2 = inlined_call_operand.hbm [shape: f32[10,256], index: 2, kind: input, shape index: {}]   ;;  %s7213_s3 = inlined_call_operand.vmem [shape: f32[16,1], index: 3, kind: input, shape index: {}]   ;;  %s7214_s4 = inlined_call_operand.<no memory space> [shape: f32[1,1], index: 4, kind: input, shape index: {}]   ;;  %s7215_s5 = inlined_call_operand.hbm [shape: f32[1,16], index: 5, kind: input, shape index: {}]   ;;  %s7216_s6 = inlined_call_operand.hbm [shape: f32[1,16], index: 6, kind: input, shape index: {}]   ;;  %s7217_s7 = inlined_call_operand.vmem [shape: f32[256,16], index: 7, kind: input, shape index: {}]   ;;  %s7218_s8 = inlined_call_operand.hbm [shape: f32[16,256], index: 8, kind: input, shape index: {}]   ;;  %s7219_s9 = inlined_call_operand.vmem [shape: f32[2,16,256], index: 9, kind: output, shape index: {}]  }
   0x1   :  { %v14_v0 = vstv %s7214_s4 }
   0x2   :  { %15 = vst [vmem:[#allocation3] sm:$0x1] %v14_v0 }
   0x3   :  { %16 = vsyncpa [#allocation5], 0 }
   0x4   :  { %17 = vsyncpa [#allocation7], 0 }
   0x5   :  { %18 = vsyncpa [#allocation10], 0  ;;  %s6572_s11 = smov 0  }
   0x6 LB: > { %s6578_s12 = sadd.s32 4294967295, %s6508_s11   ;;  %p6212_p0 = scmp.ge.s32.totalorder %s6508_s11, 1  ;;  %s6508_s11 = sphi %s6572_s11, %s24_s11  }
   0x7   : > { %p249_p1 = scmp.lt.s32.totalorder %s6508_s11, 3  ;;  %p6326_p2 = scmp.eq.s32.totalorder %s6578_s12, 0 }
   0x8   : > { %s6510_s13 = smov [#allocation6]   ;;  %s6511_s15 = smov [#allocation9]  }
   0x9   : > { %p6583_p3 = pnand %p6212_p0, %p249_p1  ;;  %s274_s14 = sshll.u32 %s6510_s13, 4  ;;  %s275_s14 = int_to_ptr.vmem [resolvable:$true] %s274_s14 }
   0xa   : > { %s305_s16 = sshll.u32 %s6511_s15, 4  ;;  %s6512_s18 = smov [#allocation4]   ;;  %s6589_s16 = int_to_ptr.vmem [resolvable:$true] %s305_s16 }
   0xb   : > { %p6310_p4 = pneg %p6583_p3  ;;  %s261_s19 = sshll.u32 %s6512_s18, 4  ;;  %s6597_s19 = int_to_ptr.vmem [resolvable:$true] %s261_s19 }
   0xc   : > { %s6513_s20 = smov [#allocation8]   ;;  %s6371_s23 = scalar_lea.vmem %s275_s14, 512 }
   0xd   : > { %p6593_p5 = pnand %p6326_p2, %p6310_p4  ;;  %s6599_s21 = sshll.u32 %s6513_s20, 4  ;;  %s295_s21 = int_to_ptr.vmem [resolvable:$true] %s6599_s21 }
   0xe   : > { %p6372_p7 = scmp.ne.s32.totalorder %s275_s14, %s6371_s23  ;;  %p6379_p10 = scmp.lt.s32.totalorder %s275_s14, %s275_s14 }
   0xf   : > { %p6603_p6 = pneg %p6593_p5  ;;  %p6380_p11 = scmp.lt.s32.totalorder %s6371_s23, %s6371_s23 }
  0x11   : > { %p6374_p8 = pnand %p6372_p7, %p6603_p6  ;;  %p6381_p12 = por %p6380_p11, %p6379_p10 }
  0x13   : > { %p6375_p9 = pneg %p6374_p8 }
  0x15   : > { %p6382_p13 = pnand %p6381_p12, %p6375_p9 }
  0x17   : > { %6385 = shalt.err (!%p6382_p13)
}
  0x18   : > { %s6514_s24 = smov 256   ;;  %s6515_s25 = smov 16  }
  0x19   : > { %6316 = dma.hbm_to_vmem [thread:$0]  (!%p6593_p5), %s7212_s2, 512, %s275_s14, [#allocation7], %s6514_s24, %s6514_s24, %s6515_s25  }
  0x1a   : > { %s6397_s28 = scalar_lea.vmem %s6589_s16, 16  ;;  %s6404_s29 = scalar_lea.vmem %s6589_s16, 32 }
  0x1b   : > { %p6398_p0 = scmp.ne.s32.totalorder %s6589_s16, %s6397_s28  ;;  %p6405_p7 = scmp.lt.s32.totalorder %s6589_s16, %s6589_s16 }
  0x1c   : > { %p6406_p8 = scmp.lt.s32.totalorder %s6404_s29, %s6397_s28 }
  0x1d   : > { %p6400_p1 = pnand %p6398_p0, %p6603_p6 }
  0x1e   : > { %p6407_p9 = por %p6406_p8, %p6405_p7 }
  0x1f   : > { %p6401_p4 = pneg %p6400_p1 }
  0x21   : > { %p6408_p10 = pnand %p6407_p9, %p6401_p4 }
  0x23   : > { %6411 = shalt.err (!%p6408_p10)
}
  0x24   : > { %6322 = dma.hbm_to_vmem [thread:$0]  (!%p6593_p5), %s7216_s6, 16, %s6589_s16, [#allocation10]  }
  0x25   : > { %s6423_s13 = scalar_lea.vmem %s6597_s19, 253952  ;;  %p6431_p0 = scmp.lt.s32.totalorder %s6597_s19, %s6597_s19 }
  0x26   : > { %p6424_p11 = scmp.ne.s32.totalorder %s6597_s19, %s6423_s13  ;;  %p6432_p1 = scmp.lt.s32.totalorder %s6423_s13, %s6423_s13 }
  0x28   : > { %p6426_p12 = pnand %p6424_p11, %p6603_p6  ;;  %p6433_p4 = por %p6432_p1, %p6431_p0 }
  0x2a   : > { %p6427_p13 = pneg %p6426_p12 }
  0x2c   : > { %p6434_p7 = pnand %p6433_p4, %p6427_p13 }
  0x2e   : > { %6437 = shalt.err (!%p6434_p7)
}
  0x2f   : > { %6313 = dma.hbm_to_vmem [thread:$0]  (!%p6593_p5), %s7211_s1, 253952, %s6597_s19, [#allocation5], %s6514_s24, %s6514_s24, %s6515_s25  }
  0x30   : > { %s6449_s16 = scalar_lea.vmem %s295_s21, 16  ;;  %s6456_s18 = scalar_lea.vmem %s295_s21, 32 }
  0x31   : > { %p6450_p8 = scmp.ne.s32.totalorder %s295_s21, %s6449_s16  ;;  %p6457_p11 = scmp.lt.s32.totalorder %s295_s21, %s295_s21 }
  0x32   : > { %p6458_p12 = scmp.lt.s32.totalorder %s6456_s18, %s6449_s16 }
  0x33   : > { %p6452_p9 = pnand %p6450_p8, %p6603_p6 }
  0x34   : > { %p6459_p13 = por %p6458_p12, %p6457_p11 }
  0x35   : > { %p6453_p10 = pneg %p6452_p9 }
  0x37   : > { %p6460_p0 = pnand %p6459_p13, %p6453_p10 }
  0x39   : > { %6463 = shalt.err (!%p6460_p0)
}
  0x3a   : > { %6319 = dma.hbm_to_vmem [thread:$0]  (!%p6593_p5), %s7215_s5, 16, %s295_s21, [#allocation7]  }
  0x3b   : > { %s6516_s19 = smov [#allocation11]  }
  0x3c   : > { %s318_s26 = sshll.u32 %s6516_s19, 4  ;;  %s319_s26 = int_to_ptr.vmem [resolvable:$true] %s318_s26 }
  0x3d   : > { %s6475_s27 = scalar_lea.vmem %s319_s26, 512  ;;  %p6483_p8 = scmp.lt.s32.totalorder %s319_s26, %s319_s26 }
  0x3e   : > { %p6476_p1 = scmp.ne.s32.totalorder %s319_s26, %s6475_s27  ;;  %p6484_p9 = scmp.lt.s32.totalorder %s6475_s27, %s6475_s27 }
  0x40   : > { %p6478_p4 = pnand %p6476_p1, %p6603_p6  ;;  %p6485_p11 = por %p6484_p9, %p6483_p8 }
  0x42   : > { %p6479_p7 = pneg %p6478_p4 }
  0x44   : > { %p6486_p10 = pnand %p6485_p11, %p6479_p7 }
  0x46   : > { %6489 = shalt.err (!%p6486_p10)
}
  0x47   : > { %6325 = dma.hbm_to_vmem [thread:$0]  (!%p6593_p5), %s7218_s8, 512, %s319_s26, [#allocation10], %s6514_s24, %s6514_s24, %s6515_s25  }
  0x48   : > { %342 = sbr.rel (%p6583_p3) target bundleno = 3414 (0xd56), region = 56 }
  0x4d   : > { %6495 = dma.done.wait (%p6326_p2), [#allocation5], 253952  }
  0x4e   : > { %6497 = vsyncadd (%p6326_p2), [#allocation5], 4294713344 }
  0x4f   : > { %6499 = dma.done.wait (%p6326_p2), [#allocation7], 528  }
  0x50   : > { %6501 = vsyncadd (%p6326_p2), [#allocation7], 4294966768 }
  0x51   : > { %6503 = dma.done.wait (%p6326_p2), [#allocation10], 528  }
  0x52   : > { %6505 = vsyncadd (%p6326_p2), [#allocation10], 4294966768  ;;  %v6517_v1 = vmov 0.0   ;;  %v524_v2 = vld [vmem:[#allocation4 + $0x2f8] sm:$0xff]  ;;  %v523_v4 = vld [vmem:[#allocation4 + $0x2f0] sm:$0xff]  ;;  %p394_p2 = scmp.lt.s32.totalorder %s6578_s12, 1 }
  0x53   : > { %404 = vst [vmem:[#allocation2 + $0x30] sm:$0xff] %v6517_v1  ;;  %405 = vst [vmem:[#allocation2] sm:$0xff] %v6517_v1  ;;  %v457_v3 = vld [vmem:[#allocation4 + $0xf8] sm:$0xff]  ;;  %557 = vmatprep.subr.mxu0 %v524_v2  ;;  %v456_v5 = vld [vmem:[#allocation4 + $0xf0] sm:$0xff]  ;;  %vm640_vm0 = vcmask 1040384   ;;  %vm809_vm1 = vcmask 1046528  }
  0x54   : > { %410 = vst [vmem:[#allocation2 + $0x28] sm:$0xff] %v6517_v1  ;;  %411 = vst [vmem:[#allocation2 + $0x38] sm:$0xff] %v6517_v1  ;;  %655 = vmatprep.subr.mxu1 %v457_v3  ;;  %v522_v6 = vld [vmem:[#allocation4 + $0x2e8] sm:$0xff]  ;;  %558 = vmatpush1.msra.mxu0 %v523_v4  ;;  %v521_v8 = vld [vmem:[#allocation4 + $0x2e0] sm:$0xff]  ;;  %s7224_s12 = smov (!%p394_p2, %s6578_s12), 1  ;;  %vm1158_vm5 = vcmask 1041408  }
  0x55   : > { %v455_v7 = vld [vmem:[#allocation4 + $0xe8] sm:$0xff]  ;;  %656 = vmatpush1.msra.mxu1 %v456_v5  ;;  %v454_v9 = vld [vmem:[#allocation4 + $0xe0] sm:$0xff]  ;;  %v520_v10 = vld [vmem:[#allocation4 + $0x2d8] sm:$0xff]  ;;  %559 = vmatprep.subr.mxu0 %v522_v6  ;;  %s6236_s4 = sshll.u32 %s7224_s12, 5  ;;  %vm1327_vm7 = vcmask 1045504   ;;  %vm1677_vm8 = vcmask 1042432  }
  0x56   : > { %657 = vmatprep.subr.mxu1 %v455_v7  ;;  %v453_v11 = vld [vmem:[#allocation4 + $0xd8] sm:$0xff]  ;;  %v519_v12 = vld [vmem:[#allocation4 + $0x2d0] sm:$0xff]  ;;  %560 = vmatpush1.msra.mxu0 %v521_v8  ;;  %v518_v14 = vld [vmem:[#allocation4 + $0x2c8] sm:$0xff]  ;;  %s6689_s24 = scalar_lea.vmem %s7210_s0, %s6236_s4  ;;  %vm1846_vm9 = vcmask 1044480   ;;  %vm2196_vm13 = vcmask 1043456   ;;  %s403_s27 = scalar_lea.vmem %s7219_s9, %s6236_s4 }
  0x57   : > { %v452_v13 = vld [vmem:[#allocation4 + $0xd0] sm:$0xff]  ;;  %658 = vmatpush1.msra.mxu1 %v454_v9  ;;  %v451_v15 = vld [vmem:[#allocation4 + $0xc8] sm:$0xff]  ;;  %561 = vmatprep.subr.mxu0 %v520_v10  ;;  %v517_v16 = vld [vmem:[#allocation4 + $0x2c0] sm:$0xff] }
  0x58   : > { %659 = vmatprep.subr.mxu1 %v453_v11  ;;  %v450_v17 = vld [vmem:[#allocation4 + $0xc0] sm:$0xff]  ;;  %562 = vmatpush1.msra.mxu0 %v519_v12  ;;  %v516_v18 = vld [vmem:[#allocation4 + $0x2b8] sm:$0xff]  ;;  %v515_v20 = vld [vmem:[#allocation4 + $0x2b0] sm:$0xff] }
  0x59   : > { %660 = vmatpush1.msra.mxu1 %v452_v13  ;;  %v449_v19 = vld [vmem:[#allocation4 + $0xb8] sm:$0xff]  ;;  %563 = vmatprep.subr.mxu0 %v518_v14  ;;  %v448_v21 = vld [vmem:[#allocation4 + $0xb0] sm:$0xff]  ;;  %v514_v22 = vld [vmem:[#allocation4 + $0x2a8] sm:$0xff] }
  0x5a   : > { %661 = vmatprep.subr.mxu1 %v451_v15  ;;  %564 = vmatpush1.msra.mxu0 %v517_v16  ;;  %v447_v23 = vld [vmem:[#allocation4 + $0xa8] sm:$0xff]  ;;  %v513_v24 = vld [vmem:[#allocation4 + $0x2a0] sm:$0xff]  ;;  %v512_v26 = vld [vmem:[#allocation4 + $0x298] sm:$0xff] }
  0x5b   : > { %662 = vmatpush1.msra.mxu1 %v450_v17  ;;  %565 = vmatprep.subr.mxu0 %v516_v18  ;;  %v446_v25 = vld [vmem:[#allocation4 + $0xa0] sm:$0xff]  ;;  %v445_v27 = vld [vmem:[#allocation4 + $0x98] sm:$0xff]  ;;  %v511_v28 = vld [vmem:[#allocation4 + $0x290] sm:$0xff] }
  0x5c   : > { %663 = vmatprep.subr.mxu1 %v449_v19  ;;  %566 = vmatpush1.msra.mxu0 %v515_v20  ;;  %v444_v29 = vld [vmem:[#allocation4 + $0x90] sm:$0xff]  ;;  %v510_v30 = vld [vmem:[#allocation4 + $0x288] sm:$0xff]  ;;  %v509_v32 = vld [vmem:[#allocation4 + $0x280] sm:$0xff] }
  0x5d   : > { %664 = vmatpush1.msra.mxu1 %v448_v21  ;;  %567 = vmatprep.subr.mxu0 %v514_v22  ;;  %v443_v31 = vld [vmem:[#allocation4 + $0x88] sm:$0xff]  ;;  %v442_v33 = vld [vmem:[#allocation4 + $0x80] sm:$0xff]  ;;  %v508_v34 = vld [vmem:[#allocation4 + $0x278] sm:$0xff] }
  0x5e   : > { %665 = vmatprep.subr.mxu1 %v447_v23  ;;  %568 = vmatpush1.msra.mxu0 %v513_v24  ;;  %v441_v35 = vld [vmem:[#allocation4 + $0x78] sm:$0xff]  ;;  %v507_v36 = vld [vmem:[#allocation4 + $0x270] sm:$0xff]  ;;  %v506_v38 = vld [vmem:[#allocation4 + $0x268] sm:$0xff] }
  0x5f   : > { %666 = vmatpush1.msra.mxu1 %v446_v25  ;;  %569 = vmatprep.subr.mxu0 %v512_v26  ;;  %v440_v37 = vld [vmem:[#allocation4 + $0x70] sm:$0xff]  ;;  %v439_v39 = vld [vmem:[#allocation4 + $0x68] sm:$0xff]  ;;  %v505_v40 = vld [vmem:[#allocation4 + $0x260] sm:$0xff] }
  0x60   : > { %667 = vmatprep.subr.mxu1 %v445_v27  ;;  %570 = vmatpush1.msra.mxu0 %v511_v28  ;;  %v438_v41 = vld [vmem:[#allocation4 + $0x60] sm:$0xff]  ;;  %v504_v42 = vld [vmem:[#allocation4 + $0x258] sm:$0xff]  ;;  %v503_v44 = vld [vmem:[#allocation4 + $0x250] sm:$0xff] }
  0x61   : > { %668 = vmatpush1.msra.mxu1 %v444_v29  ;;  %571 = vmatprep.subr.mxu0 %v510_v30  ;;  %v437_v43 = vld [vmem:[#allocation4 + $0x58] sm:$0xff]  ;;  %v436_v45 = vld [vmem:[#allocation4 + $0x50] sm:$0xff]  ;;  %v502_v46 = vld [vmem:[#allocation4 + $0x248] sm:$0xff] }
  0x62   : > { %669 = vmatprep.subr.mxu1 %v443_v31  ;;  %572 = vmatpush1.msra.mxu0 %v509_v32  ;;  %v435_v47 = vld [vmem:[#allocation4 + $0x48] sm:$0xff]  ;;  %v501_v48 = vld [vmem:[#allocation4 + $0x240] sm:$0xff]  ;;  %v500_v50 = vld [vmem:[#allocation4 + $0x238] sm:$0xff] }
  0x63   : > { %670 = vmatpush1.msra.mxu1 %v442_v33  ;;  %573 = vmatprep.subr.mxu0 %v508_v34  ;;  %v434_v49 = vld [vmem:[#allocation4 + $0x40] sm:$0xff]  ;;  %v433_v51 = vld [vmem:[#allocation4 + $0x38] sm:$0xff]  ;;  %v499_v52 = vld [vmem:[#allocation4 + $0x230] sm:$0xff] }
  0x64   : > { %671 = vmatprep.subr.mxu1 %v441_v35  ;;  %574 = vmatpush1.msra.mxu0 %v507_v36  ;;  %v432_v53 = vld [vmem:[#allocation4 + $0x30] sm:$0xff]  ;;  %v498_v54 = vld [vmem:[#allocation4 + $0x228] sm:$0xff]  ;;  %v497_v56 = vld [vmem:[#allocation4 + $0x220] sm:$0xff] }
  0x65   : > { %672 = vmatpush1.msra.mxu1 %v440_v37  ;;  %575 = vmatprep.subr.mxu0 %v506_v38  ;;  %v431_v55 = vld [vmem:[#allocation4 + $0x28] sm:$0xff]  ;;  %v430_v57 = vld [vmem:[#allocation4 + $0x20] sm:$0xff]  ;;  %v496_v58 = vld [vmem:[#allocation4 + $0x218] sm:$0xff] }
  0x66   : > { %673 = vmatprep.subr.mxu1 %v439_v39  ;;  %576 = vmatpush1.msra.mxu0 %v505_v40  ;;  %v429_v59 = vld [vmem:[#allocation4 + $0x18] sm:$0xff]  ;;  %v495_v60 = vld [vmem:[#allocation4 + $0x210] sm:$0xff]  ;;  %v494_v62 = vld [vmem:[#allocation4 + $0x208] sm:$0xff] }
  0x67   : > { %674 = vmatpush1.msra.mxu1 %v438_v41  ;;  %577 = vmatprep.subr.mxu0 %v504_v42  ;;  %v428_v61 = vld [vmem:[#allocation4 + $0x10] sm:$0xff]  ;;  %v427_v63 = vld [vmem:[#allocation4 + $0x8] sm:$0xff]  ;;  %v493_v0 = vld [vmem:[#allocation4 + $0x200] sm:$0xff] }
  0x68   : > { %675 = vmatprep.subr.mxu1 %v437_v43  ;;  %578 = vmatpush1.msra.mxu0 %v503_v44  ;;  %v426_v1 = vld [vmem:[#allocation4] sm:$0xff]  ;;  %v556_v2 = vld [vmem:[#allocation4 + $0x3f8] sm:$0xff]  ;;  %v555_v4 = vld [vmem:[#allocation4 + $0x3f0] sm:$0xff] }
  0x69   : > { %676 = vmatpush1.msra.mxu1 %v436_v45  ;;  %579 = vmatprep.subr.mxu0 %v502_v46  ;;  %v489_v3 = vld [vmem:[#allocation4 + $0x1f8] sm:$0xff]  ;;  %v488_v5 = vld [vmem:[#allocation4 + $0x1f0] sm:$0xff]  ;;  %v554_v6 = vld [vmem:[#allocation4 + $0x3e8] sm:$0xff] }
  0x6a   : > { %677 = vmatprep.subr.mxu1 %v435_v47  ;;  %580 = vmatpush1.msra.mxu0 %v501_v48  ;;  %v487_v7 = vld [vmem:[#allocation4 + $0x1e8] sm:$0xff]  ;;  %v553_v8 = vld [vmem:[#allocation4 + $0x3e0] sm:$0xff]  ;;  %v552_v10 = vld [vmem:[#allocation4 + $0x3d8] sm:$0xff] }
  0x6b   : > { %678 = vmatpush1.msra.mxu1 %v434_v49  ;;  %581 = vmatprep.subr.mxu0 %v500_v50  ;;  %v486_v9 = vld [vmem:[#allocation4 + $0x1e0] sm:$0xff]  ;;  %v485_v11 = vld [vmem:[#allocation4 + $0x1d8] sm:$0xff]  ;;  %v551_v12 = vld [vmem:[#allocation4 + $0x3d0] sm:$0xff] }
  0x6c   : > { %679 = vmatprep.subr.mxu1 %v433_v51  ;;  %582 = vmatpush1.msra.mxu0 %v499_v52  ;;  %v484_v13 = vld [vmem:[#allocation4 + $0x1d0] sm:$0xff]  ;;  %v550_v14 = vld [vmem:[#allocation4 + $0x3c8] sm:$0xff]  ;;  %v549_v16 = vld [vmem:[#allocation4 + $0x3c0] sm:$0xff] }
  0x6d   : > { %680 = vmatpush1.msra.mxu1 %v432_v53  ;;  %583 = vmatprep.subr.mxu0 %v498_v54  ;;  %v483_v15 = vld [vmem:[#allocation4 + $0x1c8] sm:$0xff]  ;;  %v482_v17 = vld [vmem:[#allocation4 + $0x1c0] sm:$0xff]  ;;  %v548_v18 = vld [vmem:[#allocation4 + $0x3b8] sm:$0xff] }
  0x6e   : > { %681 = vmatprep.subr.mxu1 %v431_v55  ;;  %584 = vmatpush1.msra.mxu0 %v497_v56  ;;  %v481_v19 = vld [vmem:[#allocation4 + $0x1b8] sm:$0xff]  ;;  %v547_v20 = vld [vmem:[#allocation4 + $0x3b0] sm:$0xff]  ;;  %v546_v22 = vld [vmem:[#allocation4 + $0x3a8] sm:$0xff] }
  0x6f   : > { %682 = vmatpush1.msra.mxu1 %v430_v57  ;;  %585 = vmatprep.subr.mxu0 %v496_v58  ;;  %v480_v21 = vld [vmem:[#allocation4 + $0x1b0] sm:$0xff]  ;;  %v479_v23 = vld [vmem:[#allocation4 + $0x1a8] sm:$0xff]  ;;  %v545_v24 = vld [vmem:[#allocation4 + $0x3a0] sm:$0xff] }
  0x70   : > { %683 = vmatprep.subr.mxu1 %v429_v59  ;;  %586 = vmatpush1.msra.mxu0 %v495_v60  ;;  %v478_v25 = vld [vmem:[#allocation4 + $0x1a0] sm:$0xff]  ;;  %v544_v26 = vld [vmem:[#allocation4 + $0x398] sm:$0xff]  ;;  %v543_v29 = vld [vmem:[#allocation4 + $0x390] sm:$0xff] }
  0x71   : > { %684 = vmatpush1.msra.mxu1 %v428_v61  ;;  %587 = vmatprep.subr.mxu0 %v494_v62  ;;  %v477_v27 = vld [vmem:[#allocation4 + $0x198] sm:$0xff]  ;;  %v6692_v28 = vld [vmem:[%s6689_s24 + $0x8] sm:$0xff]  ;;  %v476_v30 = vld [vmem:[#allocation4 + $0x190] sm:$0xff] }
  0x72   : > { %685 = vmatprep.subr.mxu1 %v427_v63  ;;  %588 = vmatpush1.msra.mxu0 %v493_v0  ;;  %417 = vst [vmem:[#allocation2 + $0x10] sm:$0xff] %v6692_v28  ;;  %v6696_v31 = vld [vmem:[%s6689_s24] sm:$0xff]  ;;  %v542_v32 = vld [vmem:[#allocation4 + $0x388] sm:$0xff]  ;;  %v539_v38 = vld [vmem:[#allocation4 + $0x370] sm:$0xff]  ;;  %v645_v0 = vrot.slane %v6692_v28, 7 }
  0x73   : > { %686 = vmatpush1.msra.mxu1 %v426_v1  ;;  %589 = vmatprep.subr.mxu0 %v556_v2  ;;  %v475_v33 = vld [vmem:[#allocation4 + $0x188] sm:$0xff]  ;;  %416 = vst [vmem:[#allocation2 + $0x18] sm:$0xff] %v6696_v31  ;;  %v541_v34 = vld [vmem:[#allocation4 + $0x380] sm:$0xff]  ;;  %v540_v36 = vld [vmem:[#allocation4 + $0x378] sm:$0xff] }
  0x74   : > { %687 = vmatprep.subr.mxu1 %v489_v3  ;;  %590 = vmatpush2.msra.mxu0 %v555_v4  ;;  %v474_v35 = vld [vmem:[#allocation4 + $0x180] sm:$0xff]  ;;  %v473_v37 = vld [vmem:[#allocation4 + $0x178] sm:$0xff]  ;;  %v472_v39 = vld [vmem:[#allocation4 + $0x170] sm:$0xff]  ;;  %v642_v4 = vrot.slane %v6696_v31, 7 }
  0x75   : > { %688 = vmatpush2.msra.mxu1 %v488_v5  ;;  %591 = vmatprep.subr.mxu0 %v554_v6  ;;  %v538_v40 = vld [vmem:[#allocation4 + $0x368] sm:$0xff]  ;;  %v537_v42 = vld [vmem:[#allocation4 + $0x360] sm:$0xff]  ;;  %v536_v44 = vld [vmem:[#allocation4 + $0x358] sm:$0xff] }
  0x76   : > { %689 = vmatprep.subr.mxu1 %v487_v7  ;;  %592 = vmatpush2.msra.mxu0 %v553_v8  ;;  %v471_v41 = vld [vmem:[#allocation4 + $0x168] sm:$0xff]  ;;  %v470_v43 = vld [vmem:[#allocation4 + $0x160] sm:$0xff]  ;;  %v469_v45 = vld [vmem:[#allocation4 + $0x158] sm:$0xff] }
  0x77   : > { %690 = vmatpush2.msra.mxu1 %v486_v9  ;;  %593 = vmatprep.subr.mxu0 %v552_v10  ;;  %v535_v46 = vld [vmem:[#allocation4 + $0x350] sm:$0xff]  ;;  %v534_v48 = vld [vmem:[#allocation4 + $0x348] sm:$0xff]  ;;  %v533_v50 = vld [vmem:[#allocation4 + $0x340] sm:$0xff] }
  0x78   : > { %691 = vmatprep.subr.mxu1 %v485_v11  ;;  %594 = vmatpush2.msra.mxu0 %v551_v12  ;;  %v468_v47 = vld [vmem:[#allocation4 + $0x150] sm:$0xff]  ;;  %v467_v49 = vld [vmem:[#allocation4 + $0x148] sm:$0xff]  ;;  %v466_v51 = vld [vmem:[#allocation4 + $0x140] sm:$0xff] }
  0x79   : > { %692 = vmatpush2.msra.mxu1 %v484_v13  ;;  %595 = vmatprep.subr.mxu0 %v550_v14  ;;  %v532_v52 = vld [vmem:[#allocation4 + $0x338] sm:$0xff]  ;;  %v531_v54 = vld [vmem:[#allocation4 + $0x330] sm:$0xff]  ;;  %v421_v56 = vld [vmem:[#allocation2] sm:$0x80] }
  0x7a   : > { %693 = vmatprep.subr.mxu1 %v483_v15  ;;  %596 = vmatpush2.msra.mxu0 %v549_v16  ;;  %v465_v53 = vld [vmem:[#allocation4 + $0x138] sm:$0xff]  ;;  %v464_v55 = vld [vmem:[#allocation4 + $0x130] sm:$0xff]  ;;  %v530_v57 = vld [vmem:[#allocation4 + $0x328] sm:$0xff]  ;;  %v644_v1 = vrot.slane %v421_v56, 7 }
  0x7b   : > { %694 = vmatpush2.msra.mxu1 %v482_v17  ;;  %597 = vmatprep.subr.mxu0 %v548_v18  ;;  %v463_v58 = vld [vmem:[#allocation4 + $0x128] sm:$0xff]  ;;  %v420_v59 = vld [vmem:[#allocation2 + $0x30] sm:$0x80]  ;;  %v529_v60 = vld [vmem:[#allocation4 + $0x320] sm:$0xff] }
  0x7c   : > { %695 = vmatprep.subr.mxu1 %v481_v19  ;;  %598 = vmatpush2.msra.mxu0 %v547_v20  ;;  %v462_v61 = vld [vmem:[#allocation4 + $0x120] sm:$0xff]  ;;  %v528_v62 = vld [vmem:[#allocation4 + $0x318] sm:$0xff]  ;;  %v527_v2 = vld [vmem:[#allocation4 + $0x310] sm:$0xff]  ;;  %v641_v5 = vrot.slane %v420_v59, 7  ;;  %v646_v10 = vsel %vm640_vm0, %v644_v1, %v645_v0 }
  0x7d   : > { %696 = vmatpush2.msra.mxu1 %v480_v21  ;;  %599 = vmatprep.subr.mxu0 %v546_v22  ;;  %v461_v63 = vld [vmem:[#allocation4 + $0x118] sm:$0xff]  ;;  %v460_v3 = vld [vmem:[#allocation4 + $0x110] sm:$0xff]  ;;  %v526_v6 = vld [vmem:[#allocation4 + $0x308] sm:$0xff] }
  0x7e   : > { %697 = vmatprep.subr.mxu1 %v479_v23  ;;  %600 = vmatpush2.msra.mxu0 %v545_v24  ;;  %v459_v7 = vld [vmem:[#allocation4 + $0x108] sm:$0xff]  ;;  %v525_v8 = vld [vmem:[#allocation4 + $0x300] sm:$0xff]  ;;  %v643_v11 = vsel %vm640_vm0, %v641_v5, %v642_v4  ;;  %v6706_v12 = vld [vmem:[%s6689_s24 + $0x18] sm:$0xff] }
  0x7f   : > { %698 = vmatpush2.msra.mxu1 %v478_v25  ;;  %601 = vmatprep.subr.mxu0 %v544_v26  ;;  %v458_v9 = vld [vmem:[#allocation4 + $0x100] sm:$0xff]  ;;  %v6709_v13 = vld [vmem:[%s6689_s24 + $0x10] sm:$0xff]  ;;  %v770_v14 = vld [vmem:[#allocation4 + $0x4f8] sm:$0xff]  ;;  %419 = vst [vmem:[#allocation2 + $0x20] sm:$0xff] %v6706_v12  ;;  %v814_v16 = vrot.slane %v6706_v12, 1 }
  0x80   : > { %699 = vmatprep.subr.mxu1 %v477_v27  ;;  %602 = vmatpush2.msra.mxu0 %v543_v29  ;;  %418 = vst [vmem:[#allocation2 + $0x8] sm:$0xff] %v6709_v13  ;;  %v769_v15 = vld [vmem:[#allocation4 + $0x4f0] sm:$0xff]  ;;  %v768_v17 = vld [vmem:[#allocation4 + $0x4e8] sm:$0xff]  ;;  %v767_v19 = vld [vmem:[#allocation4 + $0x4e0] sm:$0xff] }
  0x81   : > { %700 = vmatpush2.msra.mxu1 %v476_v30  ;;  %603 = vmatprep.subr.mxu0 %v542_v32  ;;  %v733_v18 = vld [vmem:[#allocation2 + $0x10] sm:$0xfe]  ;;  %v766_v21 = vld [vmem:[#allocation4 + $0x4d8] sm:$0xff]  ;;  %v764_v24 = vld [vmem:[#allocation4 + $0x4c8] sm:$0xff] }
  0x82   : > { %701 = vmatprep.subr.mxu1 %v475_v33  ;;  %604 = vmatpush2.msra.mxu0 %v541_v34  ;;  %v813_v20 = vrot.slane %v733_v18, 1  ;;  %v765_v22 = vld [vmem:[#allocation4 + $0x4d0] sm:$0xff]  ;;  %v763_v25 = vld [vmem:[#allocation4 + $0x4c0] sm:$0xff]  ;;  %v762_v29 = vld [vmem:[#allocation4 + $0x4b8] sm:$0xff] }
  0x83   : > { %702 = vmatpush2.msra.mxu1 %v474_v35  ;;  %605 = vmatprep.subr.mxu0 %v540_v36  ;;  %v761_v33 = vld [vmem:[#allocation4 + $0x4b0] sm:$0xff]  ;;  %v760_v34 = vld [vmem:[#allocation4 + $0x4a8] sm:$0xff]  ;;  %v795_v1 = vld [vmem:[#allocation4 + $0x5c0] sm:$0xff] }
  0x84   : > { %703 = vmatprep.subr.mxu1 %v473_v37  ;;  %606 = vmatpush2.msra.mxu0 %v539_v38  ;;  %v815_v23 = vsel %vm809_vm1, %v813_v20, %v814_v16  ;;  %v759_v37 = vld [vmem:[#allocation4 + $0x4a0] sm:$0xff]  ;;  %v758_v38 = vld [vmem:[#allocation4 + $0x498] sm:$0xff]  ;;  %v740_v56 = vld [vmem:[#allocation4 + $0x408] sm:$0xff] }
  0x85   : > { %704 = vmatpush2.msra.mxu1 %v472_v39  ;;  %607 = vmatprep.subr.mxu0 %v538_v40  ;;  %v757_v39 = vld [vmem:[#allocation4 + $0x490] sm:$0xff]  ;;  %v756_v40 = vld [vmem:[#allocation4 + $0x488] sm:$0xff]  ;;  %v791_v5 = vld [vmem:[#allocation4 + $0x5a0] sm:$0xff] }
  0x86   : > { %705 = vmatprep.subr.mxu1 %v471_v41  ;;  %608 = vmatpush2.msra.mxu0 %v537_v42  ;;  %v425_v26 = vld [vmem:[#allocation2 + $0x20] sm:$0x7f]  ;;  %v801_v59 = vld [vmem:[#allocation4 + $0x5f0] sm:$0xff] }
  0x87   : > { %706 = vmatpush2.msra.mxu1 %v470_v43  ;;  %609 = vmatprep.subr.mxu0 %v536_v44  ;;  %v424_v27 = vld [vmem:[#allocation2 + $0x8] sm:$0x7f]  ;;  %v649_v30 = vrot.slane %v425_v26, 7  ;;  %v754_v42 = vld [vmem:[#allocation4 + $0x478] sm:$0xff]  ;;  %v753_v43 = vld [vmem:[#allocation4 + $0x470] sm:$0xff] }
  0x88   : > { %707 = vmatprep.subr.mxu1 %v469_v45  ;;  %610 = vmatpush2.msra.mxu0 %v535_v46  ;;  %v647_v32 = vrot.slane %v424_v27, 7  ;;  %v755_v41 = vld [vmem:[#allocation4 + $0x480] sm:$0xff]  ;;  %v752_v44 = vld [vmem:[#allocation4 + $0x468] sm:$0xff]  ;;  %v750_v46 = vld [vmem:[#allocation4 + $0x458] sm:$0xff] }
  0x89   : > { %708 = vmatpush2.msra.mxu1 %v468_v47  ;;  %611 = vmatprep.subr.mxu0 %v534_v48  ;;  %v650_v35 = vsel %vm640_vm0, %v645_v0, %v649_v30  ;;  %v751_v45 = vld [vmem:[#allocation4 + $0x460] sm:$0xff]  ;;  %v749_v47 = vld [vmem:[#allocation4 + $0x450] sm:$0xff]  ;;  %v748_v48 = vld [vmem:[#allocation4 + $0x448] sm:$0xff]  ;;  %v811_v30 = vrot.slane %v6709_v13, 1 }
  0x8a   : > { %709 = vmatprep.subr.mxu1 %v467_v49  ;;  %612 = vmatpush2.msra.mxu0 %v533_v50  ;;  %v648_v36 = vsel %vm640_vm0, %v642_v4, %v647_v32  ;;  %v747_v49 = vld [vmem:[#allocation4 + $0x440] sm:$0xff]  ;;  %v746_v50 = vld [vmem:[#allocation4 + $0x438] sm:$0xff]  ;;  %v796_v0 = vld [vmem:[#allocation4 + $0x5c8] sm:$0xff] }
  0x8b   : > { %710 = vmatpush2.msra.mxu1 %v466_v51  ;;  %613 = vmatprep.subr.mxu0 %v532_v52  ;;  %v745_v51 = vld [vmem:[#allocation4 + $0x430] sm:$0xff]  ;;  %v744_v52 = vld [vmem:[#allocation4 + $0x428] sm:$0xff]  ;;  %v779_v20 = vld [vmem:[#allocation4 + $0x540] sm:$0xff] }
  0x8c   : > { %711 = vmatprep.subr.mxu1 %v465_v53  ;;  %614 = vmatpush2.msra.mxu0 %v531_v54  ;;  %v743_v53 = vld [vmem:[#allocation4 + $0x420] sm:$0xff]  ;;  %v742_v54 = vld [vmem:[#allocation4 + $0x418] sm:$0xff]  ;;  %v792_v4 = vld [vmem:[#allocation4 + $0x5a8] sm:$0xff] }
  0x8d   : > { %712 = vmatpush2.msra.mxu1 %v464_v55  ;;  %615 = vmatprep.subr.mxu0 %v530_v57  ;;  %v741_v55 = vld [vmem:[#allocation4 + $0x410] sm:$0xff]  ;;  %v739_v57 = vld [vmem:[#allocation4 + $0x400] sm:$0xff]  ;;  %v774_v27 = vld [vmem:[#allocation4 + $0x518] sm:$0xff] }
  0x8e   : > { %713 = vmatprep.subr.mxu1 %v463_v58  ;;  %616 = vmatpush2.msra.mxu0 %v529_v60  ;;  %v802_v58 = vld [vmem:[#allocation4 + $0x5f8] sm:$0xff]  ;;  %v800_v60 = vld [vmem:[#allocation4 + $0x5e8] sm:$0xff]  ;;  %v781_v18 = vld [vmem:[#allocation4 + $0x550] sm:$0xff] }
  0x8f   : > { %714 = vmatpush2.msra.mxu1 %v462_v61  ;;  %617 = vmatprep.subr.mxu0 %v528_v62  ;;  %v799_v61 = vld [vmem:[#allocation4 + $0x5e0] sm:$0xff]  ;;  %v798_v62 = vld [vmem:[#allocation4 + $0x5d8] sm:$0xff]  ;;  %v773_v32 = vld [vmem:[#allocation4 + $0x510] sm:$0xff] }
  0x90   : > { %715 = vmatprep.subr.mxu1 %v461_v63  ;;  %618 = vmatpush2.msra.mxu0 %v527_v2  ;;  %v797_v63 = vld [vmem:[#allocation4 + $0x5d0] sm:$0xff]  ;;  %v794_v2 = vld [vmem:[#allocation4 + $0x5b8] sm:$0xff]  ;;  %v775_v26 = vld [vmem:[#allocation4 + $0x520] sm:$0xff] }
  0x91   : > { %716 = vmatpush2.msra.mxu1 %v460_v3  ;;  %619 = vmatprep.subr.mxu0 %v526_v6  ;;  %v793_v3 = vld [vmem:[#allocation4 + $0x5b0] sm:$0xff]  ;;  %v790_v6 = vld [vmem:[#allocation4 + $0x598] sm:$0xff] }
  0x92   : > { %717 = vmatprep.subr.mxu1 %v459_v7  ;;  %620 = vmatpush2.msra.mxu0 %v525_v8  ;;  %v789_v7 = vld [vmem:[#allocation4 + $0x590] sm:$0xff]  ;;  %v788_v8 = vld [vmem:[#allocation4 + $0x588] sm:$0xff] }
  0x93   : > { %621 = vmatprep.mubr.f32.mxu0 %v6692_v28  ;;  %718 = vmatpush2.msra.mxu1 %v458_v9  ;;  %v787_v9 = vld [vmem:[#allocation4 + $0x580] sm:$0xff] }
  0x94   : > { %719 = vmatprep.mubr.f32.mxu1 %v646_v10  ;;  %622 = vmatmul.mubr.f32.vlgmr.msra.gmra.mxu0 %v6696_v31  ;;  %v786_v10 = vld [vmem:[#allocation4 + $0x578] sm:$0xff] }
  0x95   : > { %720 = vmatmul.mubr.f32.vlgmr.msra.gmra.mxu1 %v643_v11  ;;  %824 = vmatprep.subr.mxu0 %v770_v14  ;;  %v785_v11 = vld [vmem:[#allocation4 + $0x570] sm:$0xff]  ;;  %v784_v14 = vld [vmem:[#allocation4 + $0x568] sm:$0xff] }
  0x96   : > { %627 = vmatprep.mubr.f32.mxu0 %v6706_v12  ;;  %825 = vmatpush1.msra.mxu0 %v769_v15  ;;  %v783_v15 = vld [vmem:[#allocation4 + $0x560] sm:$0xff] }
  0x97   : > { %826 = vmatprep.subr.mxu0 %v768_v17  ;;  %725 = vmatprep.mubr.f32.mxu1 %v650_v35  ;;  %v782_v17 = vld [vmem:[#allocation4 + $0x558] sm:$0xff]  ;;  %v772_v35 = vld [vmem:[#allocation4 + $0x508] sm:$0xff] }
  0x98   : > { %827 = vmatpush1.msra.mxu0 %v767_v19  ;;  %v780_v19 = vld [vmem:[#allocation4 + $0x548] sm:$0xff] }
  0x99   : > { %828 = vmatprep.subr.mxu0 %v766_v21  ;;  %628 = vmatmul.mubr.f32.gmra.mxu0 %v6709_v13  ;;  %v778_v21 = vld [vmem:[#allocation4 + $0x538] sm:$0xff] }
  0x9a   : > { %829 = vmatpush1.msra.mxu0 %v765_v22  ;;  %888 = vmatprep.mubr.f32.mxu0 %v815_v23  ;;  %v777_v22 = vld [vmem:[#allocation4 + $0x530] sm:$0xff]  ;;  %v732_v23 = vld [vmem:[#allocation2 + $0x18] sm:$0xfe] }
  0x9b   : > { %830 = vmatprep.subr.mxu0 %v764_v24  ;;  %726 = vmatmul.mubr.f32.gmra.mxu1 %v648_v36  ;;  %v776_v24 = vld [vmem:[#allocation4 + $0x528] sm:$0xff]  ;;  %v771_v36 = vld [vmem:[#allocation4 + $0x500] sm:$0xff] }
  0x9c   : > { %831 = vmatpush1.msra.mxu0 %v763_v25  ;;  %v737_v25 = vld [vmem:[#allocation2 + $0x38] sm:$0x1] }
  0x9d   : > { %832 = vmatprep.subr.mxu0 %v762_v29  ;;  %v810_v29 = vrot.slane %v732_v23, 1  ;;  %v1019_v23 = vld [vmem:[#allocation4 + $0x840] sm:$0xff] }
  0x9e   : > { %833 = vmatpush1.msra.mxu0 %v761_v33  ;;  %v818_v33 = vrot.slane %v737_v25, 1  ;;  %v1018_v25 = vld [vmem:[#allocation4 + $0x838] sm:$0xff] }
  0x9f   : > { %834 = vmatprep.subr.mxu0 %v760_v34  ;;  %v736_v34 = vld [vmem:[#allocation2 + $0x28] sm:$0x1] }
  0xa0   : > { %835 = vmatpush1.msra.mxu0 %v759_v37  ;;  %v812_v37 = vsel %vm809_vm1, %v810_v29, %v811_v30  ;;  %v952_v29 = vld [vmem:[#allocation4 + $0x640] sm:$0xff] }
  0xa1   : > { %836 = vmatprep.subr.mxu0 %v758_v38  ;;  %v816_v38 = vrot.slane %v736_v34, 1  ;;  %v950_v34 = vld [vmem:[#allocation4 + $0x630] sm:$0xff] }
  0xa2   : > { %837 = vmatpush1.msra.mxu0 %v757_v39  ;;  %v819_v39 = vsel %vm809_vm1, %v814_v16, %v818_v33  ;;  %v972_v16 = vld [vmem:[#allocation4 + $0x6e0] sm:$0xff] }
  0xa3   : > { %838 = vmatprep.subr.mxu0 %v756_v40  ;;  %v817_v40 = vsel %vm809_vm1, %v811_v30, %v816_v38  ;;  %v1016_v30 = vld [vmem:[#allocation4 + $0x828] sm:$0xff]  ;;  %v1015_v33 = vld [vmem:[#allocation4 + $0x820] sm:$0xff] }
  0xa4   : > { %839 = vmatpush1.msra.mxu0 %v755_v41  ;;  %v1042_v41 = vld [vmem:[#allocation4 + $0x8f8] sm:$0xff]  ;;  %v948_v38 = vld [vmem:[#allocation4 + $0x620] sm:$0xff] }
  0xa5   : > { %840 = vmatprep.subr.mxu0 %v754_v42  ;;  %v1041_v42 = vld [vmem:[#allocation4 + $0x8f0] sm:$0xff]  ;;  %1075 = vmatprep.subr.mxu1 %v1042_v41  ;;  %v1011_v41 = vld [vmem:[#allocation4 + $0x800] sm:$0xff] }
  0xa6   : > { %841 = vmatpush1.msra.mxu0 %v753_v43  ;;  %v1040_v43 = vld [vmem:[#allocation4 + $0x8e8] sm:$0xff]  ;;  %1076 = vmatpush1.msra.mxu1 %v1041_v42  ;;  %v946_v42 = vld [vmem:[#allocation4 + $0x610] sm:$0xff] }
  0xa7   : > { %842 = vmatprep.subr.mxu0 %v752_v44  ;;  %v1039_v44 = vld [vmem:[#allocation4 + $0x8e0] sm:$0xff]  ;;  %1077 = vmatprep.subr.mxu1 %v1040_v43  ;;  %v1074_v43 = vld [vmem:[#allocation4 + $0x9f8] sm:$0xff] }
  0xa8   : > { %843 = vmatpush1.msra.mxu0 %v751_v45  ;;  %v975_v45 = vld [vmem:[#allocation4 + $0x6f8] sm:$0xff]  ;;  %1078 = vmatpush1.msra.mxu1 %v1039_v44  ;;  %v945_v44 = vld [vmem:[#allocation4 + $0x608] sm:$0xff] }
  0xa9   : > { %844 = vmatprep.subr.mxu0 %v750_v46  ;;  %v1038_v46 = vld [vmem:[#allocation4 + $0x8d8] sm:$0xff] }
  0xaa   : > { %845 = vmatpush1.msra.mxu0 %v749_v47  ;;  %v974_v47 = vld [vmem:[#allocation4 + $0x6f0] sm:$0xff]  ;;  %1079 = vmatprep.subr.mxu1 %v1038_v46  ;;  %v944_v46 = vld [vmem:[#allocation4 + $0x600] sm:$0xff] }
  0xab   : > { %846 = vmatprep.subr.mxu0 %v748_v48  ;;  %v973_v48 = vld [vmem:[#allocation4 + $0x6e8] sm:$0xff] }
  0xac   : > { %847 = vmatpush1.msra.mxu0 %v747_v49  ;;  %v1037_v49 = vld [vmem:[#allocation4 + $0x8d0] sm:$0xff] }
  0xad   : > { %848 = vmatprep.subr.mxu0 %v746_v50  ;;  %v1036_v50 = vld [vmem:[#allocation4 + $0x8c8] sm:$0xff]  ;;  %1080 = vmatpush1.msra.mxu1 %v1037_v49  ;;  %v1071_v49 = vld [vmem:[#allocation4 + $0x9e0] sm:$0xff] }
  0xae   : > { %849 = vmatpush1.msra.mxu0 %v745_v51  ;;  %v971_v51 = vld [vmem:[#allocation4 + $0x6d8] sm:$0xff]  ;;  %1081 = vmatprep.subr.mxu1 %v1036_v50 }
  0xaf   : > { %850 = vmatprep.subr.mxu0 %v744_v52  ;;  %v1035_v52 = vld [vmem:[#allocation4 + $0x8c0] sm:$0xff]  ;;  %v1070_v50 = vld [vmem:[#allocation4 + $0x9d8] sm:$0xff] }
  0xb0   : > { %851 = vmatpush1.msra.mxu0 %v743_v53  ;;  %v970_v53 = vld [vmem:[#allocation4 + $0x6d0] sm:$0xff]  ;;  %1082 = vmatpush1.msra.mxu1 %v1035_v52 }
  0xb1   : > { %852 = vmatprep.subr.mxu0 %v742_v54  ;;  %v1034_v54 = vld [vmem:[#allocation4 + $0x8b8] sm:$0xff]  ;;  %v1069_v52 = vld [vmem:[#allocation4 + $0x9d0] sm:$0xff] }
  0xb2   : > { %853 = vmatpush1.msra.mxu0 %v741_v55  ;;  %v969_v55 = vld [vmem:[#allocation4 + $0x6c8] sm:$0xff]  ;;  %1083 = vmatprep.subr.mxu1 %v1034_v54 }
  0xb3   : > { %854 = vmatprep.subr.mxu0 %v740_v56  ;;  %v1033_v56 = vld [vmem:[#allocation4 + $0x8b0] sm:$0xff]  ;;  %v1068_v54 = vld [vmem:[#allocation4 + $0x9c8] sm:$0xff] }
  0xb4   : > { %855 = vmatpush1.msra.mxu0 %v739_v57  ;;  %v968_v57 = vld [vmem:[#allocation4 + $0x6c0] sm:$0xff]  ;;  %1084 = vmatpush1.msra.mxu1 %v1033_v56 }
  0xb5   : > { %856 = vmatprep.subr.mxu0 %v802_v58  ;;  %v1032_v58 = vld [vmem:[#allocation4 + $0x8a8] sm:$0xff]  ;;  %v1067_v56 = vld [vmem:[#allocation4 + $0x9c0] sm:$0xff] }
  0xb6   : > { %857 = vmatpush2.msra.mxu0 %v801_v59  ;;  %v967_v59 = vld [vmem:[#allocation4 + $0x6b8] sm:$0xff]  ;;  %1085 = vmatprep.subr.mxu1 %v1032_v58 }
  0xb7   : > { %858 = vmatprep.subr.mxu0 %v800_v60  ;;  %v1031_v60 = vld [vmem:[#allocation4 + $0x8a0] sm:$0xff]  ;;  %v1066_v58 = vld [vmem:[#allocation4 + $0x9b8] sm:$0xff] }
  0xb8   : > { %859 = vmatpush2.msra.mxu0 %v799_v61  ;;  %v966_v61 = vld [vmem:[#allocation4 + $0x6b0] sm:$0xff]  ;;  %1086 = vmatpush1.msra.mxu1 %v1031_v60 }
  0xb9   : > { %860 = vmatprep.subr.mxu0 %v798_v62  ;;  %v1030_v62 = vld [vmem:[#allocation4 + $0x898] sm:$0xff]  ;;  %v1065_v60 = vld [vmem:[#allocation4 + $0x9b0] sm:$0xff] }
  0xba   : > { %861 = vmatpush2.msra.mxu0 %v797_v63  ;;  %v965_v63 = vld [vmem:[#allocation4 + $0x6a8] sm:$0xff]  ;;  %1087 = vmatprep.subr.mxu1 %v1030_v62 }
  0xbb   : > { %862 = vmatprep.subr.mxu0 %v796_v0  ;;  %v1029_v0 = vld [vmem:[#allocation4 + $0x890] sm:$0xff]  ;;  %v1064_v62 = vld [vmem:[#allocation4 + $0x9a8] sm:$0xff] }
  0xbc   : > { %863 = vmatpush2.msra.mxu0 %v795_v1  ;;  %v964_v1 = vld [vmem:[#allocation4 + $0x6a0] sm:$0xff]  ;;  %1088 = vmatpush1.msra.mxu1 %v1029_v0 }
  0xbd   : > { %864 = vmatprep.subr.mxu0 %v794_v2  ;;  %v1028_v2 = vld [vmem:[#allocation4 + $0x888] sm:$0xff]  ;;  %v1063_v0 = vld [vmem:[#allocation4 + $0x9a0] sm:$0xff] }
  0xbe   : > { %865 = vmatpush2.msra.mxu0 %v793_v3  ;;  %v963_v3 = vld [vmem:[#allocation4 + $0x698] sm:$0xff]  ;;  %1089 = vmatprep.subr.mxu1 %v1028_v2 }
  0xbf   : > { %866 = vmatprep.subr.mxu0 %v792_v4  ;;  %v1027_v4 = vld [vmem:[#allocation4 + $0x880] sm:$0xff]  ;;  %v1062_v2 = vld [vmem:[#allocation4 + $0x998] sm:$0xff] }
  0xc0   : > { %867 = vmatpush2.msra.mxu0 %v791_v5  ;;  %v962_v5 = vld [vmem:[#allocation4 + $0x690] sm:$0xff]  ;;  %1090 = vmatpush1.msra.mxu1 %v1027_v4 }
  0xc1   : > { %868 = vmatprep.subr.mxu0 %v790_v6  ;;  %v1026_v6 = vld [vmem:[#allocation4 + $0x878] sm:$0xff]  ;;  %v1061_v4 = vld [vmem:[#allocation4 + $0x990] sm:$0xff] }
  0xc2   : > { %869 = vmatpush2.msra.mxu0 %v789_v7  ;;  %v961_v7 = vld [vmem:[#allocation4 + $0x688] sm:$0xff]  ;;  %1091 = vmatprep.subr.mxu1 %v1026_v6  ;;  %v996_v6 = vld [vmem:[#allocation4 + $0x7a0] sm:$0xff] }
  0xc3   : > { %870 = vmatprep.subr.mxu0 %v788_v8  ;;  %v1025_v8 = vld [vmem:[#allocation4 + $0x870] sm:$0xff] }
  0xc4   : > { %871 = vmatpush2.msra.mxu0 %v787_v9  ;;  %v960_v9 = vld [vmem:[#allocation4 + $0x680] sm:$0xff]  ;;  %1092 = vmatpush1.msra.mxu1 %v1025_v8  ;;  %v995_v8 = vld [vmem:[#allocation4 + $0x798] sm:$0xff] }
  0xc5   : > { %872 = vmatprep.subr.mxu0 %v786_v10  ;;  %v1024_v10 = vld [vmem:[#allocation4 + $0x868] sm:$0xff] }
  0xc6   : > { %873 = vmatpush2.msra.mxu0 %v785_v11  ;;  %v959_v11 = vld [vmem:[#allocation4 + $0x678] sm:$0xff]  ;;  %1093 = vmatprep.subr.mxu1 %v1024_v10  ;;  %v994_v10 = vld [vmem:[#allocation4 + $0x790] sm:$0xff] }
  0xc7   : > { %874 = vmatprep.subr.mxu0 %v784_v14  ;;  %v1023_v14 = vld [vmem:[#allocation4 + $0x860] sm:$0xff] }
  0xc8   : > { %875 = vmatpush2.msra.mxu0 %v783_v15  ;;  %v958_v15 = vld [vmem:[#allocation4 + $0x670] sm:$0xff]  ;;  %1094 = vmatpush1.msra.mxu1 %v1023_v14  ;;  %v993_v14 = vld [vmem:[#allocation4 + $0x788] sm:$0xff] }
  0xc9   : > { %876 = vmatprep.subr.mxu0 %v782_v17  ;;  %v1022_v17 = vld [vmem:[#allocation4 + $0x858] sm:$0xff] }
  0xca   : > { %877 = vmatpush2.msra.mxu0 %v781_v18  ;;  %v957_v18 = vld [vmem:[#allocation4 + $0x668] sm:$0xff]  ;;  %1095 = vmatprep.subr.mxu1 %v1022_v17  ;;  %v992_v17 = vld [vmem:[#allocation4 + $0x780] sm:$0xff] }
  0xcb   : > { %878 = vmatprep.subr.mxu0 %v780_v19  ;;  %v1021_v19 = vld [vmem:[#allocation4 + $0x850] sm:$0xff] }
  0xcc   : > { %879 = vmatpush2.msra.mxu0 %v779_v20  ;;  %v956_v20 = vld [vmem:[#allocation4 + $0x660] sm:$0xff]  ;;  %1096 = vmatpush1.msra.mxu1 %v1021_v19  ;;  %v991_v19 = vld [vmem:[#allocation4 + $0x778] sm:$0xff] }
  0xcd   : > { %880 = vmatprep.subr.mxu0 %v778_v21  ;;  %v1020_v21 = vld [vmem:[#allocation4 + $0x848] sm:$0xff] }
  0xce   : > { %881 = vmatpush2.msra.mxu0 %v777_v22  ;;  %v955_v22 = vld [vmem:[#allocation4 + $0x658] sm:$0xff]  ;;  %1097 = vmatprep.subr.mxu1 %v1020_v21  ;;  %v990_v21 = vld [vmem:[#allocation4 + $0x770] sm:$0xff] }
  0xcf   : > { %882 = vmatprep.subr.mxu0 %v776_v24  ;;  %v954_v24 = vld [vmem:[#allocation4 + $0x650] sm:$0xff]  ;;  %1098 = vmatpush1.msra.mxu1 %v1019_v23  ;;  %v989_v23 = vld [vmem:[#allocation4 + $0x768] sm:$0xff] }
  0xd0   : > { %883 = vmatpush2.msra.mxu0 %v775_v26  ;;  %v953_v26 = vld [vmem:[#allocation4 + $0x648] sm:$0xff]  ;;  %1099 = vmatprep.subr.mxu1 %v1018_v25  ;;  %v988_v25 = vld [vmem:[#allocation4 + $0x760] sm:$0xff] }
  0xd1   : > { %884 = vmatprep.subr.mxu0 %v774_v27  ;;  %v1017_v27 = vld [vmem:[#allocation4 + $0x830] sm:$0xff] }
  0xd2   : > { %885 = vmatpush2.msra.mxu0 %v773_v32  ;;  %v951_v32 = vld [vmem:[#allocation4 + $0x638] sm:$0xff]  ;;  %1100 = vmatpush1.msra.mxu1 %v1017_v27 }
  0xd3   : > { %886 = vmatprep.subr.mxu0 %v772_v35  ;;  %v1014_v35 = vld [vmem:[#allocation4 + $0x818] sm:$0xff]  ;;  %1101 = vmatprep.subr.mxu1 %v1016_v30  ;;  %v986_v30 = vld [vmem:[#allocation4 + $0x750] sm:$0xff] }
  0xd4   : > { %887 = vmatpush2.msra.mxu0 %v771_v36  ;;  %v949_v36 = vld [vmem:[#allocation4 + $0x628] sm:$0xff]  ;;  %1102 = vmatpush1.msra.mxu1 %v1015_v33  ;;  %v987_v27 = vld [vmem:[#allocation4 + $0x758] sm:$0xff] }
  0xd5   : > { %889 = vmatmul.mubr.f32.vlgmr.msra.gmra.mxu0 %v812_v37  ;;  %1173 = vmatprep.subr.mxu0 %v975_v45  ;;  %v1013_v37 = vld [vmem:[#allocation4 + $0x810] sm:$0xff]  ;;  %v985_v33 = vld [vmem:[#allocation4 + $0x748] sm:$0xff] }
  0xd6   : > { %894 = vmatprep.mubr.f32.mxu0 %v819_v39  ;;  %1174 = vmatpush1.msra.mxu0 %v974_v47  ;;  %v1012_v39 = vld [vmem:[#allocation4 + $0x808] sm:$0xff]  ;;  %v1073_v45 = vld [vmem:[#allocation4 + $0x9f0] sm:$0xff] }
  0xd7   : > { %1175 = vmatprep.subr.mxu0 %v973_v48  ;;  %1103 = vmatprep.subr.mxu1 %v1014_v35  ;;  %v1072_v47 = vld [vmem:[#allocation4 + $0x9e8] sm:$0xff]  ;;  %v1007_v48 = vld [vmem:[#allocation4 + $0x7f8] sm:$0xff]  ;;  %v984_v35 = vld [vmem:[#allocation4 + $0x740] sm:$0xff] }
  0xd8   : > { %1176 = vmatpush1.msra.mxu0 %v972_v16  ;;  %1104 = vmatpush1.msra.mxu1 %v1013_v37  ;;  %v1006_v16 = vld [vmem:[#allocation4 + $0x7f0] sm:$0xff]  ;;  %v983_v37 = vld [vmem:[#allocation4 + $0x738] sm:$0xff] }
  0xd9   : > { %895 = vmatmul.mubr.f32.gmra.mxu0 %v817_v40  ;;  %1177 = vmatprep.subr.mxu0 %v971_v51  ;;  %v947_v40 = vld [vmem:[#allocation4 + $0x618] sm:$0xff]  ;;  %v1005_v51 = vld [vmem:[#allocation4 + $0x7e8] sm:$0xff] }
  0xda   : > { %1178 = vmatpush1.msra.mxu0 %v970_v53  ;;  %1105 = vmatprep.subr.mxu1 %v1012_v39  ;;  %v1004_v53 = vld [vmem:[#allocation4 + $0x7e0] sm:$0xff]  ;;  %v982_v39 = vld [vmem:[#allocation4 + $0x730] sm:$0xff] }
  0xdb   : > { %1179 = vmatprep.subr.mxu0 %v969_v55  ;;  %1106 = vmatpush1.msra.mxu1 %v1011_v41  ;;  %v1003_v55 = vld [vmem:[#allocation4 + $0x7d8] sm:$0xff]  ;;  %v981_v41 = vld [vmem:[#allocation4 + $0x728] sm:$0xff] }
  0xdc   : > { %1180 = vmatpush1.msra.mxu0 %v968_v57  ;;  %1107 = vmatprep.subr.mxu1 %v1074_v43  ;;  %v1002_v57 = vld [vmem:[#allocation4 + $0x7d0] sm:$0xff]  ;;  %v980_v43 = vld [vmem:[#allocation4 + $0x720] sm:$0xff] }
  0xdd   : > { %1181 = vmatprep.subr.mxu0 %v967_v59  ;;  %1108 = vmatpush2.msra.mxu1 %v1073_v45  ;;  %v1001_v59 = vld [vmem:[#allocation4 + $0x7c8] sm:$0xff]  ;;  %v979_v45 = vld [vmem:[#allocation4 + $0x718] sm:$0xff] }
  0xde   : > { %1182 = vmatpush1.msra.mxu0 %v966_v61  ;;  %1109 = vmatprep.subr.mxu1 %v1072_v47  ;;  %v1000_v61 = vld [vmem:[#allocation4 + $0x7c0] sm:$0xff]  ;;  %v1288_v47 = vld [vmem:[#allocation4 + $0xaf8] sm:$0xff] }
  0xdf   : > { %1183 = vmatprep.subr.mxu0 %v965_v63  ;;  %1110 = vmatpush2.msra.mxu1 %v1071_v49  ;;  %v999_v63 = vld [vmem:[#allocation4 + $0x7b8] sm:$0xff]  ;;  %v976_v49 = vld [vmem:[#allocation4 + $0x700] sm:$0xff] }
  0xe0   : > { %1184 = vmatpush1.msra.mxu0 %v964_v1  ;;  %1111 = vmatprep.subr.mxu1 %v1070_v50  ;;  %v998_v1 = vld [vmem:[#allocation4 + $0x7b0] sm:$0xff]  ;;  %v907_v50 = vlaneseq }
  0xe1   : > { %1185 = vmatprep.subr.mxu0 %v963_v3  ;;  %1112 = vmatpush2.msra.mxu1 %v1069_v52  ;;  %v997_v3 = vld [vmem:[#allocation4 + $0x7a8] sm:$0xff] }
  0xe2   : > { %1186 = vmatpush1.msra.mxu0 %v962_v5  ;;  %1113 = vmatprep.subr.mxu1 %v1068_v54  ;;  %v1060_v5 = vld [vmem:[#allocation4 + $0x988] sm:$0xff]  ;;  %v908_v52 = vshrl.u32 %v907_v50, 7  ;;  %v1280_v50 = vld [vmem:[#allocation4 + $0xab8] sm:$0xff] }
  0xe3   : > { %1187 = vmatprep.subr.mxu0 %v961_v7  ;;  %1114 = vmatpush2.msra.mxu1 %v1067_v56  ;;  %v1059_v7 = vld [vmem:[#allocation4 + $0x980] sm:$0xff] }
  0xe4   : > { %1188 = vmatpush1.msra.mxu0 %v960_v9  ;;  %1115 = vmatprep.subr.mxu1 %v1066_v58  ;;  %v1058_v9 = vld [vmem:[#allocation4 + $0x978] sm:$0xff]  ;;  %v6731_v56 = vsub.s32 0, %v908_v52 }
  0xe5   : > { %1189 = vmatprep.subr.mxu0 %v959_v11  ;;  %1116 = vmatpush2.msra.mxu1 %v1065_v60  ;;  %v1057_v11 = vld [vmem:[#allocation4 + $0x970] sm:$0xff] }
  0xe6   : > { %1190 = vmatpush1.msra.mxu0 %v958_v15  ;;  %1117 = vmatprep.subr.mxu1 %v1064_v62  ;;  %v1056_v15 = vld [vmem:[#allocation4 + $0x968] sm:$0xff] }
  0xe7   : > { %1191 = vmatprep.subr.mxu0 %v957_v18  ;;  %1118 = vmatpush2.msra.mxu1 %v1063_v0  ;;  %v1055_v18 = vld [vmem:[#allocation4 + $0x960] sm:$0xff] }
  0xe8   : > { %1192 = vmatpush1.msra.mxu0 %v956_v20  ;;  %1119 = vmatprep.subr.mxu1 %v1062_v2  ;;  %v1054_v20 = vld [vmem:[#allocation4 + $0x958] sm:$0xff] }
  0xe9   : > { %1193 = vmatprep.subr.mxu0 %v955_v22  ;;  %1120 = vmatpush2.msra.mxu1 %v1061_v4  ;;  %v1053_v22 = vld [vmem:[#allocation4 + $0x950] sm:$0xff] }
  0xea   : > { %1194 = vmatpush1.msra.mxu0 %v954_v24  ;;  %1121 = vmatprep.subr.mxu1 %v1060_v5  ;;  %v1052_v24 = vld [vmem:[#allocation4 + $0x948] sm:$0xff] }
  0xeb   : > { %1195 = vmatprep.subr.mxu0 %v953_v26  ;;  %1122 = vmatpush2.msra.mxu1 %v1059_v7  ;;  %v1051_v26 = vld [vmem:[#allocation4 + $0x940] sm:$0xff] }
  0xec   : > { %1196 = vmatpush1.msra.mxu0 %v952_v29  ;;  %1123 = vmatprep.subr.mxu1 %v1058_v9  ;;  %v1050_v29 = vld [vmem:[#allocation4 + $0x938] sm:$0xff] }
  0xed   : > { %1197 = vmatprep.subr.mxu0 %v951_v32  ;;  %1124 = vmatpush2.msra.mxu1 %v1057_v11  ;;  %v1049_v32 = vld [vmem:[#allocation4 + $0x930] sm:$0xff] }
  0xee   : > { %1198 = vmatpush1.msra.mxu0 %v950_v34  ;;  %1125 = vmatprep.subr.mxu1 %v1056_v15  ;;  %v1048_v34 = vld [vmem:[#allocation4 + $0x928] sm:$0xff] }
  0xef   : > { %1199 = vmatprep.subr.mxu0 %v949_v36  ;;  %1126 = vmatpush2.msra.mxu1 %v1055_v18  ;;  %v1047_v36 = vld [vmem:[#allocation4 + $0x920] sm:$0xff] }
  0xf0   : > { %1200 = vmatpush1.msra.mxu0 %v948_v38  ;;  %1127 = vmatprep.subr.mxu1 %v1054_v20  ;;  %v1046_v38 = vld [vmem:[#allocation4 + $0x918] sm:$0xff] }
  0xf1   : > { %1201 = vmatprep.subr.mxu0 %v947_v40  ;;  %1128 = vmatpush2.msra.mxu1 %v1053_v22  ;;  %v1045_v40 = vld [vmem:[#allocation4 + $0x910] sm:$0xff] }
  0xf2   : > { %1202 = vmatpush1.msra.mxu0 %v946_v42  ;;  %1129 = vmatprep.subr.mxu1 %v1052_v24  ;;  %v1044_v42 = vld [vmem:[#allocation4 + $0x908] sm:$0xff] }
  0xf3   : > { %1203 = vmatprep.subr.mxu0 %v945_v44  ;;  %1130 = vmatpush2.msra.mxu1 %v1051_v26  ;;  %v1043_v44 = vld [vmem:[#allocation4 + $0x900] sm:$0xff] }
  0xf4   : > { %1204 = vmatpush1.msra.mxu0 %v944_v46  ;;  %1131 = vmatprep.subr.mxu1 %v1050_v29  ;;  %v978_v46 = vld [vmem:[#allocation4 + $0x710] sm:$0xff] }
  0xf5   : > { %1205 = vmatprep.subr.mxu0 %v1007_v48  ;;  %1132 = vmatpush2.msra.mxu1 %v1049_v32  ;;  %v977_v48 = vld [vmem:[#allocation4 + $0x708] sm:$0xff] }
  0xf6   : > { %1206 = vmatpush2.msra.mxu0 %v1006_v16  ;;  %1133 = vmatprep.subr.mxu1 %v1048_v34  ;;  %v1561_v16 = vld [vmem:[#allocation4 + $0xef8] sm:$0xff]  ;;  %v1286_v34 = vld [vmem:[#allocation4 + $0xae8] sm:$0xff] }
  0xf7   : > { %1207 = vmatprep.subr.mxu0 %v1005_v51  ;;  %1134 = vmatpush2.msra.mxu1 %v1047_v36  ;;  %v1285_v36 = vld [vmem:[#allocation4 + $0xae0] sm:$0xff] }
  0xf8   : > { %1208 = vmatpush2.msra.mxu0 %v1004_v53  ;;  %1135 = vmatprep.subr.mxu1 %v1046_v38 }
  0xf9   : > { %1209 = vmatprep.subr.mxu0 %v1003_v55  ;;  %1136 = vmatpush2.msra.mxu1 %v1045_v40 }
  0xfa   : > { %1210 = vmatpush2.msra.mxu0 %v1002_v57  ;;  %1137 = vmatprep.subr.mxu1 %v1044_v42  ;;  %v905_v57 = vld [vmem:[#allocation6] ss:$8 sm:$0x3] }
  0xfb   : > { %1211 = vmatprep.subr.mxu0 %v1001_v59  ;;  %1138 = vmatpush2.msra.mxu1 %v1043_v44  ;;  %v6733_v59 = vsub.s32 1, %v908_v52  ;;  %v1559_v44 = vld [vmem:[#allocation4 + $0xee8] sm:$0xff] }
  0xfc   : > { %1212 = vmatpush2.msra.mxu0 %v1000_v61  ;;  %1342 = vmatprep.subr.mxu1 %v1288_v47  ;;  %v1558_v47 = vld [vmem:[#allocation4 + $0xee0] sm:$0xff] }
  0xfd   : > { %1213 = vmatprep.subr.mxu0 %v999_v63  ;;  %v910_v63 = vrot.slane %v905_v57, %v6731_v56 }
  0xfe   : > { %1214 = vmatpush2.msra.mxu0 %v998_v1 }
  0xff   : > { %1215 = vmatprep.subr.mxu0 %v997_v3  ;;  %v914_v3 = vrot.slane %v905_v57, %v6733_v59  ;;  %v1555_v57 = vld [vmem:[#allocation4 + $0xec8] sm:$0xff] }
 0x100   : > { %1216 = vmatpush2.msra.mxu0 %v996_v6 }
 0x101   : > { %1217 = vmatprep.subr.mxu0 %v995_v8 }
 0x102   : > { %1218 = vmatpush2.msra.mxu0 %v994_v10  ;;  %v937_v10 = vld [vmem:[#allocation2 + $0x30] sm:$0xc0] }
 0x103   : > { %1219 = vmatprep.subr.mxu0 %v993_v14 }
 0x104   : > { %1220 = vmatpush2.msra.mxu0 %v992_v17  ;;  %v938_v17 = vld [vmem:[#allocation2] sm:$0xc0] }
 0x105   : > { %1221 = vmatprep.subr.mxu0 %v991_v19  ;;  %v1162_v24 = vrot.slane %v938_v17, 6  ;;  %v1271_v17 = vld [vmem:[#allocation4 + $0xa70] sm:$0xff] }
 0x106   : > { %1222 = vmatpush2.msra.mxu0 %v990_v21 }
 0x107   : > { %1223 = vmatprep.subr.mxu0 %v989_v23 }
 0x108   : > { %1224 = vmatpush2.msra.mxu0 %v988_v25  ;;  %v1159_v25 = vrot.slane %v937_v10, 6 }
 0x109   : > { %1225 = vmatprep.subr.mxu0 %v987_v27 }
 0x10a   : > { %1226 = vmatpush2.msra.mxu0 %v986_v30  ;;  %v1287_v30 = vld [vmem:[#allocation4 + $0xaf0] sm:$0xff] }
 0x10b   : > { %1227 = vmatprep.subr.mxu0 %v985_v33 }
 0x10c   : > { %1228 = vmatpush2.msra.mxu0 %v984_v35 }
 0x10d   : > { %1229 = vmatprep.subr.mxu0 %v983_v37 }
 0x10e   : > { %1230 = vmatpush2.msra.mxu0 %v982_v39  ;;  %v1284_v39 = vld [vmem:[#allocation4 + $0xad8] sm:$0xff] }
 0x10f   : > { %1231 = vmatprep.subr.mxu0 %v981_v41  ;;  %v1560_v41 = vld [vmem:[#allocation4 + $0xef0] sm:$0xff] }
 0x110   : > { %1232 = vmatpush2.msra.mxu0 %v980_v43  ;;  %v1283_v43 = vld [vmem:[#allocation4 + $0xad0] sm:$0xff] }
 0x111   : > { %1233 = vmatprep.subr.mxu0 %v979_v45 }
 0x112   : > { %1234 = vmatpush2.msra.mxu0 %v978_v46  ;;  %v1282_v46 = vld [vmem:[#allocation4 + $0xac8] sm:$0xff] }
 0x113   : > { %1235 = vmatprep.subr.mxu0 %v977_v48  ;;  %v1281_v48 = vld [vmem:[#allocation4 + $0xac0] sm:$0xff] }
 0x114   : > { %1236 = vmatpush2.msra.mxu0 %v976_v49  ;;  %v1557_v49 = vld [vmem:[#allocation4 + $0xed8] sm:$0xff] }
 0x115   : > { %1594 = vmatprep.subr.mxu0 %v1561_v16 }
 0x154   : > { %v623_v51 = vpop.f32.mrf.mxu0 }
 0x155   : > { %v721_v54 = vpop.f32.mrf.mxu1 }
 0x156   : > { %v625_v53 = vpop.f32.mrf.mxu0  ;;  %v722_v61 = vadd.f32 %v721_v54, %v623_v51  ;;  %v1556_v51 = vld [vmem:[#allocation4 + $0xed0] sm:$0xff] }
 0x157   : > { %v723_v58 = vpop.f32.mrf.mxu1  ;;  %v1279_v54 = vld [vmem:[#allocation4 + $0xab0] sm:$0xff] }
 0x158   : > { %v724_v1 = vadd.f32 %v723_v58, %v625_v53  ;;  %v1278_v58 = vld [vmem:[#allocation4 + $0xaa8] sm:$0xff] }
 0x159   : > { %v629_v55 = vpop.f32.mrf.mxu0 }
 0x15b   : > { %v631_v60 = vpop.f32.mrf.mxu0  ;;  %v727_v62 = vpop.f32.mrf.mxu1 }
 0x15c   : > { %v728_v5 = vadd.f32 %v727_v62, %v629_v55  ;;  %v1277_v62 = vld [vmem:[#allocation4 + $0xaa0] sm:$0xff] }
 0x15d   : > { %v729_v6 = vpop.f32.mrf.mxu1 }
 0x15e   : > { %v730_v18 = vadd.f32 %v729_v6, %v631_v60  ;;  %v1274_v6 = vld [vmem:[#allocation4 + $0xa88] sm:$0xff] }
 0x195   : > { %v890_v0 = vpop.f32.mrf.mxu0 }
 0x196   : > { %v901_v2 = vadd.f32 %v890_v0, %v722_v61  ;;  %v1554_v61 = vld [vmem:[#allocation4 + $0xec0] sm:$0xff]  ;;  %v1276_v0 = vld [vmem:[#allocation4 + $0xa98] sm:$0xff] }
 0x197   : > { %v892_v4 = vpop.f32.mrf.mxu0 }
 0x198   : > { %v917_v7 = vadd.f32 %v910_v63, %v901_v2  ;;  %v902_v8 = vadd.f32 %v892_v4, %v724_v1  ;;  %v1275_v4 = vld [vmem:[#allocation4 + $0xa90] sm:$0xff] }
 0x199   : > { %v896_v9 = vpop.f32.mrf.mxu0 }
 0x19a   : > { %vm921_vm2 = vcmp.ge.f32.partialorder %v917_v7, 0.0  ;;  %v925_v11 = vmul.f32 0.2, %v917_v7  ;;  %v918_v14 = vadd.f32 %v914_v3, %v902_v8  ;;  %v903_v15 = vadd.f32 %v896_v9, %v728_v5  ;;  %v1550_v8 = vld [vmem:[#allocation4 + $0xea0] sm:$0xff] }
 0x19b   : > { %v898_v19 = vpop.f32.mrf.mxu0  ;;  %v1273_v9 = vld [vmem:[#allocation4 + $0xa80] sm:$0xff] }
 0x19c   : > { %v6737_v20 = vsel %vm921_vm2, %v917_v7, %v925_v11  ;;  %vm922_vm3 = vcmp.ge.f32.partialorder %v918_v14, 0.0  ;;  %v926_v21 = vmul.f32 0.2, %v918_v14  ;;  %v919_v22 = vadd.f32 %v910_v63, %v903_v15  ;;  %v1553_v63 = vld [vmem:[#allocation4 + $0xeb8] sm:$0xff]  ;;  %v1548_v15 = vld [vmem:[#allocation4 + $0xe90] sm:$0xff] }
 0x19d   : > { %933 = vst [vmem:[#allocation2 + $0x18] sm:$0xff] %v6737_v20  ;;  %v904_v23 = vadd.f32 %v898_v19, %v730_v18  ;;  %v1160_v29 = vrot.slane %v6737_v20, 6  ;;  %v1549_v11 = vld [vmem:[#allocation4 + $0xe98] sm:$0xff]  ;;  %v1547_v18 = vld [vmem:[#allocation4 + $0xe88] sm:$0xff] }
 0x19e   : > { %v6740_v26 = vsel %vm922_vm3, %v918_v14, %v926_v21  ;;  %vm923_vm4 = vcmp.ge.f32.partialorder %v919_v22, 0.0  ;;  %v927_v27 = vmul.f32 0.2, %v919_v22  ;;  %v1272_v14 = vld [vmem:[#allocation4 + $0xa78] sm:$0xff]  ;;  %v1270_v19 = vld [vmem:[#allocation4 + $0xa68] sm:$0xff]  ;;  %v1546_v21 = vld [vmem:[#allocation4 + $0xe80] sm:$0xff] }
 0x19f   : > { %934 = vst [vmem:[#allocation2 + $0x10] sm:$0xff] %v6740_v26  ;;  %v920_v32 = vadd.f32 %v914_v3, %v904_v23  ;;  %1139 = vmatprep.mubr.f32.mxu1 %v6740_v26  ;;  %v1163_v33 = vrot.slane %v6740_v26, 6  ;;  %v1161_v40 = vsel %vm1158_vm5, %v1159_v25, %v1160_v29  ;;  %v1552_v3 = vld [vmem:[#allocation4 + $0xeb0] sm:$0xff]  ;;  %v1268_v23 = vld [vmem:[#allocation4 + $0xa58] sm:$0xff]  ;;  %v1543_v26 = vld [vmem:[#allocation4 + $0xe68] sm:$0xff] }
 0x1a0   : > { %v6746_v35 = vsel %vm923_vm4, %v919_v22, %v927_v27  ;;  %1140 = vmatmul.mubr.f32.vlgmr.msra.gmra.mxu1 %v6737_v20  ;;  %v1269_v22 = vld [vmem:[#allocation4 + $0xa60] sm:$0xff]  ;;  %v1545_v20 = vld [vmem:[#allocation4 + $0xe78] sm:$0xff]  ;;  %v1267_v25 = vld [vmem:[#allocation4 + $0xa50] sm:$0xff] }
 0x1a1   : > { %935 = vst [vmem:[#allocation2 + $0x8] sm:$0xff] %v6746_v35  ;;  %vm924_vm6 = vcmp.ge.f32.partialorder %v920_v32, 0.0  ;;  %v928_v37 = vmul.f32 0.2, %v920_v32  ;;  %1343 = vmatpush1.msra.mxu1 %v1287_v30  ;;  %v1164_v38 = vsel %vm1158_vm5, %v1162_v24, %v1163_v33  ;;  %v1544_v24 = vld [vmem:[#allocation4 + $0xe70] sm:$0xff]  ;;  %v1266_v27 = vld [vmem:[#allocation4 + $0xa48] sm:$0xff] }
 0x1a2   : > { %1344 = vmatprep.subr.mxu1 %v1286_v34  ;;  %1237 = vmatprep.mubr.f32.mxu0 %v1164_v38  ;;  %v1265_v30 = vld [vmem:[#allocation4 + $0xa40] sm:$0xff]  ;;  %v1540_v34 = vld [vmem:[#allocation4 + $0xe50] sm:$0xff]  ;;  %v1262_v38 = vld [vmem:[#allocation4 + $0xa28] sm:$0xff] }
 0x1a3   : > { %v6756_v42 = vsel %vm924_vm6, %v920_v32, %v928_v37  ;;  %1345 = vmatpush1.msra.mxu1 %v1285_v36  ;;  %1238 = vmatmul.mubr.f32.vlgmr.msra.gmra.mxu0 %v1161_v40  ;;  %v1541_v32 = vld [vmem:[#allocation4 + $0xe58] sm:$0xff]  ;;  %v1263_v36 = vld [vmem:[#allocation4 + $0xa30] sm:$0xff]  ;;  %v1539_v37 = vld [vmem:[#allocation4 + $0xe48] sm:$0xff] }
 0x1a4   : > { %936 = vst [vmem:[#allocation2 + $0x20] sm:$0xff] %v6756_v42  ;;  %v6759_v45 = vld [vmem:[#allocation2 + $0x18] sm:$0xfc]  ;;  %1145 = vmatprep.mubr.f32.mxu1 %v6756_v42  ;;  %1346 = vmatprep.subr.mxu1 %v1284_v39  ;;  %v1332_v53 = vrot.slane %v6756_v42, 2  ;;  %v1538_v39 = vld [vmem:[#allocation4 + $0xe40] sm:$0xff] }
 0x1a5   : > { %1452 = vst [vmem:[#allocation2 + $0x18] sm:$0xff] %v6696_v31  ;;  %1595 = vmatpush1.msra.mxu0 %v1560_v41  ;;  %1146 = vmatmul.mubr.f32.gmra.mxu1 %v6746_v35  ;;  %v1261_v40 = vld [vmem:[#allocation4 + $0xa20] sm:$0xff]  ;;  %v1537_v41 = vld [vmem:[#allocation4 + $0xe38] sm:$0xff] }
 0x1a6   : > { %v1251_v16 = vld [vmem:[#allocation2 + $0x10] sm:$0xfc]  ;;  %1347 = vmatpush1.msra.mxu1 %v1283_v43  ;;  %1596 = vmatprep.subr.mxu0 %v1559_v44  ;;  %v1260_v43 = vld [vmem:[#allocation4 + $0xa18] sm:$0xff] }
 0x1a7   : > { %1453 = vst [vmem:[#allocation2 + $0x10] sm:$0xff] %v6692_v28  ;;  %1348 = vmatprep.subr.mxu1 %v1282_v46  ;;  %1597 = vmatpush1.msra.mxu0 %v1558_v47  ;;  %v1331_v52 = vrot.slane %v1251_v16, 2  ;;  %v1536_v44 = vld [vmem:[#allocation4 + $0xe30] sm:$0xff]  ;;  %v1535_v47 = vld [vmem:[#allocation4 + $0xe28] sm:$0xff]  ;;  %v1257_v16 = vld [vmem:[#allocation4 + $0xa00] sm:$0xff] }
 0x1a8   : > { %1349 = vmatpush1.msra.mxu1 %v1281_v48  ;;  %1598 = vmatprep.subr.mxu0 %v1557_v49  ;;  %v941_v55 = vld [vmem:[#allocation2 + $0x8] sm:$0x3f]  ;;  %v1259_v46 = vld [vmem:[#allocation4 + $0xa10] sm:$0xff] }
 0x1a9   : > { %v1333_v60 = vsel %vm1327_vm7, %v1331_v52, %v1332_v53  ;;  %1454 = vst [vmem:[#allocation2 + $0x8] sm:$0xff] %v6709_v13  ;;  %1350 = vmatprep.subr.mxu1 %v1280_v50  ;;  %1599 = vmatpush1.msra.mxu0 %v1556_v51  ;;  %v1165_v2 = vrot.slane %v941_v55, 6  ;;  %v1551_v13 = vld [vmem:[#allocation4 + $0xea8] sm:$0xff]  ;;  %v1534_v49 = vld [vmem:[#allocation4 + $0xe20] sm:$0xff]  ;;  %v1533_v50 = vld [vmem:[#allocation4 + $0xe18] sm:$0xff] }
 0x1aa   : > { %1406 = vmatprep.mubr.f32.mxu1 %v1333_v60  ;;  %1351 = vmatpush1.msra.mxu1 %v1279_v54  ;;  %v1258_v48 = vld [vmem:[#allocation4 + $0xa08] sm:$0xff]  ;;  %v1320_v51 = vld [vmem:[#allocation4 + $0xbf8] sm:$0xff]  ;;  %v1532_v52 = vld [vmem:[#allocation4 + $0xe10] sm:$0xff] }
 0x1ab   : > { %v942_v1 = vld [vmem:[#allocation2 + $0x20] sm:$0x3f]  ;;  %1600 = vmatprep.subr.mxu0 %v1555_v57  ;;  %1352 = vmatprep.subr.mxu1 %v1278_v58  ;;  %v1166_v10 = vsel %vm1158_vm5, %v1160_v29, %v1165_v2  ;;  %v1319_v54 = vld [vmem:[#allocation4 + $0xbf0] sm:$0xff]  ;;  %v1531_v55 = vld [vmem:[#allocation4 + $0xe08] sm:$0xff] }
 0x1ac   : > { %v1167_v5 = vrot.slane %v942_v1, 6  ;;  %1455 = vst [vmem:[#allocation2 + $0x20] sm:$0xff] %v6706_v12  ;;  %1601 = vmatpush1.msra.mxu0 %v1554_v61  ;;  %1353 = vmatpush1.msra.mxu1 %v1277_v62  ;;  %v1542_v29 = vld [vmem:[#allocation4 + $0xe60] sm:$0xff]  ;;  %v1318_v57 = vld [vmem:[#allocation4 + $0xbe8] sm:$0xff]  ;;  %v1593_v61 = vld [vmem:[#allocation4 + $0xff8] sm:$0xff] }
 0x1ad   : > { %1602 = vmatprep.subr.mxu0 %v1553_v63  ;;  %1354 = vmatprep.subr.mxu1 %v1276_v0  ;;  %v1530_v58 = vld [vmem:[#allocation4 + $0xe00] sm:$0xff]  ;;  %v1316_v62 = vld [vmem:[#allocation4 + $0xbd8] sm:$0xff]  ;;  %v1592_v63 = vld [vmem:[#allocation4 + $0xff0] sm:$0xff] }
 0x1ae   : > { %v1168_v7 = vsel %vm1158_vm5, %v1163_v33, %v1167_v5  ;;  %1603 = vmatpush1.msra.mxu0 %v1552_v3  ;;  %1355 = vmatpush1.msra.mxu1 %v1275_v4  ;;  %v1264_v33 = vld [vmem:[#allocation4 + $0xa38] sm:$0xff]  ;;  %v1317_v60 = vld [vmem:[#allocation4 + $0xbe0] sm:$0xff]  ;;  %v1315_v0 = vld [vmem:[#allocation4 + $0xbd0] sm:$0xff] }
 0x1af   : > { %1243 = vmatprep.mubr.f32.mxu0 %v1168_v7  ;;  %1604 = vmatprep.subr.mxu0 %v1551_v13  ;;  %v1591_v1 = vld [vmem:[#allocation4 + $0xfe8] sm:$0xff]  ;;  %v1590_v3 = vld [vmem:[#allocation4 + $0xfe0] sm:$0xff]  ;;  %v1589_v5 = vld [vmem:[#allocation4 + $0xfd8] sm:$0xff] }
 0x1b0   : > { %1244 = vmatmul.mubr.f32.gmra.mxu0 %v1166_v10  ;;  %1356 = vmatprep.subr.mxu1 %v1274_v6  ;;  %v1314_v2 = vld [vmem:[#allocation4 + $0xbc8] sm:$0xff]  ;;  %v1313_v4 = vld [vmem:[#allocation4 + $0xbc0] sm:$0xff]  ;;  %v1312_v13 = vld [vmem:[#allocation4 + $0xbb8] sm:$0xff] }
 0x1b1   : > { %1605 = vmatpush1.msra.mxu0 %v1550_v8  ;;  %1357 = vmatpush1.msra.mxu1 %v1273_v9  ;;  %v1588_v6 = vld [vmem:[#allocation4 + $0xfd0] sm:$0xff]  ;;  %v1587_v8 = vld [vmem:[#allocation4 + $0xfc8] sm:$0xff]  ;;  %v1586_v10 = vld [vmem:[#allocation4 + $0xfc0] sm:$0xff] }
 0x1b2   : > { %1606 = vmatprep.subr.mxu0 %v1549_v11  ;;  %1358 = vmatprep.subr.mxu1 %v1272_v14  ;;  %v1311_v7 = vld [vmem:[#allocation4 + $0xbb0] sm:$0xff]  ;;  %v1310_v9 = vld [vmem:[#allocation4 + $0xba8] sm:$0xff]  ;;  %v1309_v11 = vld [vmem:[#allocation4 + $0xba0] sm:$0xff] }
 0x1b3   : > { %1607 = vmatpush1.msra.mxu0 %v1548_v15  ;;  %1359 = vmatpush1.msra.mxu1 %v1271_v17  ;;  %v1585_v14 = vld [vmem:[#allocation4 + $0xfb8] sm:$0xff]  ;;  %v1584_v17 = vld [vmem:[#allocation4 + $0xfb0] sm:$0xff] }
 0x1b4   : > { %1608 = vmatprep.subr.mxu0 %v1547_v18  ;;  %1360 = vmatprep.subr.mxu1 %v1270_v19  ;;  %v1308_v15 = vld [vmem:[#allocation4 + $0xb98] sm:$0xff]  ;;  %v1307_v18 = vld [vmem:[#allocation4 + $0xb90] sm:$0xff]  ;;  %v1583_v19 = vld [vmem:[#allocation4 + $0xfa8] sm:$0xff] }
 0x1b5   : > { %1609 = vmatpush1.msra.mxu0 %v1546_v21  ;;  %1361 = vmatpush1.msra.mxu1 %v1269_v22  ;;  %v1306_v21 = vld [vmem:[#allocation4 + $0xb88] sm:$0xff]  ;;  %v1582_v22 = vld [vmem:[#allocation4 + $0xfa0] sm:$0xff] }
 0x1b6   : > { %1610 = vmatprep.subr.mxu0 %v1545_v20  ;;  %1362 = vmatprep.subr.mxu1 %v1268_v23  ;;  %v1305_v20 = vld [vmem:[#allocation4 + $0xb80] sm:$0xff]  ;;  %v1581_v23 = vld [vmem:[#allocation4 + $0xf98] sm:$0xff] }
 0x1b7   : > { %1611 = vmatpush1.msra.mxu0 %v1544_v24  ;;  %1363 = vmatpush1.msra.mxu1 %v1267_v25  ;;  %v1304_v24 = vld [vmem:[#allocation4 + $0xb78] sm:$0xff]  ;;  %v1580_v25 = vld [vmem:[#allocation4 + $0xf90] sm:$0xff] }
 0x1b8   : > { %1612 = vmatprep.subr.mxu0 %v1543_v26  ;;  %1364 = vmatprep.subr.mxu1 %v1266_v27  ;;  %v1303_v26 = vld [vmem:[#allocation4 + $0xb70] sm:$0xff]  ;;  %v1579_v27 = vld [vmem:[#allocation4 + $0xf88] sm:$0xff] }
 0x1b9   : > { %1613 = vmatpush1.msra.mxu0 %v1542_v29  ;;  %1365 = vmatpush1.msra.mxu1 %v1265_v30  ;;  %v1302_v29 = vld [vmem:[#allocation4 + $0xb68] sm:$0xff]  ;;  %v1578_v30 = vld [vmem:[#allocation4 + $0xf80] sm:$0xff] }
 0x1ba   : > { %1614 = vmatprep.subr.mxu0 %v1541_v32  ;;  %1366 = vmatprep.subr.mxu1 %v1264_v33  ;;  %v1301_v32 = vld [vmem:[#allocation4 + $0xb60] sm:$0xff]  ;;  %v1577_v33 = vld [vmem:[#allocation4 + $0xf78] sm:$0xff] }
 0x1bb   : > { %1615 = vmatpush1.msra.mxu0 %v1540_v34  ;;  %1367 = vmatpush1.msra.mxu1 %v1263_v36  ;;  %v1300_v34 = vld [vmem:[#allocation4 + $0xb58] sm:$0xff]  ;;  %v1576_v36 = vld [vmem:[#allocation4 + $0xf70] sm:$0xff] }
 0x1bc   : > { %1616 = vmatprep.subr.mxu0 %v1539_v37  ;;  %1368 = vmatprep.subr.mxu1 %v1262_v38  ;;  %v1299_v37 = vld [vmem:[#allocation4 + $0xb50] sm:$0xff]  ;;  %v1575_v38 = vld [vmem:[#allocation4 + $0xf68] sm:$0xff] }
 0x1bd   : > { %1617 = vmatpush1.msra.mxu0 %v1538_v39  ;;  %1369 = vmatpush1.msra.mxu1 %v1261_v40  ;;  %v1298_v39 = vld [vmem:[#allocation4 + $0xb48] sm:$0xff]  ;;  %v1574_v40 = vld [vmem:[#allocation4 + $0xf60] sm:$0xff] }
 0x1be   : > { %1618 = vmatprep.subr.mxu0 %v1537_v41  ;;  %1370 = vmatprep.subr.mxu1 %v1260_v43  ;;  %v1297_v41 = vld [vmem:[#allocation4 + $0xb40] sm:$0xff]  ;;  %v1573_v43 = vld [vmem:[#allocation4 + $0xf58] sm:$0xff] }
 0x1bf   : > { %1619 = vmatpush1.msra.mxu0 %v1536_v44  ;;  %1371 = vmatpush1.msra.mxu1 %v1259_v46  ;;  %v1296_v44 = vld [vmem:[#allocation4 + $0xb38] sm:$0xff]  ;;  %v1572_v46 = vld [vmem:[#allocation4 + $0xf50] sm:$0xff] }
 0x1c0   : > { %1620 = vmatprep.subr.mxu0 %v1535_v47  ;;  %1372 = vmatprep.subr.mxu1 %v1258_v48  ;;  %v1295_v47 = vld [vmem:[#allocation4 + $0xb30] sm:$0xff]  ;;  %v1571_v48 = vld [vmem:[#allocation4 + $0xf48] sm:$0xff] }
 0x1c1   : > { %1621 = vmatpush1.msra.mxu0 %v1534_v49  ;;  %1373 = vmatpush1.msra.mxu1 %v1257_v16  ;;  %v1294_v49 = vld [vmem:[#allocation4 + $0xb28] sm:$0xff]  ;;  %v1570_v16 = vld [vmem:[#allocation4 + $0xf40] sm:$0xff] }
 0x1c2   : > { %1622 = vmatprep.subr.mxu0 %v1533_v50  ;;  %1374 = vmatprep.subr.mxu1 %v1320_v51  ;;  %v1293_v50 = vld [vmem:[#allocation4 + $0xb20] sm:$0xff]  ;;  %v1569_v51 = vld [vmem:[#allocation4 + $0xf38] sm:$0xff] }
 0x1c3   : > { %1623 = vmatpush1.msra.mxu0 %v1532_v52  ;;  %1375 = vmatpush2.msra.mxu1 %v1319_v54  ;;  %v1292_v52 = vld [vmem:[#allocation4 + $0xb18] sm:$0xff]  ;;  %v1568_v54 = vld [vmem:[#allocation4 + $0xf30] sm:$0xff] }
 0x1c4   : > { %1624 = vmatprep.subr.mxu0 %v1531_v55  ;;  %1376 = vmatprep.subr.mxu1 %v1318_v57  ;;  %v1291_v55 = vld [vmem:[#allocation4 + $0xb10] sm:$0xff] }
 0x1c5   : > { %1625 = vmatpush1.msra.mxu0 %v1530_v58  ;;  %1377 = vmatpush2.msra.mxu1 %v1317_v60  ;;  %v1255_v57 = vld [vmem:[#allocation2 + $0x38] sm:$0x3]  ;;  %v1567_v58 = vld [vmem:[#allocation4 + $0xf28] sm:$0xff] }
 0x1c6   : > { %1626 = vmatprep.subr.mxu0 %v1593_v61  ;;  %1378 = vmatprep.subr.mxu1 %v1316_v62  ;;  %v1290_v60 = vld [vmem:[#allocation4 + $0xb08] sm:$0xff]  ;;  %v1328_v61 = vrot.slane %v6759_v45, 2  ;;  %v1566_v62 = vld [vmem:[#allocation4 + $0xf20] sm:$0xff] }
 0x1c7   : > { %1627 = vmatpush2.msra.mxu0 %v1592_v63  ;;  %1379 = vmatpush2.msra.mxu1 %v1315_v0  ;;  %v1289_v63 = vld [vmem:[#allocation4 + $0xb00] sm:$0xff]  ;;  %v1565_v0 = vld [vmem:[#allocation4 + $0xf18] sm:$0xff]  ;;  %v1563_v45 = vld [vmem:[#allocation4 + $0xf08] sm:$0xff] }
 0x1c8   : > { %1628 = vmatprep.subr.mxu0 %v1591_v1  ;;  %1380 = vmatprep.subr.mxu1 %v1314_v2  ;;  %v1329_v1 = vrot.slane %v6746_v35, 2  ;;  %v1336_v2 = vrot.slane %v1255_v57, 2  ;;  %v1788_v57 = vld [vmem:[#allocation4 + $0x1060] sm:$0xff] }
 0x1c9   : > { %1629 = vmatpush2.msra.mxu0 %v1590_v3  ;;  %1381 = vmatpush2.msra.mxu1 %v1313_v4  ;;  %v1564_v3 = vld [vmem:[#allocation4 + $0xf10] sm:$0xff]  ;;  %v1494_v4 = vld [vmem:[#allocation4 + $0xcf8] sm:$0xff] }
 0x1ca   : > { %1630 = vmatprep.subr.mxu0 %v1589_v5  ;;  %1382 = vmatprep.subr.mxu1 %v1312_v13  ;;  %v1254_v5 = vld [vmem:[#allocation2 + $0x28] sm:$0x3]  ;;  %v1330_v13 = vsel %vm1327_vm7, %v1328_v61, %v1329_v1  ;;  %v1337_v35 = vsel %vm1327_vm7, %v1332_v53, %v1336_v2  ;;  %v1470_v61 = vld [vmem:[#allocation4 + $0xc38] sm:$0xff] }
 0x1cb   : > { %1631 = vmatpush2.msra.mxu0 %v1588_v6  ;;  %1383 = vmatpush2.msra.mxu1 %v1311_v7  ;;  %v1493_v6 = vld [vmem:[#allocation4 + $0xcf0] sm:$0xff]  ;;  %v1562_v7 = vld [vmem:[#allocation4 + $0xf00] sm:$0xff]  ;;  %v1805_v53 = vld [vmem:[#allocation4 + $0x10e8] sm:$0xff] }
 0x1cc   : > { %1632 = vmatprep.subr.mxu0 %v1587_v8  ;;  %1384 = vmatprep.subr.mxu1 %v1310_v9  ;;  %v1492_v8 = vld [vmem:[#allocation4 + $0xce8] sm:$0xff]  ;;  %v1334_v9 = vrot.slane %v1254_v5, 2  ;;  %v1784_v2 = vld [vmem:[#allocation4 + $0x1040] sm:$0xff]  ;;  %v1466_v5 = vld [vmem:[#allocation4 + $0xc18] sm:$0xff] }
 0x1cd   : > { %1633 = vmatpush2.msra.mxu0 %v1586_v10  ;;  %1385 = vmatpush2.msra.mxu1 %v1309_v11  ;;  %v1491_v10 = vld [vmem:[#allocation4 + $0xce0] sm:$0xff]  ;;  %v1807_v11 = vld [vmem:[#allocation4 + $0x10f8] sm:$0xff] }
 0x1ce   : > { %1634 = vmatprep.subr.mxu0 %v1585_v14  ;;  %1386 = vmatprep.subr.mxu1 %v1308_v15  ;;  %v1490_v14 = vld [vmem:[#allocation4 + $0xcd8] sm:$0xff]  ;;  %v1806_v15 = vld [vmem:[#allocation4 + $0x10f0] sm:$0xff]  ;;  %v1335_v42 = vsel %vm1327_vm7, %v1329_v1, %v1334_v9  ;;  %v1468_v1 = vld [vmem:[#allocation4 + $0xc28] sm:$0xff] }
 0x1cf   : > { %1635 = vmatpush2.msra.mxu0 %v1584_v17  ;;  %1387 = vmatpush2.msra.mxu1 %v1307_v18  ;;  %v1489_v17 = vld [vmem:[#allocation4 + $0xcd0] sm:$0xff]  ;;  %v1488_v18 = vld [vmem:[#allocation4 + $0xcc8] sm:$0xff]  ;;  %v1779_v9 = vld [vmem:[#allocation4 + $0x1018] sm:$0xff] }
 0x1d0   : > { %1636 = vmatprep.subr.mxu0 %v1583_v19  ;;  %1388 = vmatprep.subr.mxu1 %v1306_v21  ;;  %v1804_v19 = vld [vmem:[#allocation4 + $0x10e0] sm:$0xff] }
 0x1d1   : > { %1637 = vmatpush2.msra.mxu0 %v1582_v22  ;;  %1389 = vmatpush2.msra.mxu1 %v1305_v20  ;;  %v1487_v21 = vld [vmem:[#allocation4 + $0xcc0] sm:$0xff]  ;;  %v1803_v22 = vld [vmem:[#allocation4 + $0x10d8] sm:$0xff] }
 0x1d2   : > { %1638 = vmatprep.subr.mxu0 %v1581_v23  ;;  %1390 = vmatprep.subr.mxu1 %v1304_v24  ;;  %v1486_v20 = vld [vmem:[#allocation4 + $0xcb8] sm:$0xff]  ;;  %v1802_v23 = vld [vmem:[#allocation4 + $0x10d0] sm:$0xff] }
 0x1d3   : > { %1639 = vmatpush2.msra.mxu0 %v1580_v25  ;;  %1391 = vmatpush2.msra.mxu1 %v1303_v26  ;;  %v1485_v24 = vld [vmem:[#allocation4 + $0xcb0] sm:$0xff]  ;;  %v1801_v25 = vld [vmem:[#allocation4 + $0x10c8] sm:$0xff] }
 0x1d4   : > { %1640 = vmatprep.subr.mxu0 %v1579_v27  ;;  %1392 = vmatprep.subr.mxu1 %v1302_v29  ;;  %v1484_v26 = vld [vmem:[#allocation4 + $0xca8] sm:$0xff]  ;;  %v1800_v27 = vld [vmem:[#allocation4 + $0x10c0] sm:$0xff] }
 0x1d5   : > { %1641 = vmatpush2.msra.mxu0 %v1578_v30  ;;  %1393 = vmatpush2.msra.mxu1 %v1301_v32  ;;  %v1483_v29 = vld [vmem:[#allocation4 + $0xca0] sm:$0xff]  ;;  %v1799_v30 = vld [vmem:[#allocation4 + $0x10b8] sm:$0xff] }
 0x1d6   : > { %1642 = vmatprep.subr.mxu0 %v1577_v33  ;;  %1394 = vmatprep.subr.mxu1 %v1300_v34  ;;  %v1482_v32 = vld [vmem:[#allocation4 + $0xc98] sm:$0xff]  ;;  %v1798_v33 = vld [vmem:[#allocation4 + $0x10b0] sm:$0xff] }
 0x1d7   : > { %1643 = vmatpush2.msra.mxu0 %v1576_v36  ;;  %1395 = vmatpush2.msra.mxu1 %v1299_v37  ;;  %v1481_v34 = vld [vmem:[#allocation4 + $0xc90] sm:$0xff]  ;;  %v1797_v36 = vld [vmem:[#allocation4 + $0x10a8] sm:$0xff] }
 0x1d8   : > { %1644 = vmatprep.subr.mxu0 %v1575_v38  ;;  %1396 = vmatprep.subr.mxu1 %v1298_v39  ;;  %v1480_v37 = vld [vmem:[#allocation4 + $0xc88] sm:$0xff]  ;;  %v1796_v38 = vld [vmem:[#allocation4 + $0x10a0] sm:$0xff] }
 0x1d9   : > { %1645 = vmatpush2.msra.mxu0 %v1574_v40  ;;  %1397 = vmatpush2.msra.mxu1 %v1297_v41  ;;  %v1479_v39 = vld [vmem:[#allocation4 + $0xc80] sm:$0xff]  ;;  %v1795_v40 = vld [vmem:[#allocation4 + $0x1098] sm:$0xff] }
 0x1da   : > { %1646 = vmatprep.subr.mxu0 %v1573_v43  ;;  %1398 = vmatprep.subr.mxu1 %v1296_v44  ;;  %v1478_v41 = vld [vmem:[#allocation4 + $0xc78] sm:$0xff]  ;;  %v1794_v43 = vld [vmem:[#allocation4 + $0x1090] sm:$0xff] }
 0x1db   : > { %1647 = vmatpush2.msra.mxu0 %v1572_v46  ;;  %1399 = vmatpush2.msra.mxu1 %v1295_v47  ;;  %v1477_v44 = vld [vmem:[#allocation4 + $0xc70] sm:$0xff]  ;;  %v1793_v46 = vld [vmem:[#allocation4 + $0x1088] sm:$0xff] }
 0x1dc   : > { %1648 = vmatprep.subr.mxu0 %v1571_v48  ;;  %1400 = vmatprep.subr.mxu1 %v1294_v49  ;;  %v1476_v47 = vld [vmem:[#allocation4 + $0xc68] sm:$0xff]  ;;  %v1792_v48 = vld [vmem:[#allocation4 + $0x1080] sm:$0xff] }
 0x1dd   : > { %1649 = vmatpush2.msra.mxu0 %v1570_v16  ;;  %1401 = vmatpush2.msra.mxu1 %v1293_v50  ;;  %v1475_v49 = vld [vmem:[#allocation4 + $0xc60] sm:$0xff]  ;;  %v1791_v16 = vld [vmem:[#allocation4 + $0x1078] sm:$0xff] }
 0x1de   : > { %1650 = vmatprep.subr.mxu0 %v1569_v51  ;;  %1402 = vmatprep.subr.mxu1 %v1292_v52  ;;  %v1474_v50 = vld [vmem:[#allocation4 + $0xc58] sm:$0xff]  ;;  %v1790_v51 = vld [vmem:[#allocation4 + $0x1070] sm:$0xff] }
 0x1df   : > { %1651 = vmatpush2.msra.mxu0 %v1568_v54  ;;  %1403 = vmatpush2.msra.mxu1 %v1291_v55  ;;  %v1473_v52 = vld [vmem:[#allocation4 + $0xc50] sm:$0xff]  ;;  %v1789_v54 = vld [vmem:[#allocation4 + $0x1068] sm:$0xff] }
 0x1e0   : > { %1652 = vmatprep.subr.mxu0 %v1567_v58  ;;  %1404 = vmatprep.subr.mxu1 %v1290_v60  ;;  %v1472_v55 = vld [vmem:[#allocation4 + $0xc48] sm:$0xff]  ;;  %v1471_v58 = vld [vmem:[#allocation4 + $0xc40] sm:$0xff]  ;;  %v1787_v60 = vld [vmem:[#allocation4 + $0x1058] sm:$0xff] }
 0x1e1   : > { %1653 = vmatpush2.msra.mxu0 %v1566_v62  ;;  %1405 = vmatpush2.msra.mxu1 %v1289_v63  ;;  %v1786_v62 = vld [vmem:[#allocation4 + $0x1050] sm:$0xff] }
 0x1e2   : > { %1654 = vmatprep.subr.mxu0 %v1565_v0  ;;  %1407 = vmatmul.mubr.f32.vlgmr.msra.gmra.mxu1 %v1330_v13  ;;  %v1469_v63 = vld [vmem:[#allocation4 + $0xc30] sm:$0xff]  ;;  %v1785_v0 = vld [vmem:[#allocation4 + $0x1048] sm:$0xff] }
 0x1e3   : > { %1655 = vmatpush2.msra.mxu0 %v1564_v3  ;;  %1692 = vmatprep.subr.mxu1 %v1494_v4  ;;  %v1467_v3 = vld [vmem:[#allocation4 + $0xc20] sm:$0xff]  ;;  %v1783_v4 = vld [vmem:[#allocation4 + $0x1038] sm:$0xff]  ;;  %v1782_v13 = vld [vmem:[#allocation4 + $0x1030] sm:$0xff] }
 0x1e4   : > { %1412 = vmatprep.mubr.f32.mxu1 %v1337_v35  ;;  %1656 = vmatprep.subr.mxu0 %v1563_v45  ;;  %v1465_v45 = vld [vmem:[#allocation4 + $0xc10] sm:$0xff]  ;;  %v1780_v35 = vld [vmem:[#allocation4 + $0x1020] sm:$0xff] }
 0x1e5   : > { %1693 = vmatpush1.msra.mxu1 %v1493_v6  ;;  %1657 = vmatpush2.msra.mxu0 %v1562_v7  ;;  %v1781_v6 = vld [vmem:[#allocation4 + $0x1028] sm:$0xff] }
 0x1e6   : > { %1658 = vmatprep.mubr.f32.mxu0 %v6692_v28  ;;  %1694 = vmatprep.subr.mxu1 %v1492_v8  ;;  %v1464_v7 = vld [vmem:[#allocation4 + $0xc08] sm:$0xff]  ;;  %v1463_v8 = vld [vmem:[#allocation4 + $0xc00] sm:$0xff] }
 0x1e7   : > { %1659 = vmatmul.mubr.f32.vlgmr.msra.gmra.mxu0 %v6696_v31  ;;  %1695 = vmatpush1.msra.mxu1 %v1491_v10  ;;  %v1526_v10 = vld [vmem:[#allocation4 + $0xdf8] sm:$0xff] }
 0x1e8   : > { %1861 = vmatprep.subr.mxu0 %v1807_v11  ;;  %1413 = vmatmul.mubr.f32.gmra.mxu1 %v1335_v42  ;;  %v1778_v11 = vld [vmem:[#allocation4 + $0x1010] sm:$0xff]  ;;  %v1524_v42 = vld [vmem:[#allocation4 + $0xde8] sm:$0xff] }
 0x1e9   : > { %1696 = vmatprep.subr.mxu1 %v1490_v14  ;;  %1862 = vmatpush1.msra.mxu0 %v1806_v15  ;;  %v1525_v14 = vld [vmem:[#allocation4 + $0xdf0] sm:$0xff]  ;;  %v1777_v15 = vld [vmem:[#allocation4 + $0x1008] sm:$0xff] }
 0x1ea   : > { %1697 = vmatpush1.msra.mxu1 %v1489_v17  ;;  %1863 = vmatprep.subr.mxu0 %v1805_v53  ;;  %v1776_v17 = vld [vmem:[#allocation4 + $0x1000] sm:$0xff] }
 0x1eb   : > { %1698 = vmatprep.subr.mxu1 %v1488_v18  ;;  %1864 = vmatpush1.msra.mxu0 %v1804_v19  ;;  %v1523_v53 = vld [vmem:[#allocation4 + $0xde0] sm:$0xff]  ;;  %v1839_v18 = vld [vmem:[#allocation4 + $0x11f8] sm:$0xff] }
 0x1ec   : > { %1699 = vmatpush1.msra.mxu1 %v1487_v21  ;;  %1865 = vmatprep.subr.mxu0 %v1803_v22  ;;  %v1522_v19 = vld [vmem:[#allocation4 + $0xdd8] sm:$0xff]  ;;  %v1838_v21 = vld [vmem:[#allocation4 + $0x11f0] sm:$0xff] }
 0x1ed   : > { %1700 = vmatprep.subr.mxu1 %v1486_v20  ;;  %1866 = vmatpush1.msra.mxu0 %v1802_v23  ;;  %v1521_v22 = vld [vmem:[#allocation4 + $0xdd0] sm:$0xff]  ;;  %v1837_v20 = vld [vmem:[#allocation4 + $0x11e8] sm:$0xff] }
 0x1ee   : > { %1701 = vmatpush1.msra.mxu1 %v1485_v24  ;;  %1867 = vmatprep.subr.mxu0 %v1801_v25  ;;  %v1520_v23 = vld [vmem:[#allocation4 + $0xdc8] sm:$0xff]  ;;  %v1836_v24 = vld [vmem:[#allocation4 + $0x11e0] sm:$0xff] }
 0x1ef   : > { %1702 = vmatprep.subr.mxu1 %v1484_v26  ;;  %1868 = vmatpush1.msra.mxu0 %v1800_v27  ;;  %v1519_v25 = vld [vmem:[#allocation4 + $0xdc0] sm:$0xff]  ;;  %v1835_v26 = vld [vmem:[#allocation4 + $0x11d8] sm:$0xff] }
 0x1f0   : > { %1703 = vmatpush1.msra.mxu1 %v1483_v29  ;;  %1869 = vmatprep.subr.mxu0 %v1799_v30  ;;  %v1518_v27 = vld [vmem:[#allocation4 + $0xdb8] sm:$0xff]  ;;  %v1834_v29 = vld [vmem:[#allocation4 + $0x11d0] sm:$0xff] }
 0x1f1   : > { %1704 = vmatprep.subr.mxu1 %v1482_v32  ;;  %1870 = vmatpush1.msra.mxu0 %v1798_v33  ;;  %v1517_v30 = vld [vmem:[#allocation4 + $0xdb0] sm:$0xff]  ;;  %v1833_v32 = vld [vmem:[#allocation4 + $0x11c8] sm:$0xff] }
 0x1f2   : > { %1705 = vmatpush1.msra.mxu1 %v1481_v34  ;;  %1871 = vmatprep.subr.mxu0 %v1797_v36  ;;  %v1516_v33 = vld [vmem:[#allocation4 + $0xda8] sm:$0xff]  ;;  %v1832_v34 = vld [vmem:[#allocation4 + $0x11c0] sm:$0xff] }
 0x1f3   : > { %1706 = vmatprep.subr.mxu1 %v1480_v37  ;;  %1872 = vmatpush1.msra.mxu0 %v1796_v38  ;;  %v1515_v36 = vld [vmem:[#allocation4 + $0xda0] sm:$0xff]  ;;  %v1831_v37 = vld [vmem:[#allocation4 + $0x11b8] sm:$0xff] }
 0x1f4   : > { %1707 = vmatpush1.msra.mxu1 %v1479_v39  ;;  %1873 = vmatprep.subr.mxu0 %v1795_v40  ;;  %v1514_v38 = vld [vmem:[#allocation4 + $0xd98] sm:$0xff]  ;;  %v1830_v39 = vld [vmem:[#allocation4 + $0x11b0] sm:$0xff] }
 0x1f5   : > { %1708 = vmatprep.subr.mxu1 %v1478_v41  ;;  %1874 = vmatpush1.msra.mxu0 %v1794_v43  ;;  %v1513_v40 = vld [vmem:[#allocation4 + $0xd90] sm:$0xff]  ;;  %v1829_v41 = vld [vmem:[#allocation4 + $0x11a8] sm:$0xff] }
 0x1f6   : > { %1709 = vmatpush1.msra.mxu1 %v1477_v44  ;;  %1875 = vmatprep.subr.mxu0 %v1793_v46  ;;  %v1512_v43 = vld [vmem:[#allocation4 + $0xd88] sm:$0xff]  ;;  %v1828_v44 = vld [vmem:[#allocation4 + $0x11a0] sm:$0xff] }
 0x1f7   : > { %1710 = vmatprep.subr.mxu1 %v1476_v47  ;;  %1876 = vmatpush1.msra.mxu0 %v1792_v48  ;;  %v1511_v46 = vld [vmem:[#allocation4 + $0xd80] sm:$0xff]  ;;  %v1827_v47 = vld [vmem:[#allocation4 + $0x1198] sm:$0xff] }
 0x1f8   : > { %1711 = vmatpush1.msra.mxu1 %v1475_v49  ;;  %1877 = vmatprep.subr.mxu0 %v1791_v16  ;;  %v1510_v48 = vld [vmem:[#allocation4 + $0xd78] sm:$0xff]  ;;  %v1826_v49 = vld [vmem:[#allocation4 + $0x1190] sm:$0xff] }
 0x1f9   : > { %1712 = vmatprep.subr.mxu1 %v1474_v50  ;;  %1878 = vmatpush1.msra.mxu0 %v1790_v51  ;;  %v1509_v16 = vld [vmem:[#allocation4 + $0xd70] sm:$0xff]  ;;  %v1825_v50 = vld [vmem:[#allocation4 + $0x1188] sm:$0xff] }
 0x1fa   : > { %1713 = vmatpush1.msra.mxu1 %v1473_v52  ;;  %1879 = vmatprep.subr.mxu0 %v1789_v54  ;;  %v1508_v51 = vld [vmem:[#allocation4 + $0xd68] sm:$0xff]  ;;  %v1824_v52 = vld [vmem:[#allocation4 + $0x1180] sm:$0xff] }
 0x1fb   : > { %1714 = vmatprep.subr.mxu1 %v1472_v55  ;;  %1880 = vmatpush1.msra.mxu0 %v1788_v57  ;;  %v1507_v54 = vld [vmem:[#allocation4 + $0xd60] sm:$0xff]  ;;  %v1823_v55 = vld [vmem:[#allocation4 + $0x1178] sm:$0xff] }
 0x1fc   : > { %1715 = vmatpush1.msra.mxu1 %v1471_v58  ;;  %1881 = vmatprep.subr.mxu0 %v1787_v60  ;;  %v1506_v57 = vld [vmem:[#allocation4 + $0xd58] sm:$0xff]  ;;  %v1822_v58 = vld [vmem:[#allocation4 + $0x1170] sm:$0xff] }
 0x1fd   : > { %1716 = vmatprep.subr.mxu1 %v1470_v61  ;;  %1882 = vmatpush1.msra.mxu0 %v1786_v62  ;;  %v1505_v60 = vld [vmem:[#allocation4 + $0xd50] sm:$0xff]  ;;  %v1821_v61 = vld [vmem:[#allocation4 + $0x1168] sm:$0xff] }
 0x1fe   : > { %1717 = vmatpush1.msra.mxu1 %v1469_v63  ;;  %1883 = vmatprep.subr.mxu0 %v1785_v0  ;;  %v1504_v62 = vld [vmem:[#allocation4 + $0xd48] sm:$0xff]  ;;  %v1820_v63 = vld [vmem:[#allocation4 + $0x1160] sm:$0xff] }
 0x1ff   : > { %1718 = vmatprep.subr.mxu1 %v1468_v1  ;;  %1884 = vmatpush1.msra.mxu0 %v1784_v2  ;;  %v1503_v0 = vld [vmem:[#allocation4 + $0xd40] sm:$0xff]  ;;  %v1819_v1 = vld [vmem:[#allocation4 + $0x1158] sm:$0xff] }
 0x200   : > { %1719 = vmatpush1.msra.mxu1 %v1467_v3  ;;  %1885 = vmatprep.subr.mxu0 %v1783_v4  ;;  %v1502_v2 = vld [vmem:[#allocation4 + $0xd38] sm:$0xff]  ;;  %v1818_v3 = vld [vmem:[#allocation4 + $0x1150] sm:$0xff] }
 0x201   : > { %1720 = vmatprep.subr.mxu1 %v1466_v5  ;;  %1886 = vmatpush1.msra.mxu0 %v1782_v13  ;;  %v1501_v4 = vld [vmem:[#allocation4 + $0xd30] sm:$0xff]  ;;  %v1817_v5 = vld [vmem:[#allocation4 + $0x1148] sm:$0xff] }
 0x202   : > { %1721 = vmatpush1.msra.mxu1 %v1465_v45  ;;  %1887 = vmatprep.subr.mxu0 %v1781_v6  ;;  %v1500_v13 = vld [vmem:[#allocation4 + $0xd28] sm:$0xff]  ;;  %v1457_v45 = vld [vmem:[#allocation2] sm:$0xe0] }
 0x203   : > { %1722 = vmatprep.subr.mxu1 %v1464_v7  ;;  %1888 = vmatpush1.msra.mxu0 %v1780_v35  ;;  %v1816_v6 = vld [vmem:[#allocation4 + $0x1140] sm:$0xff]  ;;  %v1456_v35 = vld [vmem:[#allocation2 + $0x30] sm:$0xe0] }
 0x204   : > { %1723 = vmatpush1.msra.mxu1 %v1463_v8  ;;  %1889 = vmatprep.subr.mxu0 %v1779_v9  ;;  %v1499_v7 = vld [vmem:[#allocation4 + $0xd20] sm:$0xff]  ;;  %v1815_v8 = vld [vmem:[#allocation4 + $0x1138] sm:$0xff]  ;;  %v1770_v9 = vld [vmem:[#allocation2 + $0x10] sm:$0xf8] }
 0x205   : > { %1724 = vmatprep.subr.mxu1 %v1526_v10  ;;  %1890 = vmatpush1.msra.mxu0 %v1778_v11  ;;  %v6786_v10 = vld [vmem:[#allocation2 + $0x20] sm:$0xff]  ;;  %v1682_v11 = vrot.slane %v6692_v28, 5 }
 0x206   : > { %1725 = vmatpush2.msra.mxu1 %v1525_v14  ;;  %1891 = vmatprep.subr.mxu0 %v1777_v15  ;;  %v1679_v14 = vrot.slane %v6696_v31, 5  ;;  %v1498_v15 = vld [vmem:[#allocation4 + $0xd18] sm:$0xff] }
 0x207   : > { %1726 = vmatprep.subr.mxu1 %v1524_v42  ;;  %1892 = vmatpush1.msra.mxu0 %v1776_v17  ;;  %v1681_v42 = vrot.slane %v1457_v45, 5  ;;  %v1461_v17 = vld [vmem:[#allocation2 + $0x20] sm:$0x1f]  ;;  %v2007_v45 = vld [vmem:[#allocation4 + $0x12c8] sm:$0xff] }
 0x208   : > { %1727 = vmatpush2.msra.mxu1 %v1523_v53  ;;  %1893 = vmatprep.subr.mxu0 %v1839_v18  ;;  %v1814_v53 = vld [vmem:[#allocation4 + $0x1130] sm:$0xff] }
 0x209   : > { %1728 = vmatprep.subr.mxu1 %v1522_v19  ;;  %1894 = vmatpush2.msra.mxu0 %v1838_v21  ;;  %v1497_v18 = vld [vmem:[#allocation4 + $0xd10] sm:$0xff]  ;;  %v1678_v19 = vrot.slane %v1456_v35, 5  ;;  %v1769_v21 = vld [vmem:[#allocation2 + $0x18] sm:$0xf8] }
 0x20a   : > { %1729 = vmatpush2.msra.mxu1 %v1521_v22  ;;  %1895 = vmatprep.subr.mxu0 %v1837_v20  ;;  %v1813_v22 = vld [vmem:[#allocation4 + $0x1128] sm:$0xff]  ;;  %v1850_v20 = vrot.slane %v1770_v9, 3  ;;  %v2071_v35 = vld [vmem:[#allocation4 + $0x14b0] sm:$0xff] }
 0x20b   : > { %1730 = vmatprep.subr.mxu1 %v1520_v23  ;;  %1896 = vmatpush2.msra.mxu0 %v1836_v24  ;;  %v1851_v23 = vrot.slane %v6786_v10, 3  ;;  %v1771_v24 = vld [vmem:[#allocation2 + $0x8] sm:$0xff]  ;;  %v2004_v10 = vld [vmem:[#allocation4 + $0x12b0] sm:$0xff] }
 0x20c   : > { %1731 = vmatpush2.msra.mxu1 %v1519_v25  ;;  %1897 = vmatprep.subr.mxu0 %v1835_v26  ;;  %v1460_v25 = vld [vmem:[#allocation2 + $0x8] sm:$0x1f] }
 0x20d   : > { %1732 = vmatprep.subr.mxu1 %v1518_v27  ;;  %1898 = vmatpush2.msra.mxu0 %v1834_v29  ;;  %v1496_v26 = vld [vmem:[#allocation4 + $0xd08] sm:$0xff]  ;;  %v1812_v27 = vld [vmem:[#allocation4 + $0x1120] sm:$0xff]  ;;  %v1686_v29 = vrot.slane %v1461_v17, 5  ;;  %v2067_v17 = vld [vmem:[#allocation4 + $0x1490] sm:$0xff] }
 0x20e   : > { %1733 = vmatpush2.msra.mxu1 %v1517_v30  ;;  %1899 = vmatprep.subr.mxu0 %v1833_v32  ;;  %v1774_v30 = vld [vmem:[#allocation2 + $0x38] sm:$0x7]  ;;  %v1495_v32 = vld [vmem:[#allocation4 + $0xd00] sm:$0xff]  ;;  %v2070_v9 = vld [vmem:[#allocation4 + $0x14a8] sm:$0xff] }
 0x20f   : > { %1734 = vmatprep.subr.mxu1 %v1516_v33  ;;  %1900 = vmatpush2.msra.mxu0 %v1832_v34  ;;  %v1683_v33 = vsel %vm1677_vm8, %v1681_v42, %v1682_v11  ;;  %v6793_v34 = vld [vmem:[#allocation2 + $0x8] sm:$0xff] }
 0x210   : > { %1735 = vmatpush2.msra.mxu1 %v1515_v36  ;;  %1901 = vmatprep.subr.mxu0 %v1831_v37  ;;  %v1811_v36 = vld [vmem:[#allocation4 + $0x1118] sm:$0xff]  ;;  %v1680_v37 = vsel %vm1677_vm8, %v1678_v19, %v1679_v14  ;;  %v2002_v42 = vld [vmem:[#allocation4 + $0x12a0] sm:$0xff]  ;;  %v2000_v19 = vld [vmem:[#allocation4 + $0x1290] sm:$0xff] }
 0x211   : > { %1736 = vmatprep.subr.mxu1 %v1514_v38  ;;  %1902 = vmatpush2.msra.mxu0 %v1830_v39  ;;  %v1847_v38 = vrot.slane %v1769_v21, 3  ;;  %v1848_v39 = vrot.slane %v1771_v24, 3  ;;  %v2065_v21 = vld [vmem:[#allocation4 + $0x1480] sm:$0xff]  ;;  %v2063_v24 = vld [vmem:[#allocation4 + $0x1470] sm:$0xff] }
 0x212   : > { %1737 = vmatpush2.msra.mxu1 %v1513_v40  ;;  %1903 = vmatprep.subr.mxu0 %v1829_v41  ;;  %v1684_v40 = vrot.slane %v1460_v25, 5  ;;  %v1810_v41 = vld [vmem:[#allocation4 + $0x1110] sm:$0xff]  ;;  %v1997_v25 = vld [vmem:[#allocation4 + $0x1278] sm:$0xff] }
 0x213   : > { %1738 = vmatprep.subr.mxu1 %v1512_v43  ;;  %1904 = vmatpush2.msra.mxu0 %v1828_v44  ;;  %v1852_v43 = vsel %vm1846_vm9, %v1850_v20, %v1851_v23  ;;  %v1855_v44 = vrot.slane %v1774_v30, 3  ;;  %v2064_v20 = vld [vmem:[#allocation4 + $0x1478] sm:$0xff]  ;;  %v1995_v30 = vld [vmem:[#allocation4 + $0x1268] sm:$0xff] }
 0x214   : > { %1739 = vmatpush2.msra.mxu1 %v1511_v46  ;;  %1905 = vmatprep.subr.mxu0 %v1827_v47  ;;  %v1773_v46 = vld [vmem:[#allocation2 + $0x28] sm:$0x7] }
 0x215   : > { %1740 = vmatprep.subr.mxu1 %v1510_v48  ;;  %1906 = vmatpush2.msra.mxu0 %v1826_v49  ;;  %v1809_v47 = vld [vmem:[#allocation4 + $0x1108] sm:$0xff]  ;;  %v1687_v48 = vsel %vm1677_vm8, %v1682_v11, %v1686_v29  ;;  %v1808_v49 = vld [vmem:[#allocation4 + $0x1100] sm:$0xff] }
 0x216   : > { %1741 = vmatpush2.msra.mxu1 %v1509_v16  ;;  %1907 = vmatprep.subr.mxu0 %v1825_v50  ;;  %v1849_v16 = vsel %vm1846_vm9, %v1847_v38, %v1848_v39  ;;  %v1685_v50 = vsel %vm1677_vm8, %v1679_v14, %v1684_v40  ;;  %v2069_v11 = vld [vmem:[#allocation4 + $0x14a0] sm:$0xff]  ;;  %v2003_v14 = vld [vmem:[#allocation4 + $0x12a8] sm:$0xff] }
 0x217   : > { %1742 = vmatprep.subr.mxu1 %v1508_v51  ;;  %1908 = vmatpush2.msra.mxu0 %v1824_v52  ;;  %v1853_v51 = vrot.slane %v1773_v46, 3  ;;  %v1856_v52 = vsel %vm1846_vm9, %v1851_v23, %v1855_v44  ;;  %v1998_v23 = vld [vmem:[#allocation4 + $0x1280] sm:$0xff]  ;;  %v2058_v38 = vld [vmem:[#allocation4 + $0x1448] sm:$0xff]  ;;  %v2055_v46 = vld [vmem:[#allocation4 + $0x1430] sm:$0xff] }
 0x218   : > { %1743 = vmatpush2.msra.mxu1 %v1507_v54  ;;  %1909 = vmatprep.subr.mxu0 %v1823_v55  ;;  %v2080_v55 = vld [vmem:[#allocation4 + $0x14f8] sm:$0xff]  ;;  %v2061_v29 = vld [vmem:[#allocation4 + $0x1460] sm:$0xff] }
 0x219   : > { %1744 = vmatprep.subr.mxu1 %v1506_v57  ;;  %1910 = vmatpush2.msra.mxu0 %v1822_v58  ;;  %v1854_v54 = vsel %vm1846_vm9, %v1848_v39, %v1853_v51  ;;  %v2079_v57 = vld [vmem:[#allocation4 + $0x14f0] sm:$0xff]  ;;  %v2078_v58 = vld [vmem:[#allocation4 + $0x14e8] sm:$0xff]  ;;  %v2057_v40 = vld [vmem:[#allocation4 + $0x1440] sm:$0xff] }
 0x21a   : > { %1745 = vmatpush2.msra.mxu1 %v1505_v60  ;;  %1911 = vmatprep.subr.mxu0 %v1821_v61  ;;  %v2077_v60 = vld [vmem:[#allocation4 + $0x14e0] sm:$0xff]  ;;  %v2013_v61 = vld [vmem:[#allocation4 + $0x12f8] sm:$0xff]  ;;  %v1992_v39 = vld [vmem:[#allocation4 + $0x1250] sm:$0xff] }
 0x21b   : > { %1746 = vmatprep.subr.mxu1 %v1504_v62  ;;  %1912 = vmatpush2.msra.mxu0 %v1820_v63  ;;  %v2076_v62 = vld [vmem:[#allocation4 + $0x14d8] sm:$0xff]  ;;  %v2012_v63 = vld [vmem:[#allocation4 + $0x12f0] sm:$0xff]  ;;  %v1990_v44 = vld [vmem:[#allocation4 + $0x1240] sm:$0xff] }
 0x21c   : > { %1747 = vmatpush2.msra.mxu1 %v1503_v0  ;;  %1913 = vmatprep.subr.mxu0 %v1819_v1  ;;  %v2011_v0 = vld [vmem:[#allocation4 + $0x12e8] sm:$0xff]  ;;  %v2075_v1 = vld [vmem:[#allocation4 + $0x14d0] sm:$0xff]  ;;  %v2052_v51 = vld [vmem:[#allocation4 + $0x1418] sm:$0xff] }
 0x21d   : > { %1748 = vmatprep.subr.mxu1 %v1502_v2  ;;  %1914 = vmatpush2.msra.mxu0 %v1818_v3  ;;  %v2010_v2 = vld [vmem:[#allocation4 + $0x12e0] sm:$0xff]  ;;  %v2074_v3 = vld [vmem:[#allocation4 + $0x14c8] sm:$0xff] }
 0x21e   : > { %1749 = vmatpush2.msra.mxu1 %v1501_v4  ;;  %1915 = vmatprep.subr.mxu0 %v1817_v5  ;;  %v2009_v4 = vld [vmem:[#allocation4 + $0x12d8] sm:$0xff]  ;;  %v2008_v5 = vld [vmem:[#allocation4 + $0x12d0] sm:$0xff] }
 0x21f   : > { %1750 = vmatprep.subr.mxu1 %v1500_v13  ;;  %1916 = vmatpush2.msra.mxu0 %v1816_v6  ;;  %v2073_v13 = vld [vmem:[#allocation4 + $0x14c0] sm:$0xff]  ;;  %v2072_v6 = vld [vmem:[#allocation4 + $0x14b8] sm:$0xff] }
 0x220   : > { %1751 = vmatpush2.msra.mxu1 %v1499_v7  ;;  %1917 = vmatprep.subr.mxu0 %v1815_v8  ;;  %v2006_v7 = vld [vmem:[#allocation4 + $0x12c0] sm:$0xff]  ;;  %v2005_v8 = vld [vmem:[#allocation4 + $0x12b8] sm:$0xff] }
 0x221   : > { %1664 = vmatprep.mubr.f32.mxu0 %v6706_v12  ;;  %1752 = vmatprep.subr.mxu1 %v1498_v15  ;;  %v2068_v15 = vld [vmem:[#allocation4 + $0x1498] sm:$0xff] }
 0x222   : > { %1918 = vmatpush2.msra.mxu0 %v1814_v53  ;;  %1753 = vmatpush2.msra.mxu1 %v1497_v18  ;;  %v2001_v53 = vld [vmem:[#allocation4 + $0x1298] sm:$0xff]  ;;  %v2066_v18 = vld [vmem:[#allocation4 + $0x1488] sm:$0xff] }
 0x223   : > { %1665 = vmatmul.mubr.f32.gmra.mxu0 %v6793_v34  ;;  %1919 = vmatprep.subr.mxu0 %v1813_v22  ;;  %v1999_v22 = vld [vmem:[#allocation4 + $0x1288] sm:$0xff] }
 0x224   : > { %1754 = vmatprep.subr.mxu1 %v1496_v26  ;;  %1920 = vmatpush2.msra.mxu0 %v1812_v27  ;;  %v2062_v26 = vld [vmem:[#allocation4 + $0x1468] sm:$0xff]  ;;  %v1996_v27 = vld [vmem:[#allocation4 + $0x1270] sm:$0xff] }
 0x225   : > { %1755 = vmatpush2.msra.mxu1 %v1495_v32  ;;  %1756 = vmatprep.mubr.f32.mxu1 %v1683_v33  ;;  %v2060_v32 = vld [vmem:[#allocation4 + $0x1458] sm:$0xff]  ;;  %v1994_v33 = vld [vmem:[#allocation4 + $0x1260] sm:$0xff] }
 0x226   : > { %1921 = vmatprep.subr.mxu0 %v1811_v36  ;;  %1757 = vmatmul.mubr.f32.vlgmr.msra.gmra.mxu1 %v1680_v37  ;;  %v2059_v36 = vld [vmem:[#allocation4 + $0x1450] sm:$0xff]  ;;  %v1993_v37 = vld [vmem:[#allocation4 + $0x1258] sm:$0xff] }
 0x227   : > { %1922 = vmatpush2.msra.mxu0 %v1810_v41  ;;  %1925 = vmatprep.mubr.f32.mxu0 %v1852_v43  ;;  %v1991_v41 = vld [vmem:[#allocation4 + $0x1248] sm:$0xff]  ;;  %v2056_v43 = vld [vmem:[#allocation4 + $0x1438] sm:$0xff] }
 0x228   : > { %1923 = vmatprep.subr.mxu0 %v1809_v47  ;;  %1762 = vmatprep.mubr.f32.mxu1 %v1687_v48  ;;  %v1989_v47 = vld [vmem:[#allocation4 + $0x1238] sm:$0xff]  ;;  %v2054_v48 = vld [vmem:[#allocation4 + $0x1428] sm:$0xff] }
 0x229   : > { %1924 = vmatpush2.msra.mxu0 %v1808_v49  ;;  %2113 = vmatprep.subr.mxu1 %v2080_v55  ;;  %v1988_v49 = vld [vmem:[#allocation4 + $0x1230] sm:$0xff]  ;;  %v1985_v55 = vld [vmem:[#allocation4 + $0x1218] sm:$0xff] }
 0x22a   : > { %1926 = vmatmul.mubr.f32.vlgmr.msra.gmra.mxu0 %v1849_v16  ;;  %1763 = vmatmul.mubr.f32.gmra.mxu1 %v1685_v50  ;;  %v2053_v16 = vld [vmem:[#allocation4 + $0x1420] sm:$0xff]  ;;  %v1987_v50 = vld [vmem:[#allocation4 + $0x1228] sm:$0xff] }
 0x22b   : > { %1931 = vmatprep.mubr.f32.mxu0 %v1856_v52  ;;  %2114 = vmatpush1.msra.mxu1 %v2079_v57  ;;  %v1986_v52 = vld [vmem:[#allocation4 + $0x1220] sm:$0xff]  ;;  %v2050_v57 = vld [vmem:[#allocation4 + $0x1408] sm:$0xff] }
 0x22c   : > { %2211 = vmatprep.subr.mxu0 %v2013_v61  ;;  %2115 = vmatprep.subr.mxu1 %v2078_v58  ;;  %v1984_v58 = vld [vmem:[#allocation4 + $0x1210] sm:$0xff]  ;;  %v1983_v61 = vld [vmem:[#allocation4 + $0x1208] sm:$0xff] }
 0x22d   : > { %2212 = vmatpush1.msra.mxu0 %v2012_v63  ;;  %2116 = vmatpush1.msra.mxu1 %v2077_v60  ;;  %v2049_v60 = vld [vmem:[#allocation4 + $0x1400] sm:$0xff] }
 0x22e   : > { %1932 = vmatmul.mubr.f32.gmra.mxu0 %v1854_v54  ;;  %2213 = vmatprep.subr.mxu0 %v2011_v0  ;;  %v2051_v54 = vld [vmem:[#allocation4 + $0x1410] sm:$0xff]  ;;  %v1982_v63 = vld [vmem:[#allocation4 + $0x1200] sm:$0xff] }
 0x22f   : > { %2117 = vmatprep.subr.mxu1 %v2076_v62  ;;  %2214 = vmatpush1.msra.mxu0 %v2010_v2  ;;  %v2112_v62 = vld [vmem:[#allocation4 + $0x15f8] sm:$0xff]  ;;  %v2111_v0 = vld [vmem:[#allocation4 + $0x15f0] sm:$0xff]  ;;  %v2110_v2 = vld [vmem:[#allocation4 + $0x15e8] sm:$0xff] }
 0x230   : > { %2118 = vmatpush1.msra.mxu1 %v2075_v1  ;;  %2215 = vmatprep.subr.mxu0 %v2009_v4  ;;  %v2045_v1 = vld [vmem:[#allocation4 + $0x13f8] sm:$0xff]  ;;  %v2109_v4 = vld [vmem:[#allocation4 + $0x15e0] sm:$0xff] }
 0x231   : > { %2119 = vmatprep.subr.mxu1 %v2074_v3  ;;  %2216 = vmatpush1.msra.mxu0 %v2008_v5  ;;  %v2044_v3 = vld [vmem:[#allocation4 + $0x13f0] sm:$0xff]  ;;  %v2043_v5 = vld [vmem:[#allocation4 + $0x13e8] sm:$0xff] }
 0x232   : > { %2120 = vmatpush1.msra.mxu1 %v2073_v13  ;;  %2217 = vmatprep.subr.mxu0 %v2007_v45  ;;  %v2108_v13 = vld [vmem:[#allocation4 + $0x15d8] sm:$0xff]  ;;  %v2042_v45 = vld [vmem:[#allocation4 + $0x13e0] sm:$0xff] }
 0x233   : > { %2121 = vmatprep.subr.mxu1 %v2072_v6  ;;  %2218 = vmatpush1.msra.mxu0 %v2006_v7  ;;  %v2107_v6 = vld [vmem:[#allocation4 + $0x15d0] sm:$0xff]  ;;  %v2041_v7 = vld [vmem:[#allocation4 + $0x13d8] sm:$0xff] }
 0x234   : > { %2122 = vmatpush1.msra.mxu1 %v2071_v35  ;;  %2219 = vmatprep.subr.mxu0 %v2005_v8  ;;  %v2106_v35 = vld [vmem:[#allocation4 + $0x15c8] sm:$0xff]  ;;  %v2105_v8 = vld [vmem:[#allocation4 + $0x15c0] sm:$0xff] }
 0x235   : > { %2123 = vmatprep.subr.mxu1 %v2070_v9  ;;  %2220 = vmatpush1.msra.mxu0 %v2004_v10  ;;  %v2104_v9 = vld [vmem:[#allocation4 + $0x15b8] sm:$0xff]  ;;  %v2040_v10 = vld [vmem:[#allocation4 + $0x13d0] sm:$0xff] }
 0x236   : > { %2124 = vmatpush1.msra.mxu1 %v2069_v11  ;;  %2221 = vmatprep.subr.mxu0 %v2003_v14  ;;  %v2103_v11 = vld [vmem:[#allocation4 + $0x15b0] sm:$0xff]  ;;  %v2039_v14 = vld [vmem:[#allocation4 + $0x13c8] sm:$0xff] }
 0x237   : > { %2125 = vmatprep.subr.mxu1 %v2068_v15  ;;  %2222 = vmatpush1.msra.mxu0 %v2002_v42  ;;  %v2102_v15 = vld [vmem:[#allocation4 + $0x15a8] sm:$0xff]  ;;  %v2038_v42 = vld [vmem:[#allocation4 + $0x13c0] sm:$0xff] }
 0x238   : > { %2126 = vmatpush1.msra.mxu1 %v2067_v17  ;;  %2223 = vmatprep.subr.mxu0 %v2001_v53  ;;  %v2101_v17 = vld [vmem:[#allocation4 + $0x15a0] sm:$0xff]  ;;  %v2037_v53 = vld [vmem:[#allocation4 + $0x13b8] sm:$0xff] }
 0x239   : > { %2127 = vmatprep.subr.mxu1 %v2066_v18  ;;  %2224 = vmatpush1.msra.mxu0 %v2000_v19  ;;  %v2100_v18 = vld [vmem:[#allocation4 + $0x1598] sm:$0xff]  ;;  %v2036_v19 = vld [vmem:[#allocation4 + $0x13b0] sm:$0xff] }
 0x23a   : > { %2128 = vmatpush1.msra.mxu1 %v2065_v21  ;;  %2225 = vmatprep.subr.mxu0 %v1999_v22  ;;  %v2099_v21 = vld [vmem:[#allocation4 + $0x1590] sm:$0xff]  ;;  %v2035_v22 = vld [vmem:[#allocation4 + $0x13a8] sm:$0xff] }
 0x23b   : > { %2129 = vmatprep.subr.mxu1 %v2064_v20  ;;  %2226 = vmatpush1.msra.mxu0 %v1998_v23  ;;  %v2098_v20 = vld [vmem:[#allocation4 + $0x1588] sm:$0xff]  ;;  %v2034_v23 = vld [vmem:[#allocation4 + $0x13a0] sm:$0xff] }
 0x23c   : > { %2130 = vmatpush1.msra.mxu1 %v2063_v24  ;;  %2227 = vmatprep.subr.mxu0 %v1997_v25  ;;  %v2097_v24 = vld [vmem:[#allocation4 + $0x1580] sm:$0xff]  ;;  %v2033_v25 = vld [vmem:[#allocation4 + $0x1398] sm:$0xff] }
 0x23d   : > { %2131 = vmatprep.subr.mxu1 %v2062_v26  ;;  %2228 = vmatpush1.msra.mxu0 %v1996_v27  ;;  %v2096_v26 = vld [vmem:[#allocation4 + $0x1578] sm:$0xff]  ;;  %v2032_v27 = vld [vmem:[#allocation4 + $0x1390] sm:$0xff] }
 0x23e   : > { %2132 = vmatpush1.msra.mxu1 %v2061_v29  ;;  %2229 = vmatprep.subr.mxu0 %v1995_v30  ;;  %v2095_v29 = vld [vmem:[#allocation4 + $0x1570] sm:$0xff]  ;;  %v2031_v30 = vld [vmem:[#allocation4 + $0x1388] sm:$0xff] }
 0x23f   : > { %2133 = vmatprep.subr.mxu1 %v2060_v32  ;;  %2230 = vmatpush1.msra.mxu0 %v1994_v33  ;;  %v2094_v32 = vld [vmem:[#allocation4 + $0x1568] sm:$0xff]  ;;  %v2030_v33 = vld [vmem:[#allocation4 + $0x1380] sm:$0xff] }
 0x240   : > { %2134 = vmatpush1.msra.mxu1 %v2059_v36  ;;  %2231 = vmatprep.subr.mxu0 %v1993_v37  ;;  %v2093_v36 = vld [vmem:[#allocation4 + $0x1560] sm:$0xff]  ;;  %v2029_v37 = vld [vmem:[#allocation4 + $0x1378] sm:$0xff] }
 0x241   : > { %2135 = vmatprep.subr.mxu1 %v2058_v38  ;;  %2232 = vmatpush1.msra.mxu0 %v1992_v39  ;;  %v2092_v38 = vld [vmem:[#allocation4 + $0x1558] sm:$0xff]  ;;  %v2028_v39 = vld [vmem:[#allocation4 + $0x1370] sm:$0xff] }
 0x242   : > { %2136 = vmatpush1.msra.mxu1 %v2057_v40  ;;  %2233 = vmatprep.subr.mxu0 %v1991_v41  ;;  %v2091_v40 = vld [vmem:[#allocation4 + $0x1550] sm:$0xff]  ;;  %v2027_v41 = vld [vmem:[#allocation4 + $0x1368] sm:$0xff] }
 0x243   : > { %2137 = vmatprep.subr.mxu1 %v2056_v43  ;;  %2234 = vmatpush1.msra.mxu0 %v1990_v44  ;;  %v2090_v43 = vld [vmem:[#allocation4 + $0x1548] sm:$0xff]  ;;  %v2026_v44 = vld [vmem:[#allocation4 + $0x1360] sm:$0xff] }
 0x244   : > { %2138 = vmatpush1.msra.mxu1 %v2055_v46  ;;  %2235 = vmatprep.subr.mxu0 %v1989_v47  ;;  %v2089_v46 = vld [vmem:[#allocation4 + $0x1540] sm:$0xff]  ;;  %v2025_v47 = vld [vmem:[#allocation4 + $0x1358] sm:$0xff] }
 0x245   : > { %2139 = vmatprep.subr.mxu1 %v2054_v48  ;;  %2236 = vmatpush1.msra.mxu0 %v1988_v49  ;;  %v2088_v48 = vld [vmem:[#allocation4 + $0x1538] sm:$0xff]  ;;  %v2024_v49 = vld [vmem:[#allocation4 + $0x1350] sm:$0xff] }
 0x246   : > { %2140 = vmatpush1.msra.mxu1 %v2053_v16  ;;  %2237 = vmatprep.subr.mxu0 %v1987_v50  ;;  %v2087_v16 = vld [vmem:[#allocation4 + $0x1530] sm:$0xff]  ;;  %v2023_v50 = vld [vmem:[#allocation4 + $0x1348] sm:$0xff] }
 0x247   : > { %2141 = vmatprep.subr.mxu1 %v2052_v51  ;;  %2238 = vmatpush1.msra.mxu0 %v1986_v52  ;;  %v2086_v51 = vld [vmem:[#allocation4 + $0x1528] sm:$0xff]  ;;  %v2022_v52 = vld [vmem:[#allocation4 + $0x1340] sm:$0xff] }
 0x248   : > { %2142 = vmatpush1.msra.mxu1 %v2051_v54  ;;  %2239 = vmatprep.subr.mxu0 %v1985_v55  ;;  %v2085_v54 = vld [vmem:[#allocation4 + $0x1520] sm:$0xff]  ;;  %v2021_v55 = vld [vmem:[#allocation4 + $0x1338] sm:$0xff] }
 0x249   : > { %2143 = vmatprep.subr.mxu1 %v2050_v57  ;;  %2240 = vmatpush1.msra.mxu0 %v1984_v58  ;;  %v2084_v57 = vld [vmem:[#allocation4 + $0x1518] sm:$0xff]  ;;  %v2020_v58 = vld [vmem:[#allocation4 + $0x1330] sm:$0xff] }
 0x24a   : > { %2144 = vmatpush1.msra.mxu1 %v2049_v60  ;;  %2241 = vmatprep.subr.mxu0 %v1983_v61  ;;  %v2083_v60 = vld [vmem:[#allocation4 + $0x1510] sm:$0xff]  ;;  %v2019_v61 = vld [vmem:[#allocation4 + $0x1328] sm:$0xff] }
 0x24b   : > { %2145 = vmatprep.subr.mxu1 %v2112_v62  ;;  %2242 = vmatpush1.msra.mxu0 %v1982_v63  ;;  %v2082_v62 = vld [vmem:[#allocation4 + $0x1508] sm:$0xff]  ;;  %v2018_v63 = vld [vmem:[#allocation4 + $0x1320] sm:$0xff] }
 0x24c   : > { %2146 = vmatpush2.msra.mxu1 %v2111_v0  ;;  %2243 = vmatprep.subr.mxu0 %v2045_v1  ;;  %v2081_v0 = vld [vmem:[#allocation4 + $0x1500] sm:$0xff]  ;;  %v2017_v1 = vld [vmem:[#allocation4 + $0x1318] sm:$0xff] }
 0x24d   : > { %2147 = vmatprep.subr.mxu1 %v2110_v2  ;;  %2244 = vmatpush2.msra.mxu0 %v2044_v3  ;;  %v2016_v2 = vld [vmem:[#allocation4 + $0x1310] sm:$0xff]  ;;  %v2326_v3 = vld [vmem:[#allocation4 + $0x16f8] sm:$0xff] }
 0x24e   : > { %2148 = vmatpush2.msra.mxu1 %v2109_v4  ;;  %2245 = vmatprep.subr.mxu0 %v2043_v5  ;;  %v2015_v4 = vld [vmem:[#allocation4 + $0x1308] sm:$0xff]  ;;  %v2014_v5 = vld [vmem:[#allocation4 + $0x1300] sm:$0xff] }
 0x24f   : > { %2149 = vmatprep.subr.mxu1 %v2108_v13  ;;  %2246 = vmatpush2.msra.mxu0 %v2042_v45  ;;  %v2598_v13 = vld [vmem:[#allocation4 + $0x1af8] sm:$0xff] }
 0x250   : > { %2150 = vmatpush2.msra.mxu1 %v2107_v6  ;;  %2247 = vmatprep.subr.mxu0 %v2041_v7 }
 0x251   : > { %2151 = vmatprep.subr.mxu1 %v2106_v35  ;;  %2248 = vmatpush2.msra.mxu0 %v2040_v10 }
 0x252   : > { %2152 = vmatpush2.msra.mxu1 %v2105_v8  ;;  %2249 = vmatprep.subr.mxu0 %v2039_v14 }
 0x253   : > { %2153 = vmatprep.subr.mxu1 %v2104_v9  ;;  %2250 = vmatpush2.msra.mxu0 %v2038_v42 }
 0x254   : > { %2154 = vmatpush2.msra.mxu1 %v2103_v11  ;;  %2251 = vmatprep.subr.mxu0 %v2037_v53 }
 0x255   : > { %2155 = vmatprep.subr.mxu1 %v2102_v15  ;;  %2252 = vmatpush2.msra.mxu0 %v2036_v19 }
 0x256   : > { %2156 = vmatpush2.msra.mxu1 %v2101_v17  ;;  %2253 = vmatprep.subr.mxu0 %v2035_v22  ;;  %v1943_v22 = vld [vmem:[#allocation6 + $0x2] ss:$8 sm:$0x3] }
 0x257   : > { %2157 = vmatprep.subr.mxu1 %v2100_v18  ;;  %2254 = vmatpush2.msra.mxu0 %v2034_v23 }
 0x258   : > { %2158 = vmatpush2.msra.mxu1 %v2099_v21  ;;  %2255 = vmatprep.subr.mxu0 %v2033_v25  ;;  %v1424_v25 = vld [vmem:[#allocation6 + $0x1] ss:$8 sm:$0x3] }
 0x259   : > { %2159 = vmatprep.subr.mxu1 %v2098_v20  ;;  %2256 = vmatpush2.msra.mxu0 %v2032_v27  ;;  %v1948_v27 = vrot.slane %v1943_v22, %v6731_v56 }
 0x25a   : > { %2160 = vmatpush2.msra.mxu1 %v2097_v24  ;;  %2257 = vmatprep.subr.mxu0 %v2031_v30 }
 0x25b   : > { %2161 = vmatprep.subr.mxu1 %v2096_v26  ;;  %2258 = vmatpush2.msra.mxu0 %v2030_v33 }
 0x25c   : > { %2162 = vmatpush2.msra.mxu1 %v2095_v29  ;;  %2259 = vmatprep.subr.mxu0 %v2029_v37  ;;  %v1952_v37 = vrot.slane %v1943_v22, %v6733_v59  ;;  %v2597_v22 = vld [vmem:[#allocation4 + $0x1af0] sm:$0xff] }
 0x25d   : > { %2163 = vmatprep.subr.mxu1 %v2094_v32  ;;  %2260 = vmatpush2.msra.mxu0 %v2028_v39 }
 0x25e   : > { %2164 = vmatpush2.msra.mxu1 %v2093_v36  ;;  %2261 = vmatprep.subr.mxu0 %v2027_v41 }
 0x25f   : > { %2165 = vmatprep.subr.mxu1 %v2092_v38  ;;  %2262 = vmatpush2.msra.mxu0 %v2026_v44 }
 0x260   : > { %2166 = vmatpush2.msra.mxu1 %v2091_v40  ;;  %2263 = vmatprep.subr.mxu0 %v2025_v47  ;;  %v1141_v45 = vpop.f32.mrf.mxu1  ;;  %v1429_v40 = vrot.slane %v1424_v25, %v6731_v56 }
 0x261   : > { %2167 = vmatprep.subr.mxu1 %v2090_v43  ;;  %2264 = vmatpush2.msra.mxu0 %v2024_v49  ;;  %v1433_v49 = vrot.slane %v1424_v25, %v6733_v59  ;;  %v2596_v25 = vld [vmem:[#allocation4 + $0x1ae8] sm:$0xff] }
 0x262   : > { %2168 = vmatpush2.msra.mxu1 %v2089_v46  ;;  %2265 = vmatprep.subr.mxu0 %v2023_v50  ;;  %v1143_v6 = vpop.f32.mrf.mxu1 }
 0x263   : > { %2169 = vmatprep.subr.mxu1 %v2088_v48  ;;  %2266 = vmatpush2.msra.mxu0 %v2022_v52  ;;  %v1239_v7 = vpop.f32.mrf.mxu0 }
 0x264   : > { %2170 = vmatpush2.msra.mxu1 %v2087_v16  ;;  %2267 = vmatprep.subr.mxu0 %v2021_v55  ;;  %v1240_v29 = vadd.f32 %v1239_v7, %v1141_v45  ;;  %v2325_v7 = vld [vmem:[#allocation4 + $0x16f0] sm:$0xff] }
 0x265   : > { %2171 = vmatprep.subr.mxu1 %v2086_v51  ;;  %2268 = vmatpush2.msra.mxu0 %v2020_v58  ;;  %v1147_v35 = vpop.f32.mrf.mxu1  ;;  %v1241_v8 = vpop.f32.mrf.mxu0  ;;  %v1975_v51 = vld [vmem:[#allocation2 + $0x30] sm:$0xf0] }
 0x266   : > { %2172 = vmatpush2.msra.mxu1 %v2085_v54  ;;  %2269 = vmatprep.subr.mxu0 %v2019_v61  ;;  %v1242_v38 = vadd.f32 %v1241_v8, %v1143_v6 }
 0x267   : > { %2173 = vmatprep.subr.mxu1 %v2084_v57  ;;  %2270 = vmatpush2.msra.mxu0 %v2018_v63  ;;  %v1149_v9 = vpop.f32.mrf.mxu1  ;;  %v1976_v57 = vld [vmem:[#allocation2] sm:$0xf0] }
 0x268   : > { %2174 = vmatpush2.msra.mxu1 %v2083_v60  ;;  %2271 = vmatprep.subr.mxu0 %v2017_v1 }
 0x269   : > { %2175 = vmatprep.subr.mxu1 %v2082_v62  ;;  %2272 = vmatpush2.msra.mxu0 %v2016_v2 }
 0x26a   : > { %2176 = vmatpush2.msra.mxu1 %v2081_v0  ;;  %2273 = vmatprep.subr.mxu0 %v2015_v4  ;;  %v2200_v4 = vrot.slane %v1976_v57, 4 }
 0x26b   : > { %2379 = vmatprep.subr.mxu1 %v2326_v3  ;;  %2274 = vmatpush2.msra.mxu0 %v2014_v5  ;;  %v2197_v5 = vrot.slane %v1975_v51, 4  ;;  %v2591_v51 = vld [vmem:[#allocation4 + $0x1ac0] sm:$0xff] }
 0x26c   : > { %2631 = vmatprep.subr.mxu0 %v2598_v13 }
 0x270   : > { %v1245_v10 = vpop.f32.mrf.mxu0 }
 0x271   : > { %v1246_v47 = vadd.f32 %v1245_v10, %v1147_v35  ;;  %v2324_v10 = vld [vmem:[#allocation4 + $0x16e8] sm:$0xff] }
 0x272   : > { %v1247_v14 = vpop.f32.mrf.mxu0 }
 0x273   : > { %v1248_v58 = vadd.f32 %v1247_v14, %v1149_v9 }
 0x2a2   : > { %v1408_v11 = vpop.f32.mrf.mxu1 }
 0x2a3   : > { %v1419_v39 = vadd.f32 %v1408_v11, %v1240_v29 }
 0x2a4   : > { %v1410_v15 = vpop.f32.mrf.mxu1 }
 0x2a5   : > { %v1420_v48 = vadd.f32 %v1410_v15, %v1242_v38  ;;  %v1436_v60 = vadd.f32 %v1429_v40, %v1419_v39  ;;  %v2318_v39 = vld [vmem:[#allocation4 + $0x16b8] sm:$0xff] }
 0x2a7   : > { %v1660_v42 = vpop.f32.mrf.mxu0  ;;  %v1437_v2 = vadd.f32 %v1433_v49, %v1420_v48  ;;  %v1444_v11 = vmul.f32 0.2, %v1436_v60  ;;  %vm1440_vm14 = vcmp.ge.f32.partialorder %v1436_v60, 0.0 }
 0x2a8   : > { %v1414_v17 = vpop.f32.mrf.mxu1 }
 0x2a9   : > { %v1662_v53 = vpop.f32.mrf.mxu0  ;;  %v1421_v61 = vadd.f32 %v1414_v17, %v1246_v47  ;;  %vm1441_vm2 = vcmp.ge.f32.partialorder %v1437_v2, 0.0 }
 0x2aa   : > { %v1416_v18 = vpop.f32.mrf.mxu1 }
 0x2ab   : > { %v1422_v35 = vadd.f32 %v1416_v18, %v1248_v58  ;;  %v1438_v14 = vadd.f32 %v1429_v40, %v1421_v61  ;;  %v2322_v18 = vld [vmem:[#allocation4 + $0x16d8] sm:$0xff]  ;;  %v2593_v40 = vld [vmem:[#allocation4 + $0x1ad0] sm:$0xff] }
 0x2ac   : > { %v2589_v61 = vld [vmem:[#allocation4 + $0x1ab0] sm:$0xff] }
 0x2ad   : > { %vm1442_vm3 = vcmp.ge.f32.partialorder %v1438_v14, 0.0 }
 0x2e3   : > { %v1666_v19 = vpop.f32.mrf.mxu0 }
 0x2e5   : > { %v1668_v23 = vpop.f32.mrf.mxu0 }
 0x2e6   : > { %v1758_v21 = vpop.f32.mrf.mxu1 }
 0x2e7   : > { %v1759_v20 = vadd.f32 %v1758_v21, %v1660_v42  ;;  %v2323_v42 = vld [vmem:[#allocation4 + $0x16e0] sm:$0xff] }
 0x2e8   : > { %v1760_v24 = vpop.f32.mrf.mxu1 }
 0x2e9   : > { %v1761_v26 = vadd.f32 %v1760_v24, %v1662_v53  ;;  %v2321_v24 = vld [vmem:[#allocation4 + $0x16d0] sm:$0xff] }
 0x2ea   : > { %v1927_v30 = vpop.f32.mrf.mxu0  ;;  %v1764_v32 = vpop.f32.mrf.mxu1 }
 0x2eb   : > { %v1938_v33 = vadd.f32 %v1927_v30, %v1759_v20  ;;  %v1765_v36 = vadd.f32 %v1764_v32, %v1666_v19  ;;  %v1445_v19 = vmul.f32 0.2, %v1437_v2  ;;  %v1439_v20 = vadd.f32 %v1433_v49, %v1422_v35  ;;  %v2320_v30 = vld [vmem:[#allocation4 + $0x16c8] sm:$0xff]  ;;  %v2595_v32 = vld [vmem:[#allocation4 + $0x1ae0] sm:$0xff]  ;;  %v2310_v35 = vld [vmem:[#allocation4 + $0x1678] sm:$0xff] }
 0x2ec   : > { %v1929_v41 = vpop.f32.mrf.mxu0  ;;  %v1766_v43 = vpop.f32.mrf.mxu1  ;;  %v2592_v49 = vld [vmem:[#allocation4 + $0x1ac8] sm:$0xff] }
 0x2ed   : > { %v1955_v44 = vadd.f32 %v1948_v27, %v1938_v33  ;;  %v1939_v46 = vadd.f32 %v1929_v41, %v1761_v26  ;;  %v1767_v16 = vadd.f32 %v1766_v43, %v1668_v23  ;;  %v6829_v26 = vsel %vm1440_vm14, %v1436_v60, %v1444_v11  ;;  %v2319_v33 = vld [vmem:[#allocation4 + $0x16c0] sm:$0xff] }
 0x2ee   : > { %v1933_v50 = vpop.f32.mrf.mxu0  ;;  %v1447_v41 = vmul.f32 0.2, %v1439_v20  ;;  %vm1443_vm4 = vcmp.ge.f32.partialorder %v1439_v20, 0.0  ;;  %v2583_v11 = vld [vmem:[#allocation4 + $0x1a80] sm:$0xff] }
 0x2ef   : > { %vm1959_vm10 = vcmp.ge.f32.partialorder %v1955_v44, 0.0  ;;  %v1963_v52 = vmul.f32 0.2, %v1955_v44  ;;  %v1956_v54 = vadd.f32 %v1952_v37, %v1939_v46  ;;  %v1940_v55 = vadd.f32 %v1933_v50, %v1765_v36  ;;  %v2594_v36 = vld [vmem:[#allocation4 + $0x1ad8] sm:$0xff]  ;;  %v2317_v46 = vld [vmem:[#allocation4 + $0x16b0] sm:$0xff] }
 0x2f0   : > { %v1935_v62 = vpop.f32.mrf.mxu0  ;;  %v6850_v57 = vsel %vm1443_vm4, %v1439_v20, %v1447_v41  ;;  %v2302_v20 = vld [vmem:[#allocation4 + $0x1638] sm:$0xff]  ;;  %v2572_v41 = vld [vmem:[#allocation4 + $0x1a28] sm:$0xff] }
 0x2f1   : > { %v6807_v63 = vsel %vm1959_vm10, %v1955_v44, %v1963_v52  ;;  %vm1960_vm11 = vcmp.ge.f32.partialorder %v1956_v54, 0.0  ;;  %v1964_v0 = vmul.f32 0.2, %v1956_v54  ;;  %v1957_v1 = vadd.f32 %v1948_v27, %v1940_v55  ;;  %v2315_v52 = vld [vmem:[#allocation4 + $0x16a0] sm:$0xff]  ;;  %v2314_v55 = vld [vmem:[#allocation4 + $0x1698] sm:$0xff] }
 0x2f2   : > { %1971 = vst [vmem:[#allocation2 + $0x18] sm:$0xff] %v6807_v63  ;;  %v1941_v3 = vadd.f32 %v1935_v62, %v1767_v16  ;;  %v2198_v6 = vrot.slane %v6807_v63, 4  ;;  %v1446_v27 = vmul.f32 0.2, %v1438_v14  ;;  %v2316_v16 = vld [vmem:[#allocation4 + $0x16a8] sm:$0xff]  ;;  %v2313_v62 = vld [vmem:[#allocation4 + $0x1690] sm:$0xff] }
 0x2f3   : > { %v6810_v13 = vsel %vm1960_vm11, %v1956_v54, %v1964_v0  ;;  %vm1961_vm12 = vcmp.ge.f32.partialorder %v1957_v1, 0.0  ;;  %v1965_v45 = vmul.f32 0.2, %v1957_v1  ;;  %v2590_v54 = vld [vmem:[#allocation4 + $0x1ab8] sm:$0xff] }
 0x2f4   : > { %1972 = vst [vmem:[#allocation2 + $0x10] sm:$0xff] %v6810_v13  ;;  %v1958_v8 = vadd.f32 %v1952_v37, %v1941_v3  ;;  %2177 = vmatprep.mubr.f32.mxu1 %v6810_v13  ;;  %v2201_v9 = vrot.slane %v6810_v13, 4  ;;  %v2199_v21 = vsel %vm2196_vm13, %v2197_v5, %v2198_v6  ;;  %v6838_v37 = vsel %vm1441_vm2, %v1437_v2, %v1445_v19  ;;  %v2312_v2 = vld [vmem:[#allocation4 + $0x1688] sm:$0xff]  ;;  %v2309_v13 = vld [vmem:[#allocation4 + $0x1670] sm:$0xff]  ;;  %v2579_v19 = vld [vmem:[#allocation4 + $0x1a60] sm:$0xff] }
 0x2f5   : > { %v6816_v15 = vsel %vm1961_vm12, %v1957_v1, %v1965_v45  ;;  %2178 = vmatmul.mubr.f32.vlgmr.msra.gmra.mxu1 %v6807_v63  ;;  %v6843_v47 = vsel %vm1442_vm3, %v1438_v14, %v1446_v27  ;;  %v2588_v1 = vld [vmem:[#allocation4 + $0x1aa8] sm:$0xff]  ;;  %v2311_v45 = vld [vmem:[#allocation4 + $0x1680] sm:$0xff]  ;;  %v2306_v14 = vld [vmem:[#allocation4 + $0x1658] sm:$0xff] }
 0x2f6   : > { %1973 = vst [vmem:[#allocation2 + $0x8] sm:$0xff] %v6816_v15  ;;  %vm1962_vm15 = vcmp.ge.f32.partialorder %v1958_v8, 0.0  ;;  %v1966_v17 = vmul.f32 0.2, %v1958_v8  ;;  %2380 = vmatpush1.msra.mxu1 %v2325_v7  ;;  %v2202_v53 = vsel %vm2196_vm13, %v2200_v4, %v2201_v9  ;;  %v2587_v4 = vld [vmem:[#allocation4 + $0x1aa0] sm:$0xff]  ;;  %v2586_v7 = vld [vmem:[#allocation4 + $0x1a98] sm:$0xff] }
 0x2f7   : > { %2381 = vmatprep.subr.mxu1 %v2324_v10  ;;  %2275 = vmatprep.mubr.f32.mxu0 %v2202_v53  ;;  %v2308_v10 = vld [vmem:[#allocation4 + $0x1668] sm:$0xff]  ;;  %v2307_v63 = vld [vmem:[#allocation4 + $0x1660] sm:$0xff] }
 0x2f8   : > { %v6826_v23 = vsel %vm1962_vm15, %v1958_v8, %v1966_v17  ;;  %2382 = vmatpush1.msra.mxu1 %v2323_v42  ;;  %2276 = vmatmul.mubr.f32.vlgmr.msra.gmra.mxu0 %v2199_v21  ;;  %v2585_v8 = vld [vmem:[#allocation4 + $0x1a90] sm:$0xff]  ;;  %v2580_v53 = vld [vmem:[#allocation4 + $0x1a68] sm:$0xff]  ;;  %v2303_v21 = vld [vmem:[#allocation4 + $0x1640] sm:$0xff] }
 0x2f9   : > { %1974 = vst [vmem:[#allocation2 + $0x20] sm:$0xff] %v6826_v23  ;;  %v6832_v29 = vld [vmem:[#allocation2 + $0x18] sm:$0xf0]  ;;  %2183 = vmatprep.mubr.f32.mxu1 %v6826_v23  ;;  %2383 = vmatprep.subr.mxu1 %v2322_v18  ;;  %v2369_v44 = vrot.slane %v6826_v23, 4  ;;  %v2581_v42 = vld [vmem:[#allocation4 + $0x1a70] sm:$0xff]  ;;  %v2304_v18 = vld [vmem:[#allocation4 + $0x1648] sm:$0xff] }
 0x2fa   : > { %2489 = vst [vmem:[#allocation2 + $0x18] sm:$0xff] %v6829_v26  ;;  %2632 = vmatpush1.msra.mxu0 %v2597_v22  ;;  %2184 = vmatmul.mubr.f32.gmra.mxu1 %v6816_v15  ;;  %v2305_v17 = vld [vmem:[#allocation4 + $0x1650] sm:$0xff]  ;;  %v2578_v22 = vld [vmem:[#allocation4 + $0x1a58] sm:$0xff]  ;;  %v2576_v27 = vld [vmem:[#allocation4 + $0x1a48] sm:$0xff] }
 0x2fb   : > { %v2289_v38 = vld [vmem:[#allocation2 + $0x10] sm:$0xf0]  ;;  %2384 = vmatpush1.msra.mxu1 %v2321_v24  ;;  %2633 = vmatprep.subr.mxu0 %v2596_v25 }
 0x2fc   : > { %2490 = vst [vmem:[#allocation2 + $0x10] sm:$0xff] %v6838_v37  ;;  %2385 = vmatprep.subr.mxu1 %v2320_v30  ;;  %2634 = vmatpush1.msra.mxu0 %v2595_v32  ;;  %v2368_v43 = vrot.slane %v2289_v38, 4  ;;  %v2577_v24 = vld [vmem:[#allocation4 + $0x1a50] sm:$0xff]  ;;  %v2300_v30 = vld [vmem:[#allocation4 + $0x1628] sm:$0xff]  ;;  %v2575_v32 = vld [vmem:[#allocation4 + $0x1a40] sm:$0xff] }
 0x2fd   : > { %2386 = vmatpush1.msra.mxu1 %v2319_v33  ;;  %2635 = vmatprep.subr.mxu0 %v2594_v36  ;;  %v1979_v48 = vld [vmem:[#allocation2 + $0x8] sm:$0xf]  ;;  %v2301_v25 = vld [vmem:[#allocation4 + $0x1630] sm:$0xff]  ;;  %v2574_v36 = vld [vmem:[#allocation4 + $0x1a38] sm:$0xff] }
 0x2fe   : > { %v2370_v50 = vsel %vm2196_vm13, %v2368_v43, %v2369_v44  ;;  %2491 = vst [vmem:[#allocation2 + $0x8] sm:$0xff] %v6843_v47  ;;  %2387 = vmatprep.subr.mxu1 %v2318_v39  ;;  %2636 = vmatpush1.msra.mxu0 %v2593_v40  ;;  %v2203_v60 = vrot.slane %v1979_v48, 4  ;;  %v2299_v33 = vld [vmem:[#allocation4 + $0x1620] sm:$0xff]  ;;  %v2298_v38 = vld [vmem:[#allocation4 + $0x1618] sm:$0xff]  ;;  %v2573_v39 = vld [vmem:[#allocation4 + $0x1a30] sm:$0xff] }
 0x2ff   : > { %2443 = vmatprep.mubr.f32.mxu1 %v2370_v50  ;;  %2388 = vmatpush1.msra.mxu1 %v2317_v46  ;;  %v2297_v40 = vld [vmem:[#allocation4 + $0x1610] sm:$0xff]  ;;  %v2296_v43 = vld [vmem:[#allocation4 + $0x1608] sm:$0xff]  ;;  %v2571_v46 = vld [vmem:[#allocation4 + $0x1a20] sm:$0xff] }
 0x300   : > { %v1980_v58 = vld [vmem:[#allocation2 + $0x20] sm:$0xf]  ;;  %2637 = vmatprep.subr.mxu0 %v2592_v49  ;;  %2389 = vmatprep.subr.mxu1 %v2316_v16  ;;  %v2204_v5 = vsel %vm2196_vm13, %v2198_v6, %v2203_v60  ;;  %v2569_v50 = vld [vmem:[#allocation4 + $0x1a10] sm:$0xff] }
 0x301   : > { %v2205_v0 = vrot.slane %v1980_v58, 4  ;;  %2492 = vst [vmem:[#allocation2 + $0x20] sm:$0xff] %v6850_v57  ;;  %2638 = vmatpush1.msra.mxu0 %v2591_v51  ;;  %2390 = vmatpush1.msra.mxu1 %v2315_v52  ;;  %v2582_v6 = vld [vmem:[#allocation4 + $0x1a78] sm:$0xff]  ;;  %v2295_v48 = vld [vmem:[#allocation4 + $0x1600] sm:$0xff]  ;;  %v2357_v51 = vld [vmem:[#allocation4 + $0x17f0] sm:$0xff] }
 0x302   : > { %2639 = vmatprep.subr.mxu0 %v2590_v54  ;;  %2391 = vmatprep.subr.mxu1 %v2314_v55  ;;  %v2570_v49 = vld [vmem:[#allocation4 + $0x1a18] sm:$0xff]  ;;  %v2568_v52 = vld [vmem:[#allocation4 + $0x1a08] sm:$0xff]  ;;  %v2567_v55 = vld [vmem:[#allocation4 + $0x1a00] sm:$0xff] }
 0x303   : > { %v2206_v3 = vsel %vm2196_vm13, %v2201_v9, %v2205_v0  ;;  %2640 = vmatpush1.msra.mxu0 %v2589_v61  ;;  %2392 = vmatpush1.msra.mxu1 %v2313_v62  ;;  %v2584_v9 = vld [vmem:[#allocation4 + $0x1a88] sm:$0xff]  ;;  %v2358_v16 = vld [vmem:[#allocation4 + $0x17f8] sm:$0xff]  ;;  %v2355_v58 = vld [vmem:[#allocation4 + $0x17e0] sm:$0xff] }
 0x304   : > { %2281 = vmatprep.mubr.f32.mxu0 %v2206_v3  ;;  %2641 = vmatprep.subr.mxu0 %v2588_v1  ;;  %v2356_v54 = vld [vmem:[#allocation4 + $0x17e8] sm:$0xff]  ;;  %v2630_v60 = vld [vmem:[#allocation4 + $0x1bf8] sm:$0xff]  ;;  %v2629_v62 = vld [vmem:[#allocation4 + $0x1bf0] sm:$0xff] }
 0x305   : > { %2282 = vmatmul.mubr.f32.gmra.mxu0 %v2204_v5  ;;  %2393 = vmatprep.subr.mxu1 %v2312_v2  ;;  %v2354_v61 = vld [vmem:[#allocation4 + $0x17d8] sm:$0xff]  ;;  %v2353_v0 = vld [vmem:[#allocation4 + $0x17d0] sm:$0xff]  ;;  %v2628_v1 = vld [vmem:[#allocation4 + $0x1be8] sm:$0xff] }
 0x306   : > { %2695 = vmatprep.mubr.f32.mxu0 %v6838_v37  ;;  %2642 = vmatpush1.msra.mxu0 %v2587_v4  ;;  %v2352_v2 = vld [vmem:[#allocation4 + $0x17c8] sm:$0xff]  ;;  %v2627_v3 = vld [vmem:[#allocation4 + $0x1be0] sm:$0xff]  ;;  %v2626_v5 = vld [vmem:[#allocation4 + $0x1bd8] sm:$0xff] }
 0x307   : > { %2394 = vmatpush1.msra.mxu1 %v2311_v45  ;;  %2643 = vmatprep.subr.mxu0 %v2586_v7  ;;  %v2351_v4 = vld [vmem:[#allocation4 + $0x17c0] sm:$0xff]  ;;  %v2350_v45 = vld [vmem:[#allocation4 + $0x17b8] sm:$0xff]  ;;  %v2625_v7 = vld [vmem:[#allocation4 + $0x1bd0] sm:$0xff] }
 0x308   : > { %2395 = vmatprep.subr.mxu1 %v2310_v35  ;;  %2644 = vmatpush1.msra.mxu0 %v2585_v8  ;;  %v2349_v35 = vld [vmem:[#allocation4 + $0x17b0] sm:$0xff]  ;;  %v2624_v8 = vld [vmem:[#allocation4 + $0x1bc8] sm:$0xff] }
 0x309   : > { %2396 = vmatpush1.msra.mxu1 %v2309_v13  ;;  %2645 = vmatprep.subr.mxu0 %v2584_v9  ;;  %v2348_v13 = vld [vmem:[#allocation4 + $0x17a8] sm:$0xff]  ;;  %v2623_v9 = vld [vmem:[#allocation4 + $0x1bc0] sm:$0xff] }
 0x30a   : > { %2397 = vmatprep.subr.mxu1 %v2308_v10  ;;  %2646 = vmatpush1.msra.mxu0 %v2583_v11  ;;  %v2347_v10 = vld [vmem:[#allocation4 + $0x17a0] sm:$0xff]  ;;  %v2622_v11 = vld [vmem:[#allocation4 + $0x1bb8] sm:$0xff] }
 0x30b   : > { %2398 = vmatpush1.msra.mxu1 %v2307_v63  ;;  %2647 = vmatprep.subr.mxu0 %v2582_v6  ;;  %v2346_v63 = vld [vmem:[#allocation4 + $0x1798] sm:$0xff]  ;;  %v2621_v6 = vld [vmem:[#allocation4 + $0x1bb0] sm:$0xff] }
 0x30c   : > { %2399 = vmatprep.subr.mxu1 %v2306_v14  ;;  %2648 = vmatpush1.msra.mxu0 %v2581_v42  ;;  %v2345_v14 = vld [vmem:[#allocation4 + $0x1790] sm:$0xff]  ;;  %v2620_v42 = vld [vmem:[#allocation4 + $0x1ba8] sm:$0xff] }
 0x30d   : > { %2400 = vmatpush1.msra.mxu1 %v2305_v17  ;;  %2649 = vmatprep.subr.mxu0 %v2580_v53  ;;  %v2344_v17 = vld [vmem:[#allocation4 + $0x1788] sm:$0xff]  ;;  %v2619_v53 = vld [vmem:[#allocation4 + $0x1ba0] sm:$0xff] }
 0x30e   : > { %2401 = vmatprep.subr.mxu1 %v2304_v18  ;;  %2650 = vmatpush1.msra.mxu0 %v2579_v19  ;;  %v2343_v18 = vld [vmem:[#allocation4 + $0x1780] sm:$0xff]  ;;  %v2618_v19 = vld [vmem:[#allocation4 + $0x1b98] sm:$0xff] }
 0x30f   : > { %2402 = vmatpush1.msra.mxu1 %v2303_v21  ;;  %2651 = vmatprep.subr.mxu0 %v2578_v22  ;;  %v2342_v21 = vld [vmem:[#allocation4 + $0x1778] sm:$0xff]  ;;  %v2617_v22 = vld [vmem:[#allocation4 + $0x1b90] sm:$0xff] }
 0x310   : > { %2403 = vmatprep.subr.mxu1 %v2302_v20  ;;  %2652 = vmatpush1.msra.mxu0 %v2577_v24  ;;  %v2341_v20 = vld [vmem:[#allocation4 + $0x1770] sm:$0xff]  ;;  %v2616_v24 = vld [vmem:[#allocation4 + $0x1b88] sm:$0xff] }
 0x311   : > { %2404 = vmatpush1.msra.mxu1 %v2301_v25  ;;  %2653 = vmatprep.subr.mxu0 %v2576_v27  ;;  %v2340_v25 = vld [vmem:[#allocation4 + $0x1768] sm:$0xff]  ;;  %v2615_v27 = vld [vmem:[#allocation4 + $0x1b80] sm:$0xff] }
 0x312   : > { %2405 = vmatprep.subr.mxu1 %v2300_v30  ;;  %2654 = vmatpush1.msra.mxu0 %v2575_v32  ;;  %v2339_v30 = vld [vmem:[#allocation4 + $0x1760] sm:$0xff]  ;;  %v2614_v32 = vld [vmem:[#allocation4 + $0x1b78] sm:$0xff] }
 0x313   : > { %2406 = vmatpush1.msra.mxu1 %v2299_v33  ;;  %2655 = vmatprep.subr.mxu0 %v2574_v36  ;;  %v2338_v33 = vld [vmem:[#allocation4 + $0x1758] sm:$0xff]  ;;  %v2613_v36 = vld [vmem:[#allocation4 + $0x1b70] sm:$0xff] }
 0x314   : > { %2407 = vmatprep.subr.mxu1 %v2298_v38  ;;  %2656 = vmatpush1.msra.mxu0 %v2573_v39  ;;  %v2337_v38 = vld [vmem:[#allocation4 + $0x1750] sm:$0xff]  ;;  %v2612_v39 = vld [vmem:[#allocation4 + $0x1b68] sm:$0xff] }
 0x315   : > { %2408 = vmatpush1.msra.mxu1 %v2297_v40  ;;  %2657 = vmatprep.subr.mxu0 %v2572_v41  ;;  %v2336_v40 = vld [vmem:[#allocation4 + $0x1748] sm:$0xff]  ;;  %v2611_v41 = vld [vmem:[#allocation4 + $0x1b60] sm:$0xff] }
 0x316   : > { %2409 = vmatprep.subr.mxu1 %v2296_v43  ;;  %2658 = vmatpush1.msra.mxu0 %v2571_v46  ;;  %v2335_v43 = vld [vmem:[#allocation4 + $0x1740] sm:$0xff]  ;;  %v2610_v46 = vld [vmem:[#allocation4 + $0x1b58] sm:$0xff] }
 0x317   : > { %2410 = vmatpush1.msra.mxu1 %v2295_v48  ;;  %2659 = vmatprep.subr.mxu0 %v2570_v49  ;;  %v2334_v48 = vld [vmem:[#allocation4 + $0x1738] sm:$0xff]  ;;  %v2609_v49 = vld [vmem:[#allocation4 + $0x1b50] sm:$0xff] }
 0x318   : > { %2411 = vmatprep.subr.mxu1 %v2358_v16  ;;  %2660 = vmatpush1.msra.mxu0 %v2569_v50  ;;  %v2333_v16 = vld [vmem:[#allocation4 + $0x1730] sm:$0xff]  ;;  %v2608_v50 = vld [vmem:[#allocation4 + $0x1b48] sm:$0xff] }
 0x319   : > { %2412 = vmatpush2.msra.mxu1 %v2357_v51  ;;  %2661 = vmatprep.subr.mxu0 %v2568_v52  ;;  %v2332_v51 = vld [vmem:[#allocation4 + $0x1728] sm:$0xff]  ;;  %v2607_v52 = vld [vmem:[#allocation4 + $0x1b40] sm:$0xff] }
 0x31a   : > { %2413 = vmatprep.subr.mxu1 %v2356_v54  ;;  %2662 = vmatpush1.msra.mxu0 %v2567_v55  ;;  %v2331_v54 = vld [vmem:[#allocation4 + $0x1720] sm:$0xff]  ;;  %v2606_v55 = vld [vmem:[#allocation4 + $0x1b38] sm:$0xff] }
 0x31b   : > { %2414 = vmatpush2.msra.mxu1 %v2355_v58  ;;  %2663 = vmatprep.subr.mxu0 %v2630_v60  ;;  %v2330_v58 = vld [vmem:[#allocation4 + $0x1718] sm:$0xff]  ;;  %v2605_v60 = vld [vmem:[#allocation4 + $0x1b30] sm:$0xff] }
 0x31c   : > { %2415 = vmatprep.subr.mxu1 %v2354_v61  ;;  %2664 = vmatpush2.msra.mxu0 %v2629_v62  ;;  %v2293_v61 = vld [vmem:[#allocation2 + $0x38] sm:$0xf] }
 0x31d   : > { %2416 = vmatpush2.msra.mxu1 %v2353_v0  ;;  %2665 = vmatprep.subr.mxu0 %v2628_v1  ;;  %v2329_v62 = vld [vmem:[#allocation4 + $0x1710] sm:$0xff]  ;;  %v2604_v0 = vld [vmem:[#allocation4 + $0x1b28] sm:$0xff] }
 0x31e   : > { %2417 = vmatprep.subr.mxu1 %v2352_v2  ;;  %2666 = vmatpush2.msra.mxu0 %v2627_v3  ;;  %v2328_v1 = vld [vmem:[#allocation4 + $0x1708] sm:$0xff]  ;;  %v2603_v2 = vld [vmem:[#allocation4 + $0x1b20] sm:$0xff]  ;;  %v2365_v3 = vrot.slane %v6832_v29, 4  ;;  %v2530_v29 = vld [vmem:[#allocation4 + $0x18f0] sm:$0xff] }
 0x31f   : > { %2418 = vmatpush2.msra.mxu1 %v2351_v4  ;;  %2667 = vmatprep.subr.mxu0 %v2626_v5  ;;  %v2327_v4 = vld [vmem:[#allocation4 + $0x1700] sm:$0xff]  ;;  %v2602_v5 = vld [vmem:[#allocation4 + $0x1b18] sm:$0xff] }
 0x320   : > { %2419 = vmatprep.subr.mxu1 %v2350_v45  ;;  %2668 = vmatpush2.msra.mxu0 %v2625_v7  ;;  %v2373_v45 = vrot.slane %v2293_v61, 4  ;;  %v2366_v7 = vrot.slane %v6816_v15, 4  ;;  %v2830_v61 = vld [vmem:[#allocation4 + $0x1c90] sm:$0xff] }
 0x321   : > { %2420 = vmatpush2.msra.mxu1 %v2349_v35  ;;  %2669 = vmatprep.subr.mxu0 %v2624_v8  ;;  %v2601_v35 = vld [vmem:[#allocation4 + $0x1b10] sm:$0xff]  ;;  %v2292_v8 = vld [vmem:[#allocation2 + $0x28] sm:$0xf] }
 0x322   : > { %2421 = vmatprep.subr.mxu1 %v2348_v13  ;;  %2670 = vmatpush2.msra.mxu0 %v2623_v9  ;;  %v2531_v13 = vld [vmem:[#allocation4 + $0x18f8] sm:$0xff]  ;;  %v2367_v9 = vsel %vm2196_vm13, %v2365_v3, %v2366_v7  ;;  %v2371_v15 = vrot.slane %v2292_v8, 4  ;;  %v2512_v3 = vld [vmem:[#allocation4 + $0x1860] sm:$0xff]  ;;  %v2509_v8 = vld [vmem:[#allocation4 + $0x1848] sm:$0xff] }
 0x323   : > { %2422 = vmatpush2.msra.mxu1 %v2347_v10  ;;  %2671 = vmatprep.subr.mxu0 %v2622_v11  ;;  %v2600_v10 = vld [vmem:[#allocation4 + $0x1b08] sm:$0xff]  ;;  %v2374_v11 = vsel %vm2196_vm13, %v2369_v44, %v2373_v45  ;;  %v2842_v44 = vld [vmem:[#allocation4 + $0x1cf0] sm:$0xff] }
 0x324   : > { %2423 = vmatprep.subr.mxu1 %v2346_v63  ;;  %2672 = vmatpush2.msra.mxu0 %v2621_v6  ;;  %v2599_v63 = vld [vmem:[#allocation4 + $0x1b00] sm:$0xff]  ;;  %v2529_v6 = vld [vmem:[#allocation4 + $0x18e8] sm:$0xff]  ;;  %v2372_v23 = vsel %vm2196_vm13, %v2366_v7, %v2371_v15  ;;  %v2826_v45 = vld [vmem:[#allocation4 + $0x1c70] sm:$0xff] }
 0x325   : > { %2424 = vmatpush2.msra.mxu1 %v2345_v14  ;;  %2673 = vmatprep.subr.mxu0 %v2620_v42  ;;  %v2494_v14 = vld [vmem:[#allocation2] sm:$0x80]  ;;  %v2510_v7 = vld [vmem:[#allocation4 + $0x1850] sm:$0xff]  ;;  %v2505_v15 = vld [vmem:[#allocation4 + $0x1828] sm:$0xff] }
 0x326   : > { %2425 = vmatprep.subr.mxu1 %v2344_v17  ;;  %2674 = vmatpush2.msra.mxu0 %v2619_v53  ;;  %v2528_v42 = vld [vmem:[#allocation4 + $0x18e0] sm:$0xff]  ;;  %v2843_v17 = vld [vmem:[#allocation4 + $0x1cf8] sm:$0xff]  ;;  %v2718_v53 = vrot.slane %v6838_v37, 7 }
 0x327   : > { %2426 = vmatpush2.msra.mxu1 %v2343_v18  ;;  %2675 = vmatprep.subr.mxu0 %v2618_v19  ;;  %v2527_v18 = vld [vmem:[#allocation4 + $0x18d8] sm:$0xff]  ;;  %v2717_v19 = vrot.slane %v2494_v14, 7  ;;  %v2820_v14 = vld [vmem:[#allocation4 + $0x1c40] sm:$0xff] }
 0x328   : > { %2427 = vmatprep.subr.mxu1 %v2342_v21  ;;  %2676 = vmatpush2.msra.mxu0 %v2617_v22  ;;  %v2526_v21 = vld [vmem:[#allocation4 + $0x18d0] sm:$0xff] }
 0x329   : > { %2428 = vmatpush2.msra.mxu1 %v2341_v20  ;;  %2677 = vmatprep.subr.mxu0 %v2616_v24  ;;  %v2806_v22 = vld [vmem:[#allocation2 + $0x10] sm:$0xfe]  ;;  %v2841_v20 = vld [vmem:[#allocation4 + $0x1ce8] sm:$0xff] }
 0x32a   : > { %2429 = vmatprep.subr.mxu1 %v2340_v25  ;;  %2678 = vmatpush2.msra.mxu0 %v2615_v27  ;;  %v2525_v24 = vld [vmem:[#allocation4 + $0x18c8] sm:$0xff]  ;;  %v2840_v25 = vld [vmem:[#allocation4 + $0x1ce0] sm:$0xff] }
 0x32b   : > { %2430 = vmatpush2.msra.mxu1 %v2339_v30  ;;  %2679 = vmatprep.subr.mxu0 %v2614_v32  ;;  %v2524_v27 = vld [vmem:[#allocation4 + $0x18c0] sm:$0xff]  ;;  %v2885_v30 = vrot.slane %v2806_v22, 1  ;;  %v2839_v32 = vld [vmem:[#allocation4 + $0x1cd8] sm:$0xff] }
 0x32c   : > { %2431 = vmatprep.subr.mxu1 %v2338_v33  ;;  %2680 = vmatpush2.msra.mxu0 %v2613_v36  ;;  %v2523_v33 = vld [vmem:[#allocation4 + $0x18b8] sm:$0xff]  ;;  %v2838_v36 = vld [vmem:[#allocation4 + $0x1cd0] sm:$0xff]  ;;  %v2816_v22 = vld [vmem:[#allocation4 + $0x1c20] sm:$0xff] }
 0x32d   : > { %2432 = vmatpush2.msra.mxu1 %v2337_v38  ;;  %2681 = vmatprep.subr.mxu0 %v2612_v39  ;;  %v2886_v38 = vrot.slane %v6850_v57, 1  ;;  %v2522_v39 = vld [vmem:[#allocation4 + $0x18b0] sm:$0xff] }
 0x32e   : > { %2433 = vmatprep.subr.mxu1 %v2336_v40  ;;  %2682 = vmatpush2.msra.mxu0 %v2611_v41  ;;  %v2837_v40 = vld [vmem:[#allocation4 + $0x1cc8] sm:$0xff] }
 0x32f   : > { %2434 = vmatpush2.msra.mxu1 %v2335_v43  ;;  %2683 = vmatprep.subr.mxu0 %v2610_v46  ;;  %v2887_v41 = vsel %vm809_vm1, %v2885_v30, %v2886_v38  ;;  %v2521_v43 = vld [vmem:[#allocation4 + $0x18a8] sm:$0xff]  ;;  %v2836_v46 = vld [vmem:[#allocation4 + $0x1cc0] sm:$0xff] }
 0x330   : > { %2435 = vmatprep.subr.mxu1 %v2334_v48  ;;  %2684 = vmatpush2.msra.mxu0 %v2609_v49  ;;  %v2520_v48 = vld [vmem:[#allocation4 + $0x18a0] sm:$0xff]  ;;  %v2835_v49 = vld [vmem:[#allocation4 + $0x1cb8] sm:$0xff]  ;;  %v2813_v30 = vld [vmem:[#allocation4 + $0x1c08] sm:$0xff] }
 0x331   : > { %2436 = vmatpush2.msra.mxu1 %v2333_v16  ;;  %2685 = vmatprep.subr.mxu0 %v2608_v50  ;;  %v2519_v16 = vld [vmem:[#allocation4 + $0x1898] sm:$0xff]  ;;  %v2834_v50 = vld [vmem:[#allocation4 + $0x1cb0] sm:$0xff] }
 0x332   : > { %2437 = vmatprep.subr.mxu1 %v2332_v51  ;;  %2686 = vmatpush2.msra.mxu0 %v2607_v52  ;;  %v2833_v51 = vld [vmem:[#allocation4 + $0x1ca8] sm:$0xff] }
 0x333   : > { %2438 = vmatpush2.msra.mxu1 %v2331_v54  ;;  %2687 = vmatprep.subr.mxu0 %v2606_v55  ;;  %v2517_v52 = vld [vmem:[#allocation4 + $0x1888] sm:$0xff]  ;;  %v2832_v54 = vld [vmem:[#allocation4 + $0x1ca0] sm:$0xff] }
 0x334   : > { %2439 = vmatprep.subr.mxu1 %v2330_v58  ;;  %2688 = vmatpush2.msra.mxu0 %v2605_v60  ;;  %v2516_v55 = vld [vmem:[#allocation4 + $0x1880] sm:$0xff]  ;;  %v2831_v58 = vld [vmem:[#allocation4 + $0x1c98] sm:$0xff] }
 0x335   : > { %2440 = vmatpush2.msra.mxu1 %v2329_v62  ;;  %2689 = vmatprep.subr.mxu0 %v2604_v0  ;;  %v2515_v60 = vld [vmem:[#allocation4 + $0x1878] sm:$0xff]  ;;  %v2514_v62 = vld [vmem:[#allocation4 + $0x1870] sm:$0xff]  ;;  %v2829_v0 = vld [vmem:[#allocation4 + $0x1c88] sm:$0xff] }
 0x336   : > { %2441 = vmatprep.subr.mxu1 %v2328_v1  ;;  %2690 = vmatpush2.msra.mxu0 %v2603_v2  ;;  %v2513_v1 = vld [vmem:[#allocation4 + $0x1868] sm:$0xff]  ;;  %v2828_v2 = vld [vmem:[#allocation4 + $0x1c80] sm:$0xff] }
 0x337   : > { %2442 = vmatpush2.msra.mxu1 %v2327_v4  ;;  %2691 = vmatprep.subr.mxu0 %v2602_v5  ;;  %v2827_v4 = vld [vmem:[#allocation4 + $0x1c78] sm:$0xff] }
 0x338   : > { %2444 = vmatmul.mubr.f32.vlgmr.msra.gmra.mxu1 %v2367_v9  ;;  %2692 = vmatpush2.msra.mxu0 %v2601_v35  ;;  %v2511_v5 = vld [vmem:[#allocation4 + $0x1858] sm:$0xff]  ;;  %v2825_v35 = vld [vmem:[#allocation4 + $0x1c68] sm:$0xff]  ;;  %v2508_v9 = vld [vmem:[#allocation4 + $0x1840] sm:$0xff] }
 0x339   : > { %2728 = vmatprep.subr.mxu1 %v2531_v13  ;;  %2449 = vmatprep.mubr.f32.mxu1 %v2374_v11  ;;  %v2824_v13 = vld [vmem:[#allocation4 + $0x1c60] sm:$0xff]  ;;  %v2822_v11 = vld [vmem:[#allocation4 + $0x1c50] sm:$0xff] }
 0x33a   : > { %2693 = vmatprep.subr.mxu0 %v2600_v10  ;;  %2729 = vmatpush1.msra.mxu1 %v2530_v29  ;;  %v2823_v10 = vld [vmem:[#allocation4 + $0x1c58] sm:$0xff] }
 0x33b   : > { %2694 = vmatpush2.msra.mxu0 %v2599_v63  ;;  %2730 = vmatprep.subr.mxu1 %v2529_v6  ;;  %v2507_v29 = vld [vmem:[#allocation4 + $0x1838] sm:$0xff]  ;;  %v2506_v63 = vld [vmem:[#allocation4 + $0x1830] sm:$0xff]  ;;  %v2821_v6 = vld [vmem:[#allocation4 + $0x1c48] sm:$0xff] }
 0x33c   : > { %2696 = vmatmul.mubr.f32.vlgmr.msra.gmra.mxu0 %v6829_v26  ;;  %2731 = vmatpush1.msra.mxu1 %v2528_v42  ;;  %v2719_v26 = vsel %vm640_vm0, %v2717_v19, %v2718_v53  ;;  %v2504_v42 = vld [vmem:[#allocation4 + $0x1820] sm:$0xff]  ;;  %v2818_v19 = vld [vmem:[#allocation4 + $0x1c30] sm:$0xff] }
 0x33d   : > { %2896 = vmatprep.subr.mxu0 %v2843_v17  ;;  %2450 = vmatmul.mubr.f32.gmra.mxu1 %v2372_v23  ;;  %v2819_v17 = vld [vmem:[#allocation4 + $0x1c38] sm:$0xff]  ;;  %v2502_v23 = vld [vmem:[#allocation4 + $0x1810] sm:$0xff] }
 0x33e   : > { %2701 = vmatprep.mubr.f32.mxu0 %v6850_v57  ;;  %2732 = vmatprep.subr.mxu1 %v2527_v18  ;;  %v2503_v18 = vld [vmem:[#allocation4 + $0x1818] sm:$0xff]  ;;  %v3096_v57 = vld [vmem:[#allocation4 + $0x20c0] sm:$0xff] }
 0x33f   : > { %2897 = vmatpush1.msra.mxu0 %v2842_v44  ;;  %2733 = vmatpush1.msra.mxu1 %v2526_v21  ;;  %v2817_v44 = vld [vmem:[#allocation4 + $0x1c28] sm:$0xff] }
 0x340   : > { %2792 = vmatprep.mubr.f32.mxu1 %v2719_v26  ;;  %2898 = vmatprep.subr.mxu0 %v2841_v20  ;;  %v2501_v21 = vld [vmem:[#allocation4 + $0x1808] sm:$0xff]  ;;  %v2500_v20 = vld [vmem:[#allocation4 + $0x1800] sm:$0xff]  ;;  %v2814_v26 = vld [vmem:[#allocation4 + $0x1c10] sm:$0xff] }
 0x341   : > { %2734 = vmatprep.subr.mxu1 %v2525_v24  ;;  %2899 = vmatpush1.msra.mxu0 %v2840_v25  ;;  %v2815_v24 = vld [vmem:[#allocation4 + $0x1c18] sm:$0xff] }
 0x342   : > { %2702 = vmatmul.mubr.f32.gmra.mxu0 %v6843_v47  ;;  %2735 = vmatpush1.msra.mxu1 %v2524_v27  ;;  %v2518_v47 = vld [vmem:[#allocation4 + $0x1890] sm:$0xff]  ;;  %v2563_v25 = vld [vmem:[#allocation4 + $0x19f8] sm:$0xff] }
 0x343   : > { %2900 = vmatprep.subr.mxu0 %v2839_v32  ;;  %2736 = vmatprep.subr.mxu1 %v2523_v33  ;;  %v2562_v27 = vld [vmem:[#allocation4 + $0x19f0] sm:$0xff]  ;;  %v2561_v32 = vld [vmem:[#allocation4 + $0x19e8] sm:$0xff]  ;;  %v2812_v33 = vld [vmem:[#allocation4 + $0x1c00] sm:$0xff] }
 0x344   : > { %2901 = vmatpush1.msra.mxu0 %v2838_v36  ;;  %2960 = vmatprep.mubr.f32.mxu0 %v2887_v41  ;;  %v2560_v36 = vld [vmem:[#allocation4 + $0x19e0] sm:$0xff]  ;;  %v2874_v41 = vld [vmem:[#allocation4 + $0x1df0] sm:$0xff] }
 0x345   : > { %2737 = vmatpush1.msra.mxu1 %v2522_v39  ;;  %2902 = vmatprep.subr.mxu0 %v2837_v40  ;;  %v2875_v39 = vld [vmem:[#allocation4 + $0x1df8] sm:$0xff] }
 0x346   : > { %2738 = vmatprep.subr.mxu1 %v2521_v43  ;;  %2903 = vmatpush1.msra.mxu0 %v2836_v46  ;;  %v2559_v40 = vld [vmem:[#allocation4 + $0x19d8] sm:$0xff]  ;;  %v2558_v43 = vld [vmem:[#allocation4 + $0x19d0] sm:$0xff]  ;;  %v2873_v46 = vld [vmem:[#allocation4 + $0x1de8] sm:$0xff] }
 0x347   : > { %2739 = vmatpush1.msra.mxu1 %v2520_v48  ;;  %2904 = vmatprep.subr.mxu0 %v2835_v49  ;;  %v2557_v48 = vld [vmem:[#allocation4 + $0x19c8] sm:$0xff]  ;;  %v2872_v49 = vld [vmem:[#allocation4 + $0x1de0] sm:$0xff] }
 0x348   : > { %2740 = vmatprep.subr.mxu1 %v2519_v16  ;;  %2905 = vmatpush1.msra.mxu0 %v2834_v50  ;;  %v2556_v16 = vld [vmem:[#allocation4 + $0x19c0] sm:$0xff]  ;;  %v2871_v50 = vld [vmem:[#allocation4 + $0x1dd8] sm:$0xff] }
 0x349   : > { %2741 = vmatpush1.msra.mxu1 %v2518_v47  ;;  %2906 = vmatprep.subr.mxu0 %v2833_v51  ;;  %v2555_v47 = vld [vmem:[#allocation4 + $0x19b8] sm:$0xff]  ;;  %v2870_v51 = vld [vmem:[#allocation4 + $0x1dd0] sm:$0xff] }
 0x34a   : > { %2742 = vmatprep.subr.mxu1 %v2517_v52  ;;  %2907 = vmatpush1.msra.mxu0 %v2832_v54  ;;  %v2554_v52 = vld [vmem:[#allocation4 + $0x19b0] sm:$0xff]  ;;  %v2869_v54 = vld [vmem:[#allocation4 + $0x1dc8] sm:$0xff] }
 0x34b   : > { %2743 = vmatpush1.msra.mxu1 %v2516_v55  ;;  %2908 = vmatprep.subr.mxu0 %v2831_v58  ;;  %v2553_v55 = vld [vmem:[#allocation4 + $0x19a8] sm:$0xff]  ;;  %v2868_v58 = vld [vmem:[#allocation4 + $0x1dc0] sm:$0xff] }
 0x34c   : > { %2744 = vmatprep.subr.mxu1 %v2515_v60  ;;  %2909 = vmatpush1.msra.mxu0 %v2830_v61  ;;  %v2552_v60 = vld [vmem:[#allocation4 + $0x19a0] sm:$0xff]  ;;  %v2867_v61 = vld [vmem:[#allocation4 + $0x1db8] sm:$0xff] }
 0x34d   : > { %2745 = vmatpush1.msra.mxu1 %v2514_v62  ;;  %2910 = vmatprep.subr.mxu0 %v2829_v0  ;;  %v2551_v62 = vld [vmem:[#allocation4 + $0x1998] sm:$0xff]  ;;  %v2866_v0 = vld [vmem:[#allocation4 + $0x1db0] sm:$0xff] }
 0x34e   : > { %2746 = vmatprep.subr.mxu1 %v2513_v1  ;;  %2911 = vmatpush1.msra.mxu0 %v2828_v2  ;;  %v2550_v1 = vld [vmem:[#allocation4 + $0x1990] sm:$0xff]  ;;  %v2865_v2 = vld [vmem:[#allocation4 + $0x1da8] sm:$0xff] }
 0x34f   : > { %2747 = vmatpush1.msra.mxu1 %v2512_v3  ;;  %2912 = vmatprep.subr.mxu0 %v2827_v4  ;;  %v2549_v3 = vld [vmem:[#allocation4 + $0x1988] sm:$0xff]  ;;  %v2864_v4 = vld [vmem:[#allocation4 + $0x1da0] sm:$0xff] }
 0x350   : > { %2748 = vmatprep.subr.mxu1 %v2511_v5  ;;  %2913 = vmatpush1.msra.mxu0 %v2826_v45  ;;  %v2548_v5 = vld [vmem:[#allocation4 + $0x1980] sm:$0xff]  ;;  %v2863_v45 = vld [vmem:[#allocation4 + $0x1d98] sm:$0xff] }
 0x351   : > { %2749 = vmatpush1.msra.mxu1 %v2510_v7  ;;  %2914 = vmatprep.subr.mxu0 %v2825_v35  ;;  %v2547_v7 = vld [vmem:[#allocation4 + $0x1978] sm:$0xff]  ;;  %v2862_v35 = vld [vmem:[#allocation4 + $0x1d90] sm:$0xff] }
 0x352   : > { %2750 = vmatprep.subr.mxu1 %v2509_v8  ;;  %2915 = vmatpush1.msra.mxu0 %v2824_v13  ;;  %v2546_v8 = vld [vmem:[#allocation4 + $0x1970] sm:$0xff]  ;;  %v2861_v13 = vld [vmem:[#allocation4 + $0x1d88] sm:$0xff] }
 0x353   : > { %2751 = vmatpush1.msra.mxu1 %v2508_v9  ;;  %2916 = vmatprep.subr.mxu0 %v2823_v10  ;;  %v2545_v9 = vld [vmem:[#allocation4 + $0x1968] sm:$0xff]  ;;  %v2860_v10 = vld [vmem:[#allocation4 + $0x1d80] sm:$0xff] }
 0x354   : > { %2752 = vmatprep.subr.mxu1 %v2507_v29  ;;  %2917 = vmatpush1.msra.mxu0 %v2822_v11  ;;  %v2544_v29 = vld [vmem:[#allocation4 + $0x1960] sm:$0xff]  ;;  %v2859_v11 = vld [vmem:[#allocation4 + $0x1d78] sm:$0xff] }
 0x355   : > { %2753 = vmatpush1.msra.mxu1 %v2506_v63  ;;  %2918 = vmatprep.subr.mxu0 %v2821_v6  ;;  %v2543_v63 = vld [vmem:[#allocation4 + $0x1958] sm:$0xff]  ;;  %v2858_v6 = vld [vmem:[#allocation4 + $0x1d70] sm:$0xff] }
 0x356   : > { %2754 = vmatprep.subr.mxu1 %v2505_v15  ;;  %2919 = vmatpush1.msra.mxu0 %v2820_v14  ;;  %v2542_v15 = vld [vmem:[#allocation4 + $0x1950] sm:$0xff]  ;;  %v2857_v14 = vld [vmem:[#allocation4 + $0x1d68] sm:$0xff] }
 0x357   : > { %2755 = vmatpush1.msra.mxu1 %v2504_v42  ;;  %2920 = vmatprep.subr.mxu0 %v2819_v17  ;;  %v2541_v42 = vld [vmem:[#allocation4 + $0x1948] sm:$0xff]  ;;  %v2856_v17 = vld [vmem:[#allocation4 + $0x1d60] sm:$0xff] }
 0x358   : > { %2756 = vmatprep.subr.mxu1 %v2503_v18  ;;  %2921 = vmatpush1.msra.mxu0 %v2818_v19  ;;  %v2540_v18 = vld [vmem:[#allocation4 + $0x1940] sm:$0xff]  ;;  %v2855_v19 = vld [vmem:[#allocation4 + $0x1d58] sm:$0xff] }
 0x359   : > { %2757 = vmatpush1.msra.mxu1 %v2502_v23  ;;  %2922 = vmatprep.subr.mxu0 %v2817_v44  ;;  %v2539_v23 = vld [vmem:[#allocation4 + $0x1938] sm:$0xff]  ;;  %v2854_v44 = vld [vmem:[#allocation4 + $0x1d50] sm:$0xff] }
 0x35a   : > { %2758 = vmatprep.subr.mxu1 %v2501_v21  ;;  %2923 = vmatpush1.msra.mxu0 %v2816_v22  ;;  %v2538_v21 = vld [vmem:[#allocation4 + $0x1930] sm:$0xff]  ;;  %v2853_v22 = vld [vmem:[#allocation4 + $0x1d48] sm:$0xff] }
 0x35b   : > { %2759 = vmatpush1.msra.mxu1 %v2500_v20  ;;  %2924 = vmatprep.subr.mxu0 %v2815_v24  ;;  %v2537_v20 = vld [vmem:[#allocation4 + $0x1928] sm:$0xff]  ;;  %v2852_v24 = vld [vmem:[#allocation4 + $0x1d40] sm:$0xff] }
 0x35c   : > { %2760 = vmatprep.subr.mxu1 %v2563_v25  ;;  %2925 = vmatpush1.msra.mxu0 %v2814_v26  ;;  %v2536_v25 = vld [vmem:[#allocation4 + $0x1920] sm:$0xff]  ;;  %v2851_v26 = vld [vmem:[#allocation4 + $0x1d38] sm:$0xff] }
 0x35d   : > { %2761 = vmatpush2.msra.mxu1 %v2562_v27  ;;  %2926 = vmatprep.subr.mxu0 %v2813_v30  ;;  %v2493_v27 = vld [vmem:[#allocation2 + $0x30] sm:$0x80]  ;;  %v2535_v30 = vld [vmem:[#allocation4 + $0x1918] sm:$0xff] }
 0x35e   : > { %2762 = vmatprep.subr.mxu1 %v2561_v32  ;;  %2927 = vmatpush1.msra.mxu0 %v2812_v33  ;;  %v2850_v32 = vld [vmem:[#allocation4 + $0x1d30] sm:$0xff]  ;;  %v2498_v33 = vld [vmem:[#allocation2 + $0x20] sm:$0x7f] }
 0x35f   : > { %2763 = vmatpush2.msra.mxu1 %v2560_v36  ;;  %2928 = vmatprep.subr.mxu0 %v2875_v39  ;;  %v2534_v36 = vld [vmem:[#allocation4 + $0x1910] sm:$0xff]  ;;  %v2849_v39 = vld [vmem:[#allocation4 + $0x1d28] sm:$0xff] }
 0x360   : > { %2764 = vmatprep.subr.mxu1 %v2559_v40  ;;  %2929 = vmatpush2.msra.mxu0 %v2874_v41  ;;  %v2810_v40 = vld [vmem:[#allocation2 + $0x38] sm:$0x1] }
 0x361   : > { %2765 = vmatpush2.msra.mxu1 %v2558_v43  ;;  %2930 = vmatprep.subr.mxu0 %v2873_v46  ;;  %v6358_v41 = vld [vmem:[#allocation2 + $0x18] sm:$0xff]  ;;  %v2533_v46 = vld [vmem:[#allocation4 + $0x1908] sm:$0xff] }
 0x362   : > { %2766 = vmatprep.subr.mxu1 %v2557_v48  ;;  %2931 = vmatpush2.msra.mxu0 %v2872_v49  ;;  %v2715_v43 = vrot.slane %v6358_v41, 7  ;;  %v2848_v48 = vld [vmem:[#allocation4 + $0x1d20] sm:$0xff]  ;;  %v2714_v49 = vrot.slane %v2493_v27, 7  ;;  %v3089_v27 = vld [vmem:[#allocation4 + $0x2088] sm:$0xff] }
 0x363   : > { %2767 = vmatpush2.msra.mxu1 %v2556_v16  ;;  %2932 = vmatprep.subr.mxu0 %v2871_v50  ;;  %v2807_v16 = vld [vmem:[#allocation2 + $0x8] sm:$0xff] }
 0x364   : > { %2768 = vmatprep.subr.mxu1 %v2555_v47  ;;  %2933 = vmatpush2.msra.mxu0 %v2870_v51  ;;  %v2532_v50 = vld [vmem:[#allocation4 + $0x1900] sm:$0xff]  ;;  %v2847_v47 = vld [vmem:[#allocation4 + $0x1d18] sm:$0xff]  ;;  %v2722_v51 = vrot.slane %v2498_v33, 7  ;;  %v3022_v41 = vld [vmem:[#allocation4 + $0x1e88] sm:$0xff] }
 0x365   : > { %2769 = vmatpush2.msra.mxu1 %v2554_v52  ;;  %2934 = vmatprep.subr.mxu0 %v2869_v54  ;;  %v2497_v52 = vld [vmem:[#allocation2 + $0x8] sm:$0x7f]  ;;  %v2846_v54 = vld [vmem:[#allocation4 + $0x1d10] sm:$0xff]  ;;  %v3024_v33 = vld [vmem:[#allocation4 + $0x1e98] sm:$0xff] }
 0x366   : > { %2770 = vmatprep.subr.mxu1 %v2553_v55  ;;  %2935 = vmatpush2.msra.mxu0 %v2868_v58  ;;  %v2805_v55 = vld [vmem:[#allocation2 + $0x18] sm:$0xfe]  ;;  %v2845_v58 = vld [vmem:[#allocation4 + $0x1d08] sm:$0xff] }
 0x367   : > { %2771 = vmatpush2.msra.mxu1 %v2552_v60  ;;  %2936 = vmatprep.subr.mxu0 %v2867_v61  ;;  %v2883_v60 = vrot.slane %v2807_v16, 1  ;;  %v2716_v61 = vsel %vm640_vm0, %v2714_v49, %v2715_v43  ;;  %v3020_v49 = vld [vmem:[#allocation4 + $0x1e78] sm:$0xff] }
 0x368   : > { %2772 = vmatprep.subr.mxu1 %v2551_v62  ;;  %2937 = vmatpush2.msra.mxu0 %v2866_v0  ;;  %v2844_v62 = vld [vmem:[#allocation4 + $0x1d00] sm:$0xff]  ;;  %v2720_v0 = vrot.slane %v2497_v52, 7  ;;  %v3083_v16 = vld [vmem:[#allocation4 + $0x2058] sm:$0xff]  ;;  %v3081_v52 = vld [vmem:[#allocation4 + $0x2048] sm:$0xff] }
 0x369   : > { %2773 = vmatpush2.msra.mxu1 %v2550_v1  ;;  %2938 = vmatprep.subr.mxu0 %v2865_v2  ;;  %v2890_v1 = vrot.slane %v2810_v40, 1  ;;  %v2809_v2 = vld [vmem:[#allocation2 + $0x28] sm:$0x1]  ;;  %v3086_v40 = vld [vmem:[#allocation4 + $0x2070] sm:$0xff] }
 0x36a   : > { %2774 = vmatprep.subr.mxu1 %v2549_v3  ;;  %2939 = vmatpush2.msra.mxu0 %v2864_v4  ;;  %v3103_v3 = vld [vmem:[#allocation4 + $0x20f8] sm:$0xff]  ;;  %v2723_v4 = vsel %vm640_vm0, %v2718_v53, %v2722_v51  ;;  %v3100_v53 = vld [vmem:[#allocation4 + $0x20e0] sm:$0xff]  ;;  %v3018_v51 = vld [vmem:[#allocation4 + $0x1e68] sm:$0xff] }
 0x36b   : > { %2775 = vmatpush2.msra.mxu1 %v2548_v5  ;;  %2940 = vmatprep.subr.mxu0 %v2863_v45  ;;  %v2882_v5 = vrot.slane %v2805_v55, 1  ;;  %v3102_v45 = vld [vmem:[#allocation4 + $0x20f0] sm:$0xff]  ;;  %v2891_v37 = vsel %vm809_vm1, %v2886_v38, %v2890_v1  ;;  %v3032_v38 = vld [vmem:[#allocation4 + $0x1ed8] sm:$0xff]  ;;  %v3080_v55 = vld [vmem:[#allocation4 + $0x2040] sm:$0xff] }
 0x36c   : > { %2776 = vmatprep.subr.mxu1 %v2547_v7  ;;  %2941 = vmatpush2.msra.mxu0 %v2862_v35  ;;  %v2888_v35 = vrot.slane %v2809_v2, 1  ;;  %v3077_v1 = vld [vmem:[#allocation4 + $0x2028] sm:$0xff]  ;;  %v3013_v2 = vld [vmem:[#allocation4 + $0x1e40] sm:$0xff] }
 0x36d   : > { %2777 = vmatpush2.msra.mxu1 %v2546_v8  ;;  %2942 = vmatprep.subr.mxu0 %v2861_v13  ;;  %v2884_v7 = vsel %vm809_vm1, %v2882_v5, %v2883_v60  ;;  %v3101_v8 = vld [vmem:[#allocation4 + $0x20e8] sm:$0xff]  ;;  %v3036_v13 = vld [vmem:[#allocation4 + $0x1ef8] sm:$0xff] }
 0x36e   : > { %2778 = vmatprep.subr.mxu1 %v2545_v9  ;;  %2943 = vmatpush2.msra.mxu0 %v2860_v10  ;;  %v2721_v9 = vsel %vm640_vm0, %v2715_v43, %v2720_v0  ;;  %v3035_v10 = vld [vmem:[#allocation4 + $0x1ef0] sm:$0xff]  ;;  %v3085_v43 = vld [vmem:[#allocation4 + $0x2068] sm:$0xff]  ;;  %v3075_v5 = vld [vmem:[#allocation4 + $0x2018] sm:$0xff] }
 0x36f   : > { %2779 = vmatpush2.msra.mxu1 %v2544_v29  ;;  %2944 = vmatprep.subr.mxu0 %v2859_v11  ;;  %v3099_v29 = vld [vmem:[#allocation4 + $0x20d8] sm:$0xff]  ;;  %v3098_v11 = vld [vmem:[#allocation4 + $0x20d0] sm:$0xff]  ;;  %v3014_v0 = vld [vmem:[#allocation4 + $0x1e48] sm:$0xff] }
 0x370   : > { %2780 = vmatprep.subr.mxu1 %v2543_v63  ;;  %2945 = vmatpush2.msra.mxu0 %v2858_v6  ;;  %v3034_v63 = vld [vmem:[#allocation4 + $0x1ee8] sm:$0xff]  ;;  %v2889_v6 = vsel %vm809_vm1, %v2883_v60, %v2888_v35  ;;  %v3079_v60 = vld [vmem:[#allocation4 + $0x2038] sm:$0xff] }
 0x371   : > { %2781 = vmatpush2.msra.mxu1 %v2542_v15  ;;  %2946 = vmatprep.subr.mxu0 %v2857_v14  ;;  %v3097_v15 = vld [vmem:[#allocation4 + $0x20c8] sm:$0xff]  ;;  %v3033_v14 = vld [vmem:[#allocation4 + $0x1ee0] sm:$0xff] }
 0x372   : > { %2782 = vmatprep.subr.mxu1 %v2541_v42  ;;  %2947 = vmatpush2.msra.mxu0 %v2856_v17  ;;  %v3095_v42 = vld [vmem:[#allocation4 + $0x20b8] sm:$0xff]  ;;  %v3031_v17 = vld [vmem:[#allocation4 + $0x1ed0] sm:$0xff]  ;;  %v3010_v35 = vld [vmem:[#allocation4 + $0x1e28] sm:$0xff] }
 0x373   : > { %2783 = vmatpush2.msra.mxu1 %v2540_v18  ;;  %2948 = vmatprep.subr.mxu0 %v2855_v19  ;;  %v3094_v18 = vld [vmem:[#allocation4 + $0x20b0] sm:$0xff]  ;;  %v3030_v19 = vld [vmem:[#allocation4 + $0x1ec8] sm:$0xff] }
 0x374   : > { %2784 = vmatprep.subr.mxu1 %v2539_v23  ;;  %2949 = vmatpush2.msra.mxu0 %v2854_v44  ;;  %v3093_v23 = vld [vmem:[#allocation4 + $0x20a8] sm:$0xff]  ;;  %v3029_v44 = vld [vmem:[#allocation4 + $0x1ec0] sm:$0xff] }
 0x375   : > { %2785 = vmatpush2.msra.mxu1 %v2538_v21  ;;  %2950 = vmatprep.subr.mxu0 %v2853_v22  ;;  %v3092_v21 = vld [vmem:[#allocation4 + $0x20a0] sm:$0xff]  ;;  %v3028_v22 = vld [vmem:[#allocation4 + $0x1eb8] sm:$0xff] }
 0x376   : > { %2786 = vmatprep.subr.mxu1 %v2537_v20  ;;  %2951 = vmatpush2.msra.mxu0 %v2852_v24  ;;  %v3091_v20 = vld [vmem:[#allocation4 + $0x2098] sm:$0xff]  ;;  %v3027_v24 = vld [vmem:[#allocation4 + $0x1eb0] sm:$0xff] }
 0x377   : > { %2787 = vmatpush2.msra.mxu1 %v2536_v25  ;;  %2952 = vmatprep.subr.mxu0 %v2851_v26  ;;  %v3090_v25 = vld [vmem:[#allocation4 + $0x2090] sm:$0xff]  ;;  %v3026_v26 = vld [vmem:[#allocation4 + $0x1ea8] sm:$0xff] }
 0x378   : > { %2788 = vmatprep.subr.mxu1 %v2535_v30  ;;  %2953 = vmatpush2.msra.mxu0 %v2850_v32  ;;  %v3025_v30 = vld [vmem:[#allocation4 + $0x1ea0] sm:$0xff] }
 0x379   : > { %2789 = vmatpush2.msra.mxu1 %v2534_v36  ;;  %2954 = vmatprep.subr.mxu0 %v2849_v39  ;;  %v3088_v32 = vld [vmem:[#allocation4 + $0x2080] sm:$0xff]  ;;  %v3087_v36 = vld [vmem:[#allocation4 + $0x2078] sm:$0xff]  ;;  %v3023_v39 = vld [vmem:[#allocation4 + $0x1e90] sm:$0xff] }
 0x37a   : > { %2790 = vmatprep.subr.mxu1 %v2533_v46  ;;  %2955 = vmatpush2.msra.mxu0 %v2848_v48  ;;  %v3021_v46 = vld [vmem:[#allocation4 + $0x1e80] sm:$0xff] }
 0x37b   : > { %2791 = vmatpush2.msra.mxu1 %v2532_v50  ;;  %2956 = vmatprep.subr.mxu0 %v2847_v47  ;;  %v3084_v48 = vld [vmem:[#allocation4 + $0x2060] sm:$0xff]  ;;  %v3019_v50 = vld [vmem:[#allocation4 + $0x1e70] sm:$0xff] }
 0x37c   : > { %2793 = vmatmul.mubr.f32.vlgmr.msra.gmra.mxu1 %v2716_v61  ;;  %2957 = vmatpush2.msra.mxu0 %v2846_v54  ;;  %v3082_v47 = vld [vmem:[#allocation4 + $0x2050] sm:$0xff]  ;;  %v3017_v54 = vld [vmem:[#allocation4 + $0x1e60] sm:$0xff] }
 0x37d   : > { %2798 = vmatprep.mubr.f32.mxu1 %v2723_v4  ;;  %2958 = vmatprep.subr.mxu0 %v2845_v58  ;;  %v3016_v58 = vld [vmem:[#allocation4 + $0x1e58] sm:$0xff]  ;;  %v3015_v61 = vld [vmem:[#allocation4 + $0x1e50] sm:$0xff] }
 0x37e   : > { %2959 = vmatpush2.msra.mxu0 %v2844_v62  ;;  %3136 = vmatprep.subr.mxu1 %v3103_v3  ;;  %v3078_v62 = vld [vmem:[#allocation4 + $0x2030] sm:$0xff]  ;;  %v3076_v3 = vld [vmem:[#allocation4 + $0x2020] sm:$0xff]  ;;  %v3012_v4 = vld [vmem:[#allocation4 + $0x1e38] sm:$0xff] }
 0x37f   : > { %2961 = vmatmul.mubr.f32.vlgmr.msra.gmra.mxu0 %v2884_v7  ;;  %3137 = vmatpush1.msra.mxu1 %v3102_v45  ;;  %v3011_v45 = vld [vmem:[#allocation4 + $0x1e30] sm:$0xff] }
 0x380   : > { %2799 = vmatmul.mubr.f32.gmra.mxu1 %v2721_v9  ;;  %2966 = vmatprep.mubr.f32.mxu0 %v2891_v37  ;;  %v3074_v7 = vld [vmem:[#allocation4 + $0x2010] sm:$0xff]  ;;  %v3072_v9 = vld [vmem:[#allocation4 + $0x2000] sm:$0xff]  ;;  %v3008_v37 = vld [vmem:[#allocation4 + $0x1e18] sm:$0xff] }
 0x381   : > { %3138 = vmatprep.subr.mxu1 %v3101_v8  ;;  %3233 = vmatprep.subr.mxu0 %v3036_v13  ;;  %v3073_v8 = vld [vmem:[#allocation4 + $0x2008] sm:$0xff]  ;;  %v3009_v13 = vld [vmem:[#allocation4 + $0x1e20] sm:$0xff] }
 0x382   : > { %3139 = vmatpush1.msra.mxu1 %v3100_v53  ;;  %3234 = vmatpush1.msra.mxu0 %v3035_v10  ;;  %v3135_v53 = vld [vmem:[#allocation4 + $0x21f8] sm:$0xff]  ;;  %v3007_v10 = vld [vmem:[#allocation4 + $0x1e10] sm:$0xff] }
 0x383   : > { %2967 = vmatmul.mubr.f32.gmra.mxu0 %v2889_v6  ;;  %3140 = vmatprep.subr.mxu1 %v3099_v29  ;;  %v3134_v29 = vld [vmem:[#allocation4 + $0x21f0] sm:$0xff]  ;;  %v3005_v6 = vld [vmem:[#allocation4 + $0x1e00] sm:$0xff] }
 0x384   : > { %3141 = vmatpush1.msra.mxu1 %v3098_v11  ;;  %3235 = vmatprep.subr.mxu0 %v3034_v63  ;;  %v3006_v11 = vld [vmem:[#allocation4 + $0x1e08] sm:$0xff] }
 0x385   : > { %3142 = vmatprep.subr.mxu1 %v3097_v15  ;;  %3236 = vmatpush1.msra.mxu0 %v3033_v14  ;;  %v3133_v63 = vld [vmem:[#allocation4 + $0x21e8] sm:$0xff]  ;;  %v3132_v15 = vld [vmem:[#allocation4 + $0x21e0] sm:$0xff]  ;;  %v3068_v14 = vld [vmem:[#allocation4 + $0x1ff8] sm:$0xff] }
 0x386   : > { %3143 = vmatpush1.msra.mxu1 %v3096_v57  ;;  %3237 = vmatprep.subr.mxu0 %v3032_v38  ;;  %v3131_v57 = vld [vmem:[#allocation4 + $0x21d8] sm:$0xff]  ;;  %v3067_v38 = vld [vmem:[#allocation4 + $0x1ff0] sm:$0xff] }
 0x387   : > { %3144 = vmatprep.subr.mxu1 %v3095_v42  ;;  %3238 = vmatpush1.msra.mxu0 %v3031_v17  ;;  %v3130_v42 = vld [vmem:[#allocation4 + $0x21d0] sm:$0xff]  ;;  %v3066_v17 = vld [vmem:[#allocation4 + $0x1fe8] sm:$0xff] }
 0x388   : > { %3145 = vmatpush1.msra.mxu1 %v3094_v18  ;;  %3239 = vmatprep.subr.mxu0 %v3030_v19  ;;  %v3129_v18 = vld [vmem:[#allocation4 + $0x21c8] sm:$0xff]  ;;  %v3065_v19 = vld [vmem:[#allocation4 + $0x1fe0] sm:$0xff] }
 0x389   : > { %3146 = vmatprep.subr.mxu1 %v3093_v23  ;;  %3240 = vmatpush1.msra.mxu0 %v3029_v44  ;;  %v3128_v23 = vld [vmem:[#allocation4 + $0x21c0] sm:$0xff]  ;;  %v3064_v44 = vld [vmem:[#allocation4 + $0x1fd8] sm:$0xff] }
 0x38a   : > { %3147 = vmatpush1.msra.mxu1 %v3092_v21  ;;  %3241 = vmatprep.subr.mxu0 %v3028_v22  ;;  %v3127_v21 = vld [vmem:[#allocation4 + $0x21b8] sm:$0xff]  ;;  %v3063_v22 = vld [vmem:[#allocation4 + $0x1fd0] sm:$0xff] }
 0x38b   : > { %3148 = vmatprep.subr.mxu1 %v3091_v20  ;;  %3242 = vmatpush1.msra.mxu0 %v3027_v24  ;;  %v3126_v20 = vld [vmem:[#allocation4 + $0x21b0] sm:$0xff]  ;;  %v3062_v24 = vld [vmem:[#allocation4 + $0x1fc8] sm:$0xff] }
 0x38c   : > { %3149 = vmatpush1.msra.mxu1 %v3090_v25  ;;  %3243 = vmatprep.subr.mxu0 %v3026_v26  ;;  %v3125_v25 = vld [vmem:[#allocation4 + $0x21a8] sm:$0xff]  ;;  %v3061_v26 = vld [vmem:[#allocation4 + $0x1fc0] sm:$0xff] }
 0x38d   : > { %3150 = vmatprep.subr.mxu1 %v3089_v27  ;;  %3244 = vmatpush1.msra.mxu0 %v3025_v30  ;;  %v3124_v27 = vld [vmem:[#allocation4 + $0x21a0] sm:$0xff]  ;;  %v3060_v30 = vld [vmem:[#allocation4 + $0x1fb8] sm:$0xff] }
 0x38e   : > { %3151 = vmatpush1.msra.mxu1 %v3088_v32  ;;  %3245 = vmatprep.subr.mxu0 %v3024_v33  ;;  %v3123_v32 = vld [vmem:[#allocation4 + $0x2198] sm:$0xff]  ;;  %v3059_v33 = vld [vmem:[#allocation4 + $0x1fb0] sm:$0xff] }
 0x38f   : > { %3152 = vmatprep.subr.mxu1 %v3087_v36  ;;  %3246 = vmatpush1.msra.mxu0 %v3023_v39  ;;  %v3122_v36 = vld [vmem:[#allocation4 + $0x2190] sm:$0xff]  ;;  %v3058_v39 = vld [vmem:[#allocation4 + $0x1fa8] sm:$0xff] }
 0x390   : > { %3153 = vmatpush1.msra.mxu1 %v3086_v40  ;;  %3247 = vmatprep.subr.mxu0 %v3022_v41  ;;  %v3121_v40 = vld [vmem:[#allocation4 + $0x2188] sm:$0xff]  ;;  %v3057_v41 = vld [vmem:[#allocation4 + $0x1fa0] sm:$0xff] }
 0x391   : > { %3154 = vmatprep.subr.mxu1 %v3085_v43  ;;  %3248 = vmatpush1.msra.mxu0 %v3021_v46  ;;  %v3120_v43 = vld [vmem:[#allocation4 + $0x2180] sm:$0xff]  ;;  %v3056_v46 = vld [vmem:[#allocation4 + $0x1f98] sm:$0xff] }
 0x392   : > { %3155 = vmatpush1.msra.mxu1 %v3084_v48  ;;  %3249 = vmatprep.subr.mxu0 %v3020_v49  ;;  %v3119_v48 = vld [vmem:[#allocation4 + $0x2178] sm:$0xff]  ;;  %v3055_v49 = vld [vmem:[#allocation4 + $0x1f90] sm:$0xff] }
 0x393   : > { %3156 = vmatprep.subr.mxu1 %v3083_v16  ;;  %3250 = vmatpush1.msra.mxu0 %v3019_v50  ;;  %v3118_v16 = vld [vmem:[#allocation4 + $0x2170] sm:$0xff]  ;;  %v3054_v50 = vld [vmem:[#allocation4 + $0x1f88] sm:$0xff] }
 0x394   : > { %3157 = vmatpush1.msra.mxu1 %v3082_v47  ;;  %3251 = vmatprep.subr.mxu0 %v3018_v51  ;;  %v3117_v47 = vld [vmem:[#allocation4 + $0x2168] sm:$0xff]  ;;  %v3053_v51 = vld [vmem:[#allocation4 + $0x1f80] sm:$0xff] }
 0x395   : > { %3158 = vmatprep.subr.mxu1 %v3081_v52  ;;  %3252 = vmatpush1.msra.mxu0 %v3017_v54  ;;  %v3116_v52 = vld [vmem:[#allocation4 + $0x2160] sm:$0xff]  ;;  %v3052_v54 = vld [vmem:[#allocation4 + $0x1f78] sm:$0xff] }
 0x396   : > { %3159 = vmatpush1.msra.mxu1 %v3080_v55  ;;  %3253 = vmatprep.subr.mxu0 %v3016_v58  ;;  %v3115_v55 = vld [vmem:[#allocation4 + $0x2158] sm:$0xff]  ;;  %v3051_v58 = vld [vmem:[#allocation4 + $0x1f70] sm:$0xff] }
 0x397   : > { %3160 = vmatprep.subr.mxu1 %v3079_v60  ;;  %3254 = vmatpush1.msra.mxu0 %v3015_v61  ;;  %v3114_v60 = vld [vmem:[#allocation4 + $0x2150] sm:$0xff]  ;;  %v3050_v61 = vld [vmem:[#allocation4 + $0x1f68] sm:$0xff] }
 0x398   : > { %3161 = vmatpush1.msra.mxu1 %v3078_v62  ;;  %3255 = vmatprep.subr.mxu0 %v3014_v0  ;;  %v3113_v62 = vld [vmem:[#allocation4 + $0x2148] sm:$0xff]  ;;  %v3049_v0 = vld [vmem:[#allocation4 + $0x1f60] sm:$0xff] }
 0x399   : > { %3162 = vmatprep.subr.mxu1 %v3077_v1  ;;  %3256 = vmatpush1.msra.mxu0 %v3013_v2  ;;  %v3112_v1 = vld [vmem:[#allocation4 + $0x2140] sm:$0xff]  ;;  %v3048_v2 = vld [vmem:[#allocation4 + $0x1f58] sm:$0xff] }
 0x39a   : > { %3163 = vmatpush1.msra.mxu1 %v3076_v3  ;;  %3257 = vmatprep.subr.mxu0 %v3012_v4  ;;  %v3111_v3 = vld [vmem:[#allocation4 + $0x2138] sm:$0xff]  ;;  %v3047_v4 = vld [vmem:[#allocation4 + $0x1f50] sm:$0xff] }
 0x39b   : > { %3164 = vmatprep.subr.mxu1 %v3075_v5  ;;  %3258 = vmatpush1.msra.mxu0 %v3011_v45  ;;  %v3110_v5 = vld [vmem:[#allocation4 + $0x2130] sm:$0xff]  ;;  %v3046_v45 = vld [vmem:[#allocation4 + $0x1f48] sm:$0xff] }
 0x39c   : > { %3165 = vmatpush1.msra.mxu1 %v3074_v7  ;;  %3259 = vmatprep.subr.mxu0 %v3010_v35  ;;  %v3109_v7 = vld [vmem:[#allocation4 + $0x2128] sm:$0xff]  ;;  %v3045_v35 = vld [vmem:[#allocation4 + $0x1f40] sm:$0xff] }
 0x39d   : > { %3166 = vmatprep.subr.mxu1 %v3073_v8  ;;  %3260 = vmatpush1.msra.mxu0 %v3009_v13  ;;  %v3108_v8 = vld [vmem:[#allocation4 + $0x2120] sm:$0xff]  ;;  %v3044_v13 = vld [vmem:[#allocation4 + $0x1f38] sm:$0xff] }
 0x39e   : > { %3167 = vmatpush1.msra.mxu1 %v3072_v9  ;;  %3261 = vmatprep.subr.mxu0 %v3008_v37  ;;  %v3107_v9 = vld [vmem:[#allocation4 + $0x2118] sm:$0xff]  ;;  %v3043_v37 = vld [vmem:[#allocation4 + $0x1f30] sm:$0xff] }
 0x39f   : > { %3168 = vmatprep.subr.mxu1 %v3135_v53  ;;  %3262 = vmatpush1.msra.mxu0 %v3007_v10  ;;  %v3106_v53 = vld [vmem:[#allocation4 + $0x2110] sm:$0xff]  ;;  %v3042_v10 = vld [vmem:[#allocation4 + $0x1f28] sm:$0xff] }
 0x3a0   : > { %3169 = vmatpush2.msra.mxu1 %v3134_v29  ;;  %3263 = vmatprep.subr.mxu0 %v3006_v11  ;;  %v3105_v29 = vld [vmem:[#allocation4 + $0x2108] sm:$0xff]  ;;  %v3041_v11 = vld [vmem:[#allocation4 + $0x1f20] sm:$0xff] }
 0x3a1   : > { %3170 = vmatprep.subr.mxu1 %v3133_v63  ;;  %3264 = vmatpush1.msra.mxu0 %v3005_v6  ;;  %v3104_v63 = vld [vmem:[#allocation4 + $0x2100] sm:$0xff]  ;;  %v3040_v6 = vld [vmem:[#allocation4 + $0x1f18] sm:$0xff] }
 0x3a2   : > { %3171 = vmatpush2.msra.mxu1 %v3132_v15  ;;  %3265 = vmatprep.subr.mxu0 %v3068_v14  ;;  %v3348_v15 = vld [vmem:[#allocation4 + $0x22f8] sm:$0xff]  ;;  %v3039_v14 = vld [vmem:[#allocation4 + $0x1f10] sm:$0xff] }
 0x3a3   : > { %3172 = vmatprep.subr.mxu1 %v3131_v57  ;;  %3266 = vmatpush2.msra.mxu0 %v3067_v38  ;;  %v3038_v57 = vld [vmem:[#allocation4 + $0x1f08] sm:$0xff]  ;;  %v3037_v38 = vld [vmem:[#allocation4 + $0x1f00] sm:$0xff] }
 0x3a4   : > { %3173 = vmatpush2.msra.mxu1 %v3130_v42  ;;  %3267 = vmatprep.subr.mxu0 %v3066_v17 }
 0x3a5   : > { %3174 = vmatprep.subr.mxu1 %v3129_v18  ;;  %3268 = vmatpush2.msra.mxu0 %v3065_v19 }
 0x3a6   : > { %3175 = vmatpush2.msra.mxu1 %v3128_v23  ;;  %3269 = vmatprep.subr.mxu0 %v3064_v44  ;;  %v2461_v23 = vld [vmem:[#allocation6 + $0x3] ss:$8 sm:$0x3] }
 0x3a7   : > { %3176 = vmatprep.subr.mxu1 %v3127_v21  ;;  %3270 = vmatpush2.msra.mxu0 %v3063_v22 }
 0x3a8   : > { %3177 = vmatpush2.msra.mxu1 %v3126_v20  ;;  %3271 = vmatprep.subr.mxu0 %v3062_v24  ;;  %v2466_v24 = vrot.slane %v2461_v23, %v6731_v56 }
 0x3a9   : > { %3178 = vmatprep.subr.mxu1 %v3125_v25  ;;  %3272 = vmatpush2.msra.mxu0 %v3061_v26 }
 0x3aa   : > { %3179 = vmatpush2.msra.mxu1 %v3124_v27  ;;  %3273 = vmatprep.subr.mxu0 %v3060_v30  ;;  %v2470_v30 = vrot.slane %v2461_v23, %v6733_v59  ;;  %v3335_v23 = vld [vmem:[#allocation4 + $0x2290] sm:$0xff] }
 0x3ab   : > { %3180 = vmatprep.subr.mxu1 %v3123_v32  ;;  %3274 = vmatpush2.msra.mxu0 %v3059_v33 }
 0x3ac   : > { %3181 = vmatpush2.msra.mxu1 %v3122_v36  ;;  %3275 = vmatprep.subr.mxu0 %v3058_v39 }
 0x3ad   : > { %3182 = vmatprep.subr.mxu1 %v3121_v40  ;;  %3276 = vmatpush2.msra.mxu0 %v3057_v41 }
 0x3ae   : > { %3183 = vmatpush2.msra.mxu1 %v3120_v43  ;;  %3277 = vmatprep.subr.mxu0 %v3056_v46 }
 0x3af   : > { %3184 = vmatprep.subr.mxu1 %v3119_v48  ;;  %3278 = vmatpush2.msra.mxu0 %v3055_v49  ;;  %v2999_v48 = vld [vmem:[#allocation2] sm:$0x80] }
 0x3b0   : > { %3185 = vmatpush2.msra.mxu1 %v3118_v16  ;;  %3279 = vmatprep.subr.mxu0 %v3054_v50  ;;  %v2998_v50 = vld [vmem:[#allocation2 + $0x30] sm:$0x80] }
 0x3b1   : > { %3186 = vmatprep.subr.mxu1 %v3117_v47  ;;  %3280 = vmatpush2.msra.mxu0 %v3053_v51 }
 0x3b2   : > { %3187 = vmatpush2.msra.mxu1 %v3116_v52  ;;  %3281 = vmatprep.subr.mxu0 %v3052_v54 }
 0x3b3   : > { %3188 = vmatprep.subr.mxu1 %v3115_v55  ;;  %3282 = vmatpush2.msra.mxu0 %v3051_v58  ;;  %v3222_v58 = vrot.slane %v2999_v48, 7  ;;  %v3320_v48 = vld [vmem:[#allocation4 + $0x2218] sm:$0xff] }
 0x3b4   : > { %3189 = vmatpush2.msra.mxu1 %v3114_v60  ;;  %3283 = vmatprep.subr.mxu0 %v3050_v61 }
 0x3b5   : > { %3190 = vmatprep.subr.mxu1 %v3113_v62  ;;  %3284 = vmatpush2.msra.mxu0 %v3049_v0  ;;  %v2179_v42 = vpop.f32.mrf.mxu1  ;;  %v3347_v62 = vld [vmem:[#allocation4 + $0x22f0] sm:$0xff]  ;;  %v3219_v0 = vrot.slane %v2998_v50, 7  ;;  %v3317_v50 = vld [vmem:[#allocation4 + $0x2200] sm:$0xff] }
 0x3b6   : > { %3191 = vmatpush2.msra.mxu1 %v3112_v1  ;;  %3285 = vmatprep.subr.mxu0 %v3048_v2 }
 0x3b7   : > { %3192 = vmatprep.subr.mxu1 %v3111_v3  ;;  %3286 = vmatpush2.msra.mxu0 %v3047_v4  ;;  %v2181_v17 = vpop.f32.mrf.mxu1  ;;  %v3346_v4 = vld [vmem:[#allocation4 + $0x22e8] sm:$0xff] }
 0x3b8   : > { %3193 = vmatpush2.msra.mxu1 %v3110_v5  ;;  %3287 = vmatprep.subr.mxu0 %v3046_v45  ;;  %v2277_v18 = vpop.f32.mrf.mxu0  ;;  %v3345_v5 = vld [vmem:[#allocation4 + $0x22e0] sm:$0xff] }
 0x3b9   : > { %3194 = vmatprep.subr.mxu1 %v3109_v7  ;;  %3288 = vmatpush2.msra.mxu0 %v3045_v35  ;;  %v2278_v22 = vadd.f32 %v2277_v18, %v2179_v42  ;;  %v3337_v42 = vld [vmem:[#allocation4 + $0x22a0] sm:$0xff] }
 0x3ba   : > { %3195 = vmatpush2.msra.mxu1 %v3108_v8  ;;  %3289 = vmatprep.subr.mxu0 %v3044_v13  ;;  %v2185_v19 = vpop.f32.mrf.mxu1  ;;  %v2279_v44 = vpop.f32.mrf.mxu0  ;;  %v3344_v8 = vld [vmem:[#allocation4 + $0x22d8] sm:$0xff] }
 0x3bb   : > { %3196 = vmatprep.subr.mxu1 %v3107_v9  ;;  %3290 = vmatpush2.msra.mxu0 %v3043_v37  ;;  %v2280_v26 = vadd.f32 %v2279_v44, %v2181_v17  ;;  %v3343_v37 = vld [vmem:[#allocation4 + $0x22d0] sm:$0xff]  ;;  %v3336_v17 = vld [vmem:[#allocation4 + $0x2298] sm:$0xff] }
 0x3bc   : > { %3197 = vmatpush2.msra.mxu1 %v3106_v53  ;;  %3291 = vmatprep.subr.mxu0 %v3042_v10  ;;  %v2187_v21 = vpop.f32.mrf.mxu1  ;;  %v3342_v53 = vld [vmem:[#allocation4 + $0x22c8] sm:$0xff]  ;;  %v3341_v10 = vld [vmem:[#allocation4 + $0x22c0] sm:$0xff] }
 0x3bd   : > { %3198 = vmatprep.subr.mxu1 %v3105_v29  ;;  %3292 = vmatpush2.msra.mxu0 %v3041_v11  ;;  %v3340_v11 = vld [vmem:[#allocation4 + $0x22b8] sm:$0xff] }
 0x3be   : > { %3199 = vmatpush2.msra.mxu1 %v3104_v63  ;;  %3293 = vmatprep.subr.mxu0 %v3040_v6 }
 0x3bf   : > { %3401 = vmatprep.subr.mxu1 %v3348_v15  ;;  %3294 = vmatpush2.msra.mxu0 %v3039_v14  ;;  %v3339_v15 = vld [vmem:[#allocation4 + $0x22b0] sm:$0xff]  ;;  %v3338_v14 = vld [vmem:[#allocation4 + $0x22a8] sm:$0xff] }
 0x3c0   : > { %3295 = vmatprep.subr.mxu0 %v3038_v57 }
 0x3c1   : > { %3296 = vmatpush2.msra.mxu0 %v3037_v38 }
 0x3c5   : > { %v2283_v20 = vpop.f32.mrf.mxu0 }
 0x3c6   : > { %v2284_v40 = vadd.f32 %v2283_v20, %v2185_v19 }
 0x3c7   : > { %v2285_v33 = vpop.f32.mrf.mxu0 }
 0x3c8   : > { %v2286_v49 = vadd.f32 %v2285_v33, %v2187_v21  ;;  %v3334_v21 = vld [vmem:[#allocation4 + $0x2288] sm:$0xff]  ;;  %v3327_v33 = vld [vmem:[#allocation4 + $0x2250] sm:$0xff] }
 0x3f8   : > { %v2445_v25 = vpop.f32.mrf.mxu1 }
 0x3f9   : > { %v2456_v27 = vadd.f32 %v2445_v25, %v2278_v22  ;;  %v3333_v22 = vld [vmem:[#allocation4 + $0x2280] sm:$0xff] }
 0x3fa   : > { %v2447_v32 = vpop.f32.mrf.mxu1 }
 0x3fb   : > { %v2473_v36 = vadd.f32 %v2466_v24, %v2456_v27  ;;  %v2457_v39 = vadd.f32 %v2447_v32, %v2280_v26  ;;  %v3331_v26 = vld [vmem:[#allocation4 + $0x2270] sm:$0xff]  ;;  %v3330_v27 = vld [vmem:[#allocation4 + $0x2268] sm:$0xff]  ;;  %v3328_v32 = vld [vmem:[#allocation4 + $0x2258] sm:$0xff] }
 0x3fd   : > { %vm2477_vm5 = vcmp.ge.f32.partialorder %v2473_v36, 0.0  ;;  %v2481_v41 = vmul.f32 0.2, %v2473_v36  ;;  %v2474_v43 = vadd.f32 %v2470_v30, %v2457_v39  ;;  %v2451_v46 = vpop.f32.mrf.mxu1  ;;  %v3325_v39 = vld [vmem:[#allocation4 + $0x2240] sm:$0xff] }
 0x3fe   : > { %v2458_v16 = vadd.f32 %v2451_v46, %v2284_v40  ;;  %v3324_v40 = vld [vmem:[#allocation4 + $0x2238] sm:$0xff]  ;;  %v3321_v46 = vld [vmem:[#allocation4 + $0x2220] sm:$0xff] }
 0x3ff   : > { %v6890_v47 = vsel %vm2477_vm5, %v2473_v36, %v2481_v41  ;;  %vm2478_vm6 = vcmp.ge.f32.partialorder %v2474_v43, 0.0  ;;  %v2482_v51 = vmul.f32 0.2, %v2474_v43  ;;  %v2453_v52 = vpop.f32.mrf.mxu1  ;;  %v3326_v36 = vld [vmem:[#allocation4 + $0x2248] sm:$0xff]  ;;  %v3323_v41 = vld [vmem:[#allocation4 + $0x2230] sm:$0xff] }
 0x400   : > { %2994 = vst [vmem:[#allocation2 + $0x18] sm:$0xff] %v6890_v47  ;;  %v2475_v54 = vadd.f32 %v2466_v24, %v2458_v16  ;;  %v2459_v55 = vadd.f32 %v2453_v52, %v2286_v49  ;;  %v3220_v61 = vrot.slane %v6890_v47, 7  ;;  %v3332_v24 = vld [vmem:[#allocation4 + $0x2278] sm:$0xff]  ;;  %v3319_v49 = vld [vmem:[#allocation4 + $0x2210] sm:$0xff]  ;;  %v3318_v16 = vld [vmem:[#allocation4 + $0x2208] sm:$0xff] }
 0x401   : > { %v2486_v60 = vsel %vm2478_vm6, %v2474_v43, %v2482_v51  ;;  %v3322_v43 = vld [vmem:[#allocation4 + $0x2228] sm:$0xff]  ;;  %v3379_v51 = vld [vmem:[#allocation4 + $0x23f0] sm:$0xff] }
 0x402   : > { %2995 = vst [vmem:[#allocation2 + $0x10] sm:$0xff] %v2486_v60  ;;  %vm2479_vm7 = vcmp.ge.f32.partialorder %v2475_v54, 0.0  ;;  %v2483_v1 = vmul.f32 0.2, %v2475_v54  ;;  %v2476_v2 = vadd.f32 %v2470_v30, %v2459_v55  ;;  %3200 = vmatprep.mubr.f32.mxu1 %v2486_v60  ;;  %v3223_v3 = vrot.slane %v2486_v60, 7  ;;  %v3329_v30 = vld [vmem:[#allocation4 + $0x2260] sm:$0xff] }
 0x403   : > { %3201 = vmatmul.mubr.f32.vlgmr.msra.gmra.mxu1 %v6890_v47  ;;  %v3221_v13 = vsel %vm640_vm0, %v3219_v0, %v3220_v61  ;;  %v3380_v47 = vld [vmem:[#allocation4 + $0x23f8] sm:$0xff]  ;;  %v3378_v52 = vld [vmem:[#allocation4 + $0x23e8] sm:$0xff]  ;;  %v3371_v0 = vld [vmem:[#allocation4 + $0x23b0] sm:$0xff] }
 0x404   : > { %v6895_v45 = vsel %vm2479_vm7, %v2475_v54, %v2483_v1  ;;  %vm2480_vm8 = vcmp.ge.f32.partialorder %v2476_v2, 0.0  ;;  %v2484_v7 = vmul.f32 0.2, %v2476_v2  ;;  %3402 = vmatpush1.msra.mxu1 %v3347_v62  ;;  %v3224_v35 = vsel %vm640_vm0, %v3222_v58, %v3223_v3  ;;  %v3377_v54 = vld [vmem:[#allocation4 + $0x23e0] sm:$0xff]  ;;  %v3376_v55 = vld [vmem:[#allocation4 + $0x23d8] sm:$0xff]  ;;  %v3375_v58 = vld [vmem:[#allocation4 + $0x23d0] sm:$0xff] }
 0x405   : > { %2996 = vst [vmem:[#allocation2 + $0x8] sm:$0xff] %v6895_v45  ;;  %3403 = vmatprep.subr.mxu1 %v3346_v4  ;;  %3297 = vmatprep.mubr.f32.mxu0 %v3224_v35  ;;  %v3374_v60 = vld [vmem:[#allocation4 + $0x23c8] sm:$0xff]  ;;  %v3372_v62 = vld [vmem:[#allocation4 + $0x23b8] sm:$0xff]  ;;  %v3367_v4 = vld [vmem:[#allocation4 + $0x2390] sm:$0xff] }
 0x406   : > { %v6900_v9 = vsel %vm2480_vm8, %v2476_v2, %v2484_v7  ;;  %3404 = vmatpush1.msra.mxu1 %v3345_v5  ;;  %3298 = vmatmul.mubr.f32.vlgmr.msra.gmra.mxu0 %v3221_v13  ;;  %v3370_v1 = vld [vmem:[#allocation4 + $0x23a8] sm:$0xff]  ;;  %v3369_v2 = vld [vmem:[#allocation4 + $0x23a0] sm:$0xff]  ;;  %v3364_v35 = vld [vmem:[#allocation4 + $0x2378] sm:$0xff] }
 0x407   : > { %2997 = vst [vmem:[#allocation2 + $0x20] sm:$0xff] %v6900_v9  ;;  %3206 = vmatprep.mubr.f32.mxu1 %v6900_v9  ;;  %3405 = vmatprep.subr.mxu1 %v3344_v8  ;;  %v3391_v6 = vrot.slane %v6900_v9, 1  ;;  %v3366_v5 = vld [vmem:[#allocation4 + $0x2388] sm:$0xff]  ;;  %v3365_v7 = vld [vmem:[#allocation4 + $0x2380] sm:$0xff]  ;;  %v3363_v8 = vld [vmem:[#allocation4 + $0x2370] sm:$0xff] }
 0x408   : > { %3207 = vmatmul.mubr.f32.gmra.mxu1 %v6895_v45  ;;  %v3362_v13 = vld [vmem:[#allocation4 + $0x2368] sm:$0xff]  ;;  %v3543_v9 = vld [vmem:[#allocation4 + $0x24f0] sm:$0xff] }
 0x409   : > { %3406 = vmatpush1.msra.mxu1 %v3343_v37  ;;  %v3311_v29 = vld [vmem:[#allocation2 + $0x10] sm:$0xfe]  ;;  %v3361_v37 = vld [vmem:[#allocation4 + $0x2360] sm:$0xff] }
 0x40a   : > { %3407 = vmatprep.subr.mxu1 %v3342_v53  ;;  %v3390_v63 = vrot.slane %v3311_v29, 1  ;;  %v3360_v53 = vld [vmem:[#allocation4 + $0x2358] sm:$0xff]  ;;  %v3358_v29 = vld [vmem:[#allocation4 + $0x2348] sm:$0xff] }
 0x40b   : > { %3408 = vmatpush1.msra.mxu1 %v3341_v10  ;;  %v3359_v10 = vld [vmem:[#allocation4 + $0x2350] sm:$0xff] }
 0x40c   : > { %v3392_v57 = vsel %vm809_vm1, %v3390_v63, %v3391_v6  ;;  %v3002_v38 = vld [vmem:[#allocation2 + $0x8] sm:$0x7f]  ;;  %3409 = vmatprep.subr.mxu1 %v3340_v11  ;;  %v3356_v63 = vld [vmem:[#allocation4 + $0x2338] sm:$0xff] }
 0x40d   : > { %3465 = vmatprep.mubr.f32.mxu1 %v3392_v57  ;;  %3410 = vmatpush1.msra.mxu1 %v3339_v15  ;;  %v3225_v19 = vrot.slane %v3002_v38, 7  ;;  %v3357_v11 = vld [vmem:[#allocation4 + $0x2340] sm:$0xff]  ;;  %v3355_v15 = vld [vmem:[#allocation4 + $0x2330] sm:$0xff]  ;;  %v3310_v38 = vld [vmem:[#allocation2 + $0x18] sm:$0xfe] }
 0x40e   : > { %v3003_v18 = vld [vmem:[#allocation2 + $0x20] sm:$0x7f]  ;;  %3411 = vmatprep.subr.mxu1 %v3338_v14  ;;  %v3354_v14 = vld [vmem:[#allocation4 + $0x2328] sm:$0xff] }
 0x40f   : > { %v3227_v44 = vrot.slane %v3003_v18, 7  ;;  %3412 = vmatpush1.msra.mxu1 %v3337_v42  ;;  %v3226_v25 = vsel %vm640_vm0, %v3220_v61, %v3225_v19  ;;  %v3373_v61 = vld [vmem:[#allocation4 + $0x23c0] sm:$0xff]  ;;  %v3352_v42 = vld [vmem:[#allocation4 + $0x2318] sm:$0xff]  ;;  %v3351_v18 = vld [vmem:[#allocation4 + $0x2310] sm:$0xff] }
 0x410   : > { %3413 = vmatprep.subr.mxu1 %v3336_v17  ;;  %v3353_v57 = vld [vmem:[#allocation4 + $0x2320] sm:$0xff]  ;;  %v3315_v17 = vld [vmem:[#allocation2 + $0x38] sm:$0x1]  ;;  %v3350_v19 = vld [vmem:[#allocation4 + $0x2308] sm:$0xff] }
 0x411   : > { %v3228_v20 = vsel %vm640_vm0, %v3223_v3, %v3227_v44  ;;  %3414 = vmatpush1.msra.mxu1 %v3335_v23  ;;  %v3368_v3 = vld [vmem:[#allocation4 + $0x2398] sm:$0xff]  ;;  %v3387_v23 = vrot.slane %v3310_v38, 1  ;;  %v3349_v44 = vld [vmem:[#allocation4 + $0x2300] sm:$0xff] }
 0x412   : > { %3303 = vmatprep.mubr.f32.mxu0 %v3228_v20  ;;  %3415 = vmatprep.subr.mxu1 %v3334_v21  ;;  %v3395_v21 = vrot.slane %v3315_v17, 1  ;;  %v3388_v20 = vrot.slane %v6895_v45, 1  ;;  %v3608_v45 = vld [vmem:[#allocation4 + $0x26e0] sm:$0xff]  ;;  %v3587_v38 = vld [vmem:[#allocation4 + $0x2638] sm:$0xff]  ;;  %v3586_v17 = vld [vmem:[#allocation4 + $0x2630] sm:$0xff] }
 0x413   : > { %3304 = vmatmul.mubr.f32.gmra.mxu0 %v3226_v25  ;;  %3416 = vmatpush1.msra.mxu1 %v3333_v22  ;;  %v3314_v22 = vld [vmem:[#allocation2 + $0x28] sm:$0x1] }
 0x414   : > { %3417 = vmatprep.subr.mxu1 %v3332_v24  ;;  %v3389_v24 = vsel %vm809_vm1, %v3387_v23, %v3388_v20  ;;  %v3393_v25 = vrot.slane %v3314_v22, 1  ;;  %v3522_v23 = vld [vmem:[#allocation4 + $0x2448] sm:$0xff]  ;;  %v3583_v22 = vld [vmem:[#allocation4 + $0x2618] sm:$0xff] }
 0x415   : > { %3418 = vmatpush1.msra.mxu1 %v3331_v26  ;;  %v3396_v26 = vsel %vm809_vm1, %v3391_v6, %v3395_v21  ;;  %v3542_v6 = vld [vmem:[#allocation4 + $0x24e8] sm:$0xff]  ;;  %v3521_v21 = vld [vmem:[#allocation4 + $0x2440] sm:$0xff] }
 0x416   : > { %3419 = vmatprep.subr.mxu1 %v3330_v27  ;;  %v3394_v27 = vsel %vm809_vm1, %v3388_v20, %v3393_v25  ;;  %v3520_v20 = vld [vmem:[#allocation4 + $0x2438] sm:$0xff]  ;;  %v3519_v25 = vld [vmem:[#allocation4 + $0x2430] sm:$0xff] }
 0x417   : > { %3420 = vmatpush1.msra.mxu1 %v3329_v30  ;;  %v3611_v30 = vld [vmem:[#allocation4 + $0x26f8] sm:$0xff] }
 0x418   : > { %3421 = vmatprep.subr.mxu1 %v3328_v32  ;;  %3644 = vmatprep.subr.mxu0 %v3611_v30  ;;  %v3610_v32 = vld [vmem:[#allocation4 + $0x26f0] sm:$0xff]  ;;  %v3580_v30 = vld [vmem:[#allocation4 + $0x2600] sm:$0xff] }
 0x419   : > { %3422 = vmatpush1.msra.mxu1 %v3327_v33  ;;  %3645 = vmatpush1.msra.mxu0 %v3610_v32  ;;  %v3609_v33 = vld [vmem:[#allocation4 + $0x26e8] sm:$0xff]  ;;  %v3517_v32 = vld [vmem:[#allocation4 + $0x2420] sm:$0xff] }
 0x41a   : > { %3423 = vmatprep.subr.mxu1 %v3326_v36  ;;  %3646 = vmatprep.subr.mxu0 %v3609_v33  ;;  %v3607_v36 = vld [vmem:[#allocation4 + $0x26d8] sm:$0xff] }
 0x41b   : > { %3424 = vmatpush1.msra.mxu1 %v3325_v39  ;;  %3647 = vmatpush1.msra.mxu0 %v3608_v45  ;;  %v3544_v39 = vld [vmem:[#allocation4 + $0x24f8] sm:$0xff] }
 0x41c   : > { %3425 = vmatprep.subr.mxu1 %v3324_v40  ;;  %3648 = vmatprep.subr.mxu0 %v3607_v36  ;;  %v3606_v40 = vld [vmem:[#allocation4 + $0x26d0] sm:$0xff]  ;;  %v3643_v33 = vld [vmem:[#allocation4 + $0x27f8] sm:$0xff] }
 0x41d   : > { %3426 = vmatpush1.msra.mxu1 %v3323_v41  ;;  %v3605_v41 = vld [vmem:[#allocation4 + $0x26c8] sm:$0xff]  ;;  %3649 = vmatpush1.msra.mxu0 %v3606_v40  ;;  %v3516_v45 = vld [vmem:[#allocation4 + $0x2418] sm:$0xff]  ;;  %v3642_v36 = vld [vmem:[#allocation4 + $0x27f0] sm:$0xff] }
 0x41e   : > { %3427 = vmatprep.subr.mxu1 %v3322_v43  ;;  %v3604_v43 = vld [vmem:[#allocation4 + $0x26c0] sm:$0xff]  ;;  %3650 = vmatprep.subr.mxu0 %v3605_v41  ;;  %v3641_v40 = vld [vmem:[#allocation4 + $0x27e8] sm:$0xff] }
 0x41f   : > { %3428 = vmatpush1.msra.mxu1 %v3321_v46  ;;  %v3541_v46 = vld [vmem:[#allocation4 + $0x24e0] sm:$0xff]  ;;  %3651 = vmatpush1.msra.mxu0 %v3604_v43  ;;  %v3639_v43 = vld [vmem:[#allocation4 + $0x27d8] sm:$0xff] }
 0x420   : > { %3429 = vmatprep.subr.mxu1 %v3320_v48  ;;  %v3603_v48 = vld [vmem:[#allocation4 + $0x26b8] sm:$0xff]  ;;  %v3640_v41 = vld [vmem:[#allocation4 + $0x27e0] sm:$0xff] }
 0x421   : > { %3430 = vmatpush1.msra.mxu1 %v3319_v49  ;;  %v3540_v49 = vld [vmem:[#allocation4 + $0x24d8] sm:$0xff]  ;;  %3652 = vmatprep.subr.mxu0 %v3603_v48  ;;  %v3638_v48 = vld [vmem:[#allocation4 + $0x27d0] sm:$0xff] }
 0x422   : > { %3431 = vmatprep.subr.mxu1 %v3318_v16  ;;  %v3602_v16 = vld [vmem:[#allocation4 + $0x26b0] sm:$0xff] }
 0x423   : > { %3432 = vmatpush1.msra.mxu1 %v3317_v50  ;;  %v3539_v50 = vld [vmem:[#allocation4 + $0x24d0] sm:$0xff]  ;;  %3653 = vmatpush1.msra.mxu0 %v3602_v16  ;;  %v3637_v16 = vld [vmem:[#allocation4 + $0x27c8] sm:$0xff] }
 0x424   : > { %3433 = vmatprep.subr.mxu1 %v3380_v47  ;;  %v3601_v47 = vld [vmem:[#allocation4 + $0x26a8] sm:$0xff] }
 0x425   : > { %3434 = vmatpush2.msra.mxu1 %v3379_v51  ;;  %v3538_v51 = vld [vmem:[#allocation4 + $0x24c8] sm:$0xff]  ;;  %3654 = vmatprep.subr.mxu0 %v3601_v47  ;;  %v3636_v47 = vld [vmem:[#allocation4 + $0x27c0] sm:$0xff] }
 0x426   : > { %3435 = vmatprep.subr.mxu1 %v3378_v52  ;;  %v3600_v52 = vld [vmem:[#allocation4 + $0x26a0] sm:$0xff] }
 0x427   : > { %3436 = vmatpush2.msra.mxu1 %v3377_v54  ;;  %v3537_v54 = vld [vmem:[#allocation4 + $0x24c0] sm:$0xff]  ;;  %3655 = vmatpush1.msra.mxu0 %v3600_v52  ;;  %v3635_v52 = vld [vmem:[#allocation4 + $0x27b8] sm:$0xff] }
 0x428   : > { %3437 = vmatprep.subr.mxu1 %v3376_v55  ;;  %v3599_v55 = vld [vmem:[#allocation4 + $0x2698] sm:$0xff] }
 0x429   : > { %3438 = vmatpush2.msra.mxu1 %v3375_v58  ;;  %v3536_v58 = vld [vmem:[#allocation4 + $0x24b8] sm:$0xff]  ;;  %3656 = vmatprep.subr.mxu0 %v3599_v55  ;;  %v3634_v55 = vld [vmem:[#allocation4 + $0x27b0] sm:$0xff] }
 0x42a   : > { %3439 = vmatprep.subr.mxu1 %v3374_v60  ;;  %v3598_v60 = vld [vmem:[#allocation4 + $0x2690] sm:$0xff] }
 0x42b   : > { %3440 = vmatpush2.msra.mxu1 %v3373_v61  ;;  %v3535_v61 = vld [vmem:[#allocation4 + $0x24b0] sm:$0xff]  ;;  %3657 = vmatpush1.msra.mxu0 %v3598_v60  ;;  %v3633_v60 = vld [vmem:[#allocation4 + $0x27a8] sm:$0xff] }
 0x42c   : > { %3441 = vmatprep.subr.mxu1 %v3372_v62  ;;  %v3597_v62 = vld [vmem:[#allocation4 + $0x2688] sm:$0xff] }
 0x42d   : > { %3442 = vmatpush2.msra.mxu1 %v3371_v0  ;;  %v3534_v0 = vld [vmem:[#allocation4 + $0x24a8] sm:$0xff]  ;;  %3658 = vmatprep.subr.mxu0 %v3597_v62  ;;  %v3632_v62 = vld [vmem:[#allocation4 + $0x27a0] sm:$0xff] }
 0x42e   : > { %3443 = vmatprep.subr.mxu1 %v3370_v1  ;;  %v3596_v1 = vld [vmem:[#allocation4 + $0x2680] sm:$0xff] }
 0x42f   : > { %3444 = vmatpush2.msra.mxu1 %v3369_v2  ;;  %v3533_v2 = vld [vmem:[#allocation4 + $0x24a0] sm:$0xff]  ;;  %3659 = vmatpush1.msra.mxu0 %v3596_v1  ;;  %v3631_v1 = vld [vmem:[#allocation4 + $0x2798] sm:$0xff] }
 0x430   : > { %3445 = vmatprep.subr.mxu1 %v3368_v3  ;;  %v3595_v3 = vld [vmem:[#allocation4 + $0x2678] sm:$0xff] }
 0x431   : > { %3446 = vmatpush2.msra.mxu1 %v3367_v4  ;;  %v3532_v4 = vld [vmem:[#allocation4 + $0x2498] sm:$0xff]  ;;  %3660 = vmatprep.subr.mxu0 %v3595_v3  ;;  %v3630_v3 = vld [vmem:[#allocation4 + $0x2790] sm:$0xff] }
 0x432   : > { %3447 = vmatprep.subr.mxu1 %v3366_v5  ;;  %v3594_v5 = vld [vmem:[#allocation4 + $0x2670] sm:$0xff] }
 0x433   : > { %3448 = vmatpush2.msra.mxu1 %v3365_v7  ;;  %v3531_v7 = vld [vmem:[#allocation4 + $0x2490] sm:$0xff]  ;;  %3661 = vmatpush1.msra.mxu0 %v3594_v5  ;;  %v3629_v5 = vld [vmem:[#allocation4 + $0x2788] sm:$0xff] }
 0x434   : > { %3449 = vmatprep.subr.mxu1 %v3364_v35  ;;  %v3593_v35 = vld [vmem:[#allocation4 + $0x2668] sm:$0xff] }
 0x435   : > { %3450 = vmatpush2.msra.mxu1 %v3363_v8  ;;  %v3530_v8 = vld [vmem:[#allocation4 + $0x2488] sm:$0xff]  ;;  %3662 = vmatprep.subr.mxu0 %v3593_v35  ;;  %v3628_v35 = vld [vmem:[#allocation4 + $0x2780] sm:$0xff] }
 0x436   : > { %3451 = vmatprep.subr.mxu1 %v3362_v13  ;;  %v3592_v13 = vld [vmem:[#allocation4 + $0x2660] sm:$0xff] }
 0x437   : > { %3452 = vmatpush2.msra.mxu1 %v3361_v37  ;;  %v3529_v37 = vld [vmem:[#allocation4 + $0x2480] sm:$0xff]  ;;  %3663 = vmatpush1.msra.mxu0 %v3592_v13  ;;  %v3627_v13 = vld [vmem:[#allocation4 + $0x2778] sm:$0xff] }
 0x438   : > { %3453 = vmatprep.subr.mxu1 %v3360_v53  ;;  %v3591_v53 = vld [vmem:[#allocation4 + $0x2658] sm:$0xff] }
 0x439   : > { %3454 = vmatpush2.msra.mxu1 %v3359_v10  ;;  %v3528_v10 = vld [vmem:[#allocation4 + $0x2478] sm:$0xff]  ;;  %3664 = vmatprep.subr.mxu0 %v3591_v53  ;;  %v3626_v53 = vld [vmem:[#allocation4 + $0x2770] sm:$0xff] }
 0x43a   : > { %3455 = vmatprep.subr.mxu1 %v3358_v29  ;;  %v3590_v29 = vld [vmem:[#allocation4 + $0x2650] sm:$0xff] }
 0x43b   : > { %3456 = vmatpush2.msra.mxu1 %v3357_v11  ;;  %v3527_v11 = vld [vmem:[#allocation4 + $0x2470] sm:$0xff]  ;;  %3665 = vmatpush1.msra.mxu0 %v3590_v29  ;;  %v3625_v29 = vld [vmem:[#allocation4 + $0x2768] sm:$0xff] }
 0x43c   : > { %3457 = vmatprep.subr.mxu1 %v3356_v63  ;;  %v3589_v63 = vld [vmem:[#allocation4 + $0x2648] sm:$0xff] }
 0x43d   : > { %3458 = vmatpush2.msra.mxu1 %v3355_v15  ;;  %v3526_v15 = vld [vmem:[#allocation4 + $0x2468] sm:$0xff]  ;;  %3666 = vmatprep.subr.mxu0 %v3589_v63  ;;  %v3624_v63 = vld [vmem:[#allocation4 + $0x2760] sm:$0xff] }
 0x43e   : > { %3459 = vmatprep.subr.mxu1 %v3354_v14  ;;  %v3588_v14 = vld [vmem:[#allocation4 + $0x2640] sm:$0xff] }
 0x43f   : > { %3460 = vmatpush2.msra.mxu1 %v3353_v57  ;;  %v3525_v57 = vld [vmem:[#allocation4 + $0x2460] sm:$0xff]  ;;  %3667 = vmatpush1.msra.mxu0 %v3588_v14  ;;  %v3623_v14 = vld [vmem:[#allocation4 + $0x2758] sm:$0xff] }
 0x440   : > { %3461 = vmatprep.subr.mxu1 %v3352_v42  ;;  %v3524_v42 = vld [vmem:[#allocation4 + $0x2458] sm:$0xff]  ;;  %3668 = vmatprep.subr.mxu0 %v3587_v38  ;;  %v3622_v38 = vld [vmem:[#allocation4 + $0x2750] sm:$0xff] }
 0x441   : > { %3462 = vmatpush2.msra.mxu1 %v3351_v18  ;;  %v3523_v18 = vld [vmem:[#allocation4 + $0x2450] sm:$0xff]  ;;  %3669 = vmatpush1.msra.mxu0 %v3586_v17  ;;  %v3621_v17 = vld [vmem:[#allocation4 + $0x2748] sm:$0xff] }
 0x442   : > { %3463 = vmatprep.subr.mxu1 %v3350_v19  ;;  %v3585_v19 = vld [vmem:[#allocation4 + $0x2628] sm:$0xff] }
 0x443   : > { %3464 = vmatpush2.msra.mxu1 %v3349_v44  ;;  %v3584_v44 = vld [vmem:[#allocation4 + $0x2620] sm:$0xff]  ;;  %3670 = vmatprep.subr.mxu0 %v3585_v19 }
 0x444   : > { %3466 = vmatmul.mubr.f32.vlgmr.msra.gmra.mxu1 %v3389_v24  ;;  %3741 = vmatprep.subr.mxu1 %v3544_v39  ;;  %v3582_v24 = vld [vmem:[#allocation4 + $0x2610] sm:$0xff]  ;;  %v3620_v19 = vld [vmem:[#allocation4 + $0x2740] sm:$0xff] }
 0x445   : > { %3471 = vmatprep.mubr.f32.mxu1 %v3396_v26  ;;  %3742 = vmatpush1.msra.mxu1 %v3543_v9  ;;  %v3581_v26 = vld [vmem:[#allocation4 + $0x2608] sm:$0xff]  ;;  %v3515_v39 = vld [vmem:[#allocation4 + $0x2410] sm:$0xff] }
 0x446   : > { %3743 = vmatprep.subr.mxu1 %v3542_v6  ;;  %3671 = vmatpush1.msra.mxu0 %v3584_v44  ;;  %v3514_v9 = vld [vmem:[#allocation4 + $0x2408] sm:$0xff]  ;;  %v3513_v6 = vld [vmem:[#allocation4 + $0x2400] sm:$0xff]  ;;  %v3619_v44 = vld [vmem:[#allocation4 + $0x2738] sm:$0xff] }
 0x447   : > { %3744 = vmatpush1.msra.mxu1 %v3541_v46  ;;  %3672 = vmatprep.subr.mxu0 %v3583_v22  ;;  %v3576_v46 = vld [vmem:[#allocation4 + $0x25f8] sm:$0xff]  ;;  %v3618_v22 = vld [vmem:[#allocation4 + $0x2730] sm:$0xff] }
 0x448   : > { %3472 = vmatmul.mubr.f32.gmra.mxu1 %v3394_v27  ;;  %3745 = vmatprep.subr.mxu1 %v3540_v49  ;;  %v3518_v27 = vld [vmem:[#allocation4 + $0x2428] sm:$0xff]  ;;  %v3575_v49 = vld [vmem:[#allocation4 + $0x25f0] sm:$0xff] }
 0x449   : > { %3746 = vmatpush1.msra.mxu1 %v3539_v50  ;;  %3673 = vmatpush1.msra.mxu0 %v3582_v24  ;;  %v3574_v50 = vld [vmem:[#allocation4 + $0x25e8] sm:$0xff] }
 0x44a   : > { %3747 = vmatprep.subr.mxu1 %v3538_v51  ;;  %3674 = vmatprep.subr.mxu0 %v3581_v26  ;;  %v3573_v51 = vld [vmem:[#allocation4 + $0x25e0] sm:$0xff]  ;;  %v3617_v24 = vld [vmem:[#allocation4 + $0x2728] sm:$0xff] }
 0x44b   : > { %3748 = vmatpush1.msra.mxu1 %v3537_v54  ;;  %3675 = vmatpush1.msra.mxu0 %v3580_v30  ;;  %v3572_v54 = vld [vmem:[#allocation4 + $0x25d8] sm:$0xff]  ;;  %v3616_v26 = vld [vmem:[#allocation4 + $0x2720] sm:$0xff] }
 0x44c   : > { %3749 = vmatprep.subr.mxu1 %v3536_v58  ;;  %3676 = vmatprep.subr.mxu0 %v3643_v33  ;;  %v3571_v58 = vld [vmem:[#allocation4 + $0x25d0] sm:$0xff]  ;;  %v3615_v30 = vld [vmem:[#allocation4 + $0x2718] sm:$0xff] }
 0x44d   : > { %3750 = vmatpush1.msra.mxu1 %v3535_v61  ;;  %3677 = vmatpush2.msra.mxu0 %v3642_v36  ;;  %v3570_v61 = vld [vmem:[#allocation4 + $0x25c8] sm:$0xff]  ;;  %v3614_v33 = vld [vmem:[#allocation4 + $0x2710] sm:$0xff] }
 0x44e   : > { %3751 = vmatprep.subr.mxu1 %v3534_v0  ;;  %3678 = vmatprep.subr.mxu0 %v3641_v40  ;;  %v3569_v0 = vld [vmem:[#allocation4 + $0x25c0] sm:$0xff]  ;;  %v3613_v36 = vld [vmem:[#allocation4 + $0x2708] sm:$0xff] }
 0x44f   : > { %3752 = vmatpush1.msra.mxu1 %v3533_v2  ;;  %3679 = vmatpush2.msra.mxu0 %v3640_v41  ;;  %v3568_v2 = vld [vmem:[#allocation4 + $0x25b8] sm:$0xff]  ;;  %v3612_v40 = vld [vmem:[#allocation4 + $0x2700] sm:$0xff] }
 0x450   : > { %3753 = vmatprep.subr.mxu1 %v3532_v4  ;;  %3680 = vmatprep.subr.mxu0 %v3639_v43  ;;  %v3567_v4 = vld [vmem:[#allocation4 + $0x25b0] sm:$0xff]  ;;  %v3548_v41 = vld [vmem:[#allocation4 + $0x2518] sm:$0xff] }
 0x451   : > { %3754 = vmatpush1.msra.mxu1 %v3531_v7  ;;  %3681 = vmatpush2.msra.mxu0 %v3638_v48  ;;  %v3566_v7 = vld [vmem:[#allocation4 + $0x25a8] sm:$0xff]  ;;  %v3547_v43 = vld [vmem:[#allocation4 + $0x2510] sm:$0xff]  ;;  %v3545_v48 = vld [vmem:[#allocation4 + $0x2500] sm:$0xff] }
 0x452   : > { %3755 = vmatprep.subr.mxu1 %v3530_v8  ;;  %3682 = vmatprep.subr.mxu0 %v3637_v16  ;;  %v3565_v8 = vld [vmem:[#allocation4 + $0x25a0] sm:$0xff] }
 0x453   : > { %3756 = vmatpush1.msra.mxu1 %v3529_v37  ;;  %3683 = vmatpush2.msra.mxu0 %v3636_v47  ;;  %v3564_v37 = vld [vmem:[#allocation4 + $0x2598] sm:$0xff] }
 0x454   : > { %3757 = vmatprep.subr.mxu1 %v3528_v10  ;;  %3684 = vmatprep.subr.mxu0 %v3635_v52  ;;  %v3563_v10 = vld [vmem:[#allocation4 + $0x2590] sm:$0xff] }
 0x455   : > { %3758 = vmatpush1.msra.mxu1 %v3527_v11  ;;  %3685 = vmatpush2.msra.mxu0 %v3634_v55  ;;  %v3562_v11 = vld [vmem:[#allocation4 + $0x2588] sm:$0xff] }
 0x456   : > { %3759 = vmatprep.subr.mxu1 %v3526_v15  ;;  %3686 = vmatprep.subr.mxu0 %v3633_v60  ;;  %v3561_v15 = vld [vmem:[#allocation4 + $0x2580] sm:$0xff] }
 0x457   : > { %3760 = vmatpush1.msra.mxu1 %v3525_v57  ;;  %3687 = vmatpush2.msra.mxu0 %v3632_v62  ;;  %v3560_v57 = vld [vmem:[#allocation4 + $0x2578] sm:$0xff] }
 0x458   : > { %3761 = vmatprep.subr.mxu1 %v3524_v42  ;;  %3688 = vmatprep.subr.mxu0 %v3631_v1  ;;  %v3559_v42 = vld [vmem:[#allocation4 + $0x2570] sm:$0xff] }
 0x459   : > { %3762 = vmatpush1.msra.mxu1 %v3523_v18  ;;  %3689 = vmatpush2.msra.mxu0 %v3630_v3  ;;  %v3558_v18 = vld [vmem:[#allocation4 + $0x2568] sm:$0xff] }
 0x45a   : > { %3763 = vmatprep.subr.mxu1 %v3522_v23  ;;  %3690 = vmatprep.subr.mxu0 %v3629_v5  ;;  %v3557_v23 = vld [vmem:[#allocation4 + $0x2560] sm:$0xff] }
 0x45b   : > { %3764 = vmatpush1.msra.mxu1 %v3521_v21  ;;  %3691 = vmatpush2.msra.mxu0 %v3628_v35  ;;  %v3556_v21 = vld [vmem:[#allocation4 + $0x2558] sm:$0xff] }
 0x45c   : > { %3765 = vmatprep.subr.mxu1 %v3520_v20  ;;  %3692 = vmatprep.subr.mxu0 %v3627_v13  ;;  %v3555_v20 = vld [vmem:[#allocation4 + $0x2550] sm:$0xff] }
 0x45d   : > { %3766 = vmatpush1.msra.mxu1 %v3519_v25  ;;  %3693 = vmatpush2.msra.mxu0 %v3626_v53  ;;  %v3554_v25 = vld [vmem:[#allocation4 + $0x2548] sm:$0xff] }
 0x45e   : > { %3767 = vmatprep.subr.mxu1 %v3518_v27  ;;  %3694 = vmatprep.subr.mxu0 %v3625_v29  ;;  %v3553_v27 = vld [vmem:[#allocation4 + $0x2540] sm:$0xff] }
 0x45f   : > { %3768 = vmatpush1.msra.mxu1 %v3517_v32  ;;  %3695 = vmatpush2.msra.mxu0 %v3624_v63  ;;  %v3552_v32 = vld [vmem:[#allocation4 + $0x2538] sm:$0xff] }
 0x460   : > { %3769 = vmatprep.subr.mxu1 %v3516_v45  ;;  %3696 = vmatprep.subr.mxu0 %v3623_v14  ;;  %v3551_v45 = vld [vmem:[#allocation4 + $0x2530] sm:$0xff] }
 0x461   : > { %3770 = vmatpush1.msra.mxu1 %v3515_v39  ;;  %3697 = vmatpush2.msra.mxu0 %v3622_v38  ;;  %v3550_v39 = vld [vmem:[#allocation4 + $0x2528] sm:$0xff] }
 0x462   : > { %3771 = vmatprep.subr.mxu1 %v3514_v9  ;;  %3698 = vmatprep.subr.mxu0 %v3621_v17  ;;  %v3549_v9 = vld [vmem:[#allocation4 + $0x2520] sm:$0xff] }
 0x463   : > { %3772 = vmatpush1.msra.mxu1 %v3513_v6  ;;  %3699 = vmatpush2.msra.mxu0 %v3620_v19  ;;  %v3856_v6 = vld [vmem:[#allocation4 + $0x28f8] sm:$0xff] }
 0x464   : > { %3773 = vmatprep.subr.mxu1 %v3576_v46  ;;  %3700 = vmatprep.subr.mxu0 %v3619_v44  ;;  %v3546_v46 = vld [vmem:[#allocation4 + $0x2508] sm:$0xff] }
 0x465   : > { %3774 = vmatpush2.msra.mxu1 %v3575_v49  ;;  %3701 = vmatpush2.msra.mxu0 %v3618_v22  ;;  %v2697_v49 = vpop.f32.mrf.mxu0 }
 0x466   : > { %3775 = vmatprep.subr.mxu1 %v3574_v50  ;;  %3702 = vmatprep.subr.mxu0 %v3617_v24  ;;  %v2794_v50 = vpop.f32.mrf.mxu1 }
 0x467   : > { %3776 = vmatpush2.msra.mxu1 %v3573_v51  ;;  %3703 = vmatpush2.msra.mxu0 %v3616_v26  ;;  %v2699_v16 = vpop.f32.mrf.mxu0 }
 0x468   : > { %3777 = vmatprep.subr.mxu1 %v3572_v54  ;;  %3704 = vmatprep.subr.mxu0 %v3615_v30  ;;  %v2796_v51 = vpop.f32.mrf.mxu1 }
 0x469   : > { %3778 = vmatpush2.msra.mxu1 %v3571_v58  ;;  %3705 = vmatpush2.msra.mxu0 %v3614_v33  ;;  %v2703_v47 = vpop.f32.mrf.mxu0 }
 0x46a   : > { %3779 = vmatprep.subr.mxu1 %v3570_v61  ;;  %3706 = vmatprep.subr.mxu0 %v3613_v36  ;;  %v2800_v55 = vpop.f32.mrf.mxu1 }
 0x46b   : > { %3780 = vmatpush2.msra.mxu1 %v3569_v0  ;;  %3707 = vmatpush2.msra.mxu0 %v3612_v40  ;;  %v2705_v52 = vpop.f32.mrf.mxu0  ;;  %v2801_v35 = vadd.f32 %v2800_v55, %v2703_v47  ;;  %v3507_v40 = vld [vmem:[#allocation2] sm:$0x80] }
 0x46c   : > { %3781 = vmatprep.subr.mxu1 %v3568_v2  ;;  %3909 = vmatprep.subr.mxu0 %v3856_v6  ;;  %v2802_v60 = vpop.f32.mrf.mxu1  ;;  %v2795_v2 = vadd.f32 %v2794_v50, %v2697_v49  ;;  %v3730_v50 = vrot.slane %v3507_v40, 7  ;;  %v3887_v40 = vld [vmem:[#allocation4 + $0x29f0] sm:$0xff] }
 0x46d   : > { %3782 = vmatpush2.msra.mxu1 %v3567_v4  ;;  %v2962_v54 = vpop.f32.mrf.mxu0  ;;  %v2978_v4 = vld [vmem:[#allocation6 + $0x4] ss:$8 sm:$0x3] }
 0x46e   : > { %3783 = vmatprep.subr.mxu1 %v3566_v7  ;;  %v2797_v7 = vadd.f32 %v2796_v51, %v2699_v16  ;;  %v2983_v13 = vrot.slane %v2978_v4, %v6731_v56  ;;  %v2987_v29 = vrot.slane %v2978_v4, %v6733_v59  ;;  %v3849_v4 = vld [vmem:[#allocation4 + $0x28c0] sm:$0xff] }
 0x46f   : > { %3784 = vmatpush2.msra.mxu1 %v3565_v8  ;;  %v2964_v58 = vpop.f32.mrf.mxu0  ;;  %v2973_v8 = vadd.f32 %v2962_v54, %v2795_v2  ;;  %v3851_v2 = vld [vmem:[#allocation4 + $0x28d0] sm:$0xff] }
 0x470   : > { %3785 = vmatprep.subr.mxu1 %v3564_v37 }
 0x471   : > { %3786 = vmatpush2.msra.mxu1 %v3563_v10  ;;  %v2968_v62 = vpop.f32.mrf.mxu0  ;;  %v2974_v10 = vadd.f32 %v2964_v58, %v2797_v7  ;;  %v2990_v38 = vadd.f32 %v2983_v13, %v2973_v8  ;;  %v3847_v8 = vld [vmem:[#allocation4 + $0x28b0] sm:$0xff] }
 0x472   : > { %3787 = vmatprep.subr.mxu1 %v3562_v11  ;;  %v2975_v14 = vadd.f32 %v2968_v62, %v2801_v35 }
 0x473   : > { %3788 = vmatpush2.msra.mxu1 %v3561_v15  ;;  %v2970_v1 = vpop.f32.mrf.mxu0  ;;  %v2803_v15 = vadd.f32 %v2802_v60, %v2705_v52  ;;  %v2991_v19 = vadd.f32 %v2987_v29, %v2974_v10  ;;  %v3855_v52 = vld [vmem:[#allocation4 + $0x28f0] sm:$0xff]  ;;  %v3853_v60 = vld [vmem:[#allocation4 + $0x28e0] sm:$0xff] }
 0x474   : > { %3789 = vmatprep.subr.mxu1 %v3560_v57  ;;  %v3845_v10 = vld [vmem:[#allocation4 + $0x28a0] sm:$0xff] }
 0x475   : > { %3790 = vmatpush2.msra.mxu1 %v3559_v42  ;;  %v2976_v24 = vadd.f32 %v2970_v1, %v2803_v15  ;;  %v3843_v15 = vld [vmem:[#allocation4 + $0x2890] sm:$0xff] }
 0x476   : > { %3791 = vmatprep.subr.mxu1 %v3558_v18 }
 0x477   : > { %3792 = vmatpush2.msra.mxu1 %v3557_v23 }
 0x478   : > { %3793 = vmatprep.subr.mxu1 %v3556_v21 }
 0x479   : > { %3794 = vmatpush2.msra.mxu1 %v3555_v20  ;;  %v2992_v20 = vadd.f32 %v2983_v13, %v2975_v14 }
 0x47a   : > { %3795 = vmatprep.subr.mxu1 %v3554_v25 }
 0x47b   : > { %3796 = vmatpush2.msra.mxu1 %v3553_v27 }
 0x47c   : > { %3797 = vmatprep.subr.mxu1 %v3552_v32 }
 0x47d   : > { %3798 = vmatpush2.msra.mxu1 %v3551_v45 }
 0x47e   : > { %3799 = vmatprep.subr.mxu1 %v3550_v39 }
 0x47f   : > { %3800 = vmatpush2.msra.mxu1 %v3549_v9  ;;  %v2993_v9 = vadd.f32 %v2987_v29, %v2976_v24  ;;  %v3844_v29 = vld [vmem:[#allocation4 + $0x2898] sm:$0xff]  ;;  %v3833_v24 = vld [vmem:[#allocation4 + $0x2840] sm:$0xff] }
 0x480   : > { %3801 = vmatprep.subr.mxu1 %v3548_v41 }
 0x481   : > { %3802 = vmatpush2.msra.mxu1 %v3547_v43  ;;  %v3506_v43 = vld [vmem:[#allocation2 + $0x30] sm:$0x80] }
 0x482   : > { %3803 = vmatprep.subr.mxu1 %v3546_v46  ;;  %v3727_v54 = vrot.slane %v3506_v43, 7  ;;  %v3884_v43 = vld [vmem:[#allocation4 + $0x29d8] sm:$0xff] }
 0x483   : > { %3804 = vmatpush2.msra.mxu1 %v3545_v48 }
 0x4c3   : > { %v3202_v61 = vpop.f32.mrf.mxu1 }
 0x4c5   : > { %v3204_v0 = vpop.f32.mrf.mxu1 }
 0x4c6   : > { %v3299_v3 = vpop.f32.mrf.mxu0 }
 0x4c7   : > { %v3300_v11 = vadd.f32 %v3299_v3, %v3202_v61  ;;  %v3850_v3 = vld [vmem:[#allocation4 + $0x28c8] sm:$0xff] }
 0x4c8   : > { %v3208_v5 = vpop.f32.mrf.mxu1  ;;  %v3301_v37 = vpop.f32.mrf.mxu0 }
 0x4c9   : > { %v3302_v42 = vadd.f32 %v3301_v37, %v3204_v0  ;;  %v3852_v0 = vld [vmem:[#allocation4 + $0x28d8] sm:$0xff]  ;;  %v3846_v37 = vld [vmem:[#allocation4 + $0x28a8] sm:$0xff] }
 0x4ca   : > { %v3210_v53 = vpop.f32.mrf.mxu1 }
 0x4d3   : > { %v3305_v63 = vpop.f32.mrf.mxu0 }
 0x4d4   : > { %v3306_v23 = vadd.f32 %v3305_v63, %v3208_v5 }
 0x4d5   : > { %v3307_v44 = vpop.f32.mrf.mxu0 }
 0x4d6   : > { %v3308_v32 = vadd.f32 %v3307_v44, %v3210_v53  ;;  %v3837_v44 = vld [vmem:[#allocation4 + $0x2860] sm:$0xff] }
 0x504   : > { %v3467_v57 = vpop.f32.mrf.mxu1 }
 0x505   : > { %v3478_v17 = vadd.f32 %v3467_v57, %v3300_v11  ;;  %v3842_v57 = vld [vmem:[#allocation4 + $0x2888] sm:$0xff] }
 0x506   : > { %v3469_v18 = vpop.f32.mrf.mxu1 }
 0x507   : > { %v3482_v21 = vadd.f32 %v3478_v17, %v2990_v38  ;;  %v3479_v22 = vadd.f32 %v3469_v18, %v3302_v42  ;;  %v3841_v38 = vld [vmem:[#allocation4 + $0x2880] sm:$0xff]  ;;  %v3840_v17 = vld [vmem:[#allocation4 + $0x2878] sm:$0xff] }
 0x508   : > { %v3473_v25 = vpop.f32.mrf.mxu1 }
 0x509   : > { %vm3486_vm9 = vcmp.ge.f32.partialorder %v3482_v21, 0.0  ;;  %v3490_v26 = vmul.f32 0.2, %v3482_v21  ;;  %v3483_v27 = vadd.f32 %v3479_v22, %v2991_v19  ;;  %v3480_v30 = vadd.f32 %v3473_v25, %v3306_v23  ;;  %v3839_v19 = vld [vmem:[#allocation4 + $0x2870] sm:$0xff]  ;;  %v3838_v23 = vld [vmem:[#allocation4 + $0x2868] sm:$0xff]  ;;  %v3832_v25 = vld [vmem:[#allocation4 + $0x2838] sm:$0xff] }
 0x50a   : > { %v3475_v33 = vpop.f32.mrf.mxu1  ;;  %v3835_v22 = vld [vmem:[#allocation4 + $0x2850] sm:$0xff] }
 0x50b   : > { %v3494_v45 = vsel %vm3486_vm9, %v3482_v21, %v3490_v26  ;;  %vm3487_vm10 = vcmp.ge.f32.partialorder %v3483_v27, 0.0  ;;  %v3491_v36 = vmul.f32 0.2, %v3483_v27  ;;  %v3484_v39 = vadd.f32 %v3480_v30, %v2992_v20  ;;  %v3836_v21 = vld [vmem:[#allocation4 + $0x2858] sm:$0xff]  ;;  %v3834_v20 = vld [vmem:[#allocation4 + $0x2848] sm:$0xff]  ;;  %v3831_v26 = vld [vmem:[#allocation4 + $0x2830] sm:$0xff] }
 0x50c   : > { %v6920_v41 = vadd.f32 %v3494_v45, %v6696_v31  ;;  %v3481_v6 = vadd.f32 %v3475_v33, %v3308_v32  ;;  %v3829_v30 = vld [vmem:[#allocation4 + $0x2820] sm:$0xff]  ;;  %v3828_v32 = vld [vmem:[#allocation4 + $0x2818] sm:$0xff]  ;;  %v3827_v33 = vld [vmem:[#allocation4 + $0x2810] sm:$0xff] }
 0x50d   : > { %v3495_v46 = vsel %vm3487_vm10, %v3483_v27, %v3491_v36  ;;  %vm3488_vm11 = vcmp.ge.f32.partialorder %v3484_v39, 0.0  ;;  %v3492_v48 = vmul.f32 0.2, %v3484_v39  ;;  %v3830_v27 = vld [vmem:[#allocation4 + $0x2828] sm:$0xff]  ;;  %v3825_v36 = vld [vmem:[#allocation4 + $0x2800] sm:$0xff]  ;;  %vm6518_vm10 = vmmov 0  }
 0x50e   : > { %3502 = vst [vmem:[#allocation2 + $0x18] sm:$0xff] %v6920_v41  ;;  %v6924_v49 = vadd.f32 %v3495_v46, %v6692_v28  ;;  %v3485_v16 = vadd.f32 %v3481_v6, %v2993_v9  ;;  %v3728_v51 = vrot.slane %v6920_v41, 7  ;;  %v3854_v28 = vld [vmem:[#allocation4 + $0x28e8] sm:$0xff]  ;;  %v3885_v6 = vld [vmem:[#allocation4 + $0x29e0] sm:$0xff]  ;;  %v3883_v46 = vld [vmem:[#allocation4 + $0x29d0] sm:$0xff] }
 0x50f   : > { %v3496_v47 = vsel %vm3488_vm11, %v3484_v39, %v3492_v48  ;;  %v3826_v45 = vld [vmem:[#allocation4 + $0x2808] sm:$0xff]  ;;  %v3888_v39 = vld [vmem:[#allocation4 + $0x29f8] sm:$0xff]  ;;  %vm5849_vm11 = vcmask 130048  }
 0x510   : > { %3503 = vst [vmem:[#allocation2 + $0x10] sm:$0xff] %v6924_v49  ;;  %v6929_v31 = vadd.f32 %v6793_v34, %v3496_v47  ;;  %vm3489_vm12 = vcmp.ge.f32.partialorder %v3485_v16, 0.0  ;;  %v3493_v55 = vmul.f32 0.2, %v3485_v16  ;;  %3708 = vmatprep.mubr.f32.mxu0 %v6924_v49  ;;  %v3731_v58 = vrot.slane %v6924_v49, 7  ;;  %v3886_v9 = vld [vmem:[#allocation4 + $0x29e8] sm:$0xff] }
 0x511   : > { %3709 = vmatmul.mubr.f32.vlgmr.msra.gmra.mxu0 %v6920_v41  ;;  %v3729_v1 = vsel %vm640_vm0, %v3727_v54, %v3728_v51  ;;  %v3882_v48 = vld [vmem:[#allocation4 + $0x29c8] sm:$0xff]  ;;  %v3879_v47 = vld [vmem:[#allocation4 + $0x29b0] sm:$0xff]  ;;  %v3876_v54 = vld [vmem:[#allocation4 + $0x2998] sm:$0xff] }
 0x512   : > { %3504 = vst [vmem:[#allocation2 + $0x8] sm:$0xff] %v6929_v31  ;;  %v3497_v61 = vsel %vm3489_vm12, %v3485_v16, %v3493_v55  ;;  %3910 = vmatpush1.msra.mxu0 %v3855_v52  ;;  %v3732_v62 = vsel %vm640_vm0, %v3730_v50, %v3731_v58  ;;  %v3881_v16 = vld [vmem:[#allocation4 + $0x29c0] sm:$0xff]  ;;  %v3880_v50 = vld [vmem:[#allocation4 + $0x29b8] sm:$0xff]  ;;  %v3875_v55 = vld [vmem:[#allocation4 + $0x2990] sm:$0xff] }
 0x513   : > { %v6937_v34 = vadd.f32 %v3497_v61, %v6706_v12  ;;  %3911 = vmatprep.subr.mxu0 %v3854_v28  ;;  %3805 = vmatprep.mubr.f32.mxu1 %v3732_v62  ;;  %v3848_v12 = vld [vmem:[#allocation4 + $0x28b8] sm:$0xff]  ;;  %v3877_v52 = vld [vmem:[#allocation4 + $0x29a0] sm:$0xff]  ;;  %v3871_v61 = vld [vmem:[#allocation4 + $0x2970] sm:$0xff] }
 0x514   : > { %3912 = vmatpush1.msra.mxu0 %v3853_v60  ;;  %3806 = vmatmul.mubr.f32.vlgmr.msra.gmra.mxu1 %v3729_v1  ;;  %v3873_v28 = vld [vmem:[#allocation4 + $0x2980] sm:$0xff]  ;;  %v3872_v60 = vld [vmem:[#allocation4 + $0x2978] sm:$0xff]  ;;  %v3870_v62 = vld [vmem:[#allocation4 + $0x2968] sm:$0xff] }
 0x515   : > { %3505 = vst [vmem:[#allocation2 + $0x20] sm:$0xff] %v6937_v34  ;;  %3714 = vmatprep.mubr.f32.mxu0 %v6937_v34  ;;  %3913 = vmatprep.subr.mxu0 %v3852_v0  ;;  %v3899_v35 = vrot.slane %v6937_v34, 1  ;;  %v3869_v0 = vld [vmem:[#allocation4 + $0x2960] sm:$0xff]  ;;  %v3868_v1 = vld [vmem:[#allocation4 + $0x2958] sm:$0xff] }
 0x516   : > { %3715 = vmatmul.mubr.f32.gmra.mxu0 %v6929_v31 }
 0x517   : > { %3914 = vmatpush1.msra.mxu0 %v3851_v2  ;;  %v3819_v5 = vld [vmem:[#allocation2 + $0x10] sm:$0xfe] }
 0x518   : > { %3915 = vmatprep.subr.mxu0 %v3850_v3  ;;  %v3898_v7 = vrot.slane %v3819_v5, 1  ;;  %v3867_v2 = vld [vmem:[#allocation4 + $0x2950] sm:$0xff]  ;;  %v3866_v3 = vld [vmem:[#allocation4 + $0x2948] sm:$0xff]  ;;  %v3864_v5 = vld [vmem:[#allocation4 + $0x2938] sm:$0xff] }
 0x519   : > { %3916 = vmatpush1.msra.mxu0 %v3849_v4  ;;  %v3510_v13 = vld [vmem:[#allocation2 + $0x8] sm:$0x7f] }
 0x51a   : > { %v3900_v53 = vsel %vm809_vm1, %v3898_v7, %v3899_v35  ;;  %3917 = vmatprep.subr.mxu0 %v3848_v12  ;;  %v3733_v63 = vrot.slane %v3510_v13, 7  ;;  %v3865_v4 = vld [vmem:[#allocation4 + $0x2940] sm:$0xff]  ;;  %v3863_v12 = vld [vmem:[#allocation4 + $0x2930] sm:$0xff]  ;;  %v3862_v7 = vld [vmem:[#allocation4 + $0x2928] sm:$0xff] }
 0x51b   : > { %3973 = vmatprep.mubr.f32.mxu0 %v3900_v53  ;;  %3918 = vmatpush1.msra.mxu0 %v3847_v8  ;;  %v3861_v8 = vld [vmem:[#allocation4 + $0x2920] sm:$0xff]  ;;  %v3818_v13 = vld [vmem:[#allocation2 + $0x18] sm:$0xfe]  ;;  %v3823_v53 = vld [vmem:[#allocation2 + $0x38] sm:$0x1] }
 0x51c   : > { %v3511_v11 = vld [vmem:[#allocation2 + $0x20] sm:$0x7f]  ;;  %3919 = vmatprep.subr.mxu0 %v3846_v37  ;;  %v3734_v18 = vsel %vm640_vm0, %v3728_v51, %v3733_v63  ;;  %v3878_v51 = vld [vmem:[#allocation4 + $0x29a8] sm:$0xff] }
 0x51d   : > { %v3735_v14 = vrot.slane %v3511_v11, 7  ;;  %3920 = vmatpush1.msra.mxu0 %v3845_v10  ;;  %v3860_v37 = vld [vmem:[#allocation4 + $0x2918] sm:$0xff]  ;;  %v3859_v10 = vld [vmem:[#allocation4 + $0x2910] sm:$0xff]  ;;  %v3895_v11 = vrot.slane %v3818_v13, 1  ;;  %v3857_v63 = vld [vmem:[#allocation4 + $0x2900] sm:$0xff] }
 0x51e   : > { %3921 = vmatprep.subr.mxu0 %v3844_v29  ;;  %v3858_v29 = vld [vmem:[#allocation4 + $0x2908] sm:$0xff]  ;;  %v4104_v13 = vld [vmem:[#allocation4 + $0x2c38] sm:$0xff] }
 0x51f   : > { %v3736_v42 = vsel %vm640_vm0, %v3731_v58, %v3735_v14  ;;  %3922 = vmatpush1.msra.mxu0 %v3843_v15  ;;  %v3874_v58 = vld [vmem:[#allocation4 + $0x2988] sm:$0xff]  ;;  %v3903_v15 = vrot.slane %v3823_v53, 1  ;;  %v3822_v14 = vld [vmem:[#allocation2 + $0x28] sm:$0x1]  ;;  %v4103_v53 = vld [vmem:[#allocation4 + $0x2c30] sm:$0xff] }
 0x520   : > { %3811 = vmatprep.mubr.f32.mxu1 %v3736_v42  ;;  %3923 = vmatprep.subr.mxu0 %v3842_v57  ;;  %v3896_v57 = vrot.slane %v6929_v31, 1  ;;  %v3901_v42 = vrot.slane %v3822_v14, 1  ;;  %v4100_v14 = vld [vmem:[#allocation4 + $0x2c18] sm:$0xff] }
 0x521   : > { %3812 = vmatmul.mubr.f32.gmra.mxu1 %v3734_v18  ;;  %3924 = vmatpush1.msra.mxu0 %v3841_v38 }
 0x522   : > { %3925 = vmatprep.subr.mxu0 %v3840_v17  ;;  %v3897_v38 = vsel %vm809_vm1, %v3895_v11, %v3896_v57  ;;  %v3904_v17 = vsel %vm809_vm1, %v3899_v35, %v3903_v15  ;;  %v3902_v18 = vsel %vm809_vm1, %v3896_v57, %v3901_v42  ;;  %v4122_v35 = vld [vmem:[#allocation4 + $0x2cc8] sm:$0xff]  ;;  %v4038_v15 = vld [vmem:[#allocation4 + $0x2a40] sm:$0xff]  ;;  %v4037_v57 = vld [vmem:[#allocation4 + $0x2a38] sm:$0xff] }
 0x523   : > { %3926 = vmatpush1.msra.mxu0 %v3839_v19  ;;  %v4128_v19 = vld [vmem:[#allocation4 + $0x2cf8] sm:$0xff]  ;;  %v4039_v11 = vld [vmem:[#allocation4 + $0x2a48] sm:$0xff]  ;;  %v4036_v42 = vld [vmem:[#allocation4 + $0x2a30] sm:$0xff] }
 0x524   : > { %3927 = vmatprep.subr.mxu0 %v3838_v23  ;;  %4161 = vmatprep.subr.mxu1 %v4128_v19  ;;  %v4127_v23 = vld [vmem:[#allocation4 + $0x2cf0] sm:$0xff]  ;;  %v4097_v19 = vld [vmem:[#allocation4 + $0x2c00] sm:$0xff] }
 0x525   : > { %3928 = vmatpush1.msra.mxu0 %v3837_v44  ;;  %4162 = vmatpush1.msra.mxu1 %v4127_v23  ;;  %v4126_v44 = vld [vmem:[#allocation4 + $0x2ce8] sm:$0xff]  ;;  %v4034_v23 = vld [vmem:[#allocation4 + $0x2a20] sm:$0xff] }
 0x526   : > { %3929 = vmatprep.subr.mxu0 %v3836_v21  ;;  %4163 = vmatprep.subr.mxu1 %v4126_v44  ;;  %v4125_v21 = vld [vmem:[#allocation4 + $0x2ce0] sm:$0xff]  ;;  %v4160_v44 = vld [vmem:[#allocation4 + $0x2df8] sm:$0xff] }
 0x527   : > { %3930 = vmatpush1.msra.mxu0 %v3835_v22  ;;  %4164 = vmatpush1.msra.mxu1 %v4125_v21  ;;  %v4124_v22 = vld [vmem:[#allocation4 + $0x2cd8] sm:$0xff] }
 0x528   : > { %3931 = vmatprep.subr.mxu0 %v3834_v20  ;;  %v4061_v20 = vld [vmem:[#allocation4 + $0x2af8] sm:$0xff]  ;;  %4165 = vmatprep.subr.mxu1 %v4124_v22  ;;  %v4159_v22 = vld [vmem:[#allocation4 + $0x2df0] sm:$0xff] }
 0x529   : > { %3932 = vmatpush1.msra.mxu0 %v3833_v24  ;;  %v4123_v24 = vld [vmem:[#allocation4 + $0x2cd0] sm:$0xff]  ;;  %v4033_v21 = vld [vmem:[#allocation4 + $0x2a18] sm:$0xff] }
 0x52a   : > { %3933 = vmatprep.subr.mxu0 %v3832_v25  ;;  %v4060_v25 = vld [vmem:[#allocation4 + $0x2af0] sm:$0xff]  ;;  %4166 = vmatpush1.msra.mxu1 %v4123_v24  ;;  %v4158_v24 = vld [vmem:[#allocation4 + $0x2de8] sm:$0xff] }
 0x52b   : > { %3934 = vmatpush1.msra.mxu0 %v3831_v26  ;;  %v4059_v26 = vld [vmem:[#allocation4 + $0x2ae8] sm:$0xff]  ;;  %4167 = vmatprep.subr.mxu1 %v4122_v35  ;;  %v4157_v35 = vld [vmem:[#allocation4 + $0x2de0] sm:$0xff] }
 0x52c   : > { %3935 = vmatprep.subr.mxu0 %v3830_v27  ;;  %v4121_v27 = vld [vmem:[#allocation4 + $0x2cc0] sm:$0xff] }
 0x52d   : > { %3936 = vmatpush1.msra.mxu0 %v3829_v30  ;;  %v4058_v30 = vld [vmem:[#allocation4 + $0x2ae0] sm:$0xff]  ;;  %4168 = vmatpush1.msra.mxu1 %v4121_v27  ;;  %v4156_v27 = vld [vmem:[#allocation4 + $0x2dd8] sm:$0xff] }
 0x52e   : > { %3937 = vmatprep.subr.mxu0 %v3828_v32  ;;  %v4120_v32 = vld [vmem:[#allocation4 + $0x2cb8] sm:$0xff] }
 0x52f   : > { %3938 = vmatpush1.msra.mxu0 %v3827_v33  ;;  %v4057_v33 = vld [vmem:[#allocation4 + $0x2ad8] sm:$0xff]  ;;  %4169 = vmatprep.subr.mxu1 %v4120_v32  ;;  %v4155_v32 = vld [vmem:[#allocation4 + $0x2dd0] sm:$0xff] }
 0x530   : > { %3939 = vmatprep.subr.mxu0 %v3826_v45  ;;  %v4119_v45 = vld [vmem:[#allocation4 + $0x2cb0] sm:$0xff] }
 0x531   : > { %3940 = vmatpush1.msra.mxu0 %v3825_v36  ;;  %v4056_v36 = vld [vmem:[#allocation4 + $0x2ad0] sm:$0xff]  ;;  %4170 = vmatpush1.msra.mxu1 %v4119_v45  ;;  %v4154_v45 = vld [vmem:[#allocation4 + $0x2dc8] sm:$0xff] }
 0x532   : > { %3941 = vmatprep.subr.mxu0 %v3888_v39  ;;  %v4118_v39 = vld [vmem:[#allocation4 + $0x2ca8] sm:$0xff] }
 0x533   : > { %3942 = vmatpush2.msra.mxu0 %v3887_v40  ;;  %v4055_v40 = vld [vmem:[#allocation4 + $0x2ac8] sm:$0xff]  ;;  %4171 = vmatprep.subr.mxu1 %v4118_v39  ;;  %v4153_v39 = vld [vmem:[#allocation4 + $0x2dc0] sm:$0xff] }
 0x534   : > { %3943 = vmatprep.subr.mxu0 %v3886_v9  ;;  %v4117_v9 = vld [vmem:[#allocation4 + $0x2ca0] sm:$0xff] }
 0x535   : > { %3944 = vmatpush2.msra.mxu0 %v3885_v6  ;;  %v4054_v6 = vld [vmem:[#allocation4 + $0x2ac0] sm:$0xff]  ;;  %4172 = vmatpush1.msra.mxu1 %v4117_v9  ;;  %v4152_v9 = vld [vmem:[#allocation4 + $0x2db8] sm:$0xff] }
 0x536   : > { %3945 = vmatprep.subr.mxu0 %v3884_v43  ;;  %v4116_v43 = vld [vmem:[#allocation4 + $0x2c98] sm:$0xff] }
 0x537   : > { %3946 = vmatpush2.msra.mxu0 %v3883_v46  ;;  %v4053_v46 = vld [vmem:[#allocation4 + $0x2ab8] sm:$0xff]  ;;  %4173 = vmatprep.subr.mxu1 %v4116_v43  ;;  %v4151_v43 = vld [vmem:[#allocation4 + $0x2db0] sm:$0xff] }
 0x538   : > { %3947 = vmatprep.subr.mxu0 %v3882_v48  ;;  %v4115_v48 = vld [vmem:[#allocation4 + $0x2c90] sm:$0xff] }
 0x539   : > { %3948 = vmatpush2.msra.mxu0 %v3881_v16  ;;  %v4052_v16 = vld [vmem:[#allocation4 + $0x2ab0] sm:$0xff]  ;;  %4174 = vmatpush1.msra.mxu1 %v4115_v48  ;;  %v4150_v48 = vld [vmem:[#allocation4 + $0x2da8] sm:$0xff] }
 0x53a   : > { %3949 = vmatprep.subr.mxu0 %v3880_v50  ;;  %v4114_v50 = vld [vmem:[#allocation4 + $0x2c88] sm:$0xff] }
 0x53b   : > { %3950 = vmatpush2.msra.mxu0 %v3879_v47  ;;  %v4051_v47 = vld [vmem:[#allocation4 + $0x2aa8] sm:$0xff]  ;;  %4175 = vmatprep.subr.mxu1 %v4114_v50  ;;  %v4149_v50 = vld [vmem:[#allocation4 + $0x2da0] sm:$0xff] }
 0x53c   : > { %3951 = vmatprep.subr.mxu0 %v3878_v51  ;;  %v4113_v51 = vld [vmem:[#allocation4 + $0x2c80] sm:$0xff] }
 0x53d   : > { %3952 = vmatpush2.msra.mxu0 %v3877_v52  ;;  %v4050_v52 = vld [vmem:[#allocation4 + $0x2aa0] sm:$0xff]  ;;  %4176 = vmatpush1.msra.mxu1 %v4113_v51  ;;  %v4148_v51 = vld [vmem:[#allocation4 + $0x2d98] sm:$0xff] }
 0x53e   : > { %3953 = vmatprep.subr.mxu0 %v3876_v54  ;;  %v4112_v54 = vld [vmem:[#allocation4 + $0x2c78] sm:$0xff] }
 0x53f   : > { %3954 = vmatpush2.msra.mxu0 %v3875_v55  ;;  %v4049_v55 = vld [vmem:[#allocation4 + $0x2a98] sm:$0xff]  ;;  %4177 = vmatprep.subr.mxu1 %v4112_v54  ;;  %v4147_v54 = vld [vmem:[#allocation4 + $0x2d90] sm:$0xff] }
 0x540   : > { %3955 = vmatprep.subr.mxu0 %v3874_v58  ;;  %v4111_v58 = vld [vmem:[#allocation4 + $0x2c70] sm:$0xff] }
 0x541   : > { %3956 = vmatpush2.msra.mxu0 %v3873_v28  ;;  %v4048_v28 = vld [vmem:[#allocation4 + $0x2a90] sm:$0xff]  ;;  %4178 = vmatpush1.msra.mxu1 %v4111_v58  ;;  %v4146_v58 = vld [vmem:[#allocation4 + $0x2d88] sm:$0xff] }
 0x542   : > { %3957 = vmatprep.subr.mxu0 %v3872_v60  ;;  %v4110_v60 = vld [vmem:[#allocation4 + $0x2c68] sm:$0xff] }
 0x543   : > { %3958 = vmatpush2.msra.mxu0 %v3871_v61  ;;  %v4047_v61 = vld [vmem:[#allocation4 + $0x2a88] sm:$0xff]  ;;  %4179 = vmatprep.subr.mxu1 %v4110_v60  ;;  %v4145_v60 = vld [vmem:[#allocation4 + $0x2d80] sm:$0xff] }
 0x544   : > { %3959 = vmatprep.subr.mxu0 %v3870_v62  ;;  %v4109_v62 = vld [vmem:[#allocation4 + $0x2c60] sm:$0xff] }
 0x545   : > { %3960 = vmatpush2.msra.mxu0 %v3869_v0  ;;  %v4046_v0 = vld [vmem:[#allocation4 + $0x2a80] sm:$0xff]  ;;  %4180 = vmatpush1.msra.mxu1 %v4109_v62  ;;  %v4144_v62 = vld [vmem:[#allocation4 + $0x2d78] sm:$0xff] }
 0x546   : > { %3961 = vmatprep.subr.mxu0 %v3868_v1  ;;  %v4108_v1 = vld [vmem:[#allocation4 + $0x2c58] sm:$0xff] }
 0x547   : > { %3962 = vmatpush2.msra.mxu0 %v3867_v2  ;;  %v4045_v2 = vld [vmem:[#allocation4 + $0x2a78] sm:$0xff]  ;;  %4181 = vmatprep.subr.mxu1 %v4108_v1  ;;  %v4143_v1 = vld [vmem:[#allocation4 + $0x2d70] sm:$0xff] }
 0x548   : > { %3963 = vmatprep.subr.mxu0 %v3866_v3  ;;  %v4107_v3 = vld [vmem:[#allocation4 + $0x2c50] sm:$0xff] }
 0x549   : > { %3964 = vmatpush2.msra.mxu0 %v3865_v4  ;;  %v4044_v4 = vld [vmem:[#allocation4 + $0x2a70] sm:$0xff]  ;;  %4182 = vmatpush1.msra.mxu1 %v4107_v3  ;;  %v4142_v3 = vld [vmem:[#allocation4 + $0x2d68] sm:$0xff] }
 0x54a   : > { %3965 = vmatprep.subr.mxu0 %v3864_v5  ;;  %v4106_v5 = vld [vmem:[#allocation4 + $0x2c48] sm:$0xff] }
 0x54b   : > { %3966 = vmatpush2.msra.mxu0 %v3863_v12  ;;  %v4043_v12 = vld [vmem:[#allocation4 + $0x2a68] sm:$0xff]  ;;  %4183 = vmatprep.subr.mxu1 %v4106_v5  ;;  %v4141_v5 = vld [vmem:[#allocation4 + $0x2d60] sm:$0xff] }
 0x54c   : > { %3967 = vmatprep.subr.mxu0 %v3862_v7  ;;  %v4105_v7 = vld [vmem:[#allocation4 + $0x2c40] sm:$0xff] }
 0x54d   : > { %3968 = vmatpush2.msra.mxu0 %v3861_v8  ;;  %v4042_v8 = vld [vmem:[#allocation4 + $0x2a60] sm:$0xff]  ;;  %4184 = vmatpush1.msra.mxu1 %v4105_v7  ;;  %v4140_v7 = vld [vmem:[#allocation4 + $0x2d58] sm:$0xff] }
 0x54e   : > { %3969 = vmatprep.subr.mxu0 %v3860_v37  ;;  %v4041_v37 = vld [vmem:[#allocation4 + $0x2a58] sm:$0xff]  ;;  %4185 = vmatprep.subr.mxu1 %v4104_v13  ;;  %v4139_v13 = vld [vmem:[#allocation4 + $0x2d50] sm:$0xff] }
 0x54f   : > { %3970 = vmatpush2.msra.mxu0 %v3859_v10  ;;  %v4040_v10 = vld [vmem:[#allocation4 + $0x2a50] sm:$0xff]  ;;  %4186 = vmatpush1.msra.mxu1 %v4103_v53  ;;  %v4138_v53 = vld [vmem:[#allocation4 + $0x2d48] sm:$0xff] }
 0x550   : > { %3971 = vmatprep.subr.mxu0 %v3858_v29  ;;  %v4102_v29 = vld [vmem:[#allocation4 + $0x2c28] sm:$0xff] }
 0x551   : > { %3972 = vmatpush2.msra.mxu0 %v3857_v63  ;;  %v4101_v63 = vld [vmem:[#allocation4 + $0x2c20] sm:$0xff]  ;;  %4187 = vmatprep.subr.mxu1 %v4102_v29 }
 0x552   : > { %3974 = vmatmul.mubr.f32.vlgmr.msra.gmra.mxu0 %v3897_v38  ;;  %4258 = vmatprep.subr.mxu0 %v4061_v20  ;;  %v4099_v38 = vld [vmem:[#allocation4 + $0x2c10] sm:$0xff]  ;;  %v4137_v29 = vld [vmem:[#allocation4 + $0x2d40] sm:$0xff] }
 0x553   : > { %3979 = vmatprep.mubr.f32.mxu0 %v3904_v17  ;;  %4259 = vmatpush1.msra.mxu0 %v4060_v25  ;;  %v4098_v17 = vld [vmem:[#allocation4 + $0x2c08] sm:$0xff]  ;;  %v4032_v20 = vld [vmem:[#allocation4 + $0x2a10] sm:$0xff] }
 0x554   : > { %4260 = vmatprep.subr.mxu0 %v4059_v26  ;;  %4188 = vmatpush1.msra.mxu1 %v4101_v63  ;;  %v4031_v25 = vld [vmem:[#allocation4 + $0x2a08] sm:$0xff]  ;;  %v4030_v26 = vld [vmem:[#allocation4 + $0x2a00] sm:$0xff]  ;;  %v4136_v63 = vld [vmem:[#allocation4 + $0x2d38] sm:$0xff] }
 0x555   : > { %4261 = vmatpush1.msra.mxu0 %v4058_v30  ;;  %4189 = vmatprep.subr.mxu1 %v4100_v14  ;;  %v4093_v30 = vld [vmem:[#allocation4 + $0x2bf8] sm:$0xff]  ;;  %v4135_v14 = vld [vmem:[#allocation4 + $0x2d30] sm:$0xff] }
 0x556   : > { %3980 = vmatmul.mubr.f32.gmra.mxu0 %v3902_v18  ;;  %4262 = vmatprep.subr.mxu0 %v4057_v33  ;;  %v4035_v18 = vld [vmem:[#allocation4 + $0x2a28] sm:$0xff]  ;;  %v4092_v33 = vld [vmem:[#allocation4 + $0x2bf0] sm:$0xff] }
 0x557   : > { %4263 = vmatpush1.msra.mxu0 %v4056_v36  ;;  %4190 = vmatpush1.msra.mxu1 %v4099_v38  ;;  %v4091_v36 = vld [vmem:[#allocation4 + $0x2be8] sm:$0xff] }
 0x558   : > { %4264 = vmatprep.subr.mxu0 %v4055_v40  ;;  %4191 = vmatprep.subr.mxu1 %v4098_v17  ;;  %v4090_v40 = vld [vmem:[#allocation4 + $0x2be0] sm:$0xff]  ;;  %v4134_v38 = vld [vmem:[#allocation4 + $0x2d28] sm:$0xff] }
 0x559   : > { %4265 = vmatpush1.msra.mxu0 %v4054_v6  ;;  %4192 = vmatpush1.msra.mxu1 %v4097_v19  ;;  %v4089_v6 = vld [vmem:[#allocation4 + $0x2bd8] sm:$0xff]  ;;  %v4133_v17 = vld [vmem:[#allocation4 + $0x2d20] sm:$0xff] }
 0x55a   : > { %4266 = vmatprep.subr.mxu0 %v4053_v46  ;;  %4193 = vmatprep.subr.mxu1 %v4160_v44  ;;  %v4088_v46 = vld [vmem:[#allocation4 + $0x2bd0] sm:$0xff]  ;;  %v4132_v19 = vld [vmem:[#allocation4 + $0x2d18] sm:$0xff] }
 0x55b   : > { %4267 = vmatpush1.msra.mxu0 %v4052_v16  ;;  %4194 = vmatpush2.msra.mxu1 %v4159_v22  ;;  %v4087_v16 = vld [vmem:[#allocation4 + $0x2bc8] sm:$0xff]  ;;  %v4131_v44 = vld [vmem:[#allocation4 + $0x2d10] sm:$0xff] }
 0x55c   : > { %4268 = vmatprep.subr.mxu0 %v4051_v47  ;;  %4195 = vmatprep.subr.mxu1 %v4158_v24  ;;  %v4086_v47 = vld [vmem:[#allocation4 + $0x2bc0] sm:$0xff]  ;;  %v4130_v22 = vld [vmem:[#allocation4 + $0x2d08] sm:$0xff] }
 0x55d   : > { %4269 = vmatpush1.msra.mxu0 %v4050_v52  ;;  %4196 = vmatpush2.msra.mxu1 %v4157_v35  ;;  %v4085_v52 = vld [vmem:[#allocation4 + $0x2bb8] sm:$0xff]  ;;  %v4129_v24 = vld [vmem:[#allocation4 + $0x2d00] sm:$0xff] }
 0x55e   : > { %4270 = vmatprep.subr.mxu0 %v4049_v55  ;;  %4197 = vmatprep.subr.mxu1 %v4156_v27  ;;  %v4084_v55 = vld [vmem:[#allocation4 + $0x2bb0] sm:$0xff]  ;;  %v4065_v35 = vld [vmem:[#allocation4 + $0x2b18] sm:$0xff] }
 0x55f   : > { %4271 = vmatpush1.msra.mxu0 %v4048_v28  ;;  %4198 = vmatpush2.msra.mxu1 %v4155_v32  ;;  %v4083_v28 = vld [vmem:[#allocation4 + $0x2ba8] sm:$0xff]  ;;  %v4064_v27 = vld [vmem:[#allocation4 + $0x2b10] sm:$0xff]  ;;  %v4062_v32 = vld [vmem:[#allocation4 + $0x2b00] sm:$0xff] }
 0x560   : > { %4272 = vmatprep.subr.mxu0 %v4047_v61  ;;  %4199 = vmatprep.subr.mxu1 %v4154_v45  ;;  %v4082_v61 = vld [vmem:[#allocation4 + $0x2ba0] sm:$0xff] }
 0x561   : > { %4273 = vmatpush1.msra.mxu0 %v4046_v0  ;;  %4200 = vmatpush2.msra.mxu1 %v4153_v39  ;;  %v4081_v0 = vld [vmem:[#allocation4 + $0x2b98] sm:$0xff] }
 0x562   : > { %4274 = vmatprep.subr.mxu0 %v4045_v2  ;;  %4201 = vmatprep.subr.mxu1 %v4152_v9  ;;  %v4080_v2 = vld [vmem:[#allocation4 + $0x2b90] sm:$0xff] }
 0x563   : > { %4275 = vmatpush1.msra.mxu0 %v4044_v4  ;;  %4202 = vmatpush2.msra.mxu1 %v4151_v43  ;;  %v4079_v4 = vld [vmem:[#allocation4 + $0x2b88] sm:$0xff] }
 0x564   : > { %4276 = vmatprep.subr.mxu0 %v4043_v12  ;;  %4203 = vmatprep.subr.mxu1 %v4150_v48  ;;  %v4078_v12 = vld [vmem:[#allocation4 + $0x2b80] sm:$0xff] }
 0x565   : > { %4277 = vmatpush1.msra.mxu0 %v4042_v8  ;;  %4204 = vmatpush2.msra.mxu1 %v4149_v50  ;;  %v4077_v8 = vld [vmem:[#allocation4 + $0x2b78] sm:$0xff] }
 0x566   : > { %4278 = vmatprep.subr.mxu0 %v4041_v37  ;;  %4205 = vmatprep.subr.mxu1 %v4148_v51  ;;  %v4076_v37 = vld [vmem:[#allocation4 + $0x2b70] sm:$0xff] }
 0x567   : > { %4279 = vmatpush1.msra.mxu0 %v4040_v10  ;;  %4206 = vmatpush2.msra.mxu1 %v4147_v54  ;;  %v4075_v10 = vld [vmem:[#allocation4 + $0x2b68] sm:$0xff] }
 0x568   : > { %4280 = vmatprep.subr.mxu0 %v4039_v11  ;;  %4207 = vmatprep.subr.mxu1 %v4146_v58  ;;  %v4074_v11 = vld [vmem:[#allocation4 + $0x2b60] sm:$0xff] }
 0x569   : > { %4281 = vmatpush1.msra.mxu0 %v4038_v15  ;;  %4208 = vmatpush2.msra.mxu1 %v4145_v60  ;;  %v4073_v15 = vld [vmem:[#allocation4 + $0x2b58] sm:$0xff] }
 0x56a   : > { %4282 = vmatprep.subr.mxu0 %v4037_v57  ;;  %4209 = vmatprep.subr.mxu1 %v4144_v62  ;;  %v4072_v57 = vld [vmem:[#allocation4 + $0x2b50] sm:$0xff] }
 0x56b   : > { %4283 = vmatpush1.msra.mxu0 %v4036_v42  ;;  %4210 = vmatpush2.msra.mxu1 %v4143_v1  ;;  %v4071_v42 = vld [vmem:[#allocation4 + $0x2b48] sm:$0xff] }
 0x56c   : > { %4284 = vmatprep.subr.mxu0 %v4035_v18  ;;  %4211 = vmatprep.subr.mxu1 %v4142_v3  ;;  %v4070_v18 = vld [vmem:[#allocation4 + $0x2b40] sm:$0xff] }
 0x56d   : > { %4285 = vmatpush1.msra.mxu0 %v4034_v23  ;;  %4212 = vmatpush2.msra.mxu1 %v4141_v5  ;;  %v4069_v23 = vld [vmem:[#allocation4 + $0x2b38] sm:$0xff] }
 0x56e   : > { %4286 = vmatprep.subr.mxu0 %v4033_v21  ;;  %4213 = vmatprep.subr.mxu1 %v4140_v7  ;;  %v4068_v21 = vld [vmem:[#allocation4 + $0x2b30] sm:$0xff] }
 0x56f   : > { %4287 = vmatpush1.msra.mxu0 %v4032_v20  ;;  %4214 = vmatpush2.msra.mxu1 %v4139_v13  ;;  %v4067_v20 = vld [vmem:[#allocation4 + $0x2b28] sm:$0xff] }
 0x570   : > { %4288 = vmatprep.subr.mxu0 %v4031_v25  ;;  %4215 = vmatprep.subr.mxu1 %v4138_v53  ;;  %v4066_v25 = vld [vmem:[#allocation4 + $0x2b20] sm:$0xff] }
 0x571   : > { %4289 = vmatpush1.msra.mxu0 %v4030_v26  ;;  %4216 = vmatpush2.msra.mxu1 %v4137_v29  ;;  %v4373_v26 = vld [vmem:[#allocation4 + $0x2ef8] sm:$0xff] }
 0x572   : > { %4290 = vmatprep.subr.mxu0 %v4093_v30  ;;  %4217 = vmatprep.subr.mxu1 %v4136_v63  ;;  %v4063_v30 = vld [vmem:[#allocation4 + $0x2b08] sm:$0xff] }
 0x573   : > { %4291 = vmatpush2.msra.mxu0 %v4092_v33  ;;  %4218 = vmatpush2.msra.mxu1 %v4135_v14  ;;  %v4371_v14 = vld [vmem:[#allocation4 + $0x2ee8] sm:$0xff] }
 0x574   : > { %4292 = vmatprep.subr.mxu0 %v4091_v36  ;;  %4219 = vmatprep.subr.mxu1 %v4134_v38  ;;  %v4370_v38 = vld [vmem:[#allocation4 + $0x2ee0] sm:$0xff] }
 0x575   : > { %4293 = vmatpush2.msra.mxu0 %v4090_v40  ;;  %4220 = vmatpush2.msra.mxu1 %v4133_v17  ;;  %v3991_v40 = vld [vmem:[#allocation6 + $0x5] ss:$8 sm:$0x3] }
 0x576   : > { %4294 = vmatprep.subr.mxu0 %v4089_v6  ;;  %4221 = vmatprep.subr.mxu1 %v4132_v19  ;;  %v3996_v48 = vrot.slane %v3991_v40, %v6731_v56  ;;  %v4000_v51 = vrot.slane %v3991_v40, %v6733_v59  ;;  %v4360_v40 = vld [vmem:[#allocation4 + $0x2e90] sm:$0xff] }
 0x577   : > { %4295 = vmatpush2.msra.mxu0 %v4088_v46  ;;  %4222 = vmatpush2.msra.mxu1 %v4131_v44  ;;  %v4368_v44 = vld [vmem:[#allocation4 + $0x2ed0] sm:$0xff] }
 0x578   : > { %4296 = vmatprep.subr.mxu0 %v4087_v16  ;;  %4223 = vmatprep.subr.mxu1 %v4130_v22  ;;  %v4366_v22 = vld [vmem:[#allocation4 + $0x2ec0] sm:$0xff] }
 0x579   : > { %4297 = vmatpush2.msra.mxu0 %v4086_v47  ;;  %4224 = vmatpush2.msra.mxu1 %v4129_v24  ;;  %v4365_v24 = vld [vmem:[#allocation4 + $0x2eb8] sm:$0xff] }
 0x57a   : > { %4298 = vmatprep.subr.mxu0 %v4085_v52  ;;  %4426 = vmatprep.subr.mxu1 %v4373_v26  ;;  %v4364_v26 = vld [vmem:[#allocation4 + $0x2eb0] sm:$0xff] }
 0x57b   : > { %4299 = vmatpush2.msra.mxu0 %v4084_v55 }
 0x57c   : > { %4300 = vmatprep.subr.mxu0 %v4083_v28 }
 0x57d   : > { %4301 = vmatpush2.msra.mxu0 %v4082_v61  ;;  %v4023_v61 = vld [vmem:[#allocation2 + $0x30] sm:$0x80] }
 0x57e   : > { %4302 = vmatprep.subr.mxu0 %v4081_v0 }
 0x57f   : > { %4303 = vmatpush2.msra.mxu0 %v4080_v2  ;;  %v4024_v2 = vld [vmem:[#allocation2] sm:$0x80] }
 0x580   : > { %4304 = vmatprep.subr.mxu0 %v4079_v4  ;;  %v4247_v13 = vrot.slane %v4024_v2, 7  ;;  %v4343_v2 = vld [vmem:[#allocation4 + $0x2e08] sm:$0xff] }
 0x581   : > { %4305 = vmatpush2.msra.mxu0 %v4078_v12 }
 0x582   : > { %4306 = vmatprep.subr.mxu0 %v4077_v8 }
 0x583   : > { %4307 = vmatpush2.msra.mxu0 %v4076_v37  ;;  %v4244_v37 = vrot.slane %v4023_v61, 7  ;;  %v4347_v61 = vld [vmem:[#allocation4 + $0x2e28] sm:$0xff] }
 0x584   : > { %4308 = vmatprep.subr.mxu0 %v4075_v10 }
 0x585   : > { %4309 = vmatpush2.msra.mxu0 %v4074_v11  ;;  %v4372_v11 = vld [vmem:[#allocation4 + $0x2ef0] sm:$0xff] }
 0x586   : > { %4310 = vmatprep.subr.mxu0 %v4073_v15 }
 0x587   : > { %4311 = vmatpush2.msra.mxu0 %v4072_v57 }
 0x588   : > { %4312 = vmatprep.subr.mxu0 %v4071_v42 }
 0x589   : > { %4313 = vmatpush2.msra.mxu0 %v4070_v18  ;;  %v4369_v18 = vld [vmem:[#allocation4 + $0x2ed8] sm:$0xff] }
 0x58a   : > { %4314 = vmatprep.subr.mxu0 %v4069_v23 }
 0x58b   : > { %4315 = vmatpush2.msra.mxu0 %v4068_v21  ;;  %v4367_v21 = vld [vmem:[#allocation4 + $0x2ec8] sm:$0xff] }
 0x58c   : > { %4316 = vmatprep.subr.mxu0 %v4067_v20 }
 0x58d   : > { %4317 = vmatpush2.msra.mxu0 %v4066_v25 }
 0x58e   : > { %4318 = vmatprep.subr.mxu0 %v4065_v35 }
 0x58f   : > { %4319 = vmatpush2.msra.mxu0 %v4064_v27 }
 0x590   : > { %4320 = vmatprep.subr.mxu0 %v4063_v30  ;;  %v4363_v30 = vld [vmem:[#allocation4 + $0x2ea8] sm:$0xff] }
 0x591   : > { %4321 = vmatpush2.msra.mxu0 %v4062_v32 }
 0x5d1   : > { %v3710_v33 = vpop.f32.mrf.mxu0 }
 0x5d3   : > { %v3712_v45 = vpop.f32.mrf.mxu0 }
 0x5d4   : > { %v3807_v36 = vpop.f32.mrf.mxu1 }
 0x5d5   : > { %v3808_v43 = vadd.f32 %v3807_v36, %v3710_v33  ;;  %v4362_v33 = vld [vmem:[#allocation4 + $0x2ea0] sm:$0xff] }
 0x5d6   : > { %v3716_v39 = vpop.f32.mrf.mxu0  ;;  %v3809_v9 = vpop.f32.mrf.mxu1 }
 0x5d7   : > { %v3810_v50 = vadd.f32 %v3809_v9, %v3712_v45  ;;  %v4361_v45 = vld [vmem:[#allocation4 + $0x2e98] sm:$0xff] }
 0x5d8   : > { %v3718_v6 = vpop.f32.mrf.mxu0 }
 0x5e1   : > { %v3813_v46 = vpop.f32.mrf.mxu1 }
 0x5e2   : > { %v3814_v54 = vadd.f32 %v3813_v46, %v3716_v39 }
 0x5e3   : > { %v3815_v55 = vpop.f32.mrf.mxu1 }
 0x5e4   : > { %v3816_v3 = vadd.f32 %v3815_v55, %v3718_v6  ;;  %v4359_v6 = vld [vmem:[#allocation4 + $0x2e88] sm:$0xff] }
 0x5e5   : > { %v4351_v55 = vld [vmem:[#allocation4 + $0x2e48] sm:$0xff] }
 0x612   : > { %v3975_v16 = vpop.f32.mrf.mxu0 }
 0x613   : > { %v3986_v47 = vadd.f32 %v3975_v16, %v3808_v43  ;;  %v4358_v43 = vld [vmem:[#allocation4 + $0x2e80] sm:$0xff] }
 0x614   : > { %v3977_v52 = vpop.f32.mrf.mxu0 }
 0x615   : > { %v4003_v58 = vadd.f32 %v3996_v48, %v3986_v47  ;;  %v3987_v28 = vadd.f32 %v3977_v52, %v3810_v50  ;;  %v4356_v50 = vld [vmem:[#allocation4 + $0x2e70] sm:$0xff]  ;;  %v4355_v47 = vld [vmem:[#allocation4 + $0x2e68] sm:$0xff]  ;;  %v4353_v52 = vld [vmem:[#allocation4 + $0x2e58] sm:$0xff] }
 0x616   : > { %v3981_v60 = vpop.f32.mrf.mxu0 }
 0x617   : > { %vm4007_vm13 = vcmp.ge.f32.partialorder %v4003_v58, 0.0  ;;  %v4011_v62 = vmul.f32 0.2, %v4003_v58  ;;  %v4004_v0 = vadd.f32 %v4000_v51, %v3987_v28  ;;  %v3988_v1 = vadd.f32 %v3981_v60, %v3814_v54  ;;  %v4352_v54 = vld [vmem:[#allocation4 + $0x2e50] sm:$0xff]  ;;  %v4349_v28 = vld [vmem:[#allocation4 + $0x2e38] sm:$0xff] }
 0x618   : > { %v3983_v4 = vpop.f32.mrf.mxu0  ;;  %v4348_v60 = vld [vmem:[#allocation4 + $0x2e30] sm:$0xff] }
 0x619   : > { %v6957_v5 = vsel %vm4007_vm13, %v4003_v58, %v4011_v62  ;;  %vm4008_vm14 = vcmp.ge.f32.partialorder %v4004_v0, 0.0  ;;  %v4012_v12 = vmul.f32 0.2, %v4004_v0  ;;  %v4005_v7 = vadd.f32 %v3996_v48, %v3988_v1  ;;  %v4357_v48 = vld [vmem:[#allocation4 + $0x2e78] sm:$0xff]  ;;  %v4350_v58 = vld [vmem:[#allocation4 + $0x2e40] sm:$0xff]  ;;  %v4344_v1 = vld [vmem:[#allocation4 + $0x2e10] sm:$0xff] }
 0x61a   : > { %4019 = vst [vmem:[#allocation2 + $0x18] sm:$0xff] %v6957_v5  ;;  %v3989_v8 = vadd.f32 %v3983_v4, %v3816_v3  ;;  %v4245_v29 = vrot.slane %v6957_v5, 7  ;;  %v4346_v62 = vld [vmem:[#allocation4 + $0x2e20] sm:$0xff]  ;;  %v4405_v4 = vld [vmem:[#allocation4 + $0x2ff8] sm:$0xff]  ;;  %vm5928_vm13 = vcmask 7168  }
 0x61b   : > { %v4016_v53 = vsel %vm4008_vm14, %v4004_v0, %v4012_v12  ;;  %vm4009_vm15 = vcmp.ge.f32.partialorder %v4005_v7, 0.0  ;;  %v4013_v10 = vmul.f32 0.2, %v4005_v7  ;;  %v4345_v0 = vld [vmem:[#allocation4 + $0x2e18] sm:$0xff]  ;;  %v4342_v3 = vld [vmem:[#allocation4 + $0x2e00] sm:$0xff]  ;;  %v4403_v12 = vld [vmem:[#allocation4 + $0x2fe8] sm:$0xff] }
 0x61c   : > { %4020 = vst [vmem:[#allocation2 + $0x10] sm:$0xff] %v4016_v53  ;;  %v4006_v63 = vadd.f32 %v4000_v51, %v3989_v8  ;;  %4225 = vmatprep.mubr.f32.mxu1 %v4016_v53  ;;  %v4248_v15 = vrot.slane %v4016_v53, 7  ;;  %v4246_v19 = vsel %vm640_vm0, %v4244_v37, %v4245_v29  ;;  %v4354_v51 = vld [vmem:[#allocation4 + $0x2e60] sm:$0xff]  ;;  %v4401_v8 = vld [vmem:[#allocation4 + $0x2fd8] sm:$0xff]  ;;  %v4399_v37 = vld [vmem:[#allocation4 + $0x2fc8] sm:$0xff] }
 0x61d   : > { %v6961_v57 = vsel %vm4009_vm15, %v4005_v7, %v4013_v10  ;;  %4226 = vmatmul.mubr.f32.vlgmr.msra.gmra.mxu1 %v6957_v5  ;;  %v4404_v5 = vld [vmem:[#allocation4 + $0x2ff0] sm:$0xff]  ;;  %v4402_v7 = vld [vmem:[#allocation4 + $0x2fe0] sm:$0xff]  ;;  %v4397_v10 = vld [vmem:[#allocation4 + $0x2fb8] sm:$0xff] }
 0x61e   : > { %4021 = vst [vmem:[#allocation2 + $0x8] sm:$0xff] %v6961_v57  ;;  %vm4010_vm2 = vcmp.ge.f32.partialorder %v4006_v63, 0.0  ;;  %v4014_v42 = vmul.f32 0.2, %v4006_v63  ;;  %4427 = vmatpush1.msra.mxu1 %v4372_v11  ;;  %v4249_v17 = vsel %vm640_vm0, %v4247_v13, %v4248_v15  ;;  %v4400_v13 = vld [vmem:[#allocation4 + $0x2fd0] sm:$0xff]  ;;  %v4398_v53 = vld [vmem:[#allocation4 + $0x2fc0] sm:$0xff] }
 0x61f   : > { %4428 = vmatprep.subr.mxu1 %v4371_v14  ;;  %4322 = vmatprep.mubr.f32.mxu0 %v4249_v17  ;;  %v4395_v11 = vld [vmem:[#allocation4 + $0x2fa8] sm:$0xff]  ;;  %v4392_v14 = vld [vmem:[#allocation4 + $0x2f90] sm:$0xff]  ;;  %v4389_v17 = vld [vmem:[#allocation4 + $0x2f78] sm:$0xff] }
 0x620   : > { %v6967_v23 = vsel %vm4010_vm2, %v4006_v63, %v4014_v42  ;;  %4429 = vmatpush1.msra.mxu1 %v4370_v38  ;;  %4323 = vmatmul.mubr.f32.vlgmr.msra.gmra.mxu0 %v4246_v19  ;;  %v4394_v63 = vld [vmem:[#allocation4 + $0x2fa0] sm:$0xff]  ;;  %v4391_v38 = vld [vmem:[#allocation4 + $0x2f88] sm:$0xff] }
 0x621   : > { %4022 = vst [vmem:[#allocation2 + $0x20] sm:$0xff] %v6967_v23  ;;  %4231 = vmatprep.mubr.f32.mxu1 %v6967_v23  ;;  %4430 = vmatprep.subr.mxu1 %v4369_v18  ;;  %v4416_v35 = vrot.slane %v6967_v23, 1  ;;  %v4390_v42 = vld [vmem:[#allocation4 + $0x2f80] sm:$0xff]  ;;  %v4388_v18 = vld [vmem:[#allocation4 + $0x2f70] sm:$0xff]  ;;  %v4387_v19 = vld [vmem:[#allocation4 + $0x2f68] sm:$0xff] }
 0x622   : > { %4232 = vmatmul.mubr.f32.gmra.mxu1 %v6961_v57  ;;  %v4573_v23 = vld [vmem:[#allocation4 + $0x30f0] sm:$0xff] }
 0x623   : > { %4431 = vmatpush1.msra.mxu1 %v4368_v44  ;;  %v4336_v20 = vld [vmem:[#allocation2 + $0x10] sm:$0xfe]  ;;  %v4386_v44 = vld [vmem:[#allocation4 + $0x2f60] sm:$0xff] }
 0x624   : > { %4432 = vmatprep.subr.mxu1 %v4367_v21  ;;  %v4415_v25 = vrot.slane %v4336_v20, 1  ;;  %v4385_v21 = vld [vmem:[#allocation4 + $0x2f58] sm:$0xff]  ;;  %v4383_v20 = vld [vmem:[#allocation4 + $0x2f48] sm:$0xff] }
 0x625   : > { %4433 = vmatpush1.msra.mxu1 %v4366_v22  ;;  %v4027_v27 = vld [vmem:[#allocation2 + $0x8] sm:$0x7f]  ;;  %v4384_v22 = vld [vmem:[#allocation4 + $0x2f50] sm:$0xff] }
 0x626   : > { %v4417_v32 = vsel %vm809_vm1, %v4415_v25, %v4416_v35  ;;  %4434 = vmatprep.subr.mxu1 %v4365_v24  ;;  %v4250_v39 = vrot.slane %v4027_v27, 7  ;;  %v4382_v24 = vld [vmem:[#allocation4 + $0x2f40] sm:$0xff]  ;;  %v4381_v25 = vld [vmem:[#allocation4 + $0x2f38] sm:$0xff]  ;;  %v4379_v27 = vld [vmem:[#allocation4 + $0x2f28] sm:$0xff] }
 0x627   : > { %4490 = vmatprep.mubr.f32.mxu1 %v4417_v32  ;;  %4435 = vmatpush1.msra.mxu1 %v4364_v26  ;;  %v4380_v26 = vld [vmem:[#allocation4 + $0x2f30] sm:$0xff]  ;;  %v4335_v32 = vld [vmem:[#allocation2 + $0x18] sm:$0xfe] }
 0x628   : > { %v4028_v36 = vld [vmem:[#allocation2 + $0x20] sm:$0x7f]  ;;  %4436 = vmatprep.subr.mxu1 %v4363_v30  ;;  %v4251_v16 = vsel %vm640_vm0, %v4245_v29, %v4250_v39  ;;  %v4396_v29 = vld [vmem:[#allocation4 + $0x2fb0] sm:$0xff]  ;;  %v4375_v39 = vld [vmem:[#allocation4 + $0x2f08] sm:$0xff] }
 0x629   : > { %v4252_v9 = vrot.slane %v4028_v36, 7  ;;  %4437 = vmatpush1.msra.mxu1 %v4362_v33  ;;  %v4378_v30 = vld [vmem:[#allocation4 + $0x2f20] sm:$0xff]  ;;  %v4377_v33 = vld [vmem:[#allocation4 + $0x2f18] sm:$0xff]  ;;  %v4376_v36 = vld [vmem:[#allocation4 + $0x2f10] sm:$0xff] }
 0x62a   : > { %4438 = vmatprep.subr.mxu1 %v4361_v45  ;;  %v4340_v45 = vld [vmem:[#allocation2 + $0x38] sm:$0x1] }
 0x62b   : > { %v4253_v46 = vsel %vm640_vm0, %v4248_v15, %v4252_v9  ;;  %4439 = vmatpush1.msra.mxu1 %v4360_v40  ;;  %v4393_v15 = vld [vmem:[#allocation4 + $0x2f98] sm:$0xff]  ;;  %v4412_v40 = vrot.slane %v4335_v32, 1  ;;  %v4374_v9 = vld [vmem:[#allocation4 + $0x2f00] sm:$0xff] }
 0x62c   : > { %4328 = vmatprep.mubr.f32.mxu0 %v4253_v46  ;;  %4440 = vmatprep.subr.mxu1 %v4359_v6  ;;  %v4420_v6 = vrot.slane %v4340_v45, 1  ;;  %v4413_v46 = vrot.slane %v6961_v57, 1  ;;  %v4638_v57 = vld [vmem:[#allocation4 + $0x32e0] sm:$0xff]  ;;  %v4617_v32 = vld [vmem:[#allocation4 + $0x3238] sm:$0xff]  ;;  %v4616_v45 = vld [vmem:[#allocation4 + $0x3230] sm:$0xff] }
 0x62d   : > { %4329 = vmatmul.mubr.f32.gmra.mxu0 %v4251_v16  ;;  %4441 = vmatpush1.msra.mxu1 %v4358_v43  ;;  %v4339_v43 = vld [vmem:[#allocation2 + $0x28] sm:$0x1] }
 0x62e   : > { %4442 = vmatprep.subr.mxu1 %v4357_v48  ;;  %v4414_v48 = vsel %vm809_vm1, %v4412_v40, %v4413_v46  ;;  %v4418_v16 = vrot.slane %v4339_v43, 1  ;;  %v4552_v40 = vld [vmem:[#allocation4 + $0x3048] sm:$0xff]  ;;  %v4613_v43 = vld [vmem:[#allocation4 + $0x3218] sm:$0xff] }
 0x62f   : > { %4443 = vmatpush1.msra.mxu1 %v4356_v50  ;;  %v4421_v50 = vsel %vm809_vm1, %v4416_v35, %v4420_v6  ;;  %v4635_v35 = vld [vmem:[#allocation4 + $0x32c8] sm:$0xff]  ;;  %v4551_v6 = vld [vmem:[#allocation4 + $0x3040] sm:$0xff] }
 0x630   : > { %4444 = vmatprep.subr.mxu1 %v4355_v47  ;;  %v4419_v47 = vsel %vm809_vm1, %v4413_v46, %v4418_v16  ;;  %v4550_v46 = vld [vmem:[#allocation4 + $0x3038] sm:$0xff]  ;;  %v4549_v16 = vld [vmem:[#allocation4 + $0x3030] sm:$0xff] }
 0x631   : > { %4445 = vmatpush1.msra.mxu1 %v4354_v51  ;;  %v4641_v51 = vld [vmem:[#allocation4 + $0x32f8] sm:$0xff] }
 0x632   : > { %4446 = vmatprep.subr.mxu1 %v4353_v52  ;;  %4674 = vmatprep.subr.mxu0 %v4641_v51  ;;  %v4640_v52 = vld [vmem:[#allocation4 + $0x32f0] sm:$0xff]  ;;  %v4610_v51 = vld [vmem:[#allocation4 + $0x3200] sm:$0xff] }
 0x633   : > { %4447 = vmatpush1.msra.mxu1 %v4352_v54  ;;  %4675 = vmatpush1.msra.mxu0 %v4640_v52  ;;  %v4639_v54 = vld [vmem:[#allocation4 + $0x32e8] sm:$0xff]  ;;  %v4547_v52 = vld [vmem:[#allocation4 + $0x3020] sm:$0xff] }
 0x634   : > { %4448 = vmatprep.subr.mxu1 %v4351_v55  ;;  %4676 = vmatprep.subr.mxu0 %v4639_v54  ;;  %v4637_v55 = vld [vmem:[#allocation4 + $0x32d8] sm:$0xff] }
 0x635   : > { %4449 = vmatpush1.msra.mxu1 %v4350_v58  ;;  %4677 = vmatpush1.msra.mxu0 %v4638_v57  ;;  %v4574_v58 = vld [vmem:[#allocation4 + $0x30f8] sm:$0xff] }
 0x636   : > { %4450 = vmatprep.subr.mxu1 %v4349_v28  ;;  %4678 = vmatprep.subr.mxu0 %v4637_v55  ;;  %v4636_v28 = vld [vmem:[#allocation4 + $0x32d0] sm:$0xff]  ;;  %v4673_v54 = vld [vmem:[#allocation4 + $0x33f8] sm:$0xff] }
 0x637   : > { %4451 = vmatpush1.msra.mxu1 %v4348_v60  ;;  %4679 = vmatpush1.msra.mxu0 %v4636_v28  ;;  %v4572_v60 = vld [vmem:[#allocation4 + $0x30e8] sm:$0xff]  ;;  %v4546_v57 = vld [vmem:[#allocation4 + $0x3018] sm:$0xff]  ;;  %v4672_v55 = vld [vmem:[#allocation4 + $0x33f0] sm:$0xff] }
 0x638   : > { %4452 = vmatprep.subr.mxu1 %v4347_v61  ;;  %4680 = vmatprep.subr.mxu0 %v4635_v35  ;;  %v4634_v61 = vld [vmem:[#allocation4 + $0x32c0] sm:$0xff]  ;;  %v4671_v28 = vld [vmem:[#allocation4 + $0x33e8] sm:$0xff] }
 0x639   : > { %4453 = vmatpush1.msra.mxu1 %v4346_v62  ;;  %v4571_v62 = vld [vmem:[#allocation4 + $0x30e0] sm:$0xff]  ;;  %4681 = vmatpush1.msra.mxu0 %v4634_v61  ;;  %v4669_v61 = vld [vmem:[#allocation4 + $0x33d8] sm:$0xff] }
 0x63a   : > { %4454 = vmatprep.subr.mxu1 %v4345_v0  ;;  %v4633_v0 = vld [vmem:[#allocation4 + $0x32b8] sm:$0xff]  ;;  %v4670_v35 = vld [vmem:[#allocation4 + $0x33e0] sm:$0xff] }
 0x63b   : > { %4455 = vmatpush1.msra.mxu1 %v4344_v1  ;;  %v4570_v1 = vld [vmem:[#allocation4 + $0x30d8] sm:$0xff]  ;;  %4682 = vmatprep.subr.mxu0 %v4633_v0  ;;  %v4668_v0 = vld [vmem:[#allocation4 + $0x33d0] sm:$0xff] }
 0x63c   : > { %4456 = vmatprep.subr.mxu1 %v4343_v2  ;;  %v4632_v2 = vld [vmem:[#allocation4 + $0x32b0] sm:$0xff] }
 0x63d   : > { %4457 = vmatpush1.msra.mxu1 %v4342_v3  ;;  %v4569_v3 = vld [vmem:[#allocation4 + $0x30d0] sm:$0xff]  ;;  %4683 = vmatpush1.msra.mxu0 %v4632_v2  ;;  %v4667_v2 = vld [vmem:[#allocation4 + $0x33c8] sm:$0xff] }
 0x63e   : > { %4458 = vmatprep.subr.mxu1 %v4405_v4  ;;  %v4631_v4 = vld [vmem:[#allocation4 + $0x32a8] sm:$0xff] }
 0x63f   : > { %4459 = vmatpush2.msra.mxu1 %v4404_v5  ;;  %v4568_v5 = vld [vmem:[#allocation4 + $0x30c8] sm:$0xff]  ;;  %4684 = vmatprep.subr.mxu0 %v4631_v4  ;;  %v4666_v4 = vld [vmem:[#allocation4 + $0x33c0] sm:$0xff] }
 0x640   : > { %4460 = vmatprep.subr.mxu1 %v4403_v12  ;;  %v4630_v12 = vld [vmem:[#allocation4 + $0x32a0] sm:$0xff] }
 0x641   : > { %4461 = vmatpush2.msra.mxu1 %v4402_v7  ;;  %v4567_v7 = vld [vmem:[#allocation4 + $0x30c0] sm:$0xff]  ;;  %4685 = vmatpush1.msra.mxu0 %v4630_v12  ;;  %v4665_v12 = vld [vmem:[#allocation4 + $0x33b8] sm:$0xff] }
 0x642   : > { %4462 = vmatprep.subr.mxu1 %v4401_v8  ;;  %v4629_v8 = vld [vmem:[#allocation4 + $0x3298] sm:$0xff] }
 0x643   : > { %4463 = vmatpush2.msra.mxu1 %v4400_v13  ;;  %v4566_v13 = vld [vmem:[#allocation4 + $0x30b8] sm:$0xff]  ;;  %4686 = vmatprep.subr.mxu0 %v4629_v8  ;;  %v4664_v8 = vld [vmem:[#allocation4 + $0x33b0] sm:$0xff] }
 0x644   : > { %4464 = vmatprep.subr.mxu1 %v4399_v37  ;;  %v4628_v37 = vld [vmem:[#allocation4 + $0x3290] sm:$0xff] }
 0x645   : > { %4465 = vmatpush2.msra.mxu1 %v4398_v53  ;;  %v4565_v53 = vld [vmem:[#allocation4 + $0x30b0] sm:$0xff]  ;;  %4687 = vmatpush1.msra.mxu0 %v4628_v37  ;;  %v4663_v37 = vld [vmem:[#allocation4 + $0x33a8] sm:$0xff] }
 0x646   : > { %4466 = vmatprep.subr.mxu1 %v4397_v10  ;;  %v4627_v10 = vld [vmem:[#allocation4 + $0x3288] sm:$0xff] }
 0x647   : > { %4467 = vmatpush2.msra.mxu1 %v4396_v29  ;;  %v4564_v29 = vld [vmem:[#allocation4 + $0x30a8] sm:$0xff]  ;;  %4688 = vmatprep.subr.mxu0 %v4627_v10  ;;  %v4662_v10 = vld [vmem:[#allocation4 + $0x33a0] sm:$0xff] }
 0x648   : > { %4468 = vmatprep.subr.mxu1 %v4395_v11  ;;  %v4626_v11 = vld [vmem:[#allocation4 + $0x3280] sm:$0xff] }
 0x649   : > { %4469 = vmatpush2.msra.mxu1 %v4394_v63  ;;  %v4563_v63 = vld [vmem:[#allocation4 + $0x30a0] sm:$0xff]  ;;  %4689 = vmatpush1.msra.mxu0 %v4626_v11  ;;  %v4661_v11 = vld [vmem:[#allocation4 + $0x3398] sm:$0xff] }
 0x64a   : > { %4470 = vmatprep.subr.mxu1 %v4393_v15  ;;  %v4625_v15 = vld [vmem:[#allocation4 + $0x3278] sm:$0xff] }
 0x64b   : > { %4471 = vmatpush2.msra.mxu1 %v4392_v14  ;;  %v4562_v14 = vld [vmem:[#allocation4 + $0x3098] sm:$0xff]  ;;  %4690 = vmatprep.subr.mxu0 %v4625_v15  ;;  %v4660_v15 = vld [vmem:[#allocation4 + $0x3390] sm:$0xff] }
 0x64c   : > { %4472 = vmatprep.subr.mxu1 %v4391_v38  ;;  %v4624_v38 = vld [vmem:[#allocation4 + $0x3270] sm:$0xff] }
 0x64d   : > { %4473 = vmatpush2.msra.mxu1 %v4390_v42  ;;  %v4561_v42 = vld [vmem:[#allocation4 + $0x3090] sm:$0xff]  ;;  %4691 = vmatpush1.msra.mxu0 %v4624_v38  ;;  %v4659_v38 = vld [vmem:[#allocation4 + $0x3388] sm:$0xff] }
 0x64e   : > { %4474 = vmatprep.subr.mxu1 %v4389_v17  ;;  %v4623_v17 = vld [vmem:[#allocation4 + $0x3268] sm:$0xff] }
 0x64f   : > { %4475 = vmatpush2.msra.mxu1 %v4388_v18  ;;  %v4560_v18 = vld [vmem:[#allocation4 + $0x3088] sm:$0xff]  ;;  %4692 = vmatprep.subr.mxu0 %v4623_v17  ;;  %v4658_v17 = vld [vmem:[#allocation4 + $0x3380] sm:$0xff] }
 0x650   : > { %4476 = vmatprep.subr.mxu1 %v4387_v19  ;;  %v4622_v19 = vld [vmem:[#allocation4 + $0x3260] sm:$0xff] }
 0x651   : > { %4477 = vmatpush2.msra.mxu1 %v4386_v44  ;;  %v4559_v44 = vld [vmem:[#allocation4 + $0x3080] sm:$0xff]  ;;  %4693 = vmatpush1.msra.mxu0 %v4622_v19  ;;  %v4657_v19 = vld [vmem:[#allocation4 + $0x3378] sm:$0xff] }
 0x652   : > { %4478 = vmatprep.subr.mxu1 %v4385_v21  ;;  %v4621_v21 = vld [vmem:[#allocation4 + $0x3258] sm:$0xff] }
 0x653   : > { %4479 = vmatpush2.msra.mxu1 %v4384_v22  ;;  %v4558_v22 = vld [vmem:[#allocation4 + $0x3078] sm:$0xff]  ;;  %4694 = vmatprep.subr.mxu0 %v4621_v21  ;;  %v4656_v21 = vld [vmem:[#allocation4 + $0x3370] sm:$0xff] }
 0x654   : > { %4480 = vmatprep.subr.mxu1 %v4383_v20  ;;  %v4620_v20 = vld [vmem:[#allocation4 + $0x3250] sm:$0xff] }
 0x655   : > { %4481 = vmatpush2.msra.mxu1 %v4382_v24  ;;  %v4557_v24 = vld [vmem:[#allocation4 + $0x3070] sm:$0xff]  ;;  %4695 = vmatpush1.msra.mxu0 %v4620_v20  ;;  %v4655_v20 = vld [vmem:[#allocation4 + $0x3368] sm:$0xff] }
 0x656   : > { %4482 = vmatprep.subr.mxu1 %v4381_v25  ;;  %v4619_v25 = vld [vmem:[#allocation4 + $0x3248] sm:$0xff] }
 0x657   : > { %4483 = vmatpush2.msra.mxu1 %v4380_v26  ;;  %v4556_v26 = vld [vmem:[#allocation4 + $0x3068] sm:$0xff]  ;;  %4696 = vmatprep.subr.mxu0 %v4619_v25  ;;  %v4654_v25 = vld [vmem:[#allocation4 + $0x3360] sm:$0xff] }
 0x658   : > { %4484 = vmatprep.subr.mxu1 %v4379_v27  ;;  %v4618_v27 = vld [vmem:[#allocation4 + $0x3240] sm:$0xff] }
 0x659   : > { %4485 = vmatpush2.msra.mxu1 %v4378_v30  ;;  %v4555_v30 = vld [vmem:[#allocation4 + $0x3060] sm:$0xff]  ;;  %4697 = vmatpush1.msra.mxu0 %v4618_v27  ;;  %v4653_v27 = vld [vmem:[#allocation4 + $0x3358] sm:$0xff] }
 0x65a   : > { %4486 = vmatprep.subr.mxu1 %v4377_v33  ;;  %v4554_v33 = vld [vmem:[#allocation4 + $0x3058] sm:$0xff]  ;;  %4698 = vmatprep.subr.mxu0 %v4617_v32  ;;  %v4652_v32 = vld [vmem:[#allocation4 + $0x3350] sm:$0xff] }
 0x65b   : > { %4487 = vmatpush2.msra.mxu1 %v4376_v36  ;;  %v4553_v36 = vld [vmem:[#allocation4 + $0x3050] sm:$0xff]  ;;  %4699 = vmatpush1.msra.mxu0 %v4616_v45  ;;  %v4651_v45 = vld [vmem:[#allocation4 + $0x3348] sm:$0xff] }
 0x65c   : > { %4488 = vmatprep.subr.mxu1 %v4375_v39  ;;  %v4615_v39 = vld [vmem:[#allocation4 + $0x3228] sm:$0xff] }
 0x65d   : > { %4489 = vmatpush2.msra.mxu1 %v4374_v9  ;;  %v4614_v9 = vld [vmem:[#allocation4 + $0x3220] sm:$0xff]  ;;  %4700 = vmatprep.subr.mxu0 %v4615_v39 }
 0x65e   : > { %4491 = vmatmul.mubr.f32.vlgmr.msra.gmra.mxu1 %v4414_v48  ;;  %4771 = vmatprep.subr.mxu1 %v4574_v58  ;;  %v4612_v48 = vld [vmem:[#allocation4 + $0x3210] sm:$0xff]  ;;  %v4650_v39 = vld [vmem:[#allocation4 + $0x3340] sm:$0xff] }
 0x65f   : > { %4496 = vmatprep.mubr.f32.mxu1 %v4421_v50  ;;  %4772 = vmatpush1.msra.mxu1 %v4573_v23  ;;  %v4611_v50 = vld [vmem:[#allocation4 + $0x3208] sm:$0xff]  ;;  %v4545_v58 = vld [vmem:[#allocation4 + $0x3010] sm:$0xff] }
 0x660   : > { %4773 = vmatprep.subr.mxu1 %v4572_v60  ;;  %4701 = vmatpush1.msra.mxu0 %v4614_v9  ;;  %v4544_v23 = vld [vmem:[#allocation4 + $0x3008] sm:$0xff]  ;;  %v4543_v60 = vld [vmem:[#allocation4 + $0x3000] sm:$0xff]  ;;  %v4649_v9 = vld [vmem:[#allocation4 + $0x3338] sm:$0xff] }
 0x661   : > { %4774 = vmatpush1.msra.mxu1 %v4571_v62  ;;  %4702 = vmatprep.subr.mxu0 %v4613_v43  ;;  %v4606_v62 = vld [vmem:[#allocation4 + $0x31f8] sm:$0xff]  ;;  %v4648_v43 = vld [vmem:[#allocation4 + $0x3330] sm:$0xff] }
 0x662   : > { %4497 = vmatmul.mubr.f32.gmra.mxu1 %v4419_v47  ;;  %4775 = vmatprep.subr.mxu1 %v4570_v1  ;;  %v4548_v47 = vld [vmem:[#allocation4 + $0x3028] sm:$0xff]  ;;  %v4605_v1 = vld [vmem:[#allocation4 + $0x31f0] sm:$0xff] }
 0x663   : > { %4776 = vmatpush1.msra.mxu1 %v4569_v3  ;;  %4703 = vmatpush1.msra.mxu0 %v4612_v48  ;;  %v4604_v3 = vld [vmem:[#allocation4 + $0x31e8] sm:$0xff] }
 0x664   : > { %4777 = vmatprep.subr.mxu1 %v4568_v5  ;;  %4704 = vmatprep.subr.mxu0 %v4611_v50  ;;  %v4603_v5 = vld [vmem:[#allocation4 + $0x31e0] sm:$0xff]  ;;  %v4647_v48 = vld [vmem:[#allocation4 + $0x3328] sm:$0xff] }
 0x665   : > { %4778 = vmatpush1.msra.mxu1 %v4567_v7  ;;  %4705 = vmatpush1.msra.mxu0 %v4610_v51  ;;  %v4602_v7 = vld [vmem:[#allocation4 + $0x31d8] sm:$0xff]  ;;  %v4646_v50 = vld [vmem:[#allocation4 + $0x3320] sm:$0xff] }
 0x666   : > { %4779 = vmatprep.subr.mxu1 %v4566_v13  ;;  %4706 = vmatprep.subr.mxu0 %v4673_v54  ;;  %v4601_v13 = vld [vmem:[#allocation4 + $0x31d0] sm:$0xff]  ;;  %v4645_v51 = vld [vmem:[#allocation4 + $0x3318] sm:$0xff] }
 0x667   : > { %4780 = vmatpush1.msra.mxu1 %v4565_v53  ;;  %4707 = vmatpush2.msra.mxu0 %v4672_v55  ;;  %v4600_v53 = vld [vmem:[#allocation4 + $0x31c8] sm:$0xff]  ;;  %v4644_v54 = vld [vmem:[#allocation4 + $0x3310] sm:$0xff] }
 0x668   : > { %4781 = vmatprep.subr.mxu1 %v4564_v29  ;;  %4708 = vmatprep.subr.mxu0 %v4671_v28  ;;  %v4599_v29 = vld [vmem:[#allocation4 + $0x31c0] sm:$0xff]  ;;  %v4643_v55 = vld [vmem:[#allocation4 + $0x3308] sm:$0xff] }
 0x669   : > { %4782 = vmatpush1.msra.mxu1 %v4563_v63  ;;  %4709 = vmatpush2.msra.mxu0 %v4670_v35  ;;  %v4598_v63 = vld [vmem:[#allocation4 + $0x31b8] sm:$0xff]  ;;  %v4642_v28 = vld [vmem:[#allocation4 + $0x3300] sm:$0xff] }
 0x66a   : > { %4783 = vmatprep.subr.mxu1 %v4562_v14  ;;  %4710 = vmatprep.subr.mxu0 %v4669_v61  ;;  %v4597_v14 = vld [vmem:[#allocation4 + $0x31b0] sm:$0xff]  ;;  %v4578_v35 = vld [vmem:[#allocation4 + $0x3118] sm:$0xff] }
 0x66b   : > { %4784 = vmatpush1.msra.mxu1 %v4561_v42  ;;  %4711 = vmatpush2.msra.mxu0 %v4668_v0  ;;  %v4596_v42 = vld [vmem:[#allocation4 + $0x31a8] sm:$0xff]  ;;  %v4577_v61 = vld [vmem:[#allocation4 + $0x3110] sm:$0xff]  ;;  %v4575_v0 = vld [vmem:[#allocation4 + $0x3100] sm:$0xff] }
 0x66c   : > { %4785 = vmatprep.subr.mxu1 %v4560_v18  ;;  %4712 = vmatprep.subr.mxu0 %v4667_v2  ;;  %v4595_v18 = vld [vmem:[#allocation4 + $0x31a0] sm:$0xff] }
 0x66d   : > { %4786 = vmatpush1.msra.mxu1 %v4559_v44  ;;  %4713 = vmatpush2.msra.mxu0 %v4666_v4  ;;  %v4594_v44 = vld [vmem:[#allocation4 + $0x3198] sm:$0xff] }
 0x66e   : > { %4787 = vmatprep.subr.mxu1 %v4558_v22  ;;  %4714 = vmatprep.subr.mxu0 %v4665_v12  ;;  %v4593_v22 = vld [vmem:[#allocation4 + $0x3190] sm:$0xff]  ;;  %v4508_v12 = vld [vmem:[#allocation6 + $0x6] ss:$8 sm:$0x3] }
 0x66f   : > { %4788 = vmatpush1.msra.mxu1 %v4557_v24  ;;  %4715 = vmatpush2.msra.mxu0 %v4664_v8  ;;  %v4592_v24 = vld [vmem:[#allocation4 + $0x3188] sm:$0xff] }
 0x670   : > { %4789 = vmatprep.subr.mxu1 %v4556_v26  ;;  %4716 = vmatprep.subr.mxu0 %v4663_v37  ;;  %v4591_v26 = vld [vmem:[#allocation4 + $0x3180] sm:$0xff]  ;;  %v4513_v37 = vrot.slane %v4508_v12, %v6731_v56 }
 0x671   : > { %4790 = vmatpush1.msra.mxu1 %v4555_v30  ;;  %4717 = vmatpush2.msra.mxu0 %v4662_v10  ;;  %v4590_v30 = vld [vmem:[#allocation4 + $0x3178] sm:$0xff] }
 0x672   : > { %4791 = vmatprep.subr.mxu1 %v4554_v33  ;;  %4718 = vmatprep.subr.mxu0 %v4661_v11  ;;  %v4589_v33 = vld [vmem:[#allocation4 + $0x3170] sm:$0xff]  ;;  %v4517_v11 = vrot.slane %v4508_v12, %v6733_v59 }
 0x673   : > { %4792 = vmatpush1.msra.mxu1 %v4553_v36  ;;  %4719 = vmatpush2.msra.mxu0 %v4660_v15  ;;  %v4588_v36 = vld [vmem:[#allocation4 + $0x3168] sm:$0xff] }
 0x674   : > { %4793 = vmatprep.subr.mxu1 %v4552_v40  ;;  %4720 = vmatprep.subr.mxu0 %v4659_v38  ;;  %v4587_v40 = vld [vmem:[#allocation4 + $0x3160] sm:$0xff] }
 0x675   : > { %4794 = vmatpush1.msra.mxu1 %v4551_v6  ;;  %4721 = vmatpush2.msra.mxu0 %v4658_v17  ;;  %v4586_v6 = vld [vmem:[#allocation4 + $0x3158] sm:$0xff] }
 0x676   : > { %4795 = vmatprep.subr.mxu1 %v4550_v46  ;;  %4722 = vmatprep.subr.mxu0 %v4657_v19  ;;  %v4585_v46 = vld [vmem:[#allocation4 + $0x3150] sm:$0xff] }
 0x677   : > { %4796 = vmatpush1.msra.mxu1 %v4549_v16  ;;  %4723 = vmatpush2.msra.mxu0 %v4656_v21  ;;  %v4584_v16 = vld [vmem:[#allocation4 + $0x3148] sm:$0xff] }
 0x678   : > { %4797 = vmatprep.subr.mxu1 %v4548_v47  ;;  %4724 = vmatprep.subr.mxu0 %v4655_v20  ;;  %v4583_v47 = vld [vmem:[#allocation4 + $0x3140] sm:$0xff] }
 0x679   : > { %4798 = vmatpush1.msra.mxu1 %v4547_v52  ;;  %4725 = vmatpush2.msra.mxu0 %v4654_v25  ;;  %v4582_v52 = vld [vmem:[#allocation4 + $0x3138] sm:$0xff]  ;;  %v4537_v20 = vld [vmem:[#allocation2] sm:$0x80] }
 0x67a   : > { %4799 = vmatprep.subr.mxu1 %v4546_v57  ;;  %4726 = vmatprep.subr.mxu0 %v4653_v27  ;;  %v4581_v57 = vld [vmem:[#allocation4 + $0x3130] sm:$0xff] }
 0x67b   : > { %4800 = vmatpush1.msra.mxu1 %v4545_v58  ;;  %4727 = vmatpush2.msra.mxu0 %v4652_v32  ;;  %v4580_v58 = vld [vmem:[#allocation4 + $0x3128] sm:$0xff] }
 0x67c   : > { %4801 = vmatprep.subr.mxu1 %v4544_v23  ;;  %4728 = vmatprep.subr.mxu0 %v4651_v45  ;;  %v4579_v23 = vld [vmem:[#allocation4 + $0x3120] sm:$0xff] }
 0x67d   : > { %4802 = vmatpush1.msra.mxu1 %v4543_v60  ;;  %4729 = vmatpush2.msra.mxu0 %v4650_v39  ;;  %v4886_v60 = vld [vmem:[#allocation4 + $0x34f8] sm:$0xff] }
 0x67e   : > { %4803 = vmatprep.subr.mxu1 %v4606_v62  ;;  %4730 = vmatprep.subr.mxu0 %v4649_v9  ;;  %v4576_v62 = vld [vmem:[#allocation4 + $0x3108] sm:$0xff] }
 0x67f   : > { %4804 = vmatpush2.msra.mxu1 %v4605_v1  ;;  %4731 = vmatpush2.msra.mxu0 %v4648_v43  ;;  %v4884_v43 = vld [vmem:[#allocation4 + $0x34e8] sm:$0xff] }
 0x680   : > { %4805 = vmatprep.subr.mxu1 %v4604_v3  ;;  %4732 = vmatprep.subr.mxu0 %v4647_v48 }
 0x681   : > { %4806 = vmatpush2.msra.mxu1 %v4603_v5  ;;  %4733 = vmatpush2.msra.mxu0 %v4646_v50  ;;  %v4881_v50 = vld [vmem:[#allocation4 + $0x34d0] sm:$0xff] }
 0x682   : > { %4807 = vmatprep.subr.mxu1 %v4602_v7  ;;  %4734 = vmatprep.subr.mxu0 %v4645_v51  ;;  %v4879_v51 = vld [vmem:[#allocation4 + $0x34c0] sm:$0xff] }
 0x683   : > { %4808 = vmatpush2.msra.mxu1 %v4601_v13  ;;  %4735 = vmatpush2.msra.mxu0 %v4644_v54  ;;  %v4878_v54 = vld [vmem:[#allocation4 + $0x34b8] sm:$0xff] }
 0x684   : > { %4809 = vmatprep.subr.mxu1 %v4600_v53  ;;  %4736 = vmatprep.subr.mxu0 %v4643_v55 }
 0x685   : > { %4810 = vmatpush2.msra.mxu1 %v4599_v29  ;;  %4737 = vmatpush2.msra.mxu0 %v4642_v28 }
 0x686   : > { %4811 = vmatprep.subr.mxu1 %v4598_v63  ;;  %4939 = vmatprep.subr.mxu0 %v4886_v60  ;;  %v4875_v60 = vld [vmem:[#allocation4 + $0x34a0] sm:$0xff] }
 0x687   : > { %4812 = vmatpush2.msra.mxu1 %v4597_v14 }
 0x688   : > { %4813 = vmatprep.subr.mxu1 %v4596_v42 }
 0x689   : > { %4814 = vmatpush2.msra.mxu1 %v4595_v18 }
 0x68a   : > { %4815 = vmatprep.subr.mxu1 %v4594_v44 }
 0x68b   : > { %4816 = vmatpush2.msra.mxu1 %v4593_v22 }
 0x68c   : > { %4817 = vmatprep.subr.mxu1 %v4592_v24 }
 0x68d   : > { %4818 = vmatpush2.msra.mxu1 %v4591_v26 }
 0x68e   : > { %4819 = vmatprep.subr.mxu1 %v4590_v30  ;;  %v4536_v30 = vld [vmem:[#allocation2 + $0x30] sm:$0x80] }
 0x68f   : > { %4820 = vmatpush2.msra.mxu1 %v4589_v33  ;;  %v4757_v39 = vrot.slane %v4536_v30, 7  ;;  %v4911_v30 = vld [vmem:[#allocation4 + $0x35c0] sm:$0xff] }
 0x690   : > { %4821 = vmatprep.subr.mxu1 %v4588_v36  ;;  %v4760_v36 = vrot.slane %v4537_v20, 7  ;;  %v4915_v20 = vld [vmem:[#allocation4 + $0x35e0] sm:$0xff] }
 0x691   : > { %4822 = vmatpush2.msra.mxu1 %v4587_v40 }
 0x692   : > { %4823 = vmatprep.subr.mxu1 %v4586_v6 }
 0x693   : > { %4824 = vmatpush2.msra.mxu1 %v4585_v46 }
 0x694   : > { %4825 = vmatprep.subr.mxu1 %v4584_v16  ;;  %v4882_v16 = vld [vmem:[#allocation4 + $0x34d8] sm:$0xff] }
 0x695   : > { %4826 = vmatpush2.msra.mxu1 %v4583_v47  ;;  %v4880_v47 = vld [vmem:[#allocation4 + $0x34c8] sm:$0xff] }
 0x696   : > { %4827 = vmatprep.subr.mxu1 %v4582_v52 }
 0x697   : > { %4828 = vmatpush2.msra.mxu1 %v4581_v57 }
 0x698   : > { %4829 = vmatprep.subr.mxu1 %v4580_v58  ;;  %v4877_v58 = vld [vmem:[#allocation4 + $0x34b0] sm:$0xff] }
 0x699   : > { %4830 = vmatpush2.msra.mxu1 %v4579_v23  ;;  %v4876_v23 = vld [vmem:[#allocation4 + $0x34a8] sm:$0xff] }
 0x69a   : > { %4831 = vmatprep.subr.mxu1 %v4578_v35 }
 0x69b   : > { %4832 = vmatpush2.msra.mxu1 %v4577_v61 }
 0x69c   : > { %4833 = vmatprep.subr.mxu1 %v4576_v62 }
 0x69d   : > { %4834 = vmatpush2.msra.mxu1 %v4575_v0  ;;  %v4874_v0 = vld [vmem:[#allocation4 + $0x3498] sm:$0xff] }
 0x6dd   : > { %v4227_v1 = vpop.f32.mrf.mxu1 }
 0x6df   : > { %v4229_v2 = vpop.f32.mrf.mxu1 }
 0x6e0   : > { %v4324_v3 = vpop.f32.mrf.mxu0 }
 0x6e1   : > { %v4325_v13 = vadd.f32 %v4324_v3, %v4227_v1  ;;  %v4872_v3 = vld [vmem:[#allocation4 + $0x3488] sm:$0xff] }
 0x6e2   : > { %v4233_v4 = vpop.f32.mrf.mxu1  ;;  %v4326_v5 = vpop.f32.mrf.mxu0 }
 0x6e3   : > { %v4327_v10 = vadd.f32 %v4326_v5, %v4229_v2  ;;  %v4873_v2 = vld [vmem:[#allocation4 + $0x3490] sm:$0xff]  ;;  %v4871_v5 = vld [vmem:[#allocation4 + $0x3480] sm:$0xff] }
 0x6e4   : > { %v4235_v7 = vpop.f32.mrf.mxu1 }
 0x6ed   : > { %v4330_v8 = vpop.f32.mrf.mxu0 }
 0x6ee   : > { %v4331_v14 = vadd.f32 %v4330_v8, %v4233_v4  ;;  %v4869_v8 = vld [vmem:[#allocation4 + $0x3470] sm:$0xff] }
 0x6ef   : > { %v4332_v63 = vpop.f32.mrf.mxu0 }
 0x6f0   : > { %v4333_v18 = vadd.f32 %v4332_v63, %v4235_v7  ;;  %v4870_v7 = vld [vmem:[#allocation4 + $0x3478] sm:$0xff] }
 0x6f1   : > { %v4862_v63 = vld [vmem:[#allocation4 + $0x3438] sm:$0xff] }
 0x71e   : > { %v4492_v53 = vpop.f32.mrf.mxu1 }
 0x71f   : > { %v4503_v29 = vadd.f32 %v4492_v53, %v4325_v13  ;;  %v4868_v13 = vld [vmem:[#allocation4 + $0x3468] sm:$0xff]  ;;  %v4866_v53 = vld [vmem:[#allocation4 + $0x3458] sm:$0xff] }
 0x720   : > { %v4494_v15 = vpop.f32.mrf.mxu1 }
 0x721   : > { %v4520_v38 = vadd.f32 %v4513_v37, %v4503_v29  ;;  %v4504_v42 = vadd.f32 %v4494_v15, %v4327_v10  ;;  %v4865_v10 = vld [vmem:[#allocation4 + $0x3450] sm:$0xff]  ;;  %v4864_v29 = vld [vmem:[#allocation4 + $0x3448] sm:$0xff] }
 0x722   : > { %v4498_v17 = vpop.f32.mrf.mxu1  ;;  %v4861_v15 = vld [vmem:[#allocation4 + $0x3430] sm:$0xff] }
 0x723   : > { %v4524_v19 = vadd.f32 %v4520_v38, %v6920_v41  ;;  %v4521_v44 = vadd.f32 %v4517_v11, %v4504_v42  ;;  %v4505_v21 = vadd.f32 %v4498_v17, %v4331_v14  ;;  %v4885_v41 = vld [vmem:[#allocation4 + $0x34f0] sm:$0xff]  ;;  %v4860_v14 = vld [vmem:[#allocation4 + $0x3428] sm:$0xff]  ;;  %v4859_v38 = vld [vmem:[#allocation4 + $0x3420] sm:$0xff] }
 0x724   : > { %v4500_v22 = vpop.f32.mrf.mxu1  ;;  %v4858_v42 = vld [vmem:[#allocation4 + $0x3418] sm:$0xff]  ;;  %v4857_v17 = vld [vmem:[#allocation4 + $0x3410] sm:$0xff] }
 0x725   : > { %v6987_v24 = vmax.f32 %v4524_v19, 0.0  ;;  %v4525_v25 = vadd.f32 %v4521_v44, %v6924_v49  ;;  %v4522_v26 = vadd.f32 %v4513_v37, %v4505_v21  ;;  %v4506_v27 = vadd.f32 %v4500_v22, %v4333_v18  ;;  %v4867_v37 = vld [vmem:[#allocation4 + $0x3460] sm:$0xff]  ;;  %v4856_v18 = vld [vmem:[#allocation4 + $0x3408] sm:$0xff]  ;;  %v4918_v44 = vld [vmem:[#allocation4 + $0x35f8] sm:$0xff] }
 0x726   : > { %v4855_v19 = vld [vmem:[#allocation4 + $0x3400] sm:$0xff]  ;;  %v4917_v21 = vld [vmem:[#allocation4 + $0x35f0] sm:$0xff]  ;;  %v4916_v22 = vld [vmem:[#allocation4 + $0x35e8] sm:$0xff] }
 0x727   : > { %4532 = vst [vmem:[#allocation2 + $0x18] sm:$0xff] %v6987_v24  ;;  %v6991_v32 = vmax.f32 %v4525_v25, 0.0  ;;  %v4526_v33 = vadd.f32 %v4522_v26, %v6929_v31  ;;  %v4523_v45 = vadd.f32 %v4517_v11, %v4506_v27  ;;  %v4758_v6 = vrot.slane %v6987_v24, 7  ;;  %v4883_v31 = vld [vmem:[#allocation4 + $0x34e0] sm:$0xff]  ;;  %v4914_v25 = vld [vmem:[#allocation4 + $0x35d8] sm:$0xff]  ;;  %v4913_v26 = vld [vmem:[#allocation4 + $0x35d0] sm:$0xff] }
 0x728   : > { %v4863_v11 = vld [vmem:[#allocation4 + $0x3440] sm:$0xff]  ;;  %v4912_v27 = vld [vmem:[#allocation4 + $0x35c8] sm:$0xff] }
 0x729   : > { %4533 = vst [vmem:[#allocation2 + $0x10] sm:$0xff] %v6991_v32  ;;  %v6995_v40 = vmax.f32 %v4526_v33, 0.0  ;;  %v4527_v9 = vadd.f32 %v4523_v45, %v6937_v34  ;;  %4738 = vmatprep.mubr.f32.mxu0 %v6991_v32  ;;  %v4761_v49 = vrot.slane %v6991_v32, 7  ;;  %v4759_v34 = vsel %vm640_vm0, %v4757_v39, %v4758_v6  ;;  %v4910_v33 = vld [vmem:[#allocation4 + $0x35b8] sm:$0xff]  ;;  %v4909_v45 = vld [vmem:[#allocation4 + $0x35b0] sm:$0xff] }
 0x72a   : > { %4739 = vmatmul.mubr.f32.vlgmr.msra.gmra.mxu0 %v6987_v24  ;;  %v4906_v39 = vld [vmem:[#allocation4 + $0x3598] sm:$0xff] }
 0x72b   : > { %4534 = vst [vmem:[#allocation2 + $0x8] sm:$0xff] %v6995_v40  ;;  %v7003_v46 = vmax.f32 %v4527_v9, 0.0  ;;  %4940 = vmatpush1.msra.mxu0 %v4885_v41  ;;  %v4762_v48 = vsel %vm640_vm0, %v4760_v36, %v4761_v49  ;;  %v4908_v36 = vld [vmem:[#allocation4 + $0x35a8] sm:$0xff]  ;;  %v4907_v41 = vld [vmem:[#allocation4 + $0x35a0] sm:$0xff]  ;;  %v4905_v9 = vld [vmem:[#allocation4 + $0x3590] sm:$0xff] }
 0x72c   : > { %4941 = vmatprep.subr.mxu0 %v4884_v43  ;;  %4835 = vmatprep.mubr.f32.mxu1 %v4762_v48  ;;  %v4902_v43 = vld [vmem:[#allocation4 + $0x3578] sm:$0xff]  ;;  %v4900_v48 = vld [vmem:[#allocation4 + $0x3568] sm:$0xff] }
 0x72d   : > { %4535 = vst [vmem:[#allocation2 + $0x20] sm:$0xff] %v7003_v46  ;;  %4942 = vmatpush1.msra.mxu0 %v4883_v31  ;;  %4744 = vmatprep.mubr.f32.mxu0 %v7003_v46  ;;  %v4929_v55 = vrot.slane %v7003_v46, 1  ;;  %v4901_v31 = vld [vmem:[#allocation4 + $0x3570] sm:$0xff] }
 0x72e   : > { %4836 = vmatmul.mubr.f32.vlgmr.msra.gmra.mxu1 %v4759_v34  ;;  %4943 = vmatprep.subr.mxu0 %v4882_v16  ;;  %v4899_v16 = vld [vmem:[#allocation4 + $0x3560] sm:$0xff]  ;;  %v4898_v34 = vld [vmem:[#allocation4 + $0x3558] sm:$0xff] }
 0x72f   : > { %4745 = vmatmul.mubr.f32.gmra.mxu0 %v6995_v40 }
 0x730   : > { %4944 = vmatpush1.msra.mxu0 %v4881_v50  ;;  %v4849_v52 = vld [vmem:[#allocation2 + $0x10] sm:$0xfe] }
 0x731   : > { %4945 = vmatprep.subr.mxu0 %v4880_v47  ;;  %v4928_v57 = vrot.slane %v4849_v52, 1  ;;  %v4897_v50 = vld [vmem:[#allocation4 + $0x3550] sm:$0xff]  ;;  %v4896_v47 = vld [vmem:[#allocation4 + $0x3548] sm:$0xff]  ;;  %v4894_v52 = vld [vmem:[#allocation4 + $0x3538] sm:$0xff] }
 0x732   : > { %4946 = vmatpush1.msra.mxu0 %v4879_v51  ;;  %v4540_v28 = vld [vmem:[#allocation2 + $0x8] sm:$0x7f] }
 0x733   : > { %v4930_v35 = vsel %vm809_vm1, %v4928_v57, %v4929_v55  ;;  %4947 = vmatprep.subr.mxu0 %v4878_v54  ;;  %v4763_v62 = vrot.slane %v4540_v28, 7  ;;  %v4895_v51 = vld [vmem:[#allocation4 + $0x3540] sm:$0xff]  ;;  %v4893_v54 = vld [vmem:[#allocation4 + $0x3530] sm:$0xff]  ;;  %v4892_v57 = vld [vmem:[#allocation4 + $0x3528] sm:$0xff] }
 0x734   : > { %v4541_v61 = vld [vmem:[#allocation2 + $0x20] sm:$0x7f]  ;;  %5003 = vmatprep.mubr.f32.mxu0 %v4930_v35  ;;  %4948 = vmatpush1.msra.mxu0 %v4877_v58  ;;  %v4848_v28 = vld [vmem:[#allocation2 + $0x18] sm:$0xfe]  ;;  %v4853_v35 = vld [vmem:[#allocation2 + $0x38] sm:$0x1] }
 0x735   : > { %v4765_v1 = vrot.slane %v4541_v61, 7  ;;  %4949 = vmatprep.subr.mxu0 %v4876_v23  ;;  %v4764_v12 = vsel %vm640_vm0, %v4758_v6, %v4763_v62  ;;  %v4903_v6 = vld [vmem:[#allocation4 + $0x3580] sm:$0xff]  ;;  %v4890_v23 = vld [vmem:[#allocation4 + $0x3518] sm:$0xff]  ;;  %v4888_v61 = vld [vmem:[#allocation4 + $0x3508] sm:$0xff]  ;;  %v4925_v62 = vrot.slane %v4848_v28, 1 }
 0x736   : > { %4950 = vmatpush1.msra.mxu0 %v4875_v60  ;;  %v4891_v58 = vld [vmem:[#allocation4 + $0x3520] sm:$0xff]  ;;  %v4889_v60 = vld [vmem:[#allocation4 + $0x3510] sm:$0xff]  ;;  %v5134_v28 = vld [vmem:[#allocation4 + $0x3838] sm:$0xff] }
 0x737   : > { %v4766_v4 = vsel %vm640_vm0, %v4761_v49, %v4765_v1  ;;  %4951 = vmatprep.subr.mxu0 %v4874_v0  ;;  %v4904_v49 = vld [vmem:[#allocation4 + $0x3588] sm:$0xff]  ;;  %v4887_v0 = vld [vmem:[#allocation4 + $0x3500] sm:$0xff]  ;;  %v4933_v1 = vrot.slane %v4853_v35, 1  ;;  %v5133_v35 = vld [vmem:[#allocation4 + $0x3830] sm:$0xff] }
 0x738   : > { %4841 = vmatprep.mubr.f32.mxu1 %v4766_v4  ;;  %4952 = vmatpush1.msra.mxu0 %v4873_v2  ;;  %v4852_v2 = vld [vmem:[#allocation2 + $0x28] sm:$0x1] }
 0x739   : > { %4842 = vmatmul.mubr.f32.gmra.mxu1 %v4764_v12  ;;  %4953 = vmatprep.subr.mxu0 %v4872_v3  ;;  %v4926_v3 = vrot.slane %v6995_v40, 1  ;;  %v4934_v12 = vsel %vm809_vm1, %v4929_v55, %v4933_v1  ;;  %v5152_v55 = vld [vmem:[#allocation4 + $0x38c8] sm:$0xff]  ;;  %v5068_v1 = vld [vmem:[#allocation4 + $0x3640] sm:$0xff] }
 0x73a   : > { %4954 = vmatpush1.msra.mxu0 %v4871_v5  ;;  %v4931_v5 = vrot.slane %v4852_v2, 1  ;;  %v5130_v2 = vld [vmem:[#allocation4 + $0x3818] sm:$0xff] }
 0x73b   : > { %4955 = vmatprep.subr.mxu0 %v4870_v7  ;;  %v4927_v4 = vsel %vm809_vm1, %v4925_v62, %v4926_v3  ;;  %v5069_v62 = vld [vmem:[#allocation4 + $0x3648] sm:$0xff] }
 0x73c   : > { %4956 = vmatpush1.msra.mxu0 %v4869_v8  ;;  %v4932_v7 = vsel %vm809_vm1, %v4926_v3, %v4931_v5  ;;  %v5158_v8 = vld [vmem:[#allocation4 + $0x38f8] sm:$0xff]  ;;  %v5066_v5 = vld [vmem:[#allocation4 + $0x3630] sm:$0xff] }
 0x73d   : > { %4957 = vmatprep.subr.mxu0 %v4868_v13  ;;  %5191 = vmatprep.subr.mxu1 %v5158_v8  ;;  %v5157_v13 = vld [vmem:[#allocation4 + $0x38f0] sm:$0xff]  ;;  %v5067_v3 = vld [vmem:[#allocation4 + $0x3638] sm:$0xff]  ;;  %v5127_v8 = vld [vmem:[#allocation4 + $0x3800] sm:$0xff] }
 0x73e   : > { %4958 = vmatpush1.msra.mxu0 %v4867_v37  ;;  %5192 = vmatpush1.msra.mxu1 %v5157_v13  ;;  %v5156_v37 = vld [vmem:[#allocation4 + $0x38e8] sm:$0xff]  ;;  %v5064_v13 = vld [vmem:[#allocation4 + $0x3620] sm:$0xff] }
 0x73f   : > { %4959 = vmatprep.subr.mxu0 %v4866_v53  ;;  %5193 = vmatprep.subr.mxu1 %v5156_v37  ;;  %v5155_v53 = vld [vmem:[#allocation4 + $0x38e0] sm:$0xff]  ;;  %v5190_v37 = vld [vmem:[#allocation4 + $0x39f8] sm:$0xff] }
 0x740   : > { %4960 = vmatpush1.msra.mxu0 %v4865_v10  ;;  %5194 = vmatpush1.msra.mxu1 %v5155_v53  ;;  %v5154_v10 = vld [vmem:[#allocation4 + $0x38d8] sm:$0xff] }
 0x741   : > { %4961 = vmatprep.subr.mxu0 %v4864_v29  ;;  %v5091_v29 = vld [vmem:[#allocation4 + $0x36f8] sm:$0xff]  ;;  %5195 = vmatprep.subr.mxu1 %v5154_v10  ;;  %v5189_v10 = vld [vmem:[#allocation4 + $0x39f0] sm:$0xff] }
 0x742   : > { %4962 = vmatpush1.msra.mxu0 %v4863_v11  ;;  %v5153_v11 = vld [vmem:[#allocation4 + $0x38d0] sm:$0xff]  ;;  %v5063_v53 = vld [vmem:[#allocation4 + $0x3618] sm:$0xff] }
 0x743   : > { %4963 = vmatprep.subr.mxu0 %v4862_v63  ;;  %v5090_v63 = vld [vmem:[#allocation4 + $0x36f0] sm:$0xff]  ;;  %5196 = vmatpush1.msra.mxu1 %v5153_v11  ;;  %v5188_v11 = vld [vmem:[#allocation4 + $0x39e8] sm:$0xff] }
 0x744   : > { %4964 = vmatpush1.msra.mxu0 %v4861_v15  ;;  %v5089_v15 = vld [vmem:[#allocation4 + $0x36e8] sm:$0xff]  ;;  %5197 = vmatprep.subr.mxu1 %v5152_v55  ;;  %v5187_v55 = vld [vmem:[#allocation4 + $0x39e0] sm:$0xff] }
 0x745   : > { %4965 = vmatprep.subr.mxu0 %v4860_v14  ;;  %v5151_v14 = vld [vmem:[#allocation4 + $0x38c0] sm:$0xff] }
 0x746   : > { %4966 = vmatpush1.msra.mxu0 %v4859_v38  ;;  %v5088_v38 = vld [vmem:[#allocation4 + $0x36e0] sm:$0xff]  ;;  %5198 = vmatpush1.msra.mxu1 %v5151_v14  ;;  %v5186_v14 = vld [vmem:[#allocation4 + $0x39d8] sm:$0xff] }
 0x747   : > { %4967 = vmatprep.subr.mxu0 %v4858_v42  ;;  %v5150_v42 = vld [vmem:[#allocation4 + $0x38b8] sm:$0xff] }
 0x748   : > { %4968 = vmatpush1.msra.mxu0 %v4857_v17  ;;  %v5087_v17 = vld [vmem:[#allocation4 + $0x36d8] sm:$0xff]  ;;  %5199 = vmatprep.subr.mxu1 %v5150_v42  ;;  %v5185_v42 = vld [vmem:[#allocation4 + $0x39d0] sm:$0xff] }
 0x749   : > { %4969 = vmatprep.subr.mxu0 %v4856_v18  ;;  %v5149_v18 = vld [vmem:[#allocation4 + $0x38b0] sm:$0xff] }
 0x74a   : > { %4970 = vmatpush1.msra.mxu0 %v4855_v19  ;;  %v5086_v19 = vld [vmem:[#allocation4 + $0x36d0] sm:$0xff]  ;;  %5200 = vmatpush1.msra.mxu1 %v5149_v18  ;;  %v5184_v18 = vld [vmem:[#allocation4 + $0x39c8] sm:$0xff] }
 0x74b   : > { %4971 = vmatprep.subr.mxu0 %v4918_v44  ;;  %v5148_v44 = vld [vmem:[#allocation4 + $0x38a8] sm:$0xff] }
 0x74c   : > { %4972 = vmatpush2.msra.mxu0 %v4917_v21  ;;  %v5085_v21 = vld [vmem:[#allocation4 + $0x36c8] sm:$0xff]  ;;  %5201 = vmatprep.subr.mxu1 %v5148_v44  ;;  %v5183_v44 = vld [vmem:[#allocation4 + $0x39c0] sm:$0xff] }
 0x74d   : > { %4973 = vmatprep.subr.mxu0 %v4916_v22  ;;  %v5147_v22 = vld [vmem:[#allocation4 + $0x38a0] sm:$0xff] }
 0x74e   : > { %4974 = vmatpush2.msra.mxu0 %v4915_v20  ;;  %v5084_v20 = vld [vmem:[#allocation4 + $0x36c0] sm:$0xff]  ;;  %5202 = vmatpush1.msra.mxu1 %v5147_v22  ;;  %v5182_v22 = vld [vmem:[#allocation4 + $0x39b8] sm:$0xff] }
 0x74f   : > { %4975 = vmatprep.subr.mxu0 %v4914_v25  ;;  %v5146_v25 = vld [vmem:[#allocation4 + $0x3898] sm:$0xff] }
 0x750   : > { %4976 = vmatpush2.msra.mxu0 %v4913_v26  ;;  %v5083_v26 = vld [vmem:[#allocation4 + $0x36b8] sm:$0xff]  ;;  %5203 = vmatprep.subr.mxu1 %v5146_v25  ;;  %v5181_v25 = vld [vmem:[#allocation4 + $0x39b0] sm:$0xff] }
 0x751   : > { %4977 = vmatprep.subr.mxu0 %v4912_v27  ;;  %v5145_v27 = vld [vmem:[#allocation4 + $0x3890] sm:$0xff] }
 0x752   : > { %4978 = vmatpush2.msra.mxu0 %v4911_v30  ;;  %v5082_v30 = vld [vmem:[#allocation4 + $0x36b0] sm:$0xff]  ;;  %5204 = vmatpush1.msra.mxu1 %v5145_v27  ;;  %v5180_v27 = vld [vmem:[#allocation4 + $0x39a8] sm:$0xff] }
 0x753   : > { %4979 = vmatprep.subr.mxu0 %v4910_v33  ;;  %v5144_v33 = vld [vmem:[#allocation4 + $0x3888] sm:$0xff] }
 0x754   : > { %4980 = vmatpush2.msra.mxu0 %v4909_v45  ;;  %v5081_v45 = vld [vmem:[#allocation4 + $0x36a8] sm:$0xff]  ;;  %5205 = vmatprep.subr.mxu1 %v5144_v33  ;;  %v5179_v33 = vld [vmem:[#allocation4 + $0x39a0] sm:$0xff] }
 0x755   : > { %4981 = vmatprep.subr.mxu0 %v4908_v36  ;;  %v5143_v36 = vld [vmem:[#allocation4 + $0x3880] sm:$0xff] }
 0x756   : > { %4982 = vmatpush2.msra.mxu0 %v4907_v41  ;;  %v5080_v41 = vld [vmem:[#allocation4 + $0x36a0] sm:$0xff]  ;;  %5206 = vmatpush1.msra.mxu1 %v5143_v36  ;;  %v5178_v36 = vld [vmem:[#allocation4 + $0x3998] sm:$0xff] }
 0x757   : > { %4983 = vmatprep.subr.mxu0 %v4906_v39  ;;  %v5142_v39 = vld [vmem:[#allocation4 + $0x3878] sm:$0xff] }
 0x758   : > { %4984 = vmatpush2.msra.mxu0 %v4905_v9  ;;  %v5079_v9 = vld [vmem:[#allocation4 + $0x3698] sm:$0xff]  ;;  %5207 = vmatprep.subr.mxu1 %v5142_v39  ;;  %v5177_v39 = vld [vmem:[#allocation4 + $0x3990] sm:$0xff] }
 0x759   : > { %4985 = vmatprep.subr.mxu0 %v4904_v49  ;;  %v5141_v49 = vld [vmem:[#allocation4 + $0x3870] sm:$0xff] }
 0x75a   : > { %4986 = vmatpush2.msra.mxu0 %v4903_v6  ;;  %v5078_v6 = vld [vmem:[#allocation4 + $0x3690] sm:$0xff]  ;;  %5208 = vmatpush1.msra.mxu1 %v5141_v49  ;;  %v5176_v49 = vld [vmem:[#allocation4 + $0x3988] sm:$0xff] }
 0x75b   : > { %4987 = vmatprep.subr.mxu0 %v4902_v43  ;;  %v5140_v43 = vld [vmem:[#allocation4 + $0x3868] sm:$0xff] }
 0x75c   : > { %4988 = vmatpush2.msra.mxu0 %v4901_v31  ;;  %v5077_v31 = vld [vmem:[#allocation4 + $0x3688] sm:$0xff]  ;;  %5209 = vmatprep.subr.mxu1 %v5140_v43  ;;  %v5175_v43 = vld [vmem:[#allocation4 + $0x3980] sm:$0xff] }
 0x75d   : > { %4989 = vmatprep.subr.mxu0 %v4900_v48  ;;  %v5139_v48 = vld [vmem:[#allocation4 + $0x3860] sm:$0xff] }
 0x75e   : > { %4990 = vmatpush2.msra.mxu0 %v4899_v16  ;;  %v5076_v16 = vld [vmem:[#allocation4 + $0x3680] sm:$0xff]  ;;  %5210 = vmatpush1.msra.mxu1 %v5139_v48  ;;  %v5174_v48 = vld [vmem:[#allocation4 + $0x3978] sm:$0xff] }
 0x75f   : > { %4991 = vmatprep.subr.mxu0 %v4898_v34  ;;  %v5138_v34 = vld [vmem:[#allocation4 + $0x3858] sm:$0xff] }
 0x760   : > { %4992 = vmatpush2.msra.mxu0 %v4897_v50  ;;  %v5075_v50 = vld [vmem:[#allocation4 + $0x3678] sm:$0xff]  ;;  %5211 = vmatprep.subr.mxu1 %v5138_v34  ;;  %v5173_v34 = vld [vmem:[#allocation4 + $0x3970] sm:$0xff] }
 0x761   : > { %4993 = vmatprep.subr.mxu0 %v4896_v47  ;;  %v5137_v47 = vld [vmem:[#allocation4 + $0x3850] sm:$0xff] }
 0x762   : > { %4994 = vmatpush2.msra.mxu0 %v4895_v51  ;;  %v5074_v51 = vld [vmem:[#allocation4 + $0x3670] sm:$0xff]  ;;  %5212 = vmatpush1.msra.mxu1 %v5137_v47  ;;  %v5172_v47 = vld [vmem:[#allocation4 + $0x3968] sm:$0xff] }
 0x763   : > { %4995 = vmatprep.subr.mxu0 %v4894_v52  ;;  %v5136_v52 = vld [vmem:[#allocation4 + $0x3848] sm:$0xff] }
 0x764   : > { %4996 = vmatpush2.msra.mxu0 %v4893_v54  ;;  %v5073_v54 = vld [vmem:[#allocation4 + $0x3668] sm:$0xff]  ;;  %5213 = vmatprep.subr.mxu1 %v5136_v52  ;;  %v5171_v52 = vld [vmem:[#allocation4 + $0x3960] sm:$0xff] }
 0x765   : > { %4997 = vmatprep.subr.mxu0 %v4892_v57  ;;  %v5135_v57 = vld [vmem:[#allocation4 + $0x3840] sm:$0xff] }
 0x766   : > { %4998 = vmatpush2.msra.mxu0 %v4891_v58  ;;  %v5072_v58 = vld [vmem:[#allocation4 + $0x3660] sm:$0xff]  ;;  %5214 = vmatpush1.msra.mxu1 %v5135_v57  ;;  %v5170_v57 = vld [vmem:[#allocation4 + $0x3958] sm:$0xff] }
 0x767   : > { %4999 = vmatprep.subr.mxu0 %v4890_v23  ;;  %v5071_v23 = vld [vmem:[#allocation4 + $0x3658] sm:$0xff]  ;;  %5215 = vmatprep.subr.mxu1 %v5134_v28  ;;  %v5169_v28 = vld [vmem:[#allocation4 + $0x3950] sm:$0xff] }
 0x768   : > { %5000 = vmatpush2.msra.mxu0 %v4889_v60  ;;  %v5070_v60 = vld [vmem:[#allocation4 + $0x3650] sm:$0xff]  ;;  %5216 = vmatpush1.msra.mxu1 %v5133_v35  ;;  %v5168_v35 = vld [vmem:[#allocation4 + $0x3948] sm:$0xff] }
 0x769   : > { %5001 = vmatprep.subr.mxu0 %v4888_v61  ;;  %v5132_v61 = vld [vmem:[#allocation4 + $0x3828] sm:$0xff] }
 0x76a   : > { %5002 = vmatpush2.msra.mxu0 %v4887_v0  ;;  %v5131_v0 = vld [vmem:[#allocation4 + $0x3820] sm:$0xff]  ;;  %5217 = vmatprep.subr.mxu1 %v5132_v61 }
 0x76b   : > { %5004 = vmatmul.mubr.f32.vlgmr.msra.gmra.mxu0 %v4927_v4  ;;  %5288 = vmatprep.subr.mxu0 %v5091_v29  ;;  %v5129_v4 = vld [vmem:[#allocation4 + $0x3810] sm:$0xff]  ;;  %v5167_v61 = vld [vmem:[#allocation4 + $0x3940] sm:$0xff] }
 0x76c   : > { %5009 = vmatprep.mubr.f32.mxu0 %v4934_v12  ;;  %5289 = vmatpush1.msra.mxu0 %v5090_v63  ;;  %v5128_v12 = vld [vmem:[#allocation4 + $0x3808] sm:$0xff]  ;;  %v5062_v29 = vld [vmem:[#allocation4 + $0x3610] sm:$0xff] }
 0x76d   : > { %5290 = vmatprep.subr.mxu0 %v5089_v15  ;;  %5218 = vmatpush1.msra.mxu1 %v5131_v0  ;;  %v5061_v63 = vld [vmem:[#allocation4 + $0x3608] sm:$0xff]  ;;  %v5060_v15 = vld [vmem:[#allocation4 + $0x3600] sm:$0xff]  ;;  %v5166_v0 = vld [vmem:[#allocation4 + $0x3938] sm:$0xff] }
 0x76e   : > { %5291 = vmatpush1.msra.mxu0 %v5088_v38  ;;  %5219 = vmatprep.subr.mxu1 %v5130_v2  ;;  %v5123_v38 = vld [vmem:[#allocation4 + $0x37f8] sm:$0xff]  ;;  %v5165_v2 = vld [vmem:[#allocation4 + $0x3930] sm:$0xff] }
 0x76f   : > { %5010 = vmatmul.mubr.f32.gmra.mxu0 %v4932_v7  ;;  %5292 = vmatprep.subr.mxu0 %v5087_v17  ;;  %v5065_v7 = vld [vmem:[#allocation4 + $0x3628] sm:$0xff]  ;;  %v5122_v17 = vld [vmem:[#allocation4 + $0x37f0] sm:$0xff] }
 0x770   : > { %5293 = vmatpush1.msra.mxu0 %v5086_v19  ;;  %5220 = vmatpush1.msra.mxu1 %v5129_v4  ;;  %v5121_v19 = vld [vmem:[#allocation4 + $0x37e8] sm:$0xff] }
 0x771   : > { %5294 = vmatprep.subr.mxu0 %v5085_v21  ;;  %5221 = vmatprep.subr.mxu1 %v5128_v12  ;;  %v5120_v21 = vld [vmem:[#allocation4 + $0x37e0] sm:$0xff]  ;;  %v5164_v4 = vld [vmem:[#allocation4 + $0x3928] sm:$0xff] }
 0x772   : > { %5295 = vmatpush1.msra.mxu0 %v5084_v20  ;;  %5222 = vmatpush1.msra.mxu1 %v5127_v8  ;;  %v5119_v20 = vld [vmem:[#allocation4 + $0x37d8] sm:$0xff]  ;;  %v5163_v12 = vld [vmem:[#allocation4 + $0x3920] sm:$0xff] }
 0x773   : > { %5296 = vmatprep.subr.mxu0 %v5083_v26  ;;  %5223 = vmatprep.subr.mxu1 %v5190_v37  ;;  %v5118_v26 = vld [vmem:[#allocation4 + $0x37d0] sm:$0xff]  ;;  %v5162_v8 = vld [vmem:[#allocation4 + $0x3918] sm:$0xff] }
 0x774   : > { %5297 = vmatpush1.msra.mxu0 %v5082_v30  ;;  %5224 = vmatpush2.msra.mxu1 %v5189_v10  ;;  %v5117_v30 = vld [vmem:[#allocation4 + $0x37c8] sm:$0xff]  ;;  %v5161_v37 = vld [vmem:[#allocation4 + $0x3910] sm:$0xff] }
 0x775   : > { %5298 = vmatprep.subr.mxu0 %v5081_v45  ;;  %5225 = vmatprep.subr.mxu1 %v5188_v11  ;;  %v5116_v45 = vld [vmem:[#allocation4 + $0x37c0] sm:$0xff]  ;;  %v5160_v10 = vld [vmem:[#allocation4 + $0x3908] sm:$0xff] }
 0x776   : > { %5299 = vmatpush1.msra.mxu0 %v5080_v41  ;;  %5226 = vmatpush2.msra.mxu1 %v5187_v55  ;;  %v5115_v41 = vld [vmem:[#allocation4 + $0x37b8] sm:$0xff]  ;;  %v5159_v11 = vld [vmem:[#allocation4 + $0x3900] sm:$0xff] }
 0x777   : > { %5300 = vmatprep.subr.mxu0 %v5079_v9  ;;  %5227 = vmatprep.subr.mxu1 %v5186_v14  ;;  %v5114_v9 = vld [vmem:[#allocation4 + $0x37b0] sm:$0xff]  ;;  %v5095_v55 = vld [vmem:[#allocation4 + $0x3718] sm:$0xff] }
 0x778   : > { %5301 = vmatpush1.msra.mxu0 %v5078_v6  ;;  %5228 = vmatpush2.msra.mxu1 %v5185_v42  ;;  %v5113_v6 = vld [vmem:[#allocation4 + $0x37a8] sm:$0xff]  ;;  %v5094_v14 = vld [vmem:[#allocation4 + $0x3710] sm:$0xff]  ;;  %v5092_v42 = vld [vmem:[#allocation4 + $0x3700] sm:$0xff] }
 0x779   : > { %5302 = vmatprep.subr.mxu0 %v5077_v31  ;;  %5229 = vmatprep.subr.mxu1 %v5184_v18  ;;  %v5112_v31 = vld [vmem:[#allocation4 + $0x37a0] sm:$0xff] }
 0x77a   : > { %5303 = vmatpush1.msra.mxu0 %v5076_v16  ;;  %5230 = vmatpush2.msra.mxu1 %v5183_v44  ;;  %v5111_v16 = vld [vmem:[#allocation4 + $0x3798] sm:$0xff] }
 0x77b   : > { %5304 = vmatprep.subr.mxu0 %v5075_v50  ;;  %5231 = vmatprep.subr.mxu1 %v5182_v22  ;;  %v5110_v50 = vld [vmem:[#allocation4 + $0x3790] sm:$0xff] }
 0x77c   : > { %5305 = vmatpush1.msra.mxu0 %v5074_v51  ;;  %5232 = vmatpush2.msra.mxu1 %v5181_v25  ;;  %v5109_v51 = vld [vmem:[#allocation4 + $0x3788] sm:$0xff] }
 0x77d   : > { %5306 = vmatprep.subr.mxu0 %v5073_v54  ;;  %5233 = vmatprep.subr.mxu1 %v5180_v27  ;;  %v5108_v54 = vld [vmem:[#allocation4 + $0x3780] sm:$0xff] }
 0x77e   : > { %5307 = vmatpush1.msra.mxu0 %v5072_v58  ;;  %5234 = vmatpush2.msra.mxu1 %v5179_v33  ;;  %v5107_v58 = vld [vmem:[#allocation4 + $0x3778] sm:$0xff] }
 0x77f   : > { %5308 = vmatprep.subr.mxu0 %v5071_v23  ;;  %5235 = vmatprep.subr.mxu1 %v5178_v36  ;;  %v5106_v23 = vld [vmem:[#allocation4 + $0x3770] sm:$0xff] }
 0x780   : > { %5309 = vmatpush1.msra.mxu0 %v5070_v60  ;;  %5236 = vmatpush2.msra.mxu1 %v5177_v39  ;;  %v5105_v60 = vld [vmem:[#allocation4 + $0x3768] sm:$0xff] }
 0x781   : > { %5310 = vmatprep.subr.mxu0 %v5069_v62  ;;  %5237 = vmatprep.subr.mxu1 %v5176_v49  ;;  %v5104_v62 = vld [vmem:[#allocation4 + $0x3760] sm:$0xff] }
 0x782   : > { %5311 = vmatpush1.msra.mxu0 %v5068_v1  ;;  %5238 = vmatpush2.msra.mxu1 %v5175_v43  ;;  %v5103_v1 = vld [vmem:[#allocation4 + $0x3758] sm:$0xff] }
 0x783   : > { %5312 = vmatprep.subr.mxu0 %v5067_v3  ;;  %5239 = vmatprep.subr.mxu1 %v5174_v48  ;;  %v5102_v3 = vld [vmem:[#allocation4 + $0x3750] sm:$0xff] }
 0x784   : > { %5313 = vmatpush1.msra.mxu0 %v5066_v5  ;;  %5240 = vmatpush2.msra.mxu1 %v5173_v34  ;;  %v5101_v5 = vld [vmem:[#allocation4 + $0x3748] sm:$0xff] }
 0x785   : > { %5314 = vmatprep.subr.mxu0 %v5065_v7  ;;  %5241 = vmatprep.subr.mxu1 %v5172_v47  ;;  %v5100_v7 = vld [vmem:[#allocation4 + $0x3740] sm:$0xff] }
 0x786   : > { %5315 = vmatpush1.msra.mxu0 %v5064_v13  ;;  %5242 = vmatpush2.msra.mxu1 %v5171_v52  ;;  %v5099_v13 = vld [vmem:[#allocation4 + $0x3738] sm:$0xff] }
 0x787   : > { %5316 = vmatprep.subr.mxu0 %v5063_v53  ;;  %5243 = vmatprep.subr.mxu1 %v5170_v57  ;;  %v5098_v53 = vld [vmem:[#allocation4 + $0x3730] sm:$0xff] }
 0x788   : > { %5317 = vmatpush1.msra.mxu0 %v5062_v29  ;;  %5244 = vmatpush2.msra.mxu1 %v5169_v28  ;;  %v5097_v29 = vld [vmem:[#allocation4 + $0x3728] sm:$0xff] }
 0x789   : > { %5318 = vmatprep.subr.mxu0 %v5061_v63  ;;  %5245 = vmatprep.subr.mxu1 %v5168_v35  ;;  %v5096_v63 = vld [vmem:[#allocation4 + $0x3720] sm:$0xff] }
 0x78a   : > { %5319 = vmatpush1.msra.mxu0 %v5060_v15  ;;  %5246 = vmatpush2.msra.mxu1 %v5167_v61  ;;  %v5403_v15 = vld [vmem:[#allocation4 + $0x3af8] sm:$0xff] }
 0x78b   : > { %5320 = vmatprep.subr.mxu0 %v5123_v38  ;;  %5247 = vmatprep.subr.mxu1 %v5166_v0  ;;  %v5093_v38 = vld [vmem:[#allocation4 + $0x3708] sm:$0xff] }
 0x78c   : > { %5321 = vmatpush2.msra.mxu0 %v5122_v17  ;;  %5248 = vmatpush2.msra.mxu1 %v5165_v2  ;;  %v5401_v2 = vld [vmem:[#allocation4 + $0x3ae8] sm:$0xff] }
 0x78d   : > { %5322 = vmatprep.subr.mxu0 %v5121_v19  ;;  %5249 = vmatprep.subr.mxu1 %v5164_v4  ;;  %v5400_v4 = vld [vmem:[#allocation4 + $0x3ae0] sm:$0xff] }
 0x78e   : > { %5323 = vmatpush2.msra.mxu0 %v5120_v21  ;;  %5250 = vmatpush2.msra.mxu1 %v5163_v12  ;;  %v5021_v21 = vld [vmem:[#allocation6 + $0x7] ss:$8 sm:$0x3] }
 0x78f   : > { %5324 = vmatprep.subr.mxu0 %v5119_v20  ;;  %5251 = vmatprep.subr.mxu1 %v5162_v8  ;;  %v5026_v27 = vrot.slane %v5021_v21, %v6731_v56  ;;  %v5030_v36 = vrot.slane %v5021_v21, %v6733_v59  ;;  %v5390_v21 = vld [vmem:[#allocation4 + $0x3a90] sm:$0xff] }
 0x790   : > { %5325 = vmatpush2.msra.mxu0 %v5118_v26  ;;  %5252 = vmatpush2.msra.mxu1 %v5161_v37  ;;  %v5398_v37 = vld [vmem:[#allocation4 + $0x3ad0] sm:$0xff] }
 0x791   : > { %5326 = vmatprep.subr.mxu0 %v5117_v30  ;;  %5253 = vmatprep.subr.mxu1 %v5160_v10  ;;  %v5396_v10 = vld [vmem:[#allocation4 + $0x3ac0] sm:$0xff] }
 0x792   : > { %5327 = vmatpush2.msra.mxu0 %v5116_v45  ;;  %5254 = vmatpush2.msra.mxu1 %v5159_v11  ;;  %v5395_v11 = vld [vmem:[#allocation4 + $0x3ab8] sm:$0xff] }
 0x793   : > { %5328 = vmatprep.subr.mxu0 %v5115_v41  ;;  %5456 = vmatprep.subr.mxu1 %v5403_v15  ;;  %v5394_v15 = vld [vmem:[#allocation4 + $0x3ab0] sm:$0xff] }
 0x794   : > { %5329 = vmatpush2.msra.mxu0 %v5114_v9 }
 0x795   : > { %5330 = vmatprep.subr.mxu0 %v5113_v6 }
 0x796   : > { %5331 = vmatpush2.msra.mxu0 %v5112_v31  ;;  %v5053_v31 = vld [vmem:[#allocation2 + $0x30] sm:$0x80] }
 0x797   : > { %5332 = vmatprep.subr.mxu0 %v5111_v16 }
 0x798   : > { %5333 = vmatpush2.msra.mxu0 %v5110_v50  ;;  %v5054_v50 = vld [vmem:[#allocation2] sm:$0x80] }
 0x799   : > { %5334 = vmatprep.subr.mxu0 %v5109_v51  ;;  %v5277_v28 = vrot.slane %v5054_v50, 7  ;;  %v5373_v50 = vld [vmem:[#allocation4 + $0x3a08] sm:$0xff] }
 0x79a   : > { %5335 = vmatpush2.msra.mxu0 %v5108_v54 }
 0x79b   : > { %5336 = vmatprep.subr.mxu0 %v5107_v58 }
 0x79c   : > { %5337 = vmatpush2.msra.mxu0 %v5106_v23  ;;  %v5274_v23 = vrot.slane %v5053_v31, 7  ;;  %v5377_v31 = vld [vmem:[#allocation4 + $0x3a28] sm:$0xff] }
 0x79d   : > { %5338 = vmatprep.subr.mxu0 %v5105_v60 }
 0x79e   : > { %5339 = vmatpush2.msra.mxu0 %v5104_v62  ;;  %v5402_v62 = vld [vmem:[#allocation4 + $0x3af0] sm:$0xff] }
 0x79f   : > { %5340 = vmatprep.subr.mxu0 %v5103_v1 }
 0x7a0   : > { %5341 = vmatpush2.msra.mxu0 %v5102_v3 }
 0x7a1   : > { %5342 = vmatprep.subr.mxu0 %v5101_v5 }
 0x7a2   : > { %5343 = vmatpush2.msra.mxu0 %v5100_v7  ;;  %v5399_v7 = vld [vmem:[#allocation4 + $0x3ad8] sm:$0xff] }
 0x7a3   : > { %5344 = vmatprep.subr.mxu0 %v5099_v13 }
 0x7a4   : > { %5345 = vmatpush2.msra.mxu0 %v5098_v53  ;;  %v5397_v53 = vld [vmem:[#allocation4 + $0x3ac8] sm:$0xff] }
 0x7a5   : > { %5346 = vmatprep.subr.mxu0 %v5097_v29 }
 0x7a6   : > { %5347 = vmatpush2.msra.mxu0 %v5096_v63 }
 0x7a7   : > { %5348 = vmatprep.subr.mxu0 %v5095_v55 }
 0x7a8   : > { %5349 = vmatpush2.msra.mxu0 %v5094_v14 }
 0x7a9   : > { %5350 = vmatprep.subr.mxu0 %v5093_v38  ;;  %v5393_v38 = vld [vmem:[#allocation4 + $0x3aa8] sm:$0xff] }
 0x7aa   : > { %5351 = vmatpush2.msra.mxu0 %v5092_v42 }
 0x7ea   : > { %v4740_v17 = vpop.f32.mrf.mxu0 }
 0x7ec   : > { %v4742_v18 = vpop.f32.mrf.mxu0 }
 0x7ee   : > { %v4837_v19 = vpop.f32.mrf.mxu1 }
 0x7ef   : > { %v4746_v44 = vpop.f32.mrf.mxu0  ;;  %v4838_v25 = vadd.f32 %v4837_v19, %v4740_v17  ;;  %v5392_v17 = vld [vmem:[#allocation4 + $0x3aa0] sm:$0xff] }
 0x7f0   : > { %v4839_v22 = vpop.f32.mrf.mxu1 }
 0x7f1   : > { %v4748_v20 = vpop.f32.mrf.mxu0  ;;  %v4840_v33 = vadd.f32 %v4839_v22, %v4742_v18  ;;  %v5391_v18 = vld [vmem:[#allocation4 + $0x3a98] sm:$0xff] }
 0x7f9   : > { %v4843_v26 = vpop.f32.mrf.mxu1 }
 0x7fa   : > { %v4844_v39 = vadd.f32 %v4843_v26, %v4746_v44 }
 0x7fb   : > { %v4845_v9 = vpop.f32.mrf.mxu1 }
 0x7fc   : > { %v4846_v47 = vadd.f32 %v4845_v9, %v4748_v20  ;;  %v5389_v20 = vld [vmem:[#allocation4 + $0x3a88] sm:$0xff] }
 0x7fd   : > { %v5381_v9 = vld [vmem:[#allocation4 + $0x3a48] sm:$0xff] }
 0x82b   : > { %v5005_v30 = vpop.f32.mrf.mxu0 }
 0x82c   : > { %v5016_v45 = vadd.f32 %v5005_v30, %v4838_v25  ;;  %v5388_v25 = vld [vmem:[#allocation4 + $0x3a80] sm:$0xff] }
 0x82d   : > { %v5007_v41 = vpop.f32.mrf.mxu0 }
 0x82e   : > { %v5033_v49 = vadd.f32 %v5026_v27, %v5016_v45  ;;  %v5017_v6 = vadd.f32 %v5007_v41, %v4840_v33  ;;  %v5386_v33 = vld [vmem:[#allocation4 + $0x3a70] sm:$0xff]  ;;  %v5385_v45 = vld [vmem:[#allocation4 + $0x3a68] sm:$0xff]  ;;  %v5383_v41 = vld [vmem:[#allocation4 + $0x3a58] sm:$0xff] }
 0x82f   : > { %v5011_v43 = vpop.f32.mrf.mxu0 }
 0x830   : > { %vm5037_vm3 = vcmp.ge.f32.partialorder %v5033_v49, 0.0  ;;  %v5041_v48 = vmul.f32 0.2, %v5033_v49  ;;  %v5034_v16 = vadd.f32 %v5030_v36, %v5017_v6  ;;  %v5018_v34 = vadd.f32 %v5011_v43, %v4844_v39  ;;  %v5382_v39 = vld [vmem:[#allocation4 + $0x3a50] sm:$0xff]  ;;  %v5379_v6 = vld [vmem:[#allocation4 + $0x3a38] sm:$0xff] }
 0x831   : > { %v5013_v51 = vpop.f32.mrf.mxu0  ;;  %v5378_v43 = vld [vmem:[#allocation4 + $0x3a30] sm:$0xff] }
 0x832   : > { %v7024_v52 = vsel %vm5037_vm3, %v5033_v49, %v5041_v48  ;;  %vm5038_vm4 = vcmp.ge.f32.partialorder %v5034_v16, 0.0  ;;  %v5042_v54 = vmul.f32 0.2, %v5034_v16  ;;  %v5035_v57 = vadd.f32 %v5026_v27, %v5018_v34  ;;  %v5387_v27 = vld [vmem:[#allocation4 + $0x3a78] sm:$0xff]  ;;  %v5380_v49 = vld [vmem:[#allocation4 + $0x3a40] sm:$0xff]  ;;  %v5374_v34 = vld [vmem:[#allocation4 + $0x3a10] sm:$0xff] }
 0x833   : > { %5049 = vst [vmem:[#allocation2 + $0x18] sm:$0xff] %v7024_v52  ;;  %v5019_v58 = vadd.f32 %v5013_v51, %v4846_v47  ;;  %v5275_v61 = vrot.slane %v7024_v52, 7  ;;  %v5376_v48 = vld [vmem:[#allocation4 + $0x3a20] sm:$0xff]  ;;  %v5435_v51 = vld [vmem:[#allocation4 + $0x3bf8] sm:$0xff] }
 0x834   : > { %v5046_v35 = vsel %vm5038_vm4, %v5034_v16, %v5042_v54  ;;  %vm5039_vm5 = vcmp.ge.f32.partialorder %v5035_v57, 0.0  ;;  %v5043_v60 = vmul.f32 0.2, %v5035_v57  ;;  %v5375_v16 = vld [vmem:[#allocation4 + $0x3a18] sm:$0xff]  ;;  %v5372_v47 = vld [vmem:[#allocation4 + $0x3a00] sm:$0xff]  ;;  %v5433_v54 = vld [vmem:[#allocation4 + $0x3be8] sm:$0xff] }
 0x835   : > { %5050 = vst [vmem:[#allocation2 + $0x10] sm:$0xff] %v5046_v35  ;;  %v5036_v0 = vadd.f32 %v5030_v36, %v5019_v58  ;;  %5255 = vmatprep.mubr.f32.mxu1 %v5046_v35  ;;  %v5278_v1 = vrot.slane %v5046_v35, 7  ;;  %v5276_v8 = vsel %vm640_vm0, %v5274_v23, %v5275_v61  ;;  %v5384_v36 = vld [vmem:[#allocation4 + $0x3a60] sm:$0xff]  ;;  %v5431_v58 = vld [vmem:[#allocation4 + $0x3bd8] sm:$0xff]  ;;  %v5429_v23 = vld [vmem:[#allocation4 + $0x3bc8] sm:$0xff] }
 0x836   : > { %v7028_v3 = vsel %vm5039_vm5, %v5035_v57, %v5043_v60  ;;  %5256 = vmatmul.mubr.f32.vlgmr.msra.gmra.mxu1 %v7024_v52  ;;  %v5434_v52 = vld [vmem:[#allocation4 + $0x3bf0] sm:$0xff]  ;;  %v5432_v57 = vld [vmem:[#allocation4 + $0x3be0] sm:$0xff]  ;;  %v5427_v60 = vld [vmem:[#allocation4 + $0x3bb8] sm:$0xff] }
 0x837   : > { %5051 = vst [vmem:[#allocation2 + $0x8] sm:$0xff] %v7028_v3  ;;  %vm5040_vm6 = vcmp.ge.f32.partialorder %v5036_v0, 0.0  ;;  %v5044_v5 = vmul.f32 0.2, %v5036_v0  ;;  %5457 = vmatpush1.msra.mxu1 %v5402_v62  ;;  %v5279_v12 = vsel %vm640_vm0, %v5277_v28, %v5278_v1  ;;  %v5430_v28 = vld [vmem:[#allocation4 + $0x3bd0] sm:$0xff]  ;;  %v5428_v35 = vld [vmem:[#allocation4 + $0x3bc0] sm:$0xff] }
 0x838   : > { %5458 = vmatprep.subr.mxu1 %v5401_v2  ;;  %5352 = vmatprep.mubr.f32.mxu0 %v5279_v12  ;;  %v5425_v62 = vld [vmem:[#allocation4 + $0x3ba8] sm:$0xff]  ;;  %v5422_v2 = vld [vmem:[#allocation4 + $0x3b90] sm:$0xff]  ;;  %v5419_v12 = vld [vmem:[#allocation4 + $0x3b78] sm:$0xff] }
 0x839   : > { %v7034_v13 = vsel %vm5040_vm6, %v5036_v0, %v5044_v5  ;;  %5459 = vmatpush1.msra.mxu1 %v5400_v4  ;;  %5353 = vmatmul.mubr.f32.vlgmr.msra.gmra.mxu0 %v5276_v8  ;;  %v5424_v0 = vld [vmem:[#allocation4 + $0x3ba0] sm:$0xff]  ;;  %v5421_v4 = vld [vmem:[#allocation4 + $0x3b88] sm:$0xff] }
 0x83a   : > { %5052 = vst [vmem:[#allocation2 + $0x20] sm:$0xff] %v7034_v13  ;;  %5261 = vmatprep.mubr.f32.mxu1 %v7034_v13  ;;  %5460 = vmatprep.subr.mxu1 %v5399_v7  ;;  %v5446_v55 = vrot.slane %v7034_v13, 1  ;;  %v5420_v5 = vld [vmem:[#allocation4 + $0x3b80] sm:$0xff]  ;;  %v5418_v7 = vld [vmem:[#allocation4 + $0x3b70] sm:$0xff]  ;;  %v5417_v8 = vld [vmem:[#allocation4 + $0x3b68] sm:$0xff] }
 0x83b   : > { %5262 = vmatmul.mubr.f32.gmra.mxu1 %v7028_v3  ;;  %v5591_v13 = vld [vmem:[#allocation4 + $0x3cc0] sm:$0xff] }
 0x83c   : > { %5461 = vmatpush1.msra.mxu1 %v5398_v37  ;;  %v5366_v29 = vld [vmem:[#allocation2 + $0x10] sm:$0xfe]  ;;  %v5416_v37 = vld [vmem:[#allocation4 + $0x3b60] sm:$0xff] }
 0x83d   : > { %5462 = vmatprep.subr.mxu1 %v5397_v53  ;;  %v5445_v63 = vrot.slane %v5366_v29, 1  ;;  %v5415_v53 = vld [vmem:[#allocation4 + $0x3b58] sm:$0xff]  ;;  %v5413_v29 = vld [vmem:[#allocation4 + $0x3b48] sm:$0xff] }
 0x83e   : > { %5463 = vmatpush1.msra.mxu1 %v5396_v10  ;;  %v5057_v14 = vld [vmem:[#allocation2 + $0x8] sm:$0x7f]  ;;  %v5414_v10 = vld [vmem:[#allocation4 + $0x3b50] sm:$0xff] }
 0x83f   : > { %v5447_v42 = vsel %vm809_vm1, %v5445_v63, %v5446_v55  ;;  %5464 = vmatprep.subr.mxu1 %v5395_v11  ;;  %v5280_v44 = vrot.slane %v5057_v14, 7  ;;  %v5412_v11 = vld [vmem:[#allocation4 + $0x3b40] sm:$0xff]  ;;  %v5411_v63 = vld [vmem:[#allocation4 + $0x3b38] sm:$0xff]  ;;  %v5409_v14 = vld [vmem:[#allocation4 + $0x3b28] sm:$0xff] }
 0x840   : > { %5520 = vmatprep.mubr.f32.mxu1 %v5447_v42  ;;  %5465 = vmatpush1.msra.mxu1 %v5394_v15  ;;  %v5410_v15 = vld [vmem:[#allocation4 + $0x3b30] sm:$0xff]  ;;  %v5365_v42 = vld [vmem:[#allocation2 + $0x18] sm:$0xfe] }
 0x841   : > { %v5058_v19 = vld [vmem:[#allocation2 + $0x20] sm:$0x7f]  ;;  %5466 = vmatprep.subr.mxu1 %v5393_v38  ;;  %v5281_v30 = vsel %vm640_vm0, %v5275_v61, %v5280_v44  ;;  %v5426_v61 = vld [vmem:[#allocation4 + $0x3bb0] sm:$0xff]  ;;  %v5405_v44 = vld [vmem:[#allocation4 + $0x3b08] sm:$0xff] }
 0x842   : > { %v5282_v22 = vrot.slane %v5058_v19, 7  ;;  %5467 = vmatpush1.msra.mxu1 %v5392_v17  ;;  %v5408_v38 = vld [vmem:[#allocation4 + $0x3b20] sm:$0xff]  ;;  %v5407_v17 = vld [vmem:[#allocation4 + $0x3b18] sm:$0xff]  ;;  %v5406_v19 = vld [vmem:[#allocation4 + $0x3b10] sm:$0xff] }
 0x843   : > { %5468 = vmatprep.subr.mxu1 %v5391_v18  ;;  %v5370_v18 = vld [vmem:[#allocation2 + $0x38] sm:$0x1] }
 0x844   : > { %v5283_v26 = vsel %vm640_vm0, %v5278_v1, %v5282_v22  ;;  %5469 = vmatpush1.msra.mxu1 %v5390_v21  ;;  %v5423_v1 = vld [vmem:[#allocation4 + $0x3b98] sm:$0xff]  ;;  %v5442_v21 = vrot.slane %v5365_v42, 1  ;;  %v5404_v22 = vld [vmem:[#allocation4 + $0x3b00] sm:$0xff] }
 0x845   : > { %5358 = vmatprep.mubr.f32.mxu0 %v5283_v26  ;;  %5470 = vmatprep.subr.mxu1 %v5389_v20  ;;  %v5450_v20 = vrot.slane %v5370_v18, 1  ;;  %v5443_v26 = vrot.slane %v7028_v3, 1  ;;  %v5595_v3 = vld [vmem:[#allocation4 + $0x3ce0] sm:$0xff]  ;;  %v5618_v42 = vld [vmem:[#allocation4 + $0x3d98] sm:$0xff]  ;;  %v5616_v18 = vld [vmem:[#allocation4 + $0x3d88] sm:$0xff] }
 0x846   : > { %5359 = vmatmul.mubr.f32.gmra.mxu0 %v5281_v30  ;;  %5471 = vmatpush1.msra.mxu1 %v5388_v25  ;;  %v5369_v25 = vld [vmem:[#allocation2 + $0x28] sm:$0x1] }
 0x847   : > { %5472 = vmatprep.subr.mxu1 %v5387_v27  ;;  %v5444_v27 = vsel %vm809_vm1, %v5442_v21, %v5443_v26  ;;  %v5448_v30 = vrot.slane %v5369_v25, 1  ;;  %v5613_v21 = vld [vmem:[#allocation4 + $0x3d70] sm:$0xff]  ;;  %v5610_v25 = vld [vmem:[#allocation4 + $0x3d58] sm:$0xff] }
 0x848   : > { %5473 = vmatpush1.msra.mxu1 %v5386_v33  ;;  %v5451_v33 = vsel %vm809_vm1, %v5446_v55, %v5450_v20  ;;  %v5590_v55 = vld [vmem:[#allocation4 + $0x3cb8] sm:$0xff]  ;;  %v5611_v20 = vld [vmem:[#allocation4 + $0x3d60] sm:$0xff] }
 0x849   : > { %5474 = vmatprep.subr.mxu1 %v5385_v45  ;;  %v5449_v45 = vsel %vm809_vm1, %v5443_v26, %v5448_v30  ;;  %v5609_v26 = vld [vmem:[#allocation4 + $0x3d50] sm:$0xff]  ;;  %v5607_v30 = vld [vmem:[#allocation4 + $0x3d40] sm:$0xff] }
 0x84a   : > { %5475 = vmatpush1.msra.mxu1 %v5384_v36  ;;  %v5598_v36 = vld [vmem:[#allocation4 + $0x3cf8] sm:$0xff] }
 0x84b   : > { %5476 = vmatprep.subr.mxu1 %v5383_v41  ;;  %5644 = vmatprep.subr.mxu0 %v5598_v36  ;;  %v5597_v41 = vld [vmem:[#allocation4 + $0x3cf0] sm:$0xff]  ;;  %v5604_v36 = vld [vmem:[#allocation4 + $0x3d28] sm:$0xff] }
 0x84c   : > { %5477 = vmatpush1.msra.mxu1 %v5382_v39  ;;  %5645 = vmatpush1.msra.mxu0 %v5597_v41  ;;  %v5596_v39 = vld [vmem:[#allocation4 + $0x3ce8] sm:$0xff]  ;;  %v5603_v41 = vld [vmem:[#allocation4 + $0x3d20] sm:$0xff] }
 0x84d   : > { %5478 = vmatprep.subr.mxu1 %v5381_v9  ;;  %5646 = vmatprep.subr.mxu0 %v5596_v39  ;;  %v5594_v9 = vld [vmem:[#allocation4 + $0x3cd8] sm:$0xff] }
 0x84e   : > { %5479 = vmatpush1.msra.mxu1 %v5380_v49  ;;  %5647 = vmatpush1.msra.mxu0 %v5595_v3  ;;  %v5593_v49 = vld [vmem:[#allocation4 + $0x3cd0] sm:$0xff]  ;;  %v5602_v39 = vld [vmem:[#allocation4 + $0x3d18] sm:$0xff] }
 0x84f   : > { %5480 = vmatprep.subr.mxu1 %v5379_v6  ;;  %5648 = vmatprep.subr.mxu0 %v5594_v9  ;;  %v5592_v6 = vld [vmem:[#allocation4 + $0x3cc8] sm:$0xff]  ;;  %v5601_v3 = vld [vmem:[#allocation4 + $0x3d10] sm:$0xff] }
 0x850   : > { %5481 = vmatpush1.msra.mxu1 %v5378_v43  ;;  %5649 = vmatpush1.msra.mxu0 %v5593_v49  ;;  %v5589_v43 = vld [vmem:[#allocation4 + $0x3cb0] sm:$0xff]  ;;  %v5600_v9 = vld [vmem:[#allocation4 + $0x3d08] sm:$0xff]  ;;  %v5599_v49 = vld [vmem:[#allocation4 + $0x3d00] sm:$0xff] }
 0x851   : > { %5482 = vmatprep.subr.mxu1 %v5377_v31  ;;  %5650 = vmatprep.subr.mxu0 %v5592_v6  ;;  %v5588_v31 = vld [vmem:[#allocation4 + $0x3ca8] sm:$0xff]  ;;  %v5774_v6 = vld [vmem:[%s7217_s7 + $0xf8] sm:$0xff] }
 0x852   : > { %5483 = vmatpush1.msra.mxu1 %v5376_v48  ;;  %5651 = vmatpush1.msra.mxu0 %v5591_v13  ;;  %v5587_v48 = vld [vmem:[#allocation4 + $0x3ca0] sm:$0xff]  ;;  %v5758_v13 = vld [vmem:[%s7217_s7 + $0x78] sm:$0xff] }
 0x853   : > { %5484 = vmatprep.subr.mxu1 %v5375_v16  ;;  %5652 = vmatprep.subr.mxu0 %v5590_v55  ;;  %v5586_v16 = vld [vmem:[#allocation4 + $0x3c98] sm:$0xff]  ;;  %v5773_v55 = vld [vmem:[%s7217_s7 + $0xf0] sm:$0xff] }
 0x854   : > { %5485 = vmatpush1.msra.mxu1 %v5374_v34  ;;  %5653 = vmatpush1.msra.mxu0 %v5589_v43  ;;  %v5585_v34 = vld [vmem:[#allocation4 + $0x3c90] sm:$0xff] }
 0x855   : > { %5486 = vmatprep.subr.mxu1 %v5373_v50  ;;  %5654 = vmatprep.subr.mxu0 %v5588_v31  ;;  %v5584_v50 = vld [vmem:[#allocation4 + $0x3c88] sm:$0xff] }
 0x856   : > { %5487 = vmatpush1.msra.mxu1 %v5372_v47  ;;  %5655 = vmatpush1.msra.mxu0 %v5587_v48  ;;  %v5583_v47 = vld [vmem:[#allocation4 + $0x3c80] sm:$0xff]  ;;  %v5757_v43 = vld [vmem:[%s7217_s7 + $0x70] sm:$0xff] }
 0x857   : > { %5488 = vmatprep.subr.mxu1 %v5435_v51  ;;  %5656 = vmatprep.subr.mxu0 %v5586_v16  ;;  %v5582_v51 = vld [vmem:[#allocation4 + $0x3c78] sm:$0xff] }
 0x858   : > { %5489 = vmatpush2.msra.mxu1 %v5434_v52  ;;  %5657 = vmatpush1.msra.mxu0 %v5585_v34  ;;  %v5581_v52 = vld [vmem:[#allocation4 + $0x3c70] sm:$0xff] }
 0x859   : > { %5490 = vmatprep.subr.mxu1 %v5433_v54  ;;  %5658 = vmatprep.subr.mxu0 %v5584_v50  ;;  %v5580_v54 = vld [vmem:[#allocation4 + $0x3c68] sm:$0xff] }
 0x85a   : > { %5491 = vmatpush2.msra.mxu1 %v5432_v57  ;;  %5659 = vmatpush1.msra.mxu0 %v5583_v47  ;;  %v5579_v57 = vld [vmem:[#allocation4 + $0x3c60] sm:$0xff]  ;;  %v5538_v47 = vld [vmem:[#allocation6 + $0x10] ss:$8 sm:$0x3] }
 0x85b   : > { %5492 = vmatprep.subr.mxu1 %v5431_v58  ;;  %5660 = vmatprep.subr.mxu0 %v5582_v51  ;;  %v5578_v58 = vld [vmem:[#allocation4 + $0x3c58] sm:$0xff] }
 0x85c   : > { %5493 = vmatpush2.msra.mxu1 %v5430_v28  ;;  %5661 = vmatpush1.msra.mxu0 %v5581_v52  ;;  %v5577_v28 = vld [vmem:[#allocation4 + $0x3c50] sm:$0xff] }
 0x85d   : > { %5494 = vmatprep.subr.mxu1 %v5429_v23  ;;  %5662 = vmatprep.subr.mxu0 %v5580_v54  ;;  %v5576_v23 = vld [vmem:[#allocation4 + $0x3c48] sm:$0xff] }
 0x85e   : > { %5495 = vmatpush2.msra.mxu1 %v5428_v35  ;;  %5663 = vmatpush1.msra.mxu0 %v5579_v57  ;;  %v5575_v35 = vld [vmem:[#allocation4 + $0x3c40] sm:$0xff]  ;;  %v5543_v57 = vrot.slane %v5538_v47, %v6731_v56 }
 0x85f   : > { %5496 = vmatprep.subr.mxu1 %v5427_v60  ;;  %5664 = vmatprep.subr.mxu0 %v5578_v58  ;;  %v5574_v60 = vld [vmem:[#allocation4 + $0x3c38] sm:$0xff] }
 0x860   : > { %5497 = vmatpush2.msra.mxu1 %v5426_v61  ;;  %5665 = vmatpush1.msra.mxu0 %v5577_v28  ;;  %v5573_v61 = vld [vmem:[#allocation4 + $0x3c30] sm:$0xff] }
 0x861   : > { %5498 = vmatprep.subr.mxu1 %v5425_v62  ;;  %5666 = vmatprep.subr.mxu0 %v5576_v23  ;;  %v5572_v62 = vld [vmem:[#allocation4 + $0x3c28] sm:$0xff] }
 0x862   : > { %5499 = vmatpush2.msra.mxu1 %v5424_v0  ;;  %5667 = vmatpush1.msra.mxu0 %v5575_v35  ;;  %v5571_v0 = vld [vmem:[#allocation4 + $0x3c20] sm:$0xff]  ;;  %v5547_v35 = vrot.slane %v5538_v47, %v6733_v59  ;;  %v7149_v47 = vld [vmem:[#allocation2 + $0x30] sm:$0xff] }
 0x863   : > { %5500 = vmatprep.subr.mxu1 %v5423_v1  ;;  %5668 = vmatprep.subr.mxu0 %v5574_v60  ;;  %v5570_v1 = vld [vmem:[#allocation4 + $0x3c18] sm:$0xff] }
 0x864   : > { %5501 = vmatpush2.msra.mxu1 %v5422_v2  ;;  %5669 = vmatpush1.msra.mxu0 %v5573_v61  ;;  %v5569_v2 = vld [vmem:[#allocation4 + $0x3c10] sm:$0xff] }
 0x865   : > { %5502 = vmatprep.subr.mxu1 %v5421_v4  ;;  %5670 = vmatprep.subr.mxu0 %v5572_v62  ;;  %v5568_v4 = vld [vmem:[#allocation4 + $0x3c08] sm:$0xff] }
 0x866   : > { %5503 = vmatpush2.msra.mxu1 %v5420_v5  ;;  %5671 = vmatpush1.msra.mxu0 %v5571_v0  ;;  %v5567_v5 = vld [vmem:[#allocation4 + $0x3c00] sm:$0xff] }
 0x867   : > { %5504 = vmatprep.subr.mxu1 %v5419_v12  ;;  %5672 = vmatprep.subr.mxu0 %v5570_v1  ;;  %v5630_v12 = vld [vmem:[#allocation4 + $0x3df8] sm:$0xff] }
 0x868   : > { %5505 = vmatpush2.msra.mxu1 %v5418_v7  ;;  %5673 = vmatpush1.msra.mxu0 %v5569_v2  ;;  %v5629_v7 = vld [vmem:[#allocation4 + $0x3df0] sm:$0xff] }
 0x869   : > { %5506 = vmatprep.subr.mxu1 %v5417_v8  ;;  %5674 = vmatprep.subr.mxu0 %v5568_v4  ;;  %v5628_v8 = vld [vmem:[#allocation4 + $0x3de8] sm:$0xff] }
 0x86a   : > { %5507 = vmatpush2.msra.mxu1 %v5416_v37  ;;  %5675 = vmatpush1.msra.mxu0 %v5567_v5  ;;  %v5627_v37 = vld [vmem:[#allocation4 + $0x3de0] sm:$0xff] }
 0x86b   : > { %5508 = vmatprep.subr.mxu1 %v5415_v53  ;;  %5676 = vmatprep.subr.mxu0 %v5630_v12  ;;  %v5626_v53 = vld [vmem:[#allocation4 + $0x3dd8] sm:$0xff] }
 0x86c   : > { %5509 = vmatpush2.msra.mxu1 %v5414_v10  ;;  %5677 = vmatpush2.msra.mxu0 %v5629_v7  ;;  %v5625_v10 = vld [vmem:[#allocation4 + $0x3dd0] sm:$0xff] }
 0x86d   : > { %5510 = vmatprep.subr.mxu1 %v5413_v29  ;;  %5678 = vmatprep.subr.mxu0 %v5628_v8  ;;  %v5624_v29 = vld [vmem:[#allocation4 + $0x3dc8] sm:$0xff] }
 0x86e   : > { %5511 = vmatpush2.msra.mxu1 %v5412_v11  ;;  %5679 = vmatpush2.msra.mxu0 %v5627_v37  ;;  %v5623_v11 = vld [vmem:[#allocation4 + $0x3dc0] sm:$0xff] }
 0x86f   : > { %5512 = vmatprep.subr.mxu1 %v5411_v63  ;;  %5680 = vmatprep.subr.mxu0 %v5626_v53  ;;  %v5622_v63 = vld [vmem:[#allocation4 + $0x3db8] sm:$0xff] }
 0x870   : > { %5513 = vmatpush2.msra.mxu1 %v5410_v15  ;;  %5681 = vmatpush2.msra.mxu0 %v5625_v10  ;;  %v5621_v15 = vld [vmem:[#allocation4 + $0x3db0] sm:$0xff] }
 0x871   : > { %5514 = vmatprep.subr.mxu1 %v5409_v14  ;;  %5682 = vmatprep.subr.mxu0 %v5624_v29  ;;  %v5620_v14 = vld [vmem:[#allocation4 + $0x3da8] sm:$0xff] }
 0x872   : > { %5515 = vmatpush2.msra.mxu1 %v5408_v38  ;;  %5683 = vmatpush2.msra.mxu0 %v5623_v11  ;;  %v5619_v38 = vld [vmem:[#allocation4 + $0x3da0] sm:$0xff] }
 0x873   : > { %5516 = vmatprep.subr.mxu1 %v5407_v17  ;;  %5684 = vmatprep.subr.mxu0 %v5622_v63  ;;  %v5617_v17 = vld [vmem:[#allocation4 + $0x3d90] sm:$0xff] }
 0x874   : > { %5517 = vmatpush2.msra.mxu1 %v5406_v19  ;;  %5685 = vmatpush2.msra.mxu0 %v5621_v15  ;;  %v5615_v19 = vld [vmem:[#allocation4 + $0x3d80] sm:$0xff] }
 0x875   : > { %5518 = vmatprep.subr.mxu1 %v5405_v44  ;;  %5686 = vmatprep.subr.mxu0 %v5620_v14  ;;  %v5614_v44 = vld [vmem:[#allocation4 + $0x3d78] sm:$0xff] }
 0x876   : > { %5519 = vmatpush2.msra.mxu1 %v5404_v22  ;;  %5687 = vmatpush2.msra.mxu0 %v5619_v38  ;;  %v5612_v22 = vld [vmem:[#allocation4 + $0x3d68] sm:$0xff] }
 0x877   : > { %5521 = vmatmul.mubr.f32.vlgmr.msra.gmra.mxu1 %v5444_v27  ;;  %5688 = vmatprep.subr.mxu0 %v5618_v42  ;;  %v5608_v27 = vld [vmem:[#allocation4 + $0x3d48] sm:$0xff] }
 0x878   : > { %5526 = vmatprep.mubr.f32.mxu1 %v5451_v33  ;;  %5689 = vmatpush2.msra.mxu0 %v5617_v17  ;;  %v5606_v33 = vld [vmem:[#allocation4 + $0x3d38] sm:$0xff]  ;;  %v5772_v17 = vld [vmem:[%s7217_s7 + $0xe8] sm:$0xff] }
 0x879   : > { %5690 = vmatprep.subr.mxu0 %v5616_v18  ;;  %6238 = vmatprep.subr.mxu1 %v5774_v6  ;;  %v5756_v18 = vld [vmem:[%s7217_s7 + $0x68] sm:$0xff]  ;;  %v5747_v6 = vld [vmem:[%s7217_s7 + $0x20] sm:$0xff] }
 0x87a   : > { %5691 = vmatpush2.msra.mxu0 %v5615_v19  ;;  %6239 = vmatpush3.msra.mxu1 %v5758_v13  ;;  %v5771_v19 = vld [vmem:[%s7217_s7 + $0xe0] sm:$0xff]  ;;  %v5762_v13 = vld [vmem:[%s7217_s7 + $0x98] sm:$0xff] }
 0x87b   : > { %5527 = vmatmul.mubr.f32.gmra.mxu1 %v5449_v45  ;;  %5692 = vmatprep.subr.mxu0 %v5614_v44  ;;  %v5605_v45 = vld [vmem:[#allocation4 + $0x3d30] sm:$0xff]  ;;  %v5755_v44 = vld [vmem:[%s7217_s7 + $0x60] sm:$0xff] }
 0x87c   : > { %5693 = vmatpush2.msra.mxu0 %v5613_v21  ;;  %6240 = vmatprep.subr.mxu1 %v5773_v55  ;;  %v5770_v21 = vld [vmem:[%s7217_s7 + $0xd8] sm:$0xff] }
 0x87d   : > { %5694 = vmatprep.subr.mxu0 %v5612_v22  ;;  %6241 = vmatpush3.msra.mxu1 %v5757_v43  ;;  %v5754_v22 = vld [vmem:[%s7217_s7 + $0x58] sm:$0xff]  ;;  %v5761_v43 = vld [vmem:[%s7217_s7 + $0x90] sm:$0xff] }
 0x87e   : > { %5695 = vmatpush2.msra.mxu0 %v5611_v20  ;;  %6242 = vmatprep.subr.mxu1 %v5772_v17  ;;  %v5769_v20 = vld [vmem:[%s7217_s7 + $0xd0] sm:$0xff]  ;;  %v5746_v55 = vld [vmem:[%s7217_s7 + $0x18] sm:$0xff]  ;;  %v5846_v17 = vld [vmem:[%s7213_s3] sm:$0xff] }
 0x87f   : > { %5696 = vmatprep.subr.mxu0 %v5610_v25  ;;  %6243 = vmatpush3.msra.mxu1 %v5756_v18  ;;  %v5753_v25 = vld [vmem:[%s7217_s7 + $0x50] sm:$0xff] }
 0x880   : > { %5697 = vmatpush2.msra.mxu0 %v5609_v26  ;;  %6244 = vmatprep.subr.mxu1 %v5771_v19  ;;  %v5768_v26 = vld [vmem:[%s7217_s7 + $0xc8] sm:$0xff] }
 0x881   : > { %5698 = vmatprep.subr.mxu0 %v5608_v27  ;;  %6245 = vmatpush3.msra.mxu1 %v5755_v44  ;;  %v5752_v27 = vld [vmem:[%s7217_s7 + $0x48] sm:$0xff] }
 0x882   : > { %5699 = vmatpush2.msra.mxu0 %v5607_v30  ;;  %6246 = vmatprep.subr.mxu1 %v5770_v21  ;;  %v5767_v30 = vld [vmem:[%s7217_s7 + $0xc0] sm:$0xff] }
 0x883   : > { %5700 = vmatprep.subr.mxu0 %v5606_v33  ;;  %6247 = vmatpush3.msra.mxu1 %v5754_v22  ;;  %v5751_v33 = vld [vmem:[%s7217_s7 + $0x40] sm:$0xff] }
 0x884   : > { %5701 = vmatpush2.msra.mxu0 %v5605_v45  ;;  %6248 = vmatprep.subr.mxu1 %v5769_v20  ;;  %v5766_v45 = vld [vmem:[%s7217_s7 + $0xb8] sm:$0xff]  ;;  %v5926_v22 = vld [vmem:[#allocation8] sm:$0x1]  ;;  %v5848_v20 = vld [vmem:[#allocation3] sm:$0x1] }
 0x885   : > { %5702 = vmatprep.subr.mxu0 %v5604_v36  ;;  %6249 = vmatpush3.msra.mxu1 %v5753_v25  ;;  %v5750_v36 = vld [vmem:[%s7217_s7 + $0x38] sm:$0xff] }
 0x886   : > { %5703 = vmatpush2.msra.mxu0 %v5603_v41  ;;  %6250 = vmatprep.subr.mxu1 %v5768_v26  ;;  %v5765_v41 = vld [vmem:[%s7217_s7 + $0xb0] sm:$0xff] }
 0x887   : > { %5704 = vmatprep.subr.mxu0 %v5602_v39  ;;  %6251 = vmatpush3.msra.mxu1 %v5752_v27  ;;  %v5749_v39 = vld [vmem:[%s7217_s7 + $0x30] sm:$0xff] }
 0x888   : > { %5705 = vmatpush2.msra.mxu0 %v5601_v3  ;;  %6252 = vmatprep.subr.mxu1 %v5767_v30  ;;  %v5764_v3 = vld [vmem:[%s7217_s7 + $0xa8] sm:$0xff] }
 0x889   : > { %5706 = vmatprep.subr.mxu0 %v5600_v9  ;;  %6253 = vmatpush3.msra.mxu1 %v5751_v33  ;;  %v5748_v9 = vld [vmem:[%s7217_s7 + $0x28] sm:$0xff] }
 0x88a   : > { %5707 = vmatpush2.msra.mxu0 %v5599_v49  ;;  %6254 = vmatprep.subr.mxu1 %v5766_v45  ;;  %v5763_v49 = vld [vmem:[%s7217_s7 + $0xa0] sm:$0xff] }
 0x88b   : > { %6255 = vmatpush3.msra.mxu1 %v5750_v36  ;;  %v6014_v45 = vld [vmem:[#allocation11 + $0x18] sm:$0xff]  ;;  %v6013_v36 = vld [vmem:[#allocation11 + $0x10] sm:$0xff] }
 0x88c   : > { %6256 = vmatprep.subr.mxu1 %v5765_v41  ;;  %v6012_v41 = vld [vmem:[#allocation11 + $0x8] sm:$0xff] }
 0x88d   : > { %6257 = vmatpush3.msra.mxu1 %v5749_v39  ;;  %v6011_v39 = vld [vmem:[#allocation11] sm:$0xff] }
 0x88e   : > { %6258 = vmatprep.subr.mxu1 %v5764_v3  ;;  %v5927_v3 = vld [vmem:[#allocation9] sm:$0x1] }
 0x88f   : > { %6259 = vmatpush3.msra.mxu1 %v5748_v9 }
 0x890   : > { %6260 = vmatprep.subr.mxu1 %v5763_v49 }
 0x891   : > { %6261 = vmatpush3.msra.mxu1 %v5747_v6 }
 0x892   : > { %6262 = vmatprep.subr.mxu1 %v5762_v13 }
 0x893   : > { %6263 = vmatpush3.msra.mxu1 %v5746_v55 }
 0x894   : > { %6264 = vmatprep.subr.mxu1 %v5761_v43 }
 0x8f6   : > { %v5257_v31 = vpop.f32.mrf.mxu1 }
 0x8f8   : > { %v5259_v48 = vpop.f32.mrf.mxu1 }
 0x8f9   : > { %v5354_v16 = vpop.f32.mrf.mxu0 }
 0x8fa   : > { %v5355_v54 = vadd.f32 %v5354_v16, %v5257_v31  ;;  %v5745_v31 = vld [vmem:[%s7217_s7 + $0x10] sm:$0xff]  ;;  %v5744_v16 = vld [vmem:[%s7217_s7 + $0x8] sm:$0xff] }
 0x8fb   : > { %v5263_v34 = vpop.f32.mrf.mxu1  ;;  %v5356_v50 = vpop.f32.mrf.mxu0  ;;  %6265 = vmatpush3.msra.mxu1 %v5745_v31 }
 0x8fc   : > { %v5357_v28 = vadd.f32 %v5356_v50, %v5259_v48  ;;  %v5760_v48 = vld [vmem:[%s7217_s7 + $0x88] sm:$0xff]  ;;  %v5743_v50 = vld [vmem:[%s7217_s7] sm:$0xff] }
 0x8fd   : > { %v5265_v51 = vpop.f32.mrf.mxu1  ;;  %6266 = vmatprep.subr.mxu1 %v5760_v48 }
 0x8fe   : > { %6267 = vmatpush3.msra.mxu1 %v5744_v16 }
 0x906   : > { %v5360_v52 = vpop.f32.mrf.mxu0 }
 0x907   : > { %v5361_v62 = vadd.f32 %v5360_v52, %v5263_v34  ;;  %v5759_v34 = vld [vmem:[%s7217_s7 + $0x80] sm:$0xff] }
 0x908   : > { %v5362_v60 = vpop.f32.mrf.mxu0  ;;  %6268 = vmatprep.subr.mxu1 %v5759_v34 }
 0x909   : > { %v5363_v4 = vadd.f32 %v5362_v60, %v5265_v51  ;;  %6269 = vmatpush3.msra.mxu1 %v5743_v50  ;;  %v5632_v51 = vld [vmem:[#allocation6 + $0x11] ss:$8 sm:$0x3] }
 0x90a   : > { %6278 = vmatprep.subr.mxu1 %v7149_v47  ;;  %v5637_v52 = vrot.slane %v5632_v51, %v6731_v56 }
 0x937   : > { %v5522_v58 = vpop.f32.mrf.mxu1 }
 0x938   : > { %v5533_v23 = vadd.f32 %v5522_v58, %v5355_v54  ;;  %v5641_v54 = vrot.slane %v5632_v51, %v6733_v59 }
 0x939   : > { %v5524_v61 = vpop.f32.mrf.mxu1 }
 0x93a   : > { %v5550_v0 = vadd.f32 %v5543_v57, %v5533_v23  ;;  %v5534_v1 = vadd.f32 %v5524_v61, %v5357_v28 }
 0x93b   : > { %v5528_v2 = vpop.f32.mrf.mxu1 }
 0x93c   : > { %v5551_v5 = vadd.f32 %v5547_v35, %v5534_v1  ;;  %v5535_v12 = vadd.f32 %v5528_v2, %v5361_v62  ;;  %vm5554_vm1 = vcmp.ge.f32.partialorder %v5550_v0, 0.0  ;;  %v5558_v7 = vmul.f32 0.2, %v5550_v0 }
 0x93d   : > { %v5530_v8 = vpop.f32.mrf.mxu1 }
 0x93e   : > { %v5552_v37 = vadd.f32 %v5543_v57, %v5535_v12  ;;  %v5536_v53 = vadd.f32 %v5530_v8, %v5363_v4  ;;  %vm5555_vm7 = vcmp.ge.f32.partialorder %v5551_v5, 0.0  ;;  %v5559_v10 = vmul.f32 0.2, %v5551_v5 }
 0x93f   : > { %v5562_v63 = vsel %vm5554_vm1, %v5550_v0, %v5558_v7 }
 0x940   : > { %v5553_v29 = vadd.f32 %v5547_v35, %v5536_v53  ;;  %v5563_v11 = vsel %vm5555_vm7, %v5551_v5, %v5559_v10  ;;  %v5560_v15 = vmul.f32 0.2, %v5552_v37  ;;  %vm5556_vm9 = vcmp.ge.f32.partialorder %v5552_v37, 0.0 }
 0x941   : > { %5708 = vmatprep.mubr.f32.mxu0 %v5563_v11 }
 0x942   : > { %5709 = vmatmul.mubr.f32.vlgmr.msra.gmra.mxu0 %v5562_v63  ;;  %vm5557_vm8 = vcmp.ge.f32.partialorder %v5553_v29, 0.0  ;;  %v5561_v14 = vmul.f32 0.2, %v5553_v29  ;;  %v5564_v42 = vsel %vm5556_vm9, %v5552_v37, %v5560_v15 }
 0x944   : > { %v5565_v38 = vsel %vm5557_vm8, %v5553_v29, %v5561_v14 }
 0x945   : > { %5714 = vmatprep.mubr.f32.mxu0 %v5565_v38 }
 0x946   : > { %5715 = vmatmul.mubr.f32.gmra.mxu0 %v5564_v42  ;;  %v5847_v42 = vld [vmem:[%s7213_s3 + $0x8] sm:$0xff] }
 0xa02   : > { %v5710_v57 = vpop.f32.mrf.mxu0 }
 0xa03   : > { %v5711_v58 = vadd.f32 %v5710_v57, %v5637_v52 }
 0xa04   : > { %v5712_v28 = vpop.f32.mrf.mxu0 }
 0xa05   : > { %v5713_v23 = vadd.f32 %v5712_v28, %v5641_v54  ;;  %v7155_v60 = vadd.f32 %v5711_v58, %v6987_v24 }
 0xa06   : > { %v5716_v35 = vpop.f32.mrf.mxu0 }
 0xa07   : > { %v5717_v61 = vadd.f32 %v5716_v35, %v5637_v52  ;;  %v7158_v0 = vadd.f32 %v5713_v23, %v6991_v32  ;;  %v5725_v4 = vmax.f32 %v7155_v60, 0.0 }
 0xa08   : > { %v5718_v62 = vpop.f32.mrf.mxu0 }
 0xa09   : > { %v7161_v1 = vadd.f32 %v5717_v61, %v6995_v40  ;;  %v5719_v2 = vadd.f32 %v5718_v62, %v5641_v54  ;;  %v5726_v12 = vmax.f32 %v7158_v0, 0.0 }
 0xa0b   : > { %v5727_v59 = vmax.f32 %v7161_v1, 0.0  ;;  %v7166_v5 = vadd.f32 %v5719_v2, %v7003_v46 }
 0xa0d   : > { %v5729_v24 = vadd.f32 %v5727_v59, %v5725_v4  ;;  %v5728_v32 = vmax.f32 %v7166_v5, 0.0 }
 0xa0f   : > { %v5730_v7 = vrot.slane %v5729_v24, 4  ;;  %v5736_v40 = vadd.f32 %v5728_v32, %v5726_v12 }
 0xa11   : > { %v5731_v8 = vadd.f32 %v5730_v7, %v5729_v24  ;;  %v5737_v37 = vrot.slane %v5736_v40, 4 }
 0xa13   : > { %v5732_v53 = vrot.slane %v5731_v8, 2  ;;  %v5738_v46 = vadd.f32 %v5737_v37, %v5736_v40 }
 0xa15   : > { %v5733_v10 = vadd.f32 %v5732_v53, %v5731_v8  ;;  %v5739_v29 = vrot.slane %v5738_v46, 2 }
 0xa17   : > { %v5740_v11 = vadd.f32 %v5739_v29, %v5738_v46  ;;  %v5734_v63 = vrot.slane %v5733_v10, 1 }
 0xa19   : > { %v5741_v15 = vrot.slane %v5740_v11, 1  ;;  %v5735_v38 = vadd.f32 %v5734_v63, %v5733_v10 }
 0xa1b   : > { %v5742_v14 = vadd.f32 %v5741_v15, %v5740_v11 }
 0xa1d   : > { %5839 = vmatprep.mubr.f32.mxu1 %v5742_v14 }
 0xa1e   : > { %5840 = vmatmul.mubr.f32.vlgmr.msra.gmra.mxu1 %v5735_v38 }
 0xa1f   : > { %6279 = vmatpush3.msra.mxu1 %v5847_v42  ;;  %6282 = vmatprep.mubr.msk.f32.mxu1 %vm6518_vm10, %v7149_v47 }
 0xa20   : > { %6280 = vmatprep.subr.mxu1 %v7149_v47 }
 0xa21   : > { %6281 = vmatpush3.msra.mxu1 %v5846_v17 }
 0xa22   : > { %6285 = vmatprep.subr.mxu1 %v7149_v47 }
 0xade   : > { %v6270_v18 = vpop.f32.mrf.mxu1 }
 0xae0   : > { %v6271_v19 = vpop.f32.mrf.mxu1 }
 0xae1   : > { %v6272_v44 = vadd.f32 %v6271_v19, %v6270_v18 }
 0xae3   : > { %v5845_v21 = vmul.f32 0.00390625, %v6272_v44 }
 0xae5   : > { %6283 = vmatmul.mubr.msk.f32.vlgmr.msra.gmra.mxu1 %vm5849_vm11, %v5845_v21 }
 0xae6   : > { %6287 = vmatprep.mubr.msk.f32.mxu1 %vm6518_vm10, %v7149_v47  ;;  %6286 = vmatpush3.msk.msra.mxu1 %vm640_vm0, %v5926_v22 }
 0xae7   : > { %6046 = vmatprep.subr.mxu1 %v6014_v45 }
 0xba5   : > { %v5919_v25 = vpop.f32.mrf.mxu1 }
 0xba6   : > { %v5920_v26 = vadd.f32 %v5919_v25, %v5848_v20 }
 0xba7   : > { %v6284_v27 = vpop.f32.mrf.mxu1 }
 0xba8   : > { %vm5923_vm12 = vcmp.ge.f32.partialorder %v5920_v26, 0.0  ;;  %v5924_v30 = vmul.f32 0.2, %v5920_v26 }
 0xbaa   : > { %v5925_v33 = vsel %vm5923_vm12, %v5920_v26, %v5924_v30 }
 0xbab   : > { %6288 = vmatmul.mubr.msk.f32.vlgmr.msra.gmra.mxu1 %vm5928_vm13, %v5925_v33 }
 0xbac   : > { %6082 = vmatprep.mubr.f32.mxu1 %v7149_v47  ;;  %6047 = vmatpush1.msra.mxu1 %v6013_v36 }
 0xbad   : > { %6048 = vmatprep.subr.mxu1 %v6012_v41 }
 0xbae   : > { %6049 = vmatpush1.msra.mxu1 %v6011_v39 }
 0xc6b   : > { %v6001_v9 = vpop.f32.mrf.mxu1 }
 0xc6c   : > { %v6002_v49 = vadd.f32 %v6001_v9, %v5927_v3 }
 0xc6d   : > { %v6289_v6 = vpop.f32.mrf.mxu1 }
 0xc6e   : > { %v6232_v13 = vmul.f32 -1.442695, %v6002_v49 }
 0xc70   : > { %6353 = vpow2.f32 %v6232_v13 }
 0xc7d   : > { %v6354_v55 = vpop.eup %6353 }
 0xc7e   : > { %v6008_v43 = vadd.f32 1.0, %v6354_v55 }
 0xc80   : > { %6355 = vrcp.f32 %v6008_v43 }
 0xc8d   : > { %v6356_v31 = vpop.eup %6355 }
 0xc8e   : > { %6233 = vmatmul.mubr.msk.f32.vlgmr.msra.gmra.mxu1 %vm5849_vm11, %v6356_v31 }
 0xd4e   : > { %v6084_v48 = vpop.f32.mrf.mxu1 }
 0xd4f   : > { %v6092_v16 = vrot.slane %v6084_v48, %v6731_v56 }
 0xd50   : > { %v6086_v34 = vpop.f32.mrf.mxu1 }
 0xd51   : > { %v6097_v50 = vmul.f32 %v6092_v16, %v5725_v4  ;;  %v6099_v47 = vmul.f32 %v6092_v16, %v5727_v59  ;;  %v6096_v51 = vrot.slane %v6086_v34, %v6731_v56 }
 0xd53   : > { %6101 = vst [vmem:[%s403_s27] sm:$0xff] %v6097_v50  ;;  %6103 = vst [vmem:[%s403_s27 + $0x10] sm:$0xff] %v6099_v47  ;;  %v6098_v52 = vmul.f32 %v6096_v51, %v5726_v12  ;;  %v6100_v54 = vmul.f32 %v6096_v51, %v5728_v32 }
 0xd55   : > { %6102 = vst [vmem:[%s403_s27 + $0x8] sm:$0xff] %v6098_v52  ;;  %6104 = vst [vmem:[%s403_s27 + $0x18] sm:$0xff] %v6100_v54 }
 0xd56 PF: > { %s24_s11 = sadd.s32 1, %s6508_s11  }
 0xd57   : > { %p21_p3 = scmp.ge.s32.totalorder %s24_s11, 4  }
 0xd59   :  { %23 = sbr.rel (!%p21_p3) target bundleno = 6 (0x6), region = 146 }
 0xd5e   :  { %6126 = vsyncpa [#allocation5], 1 }
 0xd5f   :  { %6128 = vsyncpa [#allocation5 + $0x1], 1 }
 0xd60   :  { %6129 = vsyncpa [#allocation7], 1 }
 0xd61   :  { %6130 = vsyncpa [#allocation10], 1 }

</bundles_post_ra>
